<compile_context>
chip_gen: v6e
topology: v6e:2x2x1
jax: 0.10.0
libtpu: 0.0.40
codegen_flags: <defaults>
</compile_context>

<pallas_src>
import functools
import math

import jax
import jax.numpy as jnp
from jax.experimental import pallas as pl
from jax.experimental.pallas import tpu as pltpu

# ----------------------------- configuration -------------------------------
CFG = dict(
    image_size=16, patch_size=8, num_channels=3,
    vision_hidden=32, vision_heads=4, vision_layers=2, vision_intermediate=64,
    hidden=32, heads=4, layers=2, intermediate=64,
    vocab=64, max_position=64,
    vision_ln_eps=1e-5, text_ln_eps=1e-12,
)

NEG = -1.0e9      # single finite "blocked" additive-mask value
LANES = 128       # lane width of the packed weight slab


# --------------------------- weight slab packing -----------------------------
def _pack_params(params):
    """Pack every 2-D leaf into one (rows, 128) f32 slab (sublane-aligned rows).

    Returns (slab, spec_tree) where spec_tree mirrors `params` with
    (row_offset, rows, cols) tuples that the kernel uses for static ref slicing.
    """
    leaves, treedef = jax.tree_util.tree_flatten(params)
    specs, blocks, off = [], [], 0
    for leaf in leaves:
        r, c = leaf.shape
        assert c <= LANES, (r, c)
        ra = ((r + 7) // 8) * 8
        specs.append((off, r, c))
        blocks.append(jnp.pad(leaf.astype(jnp.float32),
                              ((0, ra - r), (0, LANES - c))))
        off += ra
    slab = jnp.concatenate(blocks, axis=0)            # [rows, 128], one DMA
    return slab, jax.tree_util.tree_unflatten(treedef, specs)


# --------------------------- in-kernel helpers ------------------------------
def _ln(x, g, b, eps):
    """Row-wise LayerNorm; g/b are (1, H) values."""
    mu = jnp.mean(x, axis=-1, keepdims=True)
    xc = x - mu
    var = jnp.mean(xc * xc, axis=-1, keepdims=True)
    return xc * jax.lax.rsqrt(var + eps) * g + b


def _stack(parts):
    return parts[0] if len(parts) == 1 else jnp.concatenate(parts, axis=0)


def _mha(x2, masks, ld, w, nh, n_tok, bc):
    """Fused-QKV multi-head attention on [bc*n_tok, H] rows (values only, no scratch).

    masks: list of [n_tok, n_tok] additive masks (one per batch element) or None.
    The per-head context is folded directly into the output projection so neither a
    head concat nor any VMEM staging is required.
    """
    H = x2.shape[-1]
    d = H // nh
    scale = 1.0 / math.sqrt(d)
    o_wo, _, c_wo = w["attn_out_w"]
    qkv = (jnp.dot(x2, ld(w["wqkv"]), preferred_element_type=jnp.float32)
           + ld(w["bqkv"]))                                      # [bc*n_tok, 3H]
    outs = []
    for b in range(bc):
        qkv_b = qkv[b * n_tok:(b + 1) * n_tok, :]
        acc = None
        for h in range(nh):
            q = qkv_b[:, h * d:(h + 1) * d]
            k = qkv_b[:, H + h * d:H + (h + 1) * d]
            v = qkv_b[:, 2 * H + h * d:2 * H + (h + 1) * d]
            s = jax.lax.dot_general(q, k, (((1,), (1,)), ((), ())),
                                    preferred_element_type=jnp.float32) * scale
            if masks is not None:
                s = s + masks[b]
            s = s - jnp.max(s, axis=-1, keepdims=True)
            p = jnp.exp(s)
            p = p * pl.reciprocal(jnp.sum(p, axis=-1, keepdims=True), approx=True)
            ctx_h = jnp.dot(p, v, preferred_element_type=jnp.float32)      # [n_tok, d]
            wo_h = ld((o_wo + h * d, d, c_wo))                             # [d, H] (8-row aligned)
            part = jnp.dot(ctx_h, wo_h, preferred_element_type=jnp.float32)
            acc = part if acc is None else acc + part
        outs.append(acc)
    return _stack(outs) + ld(w["attn_out_b"])


def _vision_layer(x2, masks, ld, w, nh, n_tok, bc, eps):
    """CLIP-style pre-LN encoder layer (quick-GELU MLP)."""
    h = _ln(x2, ld(w["ln1_g"]), ld(w["ln1_b"]), eps)
    x2 = x2 + _mha(h, masks, ld, w, nh, n_tok, bc)
    h = _ln(x2, ld(w["ln2_g"]), ld(w["ln2_b"]), eps)
    h = jnp.dot(h, ld(w["fc1_w"]), preferred_element_type=jnp.float32) + ld(w["fc1_b"])
    h = h * jax.nn.sigmoid(1.702 * h)          # quick_gelu
    h = jnp.dot(h, ld(w["fc2_w"]), preferred_element_type=jnp.float32) + ld(w["fc2_b"])
    return x2 + h


def _text_layer(x2, masks, ld, w, nh, n_tok, bc, eps):
    """BERT/GIT post-LN decoder layer."""
    a = _mha(x2, masks, ld, w, nh, n_tok, bc)
    x2 = _ln(a + x2, ld(w["attn_ln_g"]), ld(w["attn_ln_b"]), eps)
    h = jnp.dot(x2, ld(w["inter_w"]), preferred_element_type=jnp.float32) + ld(w["inter_b"])
    # TODO(synk): HF GIT uses exact erf-GELU; tanh approximation for guaranteed lowering.
    h = jax.nn.gelu(h, approximate=True)
    h = jnp.dot(h, ld(w["out_w"]), preferred_element_type=jnp.float32) + ld(w["out_b"])
    return _ln(h + x2, ld(w["out_ln_g"]), ld(w["out_ln_b"]), eps)


# ------------------------------ fused kernel --------------------------------
def _git_kernel(patches_ref, cap_ref, kbias_ref, slab_ref, out_ref, *, wspec, meta):
    bc = meta["Bc"]
    nv, nvp, t = meta["Nv"], meta["Nv_pad"], meta["T"]
    sp = nvp + t
    vocab = meta["vocab"]
    eps_v, eps_t = meta["vision_ln_eps"], meta["text_ln_eps"]

    def ld(spec, rows=None):
        o, r, c = spec
        rr = r if rows is None else rows
        return slab_ref[o:o + rr, 0:c]

    pv, pj, pt, po = wspec["vision"], wspec["visproj"], wspec["text"], wspec["output"]

    # ---- vision encoder (CLIP-style pre-LN ViT) over the whole batch chunk ----
    px = _stack([patches_ref[b] for b in range(bc)])                 # [bc*Nvp, Fp]
    x = jnp.dot(px, ld(pv["patch_cls_w"]), preferred_element_type=jnp.float32)
    pos_v = ld(pv["pos_emb"])                                        # [Nvp, Hv]
    x = x + _stack([pos_v] * bc)
    x = _ln(x, ld(pv["pre_ln_g"]), ld(pv["pre_ln_b"]), eps_v)

    # dummy image tokens (key index >= Nv) are masked out of every attention.
    kjv = jax.lax.broadcasted_iota(jnp.int32, (nvp, nvp), 1)
    vmask = jnp.where(kjv >= nv, NEG, 0.0)
    vmasks = [vmask] * bc
    for lw in pv["layers"]:
        x = _vision_layer(x, vmasks, ld, lw, meta["vision_heads"], nvp, bc, eps_v)
    x = _ln(x, ld(pv["post_ln_g"]), ld(pv["post_ln_b"]), eps_v)

    # ---- visual projection (Linear + LN) ----
    vfeat = jnp.dot(x, ld(pj["w"]), preferred_element_type=jnp.float32) + ld(pj["b"])
    vfeat = _ln(vfeat, ld(pj["ln_g"]), ld(pj["ln_b"]), eps_t)        # [bc*Nvp, H]

    # ---- text embeddings: one-hot gather as an MXU matmul ----
    # TODO(synk): at real vocab sizes replace the one-hot matmul with a row-gather DMA.
    cols = jax.lax.broadcasted_iota(jnp.int32, (t, vocab), 1)
    onehot = _stack([(cols == cap_ref[b]).astype(jnp.float32) for b in range(bc)])
    tok = jnp.dot(onehot, ld(pt["word_emb"]), preferred_element_type=jnp.float32)
    tok = tok + _stack([ld(pt["pos_emb"], rows=t)] * bc)
    emb = _ln(tok, ld(pt["emb_ln_g"]), ld(pt["emb_ln_b"]), eps_t)    # [bc*T, H]

    # ---- [image | text] sequence per element (all chunks are 8-row aligned) ----
    parts = []
    for b in range(bc):
        parts.append(vfeat[b * nvp:(b + 1) * nvp, :])
        parts.append(emb[b * t:(b + 1) * t, :])
    hseq = jnp.concatenate(parts, axis=0)                            # [bc*Sp, H]

    # ---- decoder mask: structure built in-kernel (iota) + per-key padding bias ----
    qi = jax.lax.broadcasted_iota(jnp.int32, (sp, sp), 0)
    kj = jax.lax.broadcasted_iota(jnp.int32, (sp, sp), 1)
    base = jnp.where(qi < nvp,
                     jnp.where(kj >= nvp, NEG, 0.0),   # image queries: image keys only
                     jnp.where(kj > qi, NEG, 0.0))     # text queries: causal over text
    base = base + jnp.where((kj >= nv) & (kj < nvp), NEG, 0.0)   # block dummy image keys
    kbias = kbias_ref[...]                                        # [bc, 1, Sp]
    masks = [base + kbias[b] for b in range(bc)]

    for lw in pt["layers"]:
        hseq = _text_layer(hseq, masks, ld, lw, meta["heads"], sp, bc, eps_t)

    # ---- LM head (vocab padded to a 128-lane slab -> unmasked stores) ----
    # NOTE: forward() returns logits[:, -20:, :]; with only 13 real tokens every real
    # row is needed, so the head is evaluated for the whole (padded) sequence.
    logits = jnp.dot(hseq, ld(po["w"]), preferred_element_type=jnp.float32) + ld(po["b"])
    for b in range(bc):
        out_ref[b] = logits[b * sp:(b + 1) * sp, :]


# ------------------------------ forward wrapper ------------------------------
def _num_grid_steps(batch):
    """1 fat step on single-TC chips (v5e/v6e); 2 'parallel' steps on dual-TC parts."""
    kind = ""
    try:
        kind = jax.devices()[0].device_kind.lower()
    except Exception:
        pass
    dual_tc = ("v4" in kind) or ("v7" in kind) or ("7x" in kind)
    return 2 if (dual_tc and batch % 2 == 0) else 1


def git_forward(params, patch_img, cap, att_mask, cap_len):
    """Mirror of GIT.forward(patch_img, cap, att_mask, cap_len) -> logits[:, -20:, :]."""
    del cap_len  # unused by the PyTorch forward as well
    B, C, Hi, Wi = patch_img.shape
    ps = CFG["patch_size"]
    V = CFG["vocab"]
    gh, gw = Hi // ps, Wi // ps
    P = gh * gw
    Nv = P + 1                                      # CLS + patches (real image tokens)
    Nvp = ((Nv + 7) // 8) * 8                       # sublane-padded image-token count
    T = cap.shape[1]
    Sp = Nvp + T                                    # padded sequence length
    F = C * ps * ps
    Fp = ((F + 1 + LANES - 1) // LANES) * LANES     # lane-dense patch contraction dim
    Vp = ((V + LANES - 1) // LANES) * LANES         # lane-dense logits slab
    f32 = jnp.float32

    # --- patchify + CLS indicator column; pad to (Nvp, Fp): conv == one matmul ---
    patches = patch_img.reshape(B, C, gh, ps, gw, ps).transpose(0, 2, 4, 1, 3, 5)
    patches = patches.reshape(B, P, F)
    patches = jnp.concatenate([patches, jnp.zeros((B, P, 1), f32)], axis=-1)
    cls_sel = jnp.concatenate([jnp.zeros((B, 1, F), f32), jnp.ones((B, 1, 1), f32)], axis=-1)
    patches_aug = jnp.concatenate([cls_sel, patches], axis=1)            # [B, Nv, F+1]
    patches_aug = jnp.pad(patches_aug, ((0, 0), (0, Nvp - Nv), (0, Fp - (F + 1))))

    cap_ids = cap.astype(jnp.int32).reshape(B, T, 1)

    # --- per-key padding bias only (mask structure is rebuilt in-kernel) ---
    pad_bias = (1.0 - att_mask.astype(f32)) * NEG                        # [B, T]
    key_bias = jnp.concatenate([jnp.zeros((B, Nvp), f32), pad_bias], axis=1)[:, None, :]

    # --- weight prep: pad LM head to Vp lanes, patch/pos weights to Fp/Nvp rows; pack ---
    p_call = dict(params)
    vis = dict(params["vision"])
    vis["patch_cls_w"] = jnp.pad(params["vision"]["patch_cls_w"],
                                 ((0, Fp - (F + 1)), (0, 0)))
    vis["pos_emb"] = jnp.pad(params["vision"]["pos_emb"], ((0, Nvp - Nv), (0, 0)))
    p_call["vision"] = vis
    p_call["output"] = dict(w=jnp.pad(params["output"]["w"], ((0, 0), (0, Vp - V))),
                            b=jnp.pad(params["output"]["b"], ((0, 0), (0, Vp - V))))
    slab, wspec = _pack_params(p_call)
    rows = slab.shape[0]

    steps = _num_grid_steps(B)
    Bc = B // steps

    meta = dict(CFG, Nv=Nv, Nv_pad=Nvp, T=T, Bc=Bc)
    kernel = functools.partial(_git_kernel, wspec=wspec, meta=meta)

    logits = pl.pallas_call(
        kernel,
        grid=(steps,),
        in_specs=[
            pl.BlockSpec((Bc, Nvp, Fp), lambda i: (i, 0, 0)),
            pl.BlockSpec((Bc, T, 1), lambda i: (i, 0, 0)),
            pl.BlockSpec((Bc, 1, Sp), lambda i: (i, 0, 0)),
            # Single packed weight slab, constant index map -> one DMA, VMEM-resident.
            # TODO(synk): pipeline_mode=pl.Buffered(1) would drop its double buffer.
            pl.BlockSpec((rows, LANES), lambda i: (0, 0)),
        ],
        out_specs=pl.BlockSpec((Bc, Sp, Vp), lambda i: (i, 0, 0)),
        out_shape=jax.ShapeDtypeStruct((B, Sp, Vp), f32),
        compiler_params=pltpu.CompilerParams(
            dimension_semantics=("parallel",)),      # splits batch chunks across TCs
    )(patches_aug, cap_ids, key_bias, slab)

    # drop the dummy image-token rows and the lane padding, then the last 20 tokens
    logits = jnp.concatenate([logits[:, :Nv, :], logits[:, Nvp:, :]], axis=1)
    return logits[:, -20:, :V]


# ------------------------------ parameter init ------------------------------
def init_params(key):
    keys = iter(jax.random.split(key, 256))

    def nrm(shape):
        return jax.random.normal(next(keys), shape, jnp.float32) * 0.02

    def zeros(*shape):
        return jnp.zeros(shape, jnp.float32)

    def ones(*shape):
        return jnp.ones(shape, jnp.float32)

    Hv, H = CFG["vision_hidden"], CFG["hidden"]
    Iv, It = CFG["vision_intermediate"], CFG["intermediate"]
    ps, C = CFG["patch_size"], CFG["num_channels"]
    F = C * ps * ps
    Nv = (CFG["image_size"] // ps) ** 2 + 1

    def vis_layer():
        return dict(
            ln1_g=ones(1, Hv), ln1_b=zeros(1, Hv),
            wqkv=nrm((Hv, 3 * Hv)), bqkv=zeros(1, 3 * Hv),
            attn_out_w=nrm((Hv, Hv)), attn_out_b=zeros(1, Hv),
            ln2_g=ones(1, Hv), ln2_b=zeros(1, Hv),
            fc1_w=nrm((Hv, Iv)), fc1_b=zeros(1, Iv),
            fc2_w=nrm((Iv, Hv)), fc2_b=zeros(1, Hv))

    def txt_layer():
        return dict(
            wqkv=nrm((H, 3 * H)), bqkv=zeros(1, 3 * H),
            attn_out_w=nrm((H, H)), attn_out_b=zeros(1, H),
            attn_ln_g=ones(1, H), attn_ln_b=zeros(1, H),
            inter_w=nrm((H, It)), inter_b=zeros(1, It),
            out_w=nrm((It, H)), out_b=zeros(1, H),
            out_ln_g=ones(1, H), out_ln_b=zeros(1, H))

    return dict(
        vision=dict(
            patch_cls_w=nrm((F + 1, Hv)),       # rows 0..F-1: patch "conv"; row F: CLS token
            pos_emb=nrm((Nv, Hv)),
            pre_ln_g=ones(1, Hv), pre_ln_b=zeros(1, Hv),
            post_ln_g=ones(1, Hv), post_ln_b=zeros(1, Hv),
            layers=[vis_layer() for _ in range(CFG["vision_layers"])]),
        visproj=dict(w=nrm((Hv, H)), b=zeros(1, H), ln_g=ones(1, H), ln_b=zeros(1, H)),
        text=dict(
            word_emb=nrm((CFG["vocab"], H)),
            pos_emb=nrm((CFG["max_position"], H)),
            emb_ln_g=ones(1, H), emb_ln_b=zeros(1, H),
            layers=[txt_layer() for _ in range(CFG["layers"])]),
        output=dict(w=nrm((H, CFG["vocab"])), b=zeros(1, CFG["vocab"])),
    )


# ---------------------------------- main ------------------------------------
if __name__ == "__main__":
    root = jax.random.PRNGKey(0)
    k_params, k_img, k_cap = jax.random.split(root, 3)

    params = init_params(k_params)

    B, T = 2, 8
    patch_img = jax.random.normal(
        k_img, (B, CFG["num_channels"], CFG["image_size"], CFG["image_size"]), jnp.float32)
    cap = jax.random.randint(k_cap, (B, T), 0, CFG["vocab"], dtype=jnp.int32)
    att_mask = jnp.ones((B, T), jnp.int32)
    cap_len = jnp.full((B,), T, jnp.int32)

    fwd = jax.jit(git_forward)
    logits = jax.block_until_ready(fwd(params, patch_img, cap, att_mask, cap_len))

    n_img_tokens = (CFG["image_size"] // CFG["patch_size"]) ** 2 + 1
    S = n_img_tokens + T
    expected = (B, min(20, S), CFG["vocab"])
    assert logits.shape == expected, (logits.shape, expected)
    assert bool(jnp.all(jnp.isfinite(logits)))
    print("KERNEL_OK")
</pallas_src>

<mosaic_0001>
module attributes {stable_mosaic.version = 11 : i64} {
  func.func @_git_kernel(%arg0: i32, %arg1: memref<2x8x256xf32, #tpu.memory_space<vmem>>, %arg2: memref<2x8x1xi32, #tpu.memory_space<vmem>>, %arg3: memref<2x1x16xf32, #tpu.memory_space<vmem>>, %arg4: memref<1432x128xf32, #tpu.memory_space<vmem>>, %arg5: memref<2x16x128xf32, #tpu.memory_space<vmem>>) attributes {dimension_semantics = [#tpu.dimension_semantics<parallel>], iteration_bounds = array<i64: 1>, scalar_prefetch = 0 : i64, scratch_operands = 0 : i64, tpu.core_type = #tpu.core_type<tc>, window_params = [{transform_indices = @transform_0, window_bounds = array<i64: 2, 8, 256>}, {transform_indices = @transform_1, window_bounds = array<i64: 2, 8, 1>}, {transform_indices = @transform_2, window_bounds = array<i64: 2, 1, 16>}, {pipeline_mode = #tpu.pipeline_mode<synchronous>, transform_indices = @transform_3, window_bounds = array<i64: 1432, 128>}, {transform_indices = @transform_4, window_bounds = array<i64: 2, 16, 128>}]} {
    %c0 = arith.constant 0 : index
    %c0_0 = arith.constant 0 : index
    %c0_1 = arith.constant 0 : index
    %0 = vector.load %arg1[%c0, %c0_0, %c0_1] : memref<2x8x256xf32, #tpu.memory_space<vmem>>, vector<1x8x256xf32>
    %1 = vector.shape_cast %0 : vector<1x8x256xf32> to vector<8x256xf32>
    %c1 = arith.constant 1 : index
    %c0_2 = arith.constant 0 : index
    %c0_3 = arith.constant 0 : index
    %2 = vector.load %arg1[%c1, %c0_2, %c0_3] : memref<2x8x256xf32, #tpu.memory_space<vmem>>, vector<1x8x256xf32>
    %3 = vector.shape_cast %2 : vector<1x8x256xf32> to vector<8x256xf32>
    %4 = tpu.concatenate %1, %3 in 0 : vector<8x256xf32>, vector<8x256xf32> -> vector<16x256xf32>
    %c1080 = arith.constant 1080 : index
    %c0_4 = arith.constant 0 : index
    %5 = vector.load %arg4[%c1080, %c0_4] : memref<1432x128xf32, #tpu.memory_space<vmem>>, vector<256x32xf32>
    %cst = arith.constant dense<0.000000e+00> : vector<16x32xf32>
    %6 = tpu.matmul %4, %5, %cst {dimension_numbers = #tpu.dot_dimension_numbers<[1], [0], [0], [1], [0, 0, 1, 1], [], []>} : vector<16x256xf32>, vector<256x32xf32>, vector<16x32xf32> -> vector<16x32xf32>
    %c1336 = arith.constant 1336 : index
    %c0_5 = arith.constant 0 : index
    %7 = vector.load %arg4[%c1336, %c0_5] : memref<1432x128xf32, #tpu.memory_space<vmem>>, vector<8x32xf32>
    %8 = tpu.concatenate %7, %7 in 0 : vector<8x32xf32>, vector<8x32xf32> -> vector<16x32xf32>
    %9 = arith.addf %6, %8 : vector<16x32xf32>
    %c1368 = arith.constant 1368 : index
    %c0_6 = arith.constant 0 : index
    %10 = vector.load %arg4[%c1368, %c0_6] : memref<1432x128xf32, #tpu.memory_space<vmem>>, vector<1x32xf32>
    %c1360 = arith.constant 1360 : index
    %c0_7 = arith.constant 0 : index
    %11 = vector.load %arg4[%c1360, %c0_7] : memref<1432x128xf32, #tpu.memory_space<vmem>>, vector<1x32xf32>
    %cst_8 = arith.constant dense<0.000000e+00> : vector<16xf32>
    %12 = vector.multi_reduction <add>, %9, %cst_8 [1] : vector<16x32xf32> to vector<16xf32>
    %13 = vector.shape_cast %12 : vector<16xf32> to vector<16x1xf32>
    %cst_9 = arith.constant 3.200000e+01 : f32
    %14 = vector.broadcast %cst_9 : f32 to vector<16x1xf32>
    %15 = arith.divf %13, %14 : vector<16x1xf32>
    %16 = vector.broadcast %15 : vector<16x1xf32> to vector<16x32xf32>
    %17 = arith.subf %9, %16 : vector<16x32xf32>
    %18 = arith.mulf %17, %17 : vector<16x32xf32>
    %cst_10 = arith.constant dense<0.000000e+00> : vector<16xf32>
    %19 = vector.multi_reduction <add>, %18, %cst_10 [1] : vector<16x32xf32> to vector<16xf32>
    %20 = vector.shape_cast %19 : vector<16xf32> to vector<16x1xf32>
    %cst_11 = arith.constant 3.200000e+01 : f32
    %21 = vector.broadcast %cst_11 : f32 to vector<16x1xf32>
    %22 = arith.divf %20, %21 : vector<16x1xf32>
    %cst_12 = arith.constant 9.99999974E-6 : f32
    %23 = vector.broadcast %cst_12 : f32 to vector<16x1xf32>
    %24 = arith.addf %22, %23 : vector<16x1xf32>
    %25 = math.rsqrt %24 : vector<16x1xf32>
    %26 = vector.broadcast %25 : vector<16x1xf32> to vector<16x32xf32>
    %27 = arith.mulf %17, %26 : vector<16x32xf32>
    %28 = vector.broadcast %10 : vector<1x32xf32> to vector<16x32xf32>
    %29 = arith.mulf %27, %28 : vector<16x32xf32>
    %30 = vector.broadcast %11 : vector<1x32xf32> to vector<16x32xf32>
    %31 = arith.addf %29, %30 : vector<16x32xf32>
    %32 = tpu.iota {dimensions = array<i32: 1>} : vector<8x8xi32>
    %c5_i32 = arith.constant 5 : i32
    %33 = vector.broadcast %c5_i32 : i32 to vector<8x8xi32>
    %34 = arith.cmpi sge, %32, %33 : vector<8x8xi32>
    %cst_13 = arith.constant -1.000000e+09 : f32
    %cst_14 = arith.constant 0.000000e+00 : f32
    %35 = vector.broadcast %cst_13 : f32 to vector<8x8xf32>
    %36 = vector.broadcast %cst_14 : f32 to vector<8x8xf32>
    %37 = arith.select %34, %35, %36 : vector<8x8xi1>, vector<8x8xf32>
    %c800 = arith.constant 800 : index
    %c0_15 = arith.constant 0 : index
    %38 = vector.load %arg4[%c800, %c0_15] : memref<1432x128xf32, #tpu.memory_space<vmem>>, vector<1x32xf32>
    %c792 = arith.constant 792 : index
    %c0_16 = arith.constant 0 : index
    %39 = vector.load %arg4[%c792, %c0_16] : memref<1432x128xf32, #tpu.memory_space<vmem>>, vector<1x32xf32>
    %cst_17 = arith.constant dense<0.000000e+00> : vector<16xf32>
    %40 = vector.multi_reduction <add>, %31, %cst_17 [1] : vector<16x32xf32> to vector<16xf32>
    %41 = vector.shape_cast %40 : vector<16xf32> to vector<16x1xf32>
    %cst_18 = arith.constant 3.200000e+01 : f32
    %42 = vector.broadcast %cst_18 : f32 to vector<16x1xf32>
    %43 = arith.divf %41, %42 : vector<16x1xf32>
    %44 = vector.broadcast %43 : vector<16x1xf32> to vector<16x32xf32>
    %45 = arith.subf %31, %44 : vector<16x32xf32>
    %46 = arith.mulf %45, %45 : vector<16x32xf32>
    %cst_19 = arith.constant dense<0.000000e+00> : vector<16xf32>
    %47 = vector.multi_reduction <add>, %46, %cst_19 [1] : vector<16x32xf32> to vector<16xf32>
    %48 = vector.shape_cast %47 : vector<16xf32> to vector<16x1xf32>
    %cst_20 = arith.constant 3.200000e+01 : f32
    %49 = vector.broadcast %cst_20 : f32 to vector<16x1xf32>
    %50 = arith.divf %48, %49 : vector<16x1xf32>
    %cst_21 = arith.constant 9.99999974E-6 : f32
    %51 = vector.broadcast %cst_21 : f32 to vector<16x1xf32>
    %52 = arith.addf %50, %51 : vector<16x1xf32>
    %53 = math.rsqrt %52 : vector<16x1xf32>
    %54 = vector.broadcast %53 : vector<16x1xf32> to vector<16x32xf32>
    %55 = arith.mulf %45, %54 : vector<16x32xf32>
    %56 = vector.broadcast %38 : vector<1x32xf32> to vector<16x32xf32>
    %57 = arith.mulf %55, %56 : vector<16x32xf32>
    %58 = vector.broadcast %39 : vector<1x32xf32> to vector<16x32xf32>
    %59 = arith.addf %57, %58 : vector<16x32xf32>
    %c824 = arith.constant 824 : index
    %c0_22 = arith.constant 0 : index
    %60 = vector.load %arg4[%c824, %c0_22] : memref<1432x128xf32, #tpu.memory_space<vmem>>, vector<32x96xf32>
    %cst_23 = arith.constant dense<0.000000e+00> : vector<16x96xf32>
    %61 = tpu.matmul %59, %60, %cst_23 {dimension_numbers = #tpu.dot_dimension_numbers<[1], [0], [0], [1], [0, 0, 1, 1], [], []>} : vector<16x32xf32>, vector<32x96xf32>, vector<16x96xf32> -> vector<16x96xf32>
    %c672 = arith.constant 672 : index
    %c0_24 = arith.constant 0 : index
    %62 = vector.load %arg4[%c672, %c0_24] : memref<1432x128xf32, #tpu.memory_space<vmem>>, vector<1x96xf32>
    %63 = vector.broadcast %62 : vector<1x96xf32> to vector<16x96xf32>
    %64 = arith.addf %61, %63 : vector<16x96xf32>
    %65 = vector.extract_strided_slice %64 {offsets = [0, 0], sizes = [8, 96], strides = [1, 1]} : vector<16x96xf32> to vector<8x96xf32>
    %66 = vector.extract_strided_slice %65 {offsets = [0, 0], sizes = [8, 8], strides = [1, 1]} : vector<8x96xf32> to vector<8x8xf32>
    %67 = vector.extract_strided_slice %65 {offsets = [0, 32], sizes = [8, 8], strides = [1, 1]} : vector<8x96xf32> to vector<8x8xf32>
    %68 = vector.extract_strided_slice %65 {offsets = [0, 64], sizes = [8, 8], strides = [1, 1]} : vector<8x96xf32> to vector<8x8xf32>
    %cst_25 = arith.constant dense<0.000000e+00> : vector<8x8xf32>
    %69 = tpu.matmul %66, %67, %cst_25 {dimension_numbers = #tpu.dot_dimension_numbers<[1], [1], [0], [0], [0, 0, 1, 0], [], []>} : vector<8x8xf32>, vector<8x8xf32>, vector<8x8xf32> -> vector<8x8xf32>
    %cst_26 = arith.constant 0.353553385 : f32
    %70 = vector.broadcast %cst_26 : f32 to vector<8x8xf32>
    %71 = arith.mulf %69, %70 : vector<8x8xf32>
    %72 = arith.addf %71, %37 : vector<8x8xf32>
    %cst_27 = arith.constant dense<0xFF800000> : vector<8xf32>
    %73 = vector.multi_reduction <maximumf>, %72, %cst_27 [1] : vector<8x8xf32> to vector<8xf32>
    %74 = vector.shape_cast %73 : vector<8xf32> to vector<8x1xf32>
    %75 = vector.broadcast %74 : vector<8x1xf32> to vector<8x8xf32>
    %76 = arith.subf %72, %75 : vector<8x8xf32>
    %77 = math.exp %76 : vector<8x8xf32>
    %cst_28 = arith.constant dense<0.000000e+00> : vector<8xf32>
    %78 = vector.multi_reduction <add>, %77, %cst_28 [1] : vector<8x8xf32> to vector<8xf32>
    %79 = vector.shape_cast %78 : vector<8xf32> to vector<8x1xf32>
    %80 = tpu.reciprocal %79 {approx = true} : vector<8x1xf32> -> vector<8x1xf32>
    %81 = vector.broadcast %80 : vector<8x1xf32> to vector<8x8xf32>
    %82 = arith.mulf %77, %81 : vector<8x8xf32>
    %cst_29 = arith.constant dense<0.000000e+00> : vector<8x8xf32>
    %83 = tpu.matmul %82, %68, %cst_29 {dimension_numbers = #tpu.dot_dimension_numbers<[1], [0], [0], [1], [0, 0, 1, 1], [], []>} : vector<8x8xf32>, vector<8x8xf32>, vector<8x8xf32> -> vector<8x8xf32>
    %c640 = arith.constant 640 : index
    %c0_30 = arith.constant 0 : index
    %84 = vector.load %arg4[%c640, %c0_30] : memref<1432x128xf32, #tpu.memory_space<vmem>>, vector<8x32xf32>
    %cst_31 = arith.constant dense<0.000000e+00> : vector<8x32xf32>
    %85 = tpu.matmul %83, %84, %cst_31 {dimension_numbers = #tpu.dot_dimension_numbers<[1], [0], [0], [1], [0, 0, 1, 1], [], []>} : vector<8x8xf32>, vector<8x32xf32>, vector<8x32xf32> -> vector<8x32xf32>
    %86 = vector.extract_strided_slice %65 {offsets = [0, 8], sizes = [8, 8], strides = [1, 1]} : vector<8x96xf32> to vector<8x8xf32>
    %87 = vector.extract_strided_slice %65 {offsets = [0, 40], sizes = [8, 8], strides = [1, 1]} : vector<8x96xf32> to vector<8x8xf32>
    %88 = vector.extract_strided_slice %65 {offsets = [0, 72], sizes = [8, 8], strides = [1, 1]} : vector<8x96xf32> to vector<8x8xf32>
    %cst_32 = arith.constant dense<0.000000e+00> : vector<8x8xf32>
    %89 = tpu.matmul %86, %87, %cst_32 {dimension_numbers = #tpu.dot_dimension_numbers<[1], [1], [0], [0], [0, 0, 1, 0], [], []>} : vector<8x8xf32>, vector<8x8xf32>, vector<8x8xf32> -> vector<8x8xf32>
    %cst_33 = arith.constant 0.353553385 : f32
    %90 = vector.broadcast %cst_33 : f32 to vector<8x8xf32>
    %91 = arith.mulf %89, %90 : vector<8x8xf32>
    %92 = arith.addf %91, %37 : vector<8x8xf32>
    %cst_34 = arith.constant dense<0xFF800000> : vector<8xf32>
    %93 = vector.multi_reduction <maximumf>, %92, %cst_34 [1] : vector<8x8xf32> to vector<8xf32>
    %94 = vector.shape_cast %93 : vector<8xf32> to vector<8x1xf32>
    %95 = vector.broadcast %94 : vector<8x1xf32> to vector<8x8xf32>
    %96 = arith.subf %92, %95 : vector<8x8xf32>
    %97 = math.exp %96 : vector<8x8xf32>
    %cst_35 = arith.constant dense<0.000000e+00> : vector<8xf32>
    %98 = vector.multi_reduction <add>, %97, %cst_35 [1] : vector<8x8xf32> to vector<8xf32>
    %99 = vector.shape_cast %98 : vector<8xf32> to vector<8x1xf32>
    %100 = tpu.reciprocal %99 {approx = true} : vector<8x1xf32> -> vector<8x1xf32>
    %101 = vector.broadcast %100 : vector<8x1xf32> to vector<8x8xf32>
    %102 = arith.mulf %97, %101 : vector<8x8xf32>
    %cst_36 = arith.constant dense<0.000000e+00> : vector<8x8xf32>
    %103 = tpu.matmul %102, %88, %cst_36 {dimension_numbers = #tpu.dot_dimension_numbers<[1], [0], [0], [1], [0, 0, 1, 1], [], []>} : vector<8x8xf32>, vector<8x8xf32>, vector<8x8xf32> -> vector<8x8xf32>
    %c648 = arith.constant 648 : index
    %c0_37 = arith.constant 0 : index
    %104 = vector.load %arg4[%c648, %c0_37] : memref<1432x128xf32, #tpu.memory_space<vmem>>, vector<8x32xf32>
    %cst_38 = arith.constant dense<0.000000e+00> : vector<8x32xf32>
    %105 = tpu.matmul %103, %104, %cst_38 {dimension_numbers = #tpu.dot_dimension_numbers<[1], [0], [0], [1], [0, 0, 1, 1], [], []>} : vector<8x8xf32>, vector<8x32xf32>, vector<8x32xf32> -> vector<8x32xf32>
    %106 = arith.addf %85, %105 : vector<8x32xf32>
    %107 = vector.extract_strided_slice %65 {offsets = [0, 16], sizes = [8, 8], strides = [1, 1]} : vector<8x96xf32> to vector<8x8xf32>
    %108 = vector.extract_strided_slice %65 {offsets = [0, 48], sizes = [8, 8], strides = [1, 1]} : vector<8x96xf32> to vector<8x8xf32>
    %109 = vector.extract_strided_slice %65 {offsets = [0, 80], sizes = [8, 8], strides = [1, 1]} : vector<8x96xf32> to vector<8x8xf32>
    %cst_39 = arith.constant dense<0.000000e+00> : vector<8x8xf32>
    %110 = tpu.matmul %107, %108, %cst_39 {dimension_numbers = #tpu.dot_dimension_numbers<[1], [1], [0], [0], [0, 0, 1, 0], [], []>} : vector<8x8xf32>, vector<8x8xf32>, vector<8x8xf32> -> vector<8x8xf32>
    %cst_40 = arith.constant 0.353553385 : f32
    %111 = vector.broadcast %cst_40 : f32 to vector<8x8xf32>
    %112 = arith.mulf %110, %111 : vector<8x8xf32>
    %113 = arith.addf %112, %37 : vector<8x8xf32>
    %cst_41 = arith.constant dense<0xFF800000> : vector<8xf32>
    %114 = vector.multi_reduction <maximumf>, %113, %cst_41 [1] : vector<8x8xf32> to vector<8xf32>
    %115 = vector.shape_cast %114 : vector<8xf32> to vector<8x1xf32>
    %116 = vector.broadcast %115 : vector<8x1xf32> to vector<8x8xf32>
    %117 = arith.subf %113, %116 : vector<8x8xf32>
    %118 = math.exp %117 : vector<8x8xf32>
    %cst_42 = arith.constant dense<0.000000e+00> : vector<8xf32>
    %119 = vector.multi_reduction <add>, %118, %cst_42 [1] : vector<8x8xf32> to vector<8xf32>
    %120 = vector.shape_cast %119 : vector<8xf32> to vector<8x1xf32>
    %121 = tpu.reciprocal %120 {approx = true} : vector<8x1xf32> -> vector<8x1xf32>
    %122 = vector.broadcast %121 : vector<8x1xf32> to vector<8x8xf32>
    %123 = arith.mulf %118, %122 : vector<8x8xf32>
    %cst_43 = arith.constant dense<0.000000e+00> : vector<8x8xf32>
    %124 = tpu.matmul %123, %109, %cst_43 {dimension_numbers = #tpu.dot_dimension_numbers<[1], [0], [0], [1], [0, 0, 1, 1], [], []>} : vector<8x8xf32>, vector<8x8xf32>, vector<8x8xf32> -> vector<8x8xf32>
    %c656 = arith.constant 656 : index
    %c0_44 = arith.constant 0 : index
    %125 = vector.load %arg4[%c656, %c0_44] : memref<1432x128xf32, #tpu.memory_space<vmem>>, vector<8x32xf32>
    %cst_45 = arith.constant dense<0.000000e+00> : vector<8x32xf32>
    %126 = tpu.matmul %124, %125, %cst_45 {dimension_numbers = #tpu.dot_dimension_numbers<[1], [0], [0], [1], [0, 0, 1, 1], [], []>} : vector<8x8xf32>, vector<8x32xf32>, vector<8x32xf32> -> vector<8x32xf32>
    %127 = arith.addf %106, %126 : vector<8x32xf32>
    %128 = vector.extract_strided_slice %65 {offsets = [0, 24], sizes = [8, 8], strides = [1, 1]} : vector<8x96xf32> to vector<8x8xf32>
    %129 = vector.extract_strided_slice %65 {offsets = [0, 56], sizes = [8, 8], strides = [1, 1]} : vector<8x96xf32> to vector<8x8xf32>
    %130 = vector.extract_strided_slice %65 {offsets = [0, 88], sizes = [8, 8], strides = [1, 1]} : vector<8x96xf32> to vector<8x8xf32>
    %cst_46 = arith.constant dense<0.000000e+00> : vector<8x8xf32>
    %131 = tpu.matmul %128, %129, %cst_46 {dimension_numbers = #tpu.dot_dimension_numbers<[1], [1], [0], [0], [0, 0, 1, 0], [], []>} : vector<8x8xf32>, vector<8x8xf32>, vector<8x8xf32> -> vector<8x8xf32>
    %cst_47 = arith.constant 0.353553385 : f32
    %132 = vector.broadcast %cst_47 : f32 to vector<8x8xf32>
    %133 = arith.mulf %131, %132 : vector<8x8xf32>
    %134 = arith.addf %133, %37 : vector<8x8xf32>
    %cst_48 = arith.constant dense<0xFF800000> : vector<8xf32>
    %135 = vector.multi_reduction <maximumf>, %134, %cst_48 [1] : vector<8x8xf32> to vector<8xf32>
    %136 = vector.shape_cast %135 : vector<8xf32> to vector<8x1xf32>
    %137 = vector.broadcast %136 : vector<8x1xf32> to vector<8x8xf32>
    %138 = arith.subf %134, %137 : vector<8x8xf32>
    %139 = math.exp %138 : vector<8x8xf32>
    %cst_49 = arith.constant dense<0.000000e+00> : vector<8xf32>
    %140 = vector.multi_reduction <add>, %139, %cst_49 [1] : vector<8x8xf32> to vector<8xf32>
    %141 = vector.shape_cast %140 : vector<8xf32> to vector<8x1xf32>
    %142 = tpu.reciprocal %141 {approx = true} : vector<8x1xf32> -> vector<8x1xf32>
    %143 = vector.broadcast %142 : vector<8x1xf32> to vector<8x8xf32>
    %144 = arith.mulf %139, %143 : vector<8x8xf32>
    %cst_50 = arith.constant dense<0.000000e+00> : vector<8x8xf32>
    %145 = tpu.matmul %144, %130, %cst_50 {dimension_numbers = #tpu.dot_dimension_numbers<[1], [0], [0], [1], [0, 0, 1, 1], [], []>} : vector<8x8xf32>, vector<8x8xf32>, vector<8x8xf32> -> vector<8x8xf32>
    %c664 = arith.constant 664 : index
    %c0_51 = arith.constant 0 : index
    %146 = vector.load %arg4[%c664, %c0_51] : memref<1432x128xf32, #tpu.memory_space<vmem>>, vector<8x32xf32>
    %cst_52 = arith.constant dense<0.000000e+00> : vector<8x32xf32>
    %147 = tpu.matmul %145, %146, %cst_52 {dimension_numbers = #tpu.dot_dimension_numbers<[1], [0], [0], [1], [0, 0, 1, 1], [], []>} : vector<8x8xf32>, vector<8x32xf32>, vector<8x32xf32> -> vector<8x32xf32>
    %148 = arith.addf %127, %147 : vector<8x32xf32>
    %149 = vector.extract_strided_slice %64 {offsets = [8, 0], sizes = [8, 96], strides = [1, 1]} : vector<16x96xf32> to vector<8x96xf32>
    %150 = vector.extract_strided_slice %149 {offsets = [0, 0], sizes = [8, 8], strides = [1, 1]} : vector<8x96xf32> to vector<8x8xf32>
    %151 = vector.extract_strided_slice %149 {offsets = [0, 32], sizes = [8, 8], strides = [1, 1]} : vector<8x96xf32> to vector<8x8xf32>
    %152 = vector.extract_strided_slice %149 {offsets = [0, 64], sizes = [8, 8], strides = [1, 1]} : vector<8x96xf32> to vector<8x8xf32>
    %cst_53 = arith.constant dense<0.000000e+00> : vector<8x8xf32>
    %153 = tpu.matmul %150, %151, %cst_53 {dimension_numbers = #tpu.dot_dimension_numbers<[1], [1], [0], [0], [0, 0, 1, 0], [], []>} : vector<8x8xf32>, vector<8x8xf32>, vector<8x8xf32> -> vector<8x8xf32>
    %cst_54 = arith.constant 0.353553385 : f32
    %154 = vector.broadcast %cst_54 : f32 to vector<8x8xf32>
    %155 = arith.mulf %153, %154 : vector<8x8xf32>
    %156 = arith.addf %155, %37 : vector<8x8xf32>
    %cst_55 = arith.constant dense<0xFF800000> : vector<8xf32>
    %157 = vector.multi_reduction <maximumf>, %156, %cst_55 [1] : vector<8x8xf32> to vector<8xf32>
    %158 = vector.shape_cast %157 : vector<8xf32> to vector<8x1xf32>
    %159 = vector.broadcast %158 : vector<8x1xf32> to vector<8x8xf32>
    %160 = arith.subf %156, %159 : vector<8x8xf32>
    %161 = math.exp %160 : vector<8x8xf32>
    %cst_56 = arith.constant dense<0.000000e+00> : vector<8xf32>
    %162 = vector.multi_reduction <add>, %161, %cst_56 [1] : vector<8x8xf32> to vector<8xf32>
    %163 = vector.shape_cast %162 : vector<8xf32> to vector<8x1xf32>
    %164 = tpu.reciprocal %163 {approx = true} : vector<8x1xf32> -> vector<8x1xf32>
    %165 = vector.broadcast %164 : vector<8x1xf32> to vector<8x8xf32>
    %166 = arith.mulf %161, %165 : vector<8x8xf32>
    %cst_57 = arith.constant dense<0.000000e+00> : vector<8x8xf32>
    %167 = tpu.matmul %166, %152, %cst_57 {dimension_numbers = #tpu.dot_dimension_numbers<[1], [0], [0], [1], [0, 0, 1, 1], [], []>} : vector<8x8xf32>, vector<8x8xf32>, vector<8x8xf32> -> vector<8x8xf32>
    %c640_58 = arith.constant 640 : index
    %c0_59 = arith.constant 0 : index
    %168 = vector.load %arg4[%c640_58, %c0_59] : memref<1432x128xf32, #tpu.memory_space<vmem>>, vector<8x32xf32>
    %cst_60 = arith.constant dense<0.000000e+00> : vector<8x32xf32>
    %169 = tpu.matmul %167, %168, %cst_60 {dimension_numbers = #tpu.dot_dimension_numbers<[1], [0], [0], [1], [0, 0, 1, 1], [], []>} : vector<8x8xf32>, vector<8x32xf32>, vector<8x32xf32> -> vector<8x32xf32>
    %170 = vector.extract_strided_slice %149 {offsets = [0, 8], sizes = [8, 8], strides = [1, 1]} : vector<8x96xf32> to vector<8x8xf32>
    %171 = vector.extract_strided_slice %149 {offsets = [0, 40], sizes = [8, 8], strides = [1, 1]} : vector<8x96xf32> to vector<8x8xf32>
    %172 = vector.extract_strided_slice %149 {offsets = [0, 72], sizes = [8, 8], strides = [1, 1]} : vector<8x96xf32> to vector<8x8xf32>
    %cst_61 = arith.constant dense<0.000000e+00> : vector<8x8xf32>
    %173 = tpu.matmul %170, %171, %cst_61 {dimension_numbers = #tpu.dot_dimension_numbers<[1], [1], [0], [0], [0, 0, 1, 0], [], []>} : vector<8x8xf32>, vector<8x8xf32>, vector<8x8xf32> -> vector<8x8xf32>
    %cst_62 = arith.constant 0.353553385 : f32
    %174 = vector.broadcast %cst_62 : f32 to vector<8x8xf32>
    %175 = arith.mulf %173, %174 : vector<8x8xf32>
    %176 = arith.addf %175, %37 : vector<8x8xf32>
    %cst_63 = arith.constant dense<0xFF800000> : vector<8xf32>
    %177 = vector.multi_reduction <maximumf>, %176, %cst_63 [1] : vector<8x8xf32> to vector<8xf32>
    %178 = vector.shape_cast %177 : vector<8xf32> to vector<8x1xf32>
    %179 = vector.broadcast %178 : vector<8x1xf32> to vector<8x8xf32>
    %180 = arith.subf %176, %179 : vector<8x8xf32>
    %181 = math.exp %180 : vector<8x8xf32>
    %cst_64 = arith.constant dense<0.000000e+00> : vector<8xf32>
    %182 = vector.multi_reduction <add>, %181, %cst_64 [1] : vector<8x8xf32> to vector<8xf32>
    %183 = vector.shape_cast %182 : vector<8xf32> to vector<8x1xf32>
    %184 = tpu.reciprocal %183 {approx = true} : vector<8x1xf32> -> vector<8x1xf32>
    %185 = vector.broadcast %184 : vector<8x1xf32> to vector<8x8xf32>
    %186 = arith.mulf %181, %185 : vector<8x8xf32>
    %cst_65 = arith.constant dense<0.000000e+00> : vector<8x8xf32>
    %187 = tpu.matmul %186, %172, %cst_65 {dimension_numbers = #tpu.dot_dimension_numbers<[1], [0], [0], [1], [0, 0, 1, 1], [], []>} : vector<8x8xf32>, vector<8x8xf32>, vector<8x8xf32> -> vector<8x8xf32>
    %c648_66 = arith.constant 648 : index
    %c0_67 = arith.constant 0 : index
    %188 = vector.load %arg4[%c648_66, %c0_67] : memref<1432x128xf32, #tpu.memory_space<vmem>>, vector<8x32xf32>
    %cst_68 = arith.constant dense<0.000000e+00> : vector<8x32xf32>
    %189 = tpu.matmul %187, %188, %cst_68 {dimension_numbers = #tpu.dot_dimension_numbers<[1], [0], [0], [1], [0, 0, 1, 1], [], []>} : vector<8x8xf32>, vector<8x32xf32>, vector<8x32xf32> -> vector<8x32xf32>
    %190 = arith.addf %169, %189 : vector<8x32xf32>
    %191 = vector.extract_strided_slice %149 {offsets = [0, 16], sizes = [8, 8], strides = [1, 1]} : vector<8x96xf32> to vector<8x8xf32>
    %192 = vector.extract_strided_slice %149 {offsets = [0, 48], sizes = [8, 8], strides = [1, 1]} : vector<8x96xf32> to vector<8x8xf32>
    %193 = vector.extract_strided_slice %149 {offsets = [0, 80], sizes = [8, 8], strides = [1, 1]} : vector<8x96xf32> to vector<8x8xf32>
    %cst_69 = arith.constant dense<0.000000e+00> : vector<8x8xf32>
    %194 = tpu.matmul %191, %192, %cst_69 {dimension_numbers = #tpu.dot_dimension_numbers<[1], [1], [0], [0], [0, 0, 1, 0], [], []>} : vector<8x8xf32>, vector<8x8xf32>, vector<8x8xf32> -> vector<8x8xf32>
    %cst_70 = arith.constant 0.353553385 : f32
    %195 = vector.broadcast %cst_70 : f32 to vector<8x8xf32>
    %196 = arith.mulf %194, %195 : vector<8x8xf32>
    %197 = arith.addf %196, %37 : vector<8x8xf32>
    %cst_71 = arith.constant dense<0xFF800000> : vector<8xf32>
    %198 = vector.multi_reduction <maximumf>, %197, %cst_71 [1] : vector<8x8xf32> to vector<8xf32>
    %199 = vector.shape_cast %198 : vector<8xf32> to vector<8x1xf32>
    %200 = vector.broadcast %199 : vector<8x1xf32> to vector<8x8xf32>
    %201 = arith.subf %197, %200 : vector<8x8xf32>
    %202 = math.exp %201 : vector<8x8xf32>
    %cst_72 = arith.constant dense<0.000000e+00> : vector<8xf32>
    %203 = vector.multi_reduction <add>, %202, %cst_72 [1] : vector<8x8xf32> to vector<8xf32>
    %204 = vector.shape_cast %203 : vector<8xf32> to vector<8x1xf32>
    %205 = tpu.reciprocal %204 {approx = true} : vector<8x1xf32> -> vector<8x1xf32>
    %206 = vector.broadcast %205 : vector<8x1xf32> to vector<8x8xf32>
    %207 = arith.mulf %202, %206 : vector<8x8xf32>
    %cst_73 = arith.constant dense<0.000000e+00> : vector<8x8xf32>
    %208 = tpu.matmul %207, %193, %cst_73 {dimension_numbers = #tpu.dot_dimension_numbers<[1], [0], [0], [1], [0, 0, 1, 1], [], []>} : vector<8x8xf32>, vector<8x8xf32>, vector<8x8xf32> -> vector<8x8xf32>
    %c656_74 = arith.constant 656 : index
    %c0_75 = arith.constant 0 : index
    %209 = vector.load %arg4[%c656_74, %c0_75] : memref<1432x128xf32, #tpu.memory_space<vmem>>, vector<8x32xf32>
    %cst_76 = arith.constant dense<0.000000e+00> : vector<8x32xf32>
    %210 = tpu.matmul %208, %209, %cst_76 {dimension_numbers = #tpu.dot_dimension_numbers<[1], [0], [0], [1], [0, 0, 1, 1], [], []>} : vector<8x8xf32>, vector<8x32xf32>, vector<8x32xf32> -> vector<8x32xf32>
    %211 = arith.addf %190, %210 : vector<8x32xf32>
    %212 = vector.extract_strided_slice %149 {offsets = [0, 24], sizes = [8, 8], strides = [1, 1]} : vector<8x96xf32> to vector<8x8xf32>
    %213 = vector.extract_strided_slice %149 {offsets = [0, 56], sizes = [8, 8], strides = [1, 1]} : vector<8x96xf32> to vector<8x8xf32>
    %214 = vector.extract_strided_slice %149 {offsets = [0, 88], sizes = [8, 8], strides = [1, 1]} : vector<8x96xf32> to vector<8x8xf32>
    %cst_77 = arith.constant dense<0.000000e+00> : vector<8x8xf32>
    %215 = tpu.matmul %212, %213, %cst_77 {dimension_numbers = #tpu.dot_dimension_numbers<[1], [1], [0], [0], [0, 0, 1, 0], [], []>} : vector<8x8xf32>, vector<8x8xf32>, vector<8x8xf32> -> vector<8x8xf32>
    %cst_78 = arith.constant 0.353553385 : f32
    %216 = vector.broadcast %cst_78 : f32 to vector<8x8xf32>
    %217 = arith.mulf %215, %216 : vector<8x8xf32>
    %218 = arith.addf %217, %37 : vector<8x8xf32>
    %cst_79 = arith.constant dense<0xFF800000> : vector<8xf32>
    %219 = vector.multi_reduction <maximumf>, %218, %cst_79 [1] : vector<8x8xf32> to vector<8xf32>
    %220 = vector.shape_cast %219 : vector<8xf32> to vector<8x1xf32>
    %221 = vector.broadcast %220 : vector<8x1xf32> to vector<8x8xf32>
    %222 = arith.subf %218, %221 : vector<8x8xf32>
    %223 = math.exp %222 : vector<8x8xf32>
    %cst_80 = arith.constant dense<0.000000e+00> : vector<8xf32>
    %224 = vector.multi_reduction <add>, %223, %cst_80 [1] : vector<8x8xf32> to vector<8xf32>
    %225 = vector.shape_cast %224 : vector<8xf32> to vector<8x1xf32>
    %226 = tpu.reciprocal %225 {approx = true} : vector<8x1xf32> -> vector<8x1xf32>
    %227 = vector.broadcast %226 : vector<8x1xf32> to vector<8x8xf32>
    %228 = arith.mulf %223, %227 : vector<8x8xf32>
    %cst_81 = arith.constant dense<0.000000e+00> : vector<8x8xf32>
    %229 = tpu.matmul %228, %214, %cst_81 {dimension_numbers = #tpu.dot_dimension_numbers<[1], [0], [0], [1], [0, 0, 1, 1], [], []>} : vector<8x8xf32>, vector<8x8xf32>, vector<8x8xf32> -> vector<8x8xf32>
    %c664_82 = arith.constant 664 : index
    %c0_83 = arith.constant 0 : index
    %230 = vector.load %arg4[%c664_82, %c0_83] : memref<1432x128xf32, #tpu.memory_space<vmem>>, vector<8x32xf32>
    %cst_84 = arith.constant dense<0.000000e+00> : vector<8x32xf32>
    %231 = tpu.matmul %229, %230, %cst_84 {dimension_numbers = #tpu.dot_dimension_numbers<[1], [0], [0], [1], [0, 0, 1, 1], [], []>} : vector<8x8xf32>, vector<8x32xf32>, vector<8x32xf32> -> vector<8x32xf32>
    %232 = arith.addf %211, %231 : vector<8x32xf32>
    %233 = tpu.concatenate %148, %232 in 0 : vector<8x32xf32>, vector<8x32xf32> -> vector<16x32xf32>
    %c632 = arith.constant 632 : index
    %c0_85 = arith.constant 0 : index
    %234 = vector.load %arg4[%c632, %c0_85] : memref<1432x128xf32, #tpu.memory_space<vmem>>, vector<1x32xf32>
    %235 = vector.broadcast %234 : vector<1x32xf32> to vector<16x32xf32>
    %236 = arith.addf %233, %235 : vector<16x32xf32>
    %237 = arith.addf %31, %236 : vector<16x32xf32>
    %c816 = arith.constant 816 : index
    %c0_86 = arith.constant 0 : index
    %238 = vector.load %arg4[%c816, %c0_86] : memref<1432x128xf32, #tpu.memory_space<vmem>>, vector<1x32xf32>
    %c808 = arith.constant 808 : index
    %c0_87 = arith.constant 0 : index
    %239 = vector.load %arg4[%c808, %c0_87] : memref<1432x128xf32, #tpu.memory_space<vmem>>, vector<1x32xf32>
    %cst_88 = arith.constant dense<0.000000e+00> : vector<16xf32>
    %240 = vector.multi_reduction <add>, %237, %cst_88 [1] : vector<16x32xf32> to vector<16xf32>
    %241 = vector.shape_cast %240 : vector<16xf32> to vector<16x1xf32>
    %cst_89 = arith.constant 3.200000e+01 : f32
    %242 = vector.broadcast %cst_89 : f32 to vector<16x1xf32>
    %243 = arith.divf %241, %242 : vector<16x1xf32>
    %244 = vector.broadcast %243 : vector<16x1xf32> to vector<16x32xf32>
    %245 = arith.subf %237, %244 : vector<16x32xf32>
    %246 = arith.mulf %245, %245 : vector<16x32xf32>
    %cst_90 = arith.constant dense<0.000000e+00> : vector<16xf32>
    %247 = vector.multi_reduction <add>, %246, %cst_90 [1] : vector<16x32xf32> to vector<16xf32>
    %248 = vector.shape_cast %247 : vector<16xf32> to vector<16x1xf32>
    %cst_91 = arith.constant 3.200000e+01 : f32
    %249 = vector.broadcast %cst_91 : f32 to vector<16x1xf32>
    %250 = arith.divf %248, %249 : vector<16x1xf32>
    %cst_92 = arith.constant 9.99999974E-6 : f32
    %251 = vector.broadcast %cst_92 : f32 to vector<16x1xf32>
    %252 = arith.addf %250, %251 : vector<16x1xf32>
    %253 = math.rsqrt %252 : vector<16x1xf32>
    %254 = vector.broadcast %253 : vector<16x1xf32> to vector<16x32xf32>
    %255 = arith.mulf %245, %254 : vector<16x32xf32>
    %256 = vector.broadcast %238 : vector<1x32xf32> to vector<16x32xf32>
    %257 = arith.mulf %255, %256 : vector<16x32xf32>
    %258 = vector.broadcast %239 : vector<1x32xf32> to vector<16x32xf32>
    %259 = arith.addf %257, %258 : vector<16x32xf32>
    %c688 = arith.constant 688 : index
    %c0_93 = arith.constant 0 : index
    %260 = vector.load %arg4[%c688, %c0_93] : memref<1432x128xf32, #tpu.memory_space<vmem>>, vector<32x64xf32>
    %cst_94 = arith.constant dense<0.000000e+00> : vector<16x64xf32>
    %261 = tpu.matmul %259, %260, %cst_94 {dimension_numbers = #tpu.dot_dimension_numbers<[1], [0], [0], [1], [0, 0, 1, 1], [], []>} : vector<16x32xf32>, vector<32x64xf32>, vector<16x64xf32> -> vector<16x64xf32>
    %c680 = arith.constant 680 : index
    %c0_95 = arith.constant 0 : index
    %262 = vector.load %arg4[%c680, %c0_95] : memref<1432x128xf32, #tpu.memory_space<vmem>>, vector<1x64xf32>
    %263 = vector.broadcast %262 : vector<1x64xf32> to vector<16x64xf32>
    %264 = arith.addf %261, %263 : vector<16x64xf32>
    %cst_96 = arith.constant 1.702000e+00 : f32
    %265 = vector.broadcast %cst_96 : f32 to vector<16x64xf32>
    %266 = arith.mulf %265, %264 : vector<16x64xf32>
    %267 = arith.negf %266 : vector<16x64xf32>
    %268 = math.exp %267 : vector<16x64xf32>
    %cst_97 = arith.constant 1.000000e+00 : f32
    %269 = vector.broadcast %cst_97 : f32 to vector<16x64xf32>
    %270 = arith.addf %269, %268 : vector<16x64xf32>
    %271 = arith.divf %269, %270 : vector<16x64xf32>
    %272 = arith.mulf %264, %271 : vector<16x64xf32>
    %c728 = arith.constant 728 : index
    %c0_98 = arith.constant 0 : index
    %273 = vector.load %arg4[%c728, %c0_98] : memref<1432x128xf32, #tpu.memory_space<vmem>>, vector<64x32xf32>
    %cst_99 = arith.constant dense<0.000000e+00> : vector<16x32xf32>
    %274 = tpu.matmul %272, %273, %cst_99 {dimension_numbers = #tpu.dot_dimension_numbers<[1], [0], [0], [1], [0, 0, 1, 1], [], []>} : vector<16x64xf32>, vector<64x32xf32>, vector<16x32xf32> -> vector<16x32xf32>
    %c720 = arith.constant 720 : index
    %c0_100 = arith.constant 0 : index
    %275 = vector.load %arg4[%c720, %c0_100] : memref<1432x128xf32, #tpu.memory_space<vmem>>, vector<1x32xf32>
    %276 = vector.broadcast %275 : vector<1x32xf32> to vector<16x32xf32>
    %277 = arith.addf %274, %276 : vector<16x32xf32>
    %278 = arith.addf %237, %277 : vector<16x32xf32>
    %c1024 = arith.constant 1024 : index
    %c0_101 = arith.constant 0 : index
    %279 = vector.load %arg4[%c1024, %c0_101] : memref<1432x128xf32, #tpu.memory_space<vmem>>, vector<1x32xf32>
    %c1016 = arith.constant 1016 : index
    %c0_102 = arith.constant 0 : index
    %280 = vector.load %arg4[%c1016, %c0_102] : memref<1432x128xf32, #tpu.memory_space<vmem>>, vector<1x32xf32>
    %cst_103 = arith.constant dense<0.000000e+00> : vector<16xf32>
    %281 = vector.multi_reduction <add>, %278, %cst_103 [1] : vector<16x32xf32> to vector<16xf32>
    %282 = vector.shape_cast %281 : vector<16xf32> to vector<16x1xf32>
    %cst_104 = arith.constant 3.200000e+01 : f32
    %283 = vector.broadcast %cst_104 : f32 to vector<16x1xf32>
    %284 = arith.divf %282, %283 : vector<16x1xf32>
    %285 = vector.broadcast %284 : vector<16x1xf32> to vector<16x32xf32>
    %286 = arith.subf %278, %285 : vector<16x32xf32>
    %287 = arith.mulf %286, %286 : vector<16x32xf32>
    %cst_105 = arith.constant dense<0.000000e+00> : vector<16xf32>
    %288 = vector.multi_reduction <add>, %287, %cst_105 [1] : vector<16x32xf32> to vector<16xf32>
    %289 = vector.shape_cast %288 : vector<16xf32> to vector<16x1xf32>
    %cst_106 = arith.constant 3.200000e+01 : f32
    %290 = vector.broadcast %cst_106 : f32 to vector<16x1xf32>
    %291 = arith.divf %289, %290 : vector<16x1xf32>
    %cst_107 = arith.constant 9.99999974E-6 : f32
    %292 = vector.broadcast %cst_107 : f32 to vector<16x1xf32>
    %293 = arith.addf %291, %292 : vector<16x1xf32>
    %294 = math.rsqrt %293 : vector<16x1xf32>
    %295 = vector.broadcast %294 : vector<16x1xf32> to vector<16x32xf32>
    %296 = arith.mulf %286, %295 : vector<16x32xf32>
    %297 = vector.broadcast %279 : vector<1x32xf32> to vector<16x32xf32>
    %298 = arith.mulf %296, %297 : vector<16x32xf32>
    %299 = vector.broadcast %280 : vector<1x32xf32> to vector<16x32xf32>
    %300 = arith.addf %298, %299 : vector<16x32xf32>
    %c1048 = arith.constant 1048 : index
    %c0_108 = arith.constant 0 : index
    %301 = vector.load %arg4[%c1048, %c0_108] : memref<1432x128xf32, #tpu.memory_space<vmem>>, vector<32x96xf32>
    %cst_109 = arith.constant dense<0.000000e+00> : vector<16x96xf32>
    %302 = tpu.matmul %300, %301, %cst_109 {dimension_numbers = #tpu.dot_dimension_numbers<[1], [0], [0], [1], [0, 0, 1, 1], [], []>} : vector<16x32xf32>, vector<32x96xf32>, vector<16x96xf32> -> vector<16x96xf32>
    %c896 = arith.constant 896 : index
    %c0_110 = arith.constant 0 : index
    %303 = vector.load %arg4[%c896, %c0_110] : memref<1432x128xf32, #tpu.memory_space<vmem>>, vector<1x96xf32>
    %304 = vector.broadcast %303 : vector<1x96xf32> to vector<16x96xf32>
    %305 = arith.addf %302, %304 : vector<16x96xf32>
    %306 = vector.extract_strided_slice %305 {offsets = [0, 0], sizes = [8, 96], strides = [1, 1]} : vector<16x96xf32> to vector<8x96xf32>
    %307 = vector.extract_strided_slice %306 {offsets = [0, 0], sizes = [8, 8], strides = [1, 1]} : vector<8x96xf32> to vector<8x8xf32>
    %308 = vector.extract_strided_slice %306 {offsets = [0, 32], sizes = [8, 8], strides = [1, 1]} : vector<8x96xf32> to vector<8x8xf32>
    %309 = vector.extract_strided_slice %306 {offsets = [0, 64], sizes = [8, 8], strides = [1, 1]} : vector<8x96xf32> to vector<8x8xf32>
    %cst_111 = arith.constant dense<0.000000e+00> : vector<8x8xf32>
    %310 = tpu.matmul %307, %308, %cst_111 {dimension_numbers = #tpu.dot_dimension_numbers<[1], [1], [0], [0], [0, 0, 1, 0], [], []>} : vector<8x8xf32>, vector<8x8xf32>, vector<8x8xf32> -> vector<8x8xf32>
    %cst_112 = arith.constant 0.353553385 : f32
    %311 = vector.broadcast %cst_112 : f32 to vector<8x8xf32>
    %312 = arith.mulf %310, %311 : vector<8x8xf32>
    %313 = arith.addf %312, %37 : vector<8x8xf32>
    %cst_113 = arith.constant dense<0xFF800000> : vector<8xf32>
    %314 = vector.multi_reduction <maximumf>, %313, %cst_113 [1] : vector<8x8xf32> to vector<8xf32>
    %315 = vector.shape_cast %314 : vector<8xf32> to vector<8x1xf32>
    %316 = vector.broadcast %315 : vector<8x1xf32> to vector<8x8xf32>
    %317 = arith.subf %313, %316 : vector<8x8xf32>
    %318 = math.exp %317 : vector<8x8xf32>
    %cst_114 = arith.constant dense<0.000000e+00> : vector<8xf32>
    %319 = vector.multi_reduction <add>, %318, %cst_114 [1] : vector<8x8xf32> to vector<8xf32>
    %320 = vector.shape_cast %319 : vector<8xf32> to vector<8x1xf32>
    %321 = tpu.reciprocal %320 {approx = true} : vector<8x1xf32> -> vector<8x1xf32>
    %322 = vector.broadcast %321 : vector<8x1xf32> to vector<8x8xf32>
    %323 = arith.mulf %318, %322 : vector<8x8xf32>
    %cst_115 = arith.constant dense<0.000000e+00> : vector<8x8xf32>
    %324 = tpu.matmul %323, %309, %cst_115 {dimension_numbers = #tpu.dot_dimension_numbers<[1], [0], [0], [1], [0, 0, 1, 1], [], []>} : vector<8x8xf32>, vector<8x8xf32>, vector<8x8xf32> -> vector<8x8xf32>
    %c864 = arith.constant 864 : index
    %c0_116 = arith.constant 0 : index
    %325 = vector.load %arg4[%c864, %c0_116] : memref<1432x128xf32, #tpu.memory_space<vmem>>, vector<8x32xf32>
    %cst_117 = arith.constant dense<0.000000e+00> : vector<8x32xf32>
    %326 = tpu.matmul %324, %325, %cst_117 {dimension_numbers = #tpu.dot_dimension_numbers<[1], [0], [0], [1], [0, 0, 1, 1], [], []>} : vector<8x8xf32>, vector<8x32xf32>, vector<8x32xf32> -> vector<8x32xf32>
    %327 = vector.extract_strided_slice %306 {offsets = [0, 8], sizes = [8, 8], strides = [1, 1]} : vector<8x96xf32> to vector<8x8xf32>
    %328 = vector.extract_strided_slice %306 {offsets = [0, 40], sizes = [8, 8], strides = [1, 1]} : vector<8x96xf32> to vector<8x8xf32>
    %329 = vector.extract_strided_slice %306 {offsets = [0, 72], sizes = [8, 8], strides = [1, 1]} : vector<8x96xf32> to vector<8x8xf32>
    %cst_118 = arith.constant dense<0.000000e+00> : vector<8x8xf32>
    %330 = tpu.matmul %327, %328, %cst_118 {dimension_numbers = #tpu.dot_dimension_numbers<[1], [1], [0], [0], [0, 0, 1, 0], [], []>} : vector<8x8xf32>, vector<8x8xf32>, vector<8x8xf32> -> vector<8x8xf32>
    %cst_119 = arith.constant 0.353553385 : f32
    %331 = vector.broadcast %cst_119 : f32 to vector<8x8xf32>
    %332 = arith.mulf %330, %331 : vector<8x8xf32>
    %333 = arith.addf %332, %37 : vector<8x8xf32>
    %cst_120 = arith.constant dense<0xFF800000> : vector<8xf32>
    %334 = vector.multi_reduction <maximumf>, %333, %cst_120 [1] : vector<8x8xf32> to vector<8xf32>
    %335 = vector.shape_cast %334 : vector<8xf32> to vector<8x1xf32>
    %336 = vector.broadcast %335 : vector<8x1xf32> to vector<8x8xf32>
    %337 = arith.subf %333, %336 : vector<8x8xf32>
    %338 = math.exp %337 : vector<8x8xf32>
    %cst_121 = arith.constant dense<0.000000e+00> : vector<8xf32>
    %339 = vector.multi_reduction <add>, %338, %cst_121 [1] : vector<8x8xf32> to vector<8xf32>
    %340 = vector.shape_cast %339 : vector<8xf32> to vector<8x1xf32>
    %341 = tpu.reciprocal %340 {approx = true} : vector<8x1xf32> -> vector<8x1xf32>
    %342 = vector.broadcast %341 : vector<8x1xf32> to vector<8x8xf32>
    %343 = arith.mulf %338, %342 : vector<8x8xf32>
    %cst_122 = arith.constant dense<0.000000e+00> : vector<8x8xf32>
    %344 = tpu.matmul %343, %329, %cst_122 {dimension_numbers = #tpu.dot_dimension_numbers<[1], [0], [0], [1], [0, 0, 1, 1], [], []>} : vector<8x8xf32>, vector<8x8xf32>, vector<8x8xf32> -> vector<8x8xf32>
    %c872 = arith.constant 872 : index
    %c0_123 = arith.constant 0 : index
    %345 = vector.load %arg4[%c872, %c0_123] : memref<1432x128xf32, #tpu.memory_space<vmem>>, vector<8x32xf32>
    %cst_124 = arith.constant dense<0.000000e+00> : vector<8x32xf32>
    %346 = tpu.matmul %344, %345, %cst_124 {dimension_numbers = #tpu.dot_dimension_numbers<[1], [0], [0], [1], [0, 0, 1, 1], [], []>} : vector<8x8xf32>, vector<8x32xf32>, vector<8x32xf32> -> vector<8x32xf32>
    %347 = arith.addf %326, %346 : vector<8x32xf32>
    %348 = vector.extract_strided_slice %306 {offsets = [0, 16], sizes = [8, 8], strides = [1, 1]} : vector<8x96xf32> to vector<8x8xf32>
    %349 = vector.extract_strided_slice %306 {offsets = [0, 48], sizes = [8, 8], strides = [1, 1]} : vector<8x96xf32> to vector<8x8xf32>
    %350 = vector.extract_strided_slice %306 {offsets = [0, 80], sizes = [8, 8], strides = [1, 1]} : vector<8x96xf32> to vector<8x8xf32>
    %cst_125 = arith.constant dense<0.000000e+00> : vector<8x8xf32>
    %351 = tpu.matmul %348, %349, %cst_125 {dimension_numbers = #tpu.dot_dimension_numbers<[1], [1], [0], [0], [0, 0, 1, 0], [], []>} : vector<8x8xf32>, vector<8x8xf32>, vector<8x8xf32> -> vector<8x8xf32>
    %cst_126 = arith.constant 0.353553385 : f32
    %352 = vector.broadcast %cst_126 : f32 to vector<8x8xf32>
    %353 = arith.mulf %351, %352 : vector<8x8xf32>
    %354 = arith.addf %353, %37 : vector<8x8xf32>
    %cst_127 = arith.constant dense<0xFF800000> : vector<8xf32>
    %355 = vector.multi_reduction <maximumf>, %354, %cst_127 [1] : vector<8x8xf32> to vector<8xf32>
    %356 = vector.shape_cast %355 : vector<8xf32> to vector<8x1xf32>
    %357 = vector.broadcast %356 : vector<8x1xf32> to vector<8x8xf32>
    %358 = arith.subf %354, %357 : vector<8x8xf32>
    %359 = math.exp %358 : vector<8x8xf32>
    %cst_128 = arith.constant dense<0.000000e+00> : vector<8xf32>
    %360 = vector.multi_reduction <add>, %359, %cst_128 [1] : vector<8x8xf32> to vector<8xf32>
    %361 = vector.shape_cast %360 : vector<8xf32> to vector<8x1xf32>
    %362 = tpu.reciprocal %361 {approx = true} : vector<8x1xf32> -> vector<8x1xf32>
    %363 = vector.broadcast %362 : vector<8x1xf32> to vector<8x8xf32>
    %364 = arith.mulf %359, %363 : vector<8x8xf32>
    %cst_129 = arith.constant dense<0.000000e+00> : vector<8x8xf32>
    %365 = tpu.matmul %364, %350, %cst_129 {dimension_numbers = #tpu.dot_dimension_numbers<[1], [0], [0], [1], [0, 0, 1, 1], [], []>} : vector<8x8xf32>, vector<8x8xf32>, vector<8x8xf32> -> vector<8x8xf32>
    %c880 = arith.constant 880 : index
    %c0_130 = arith.constant 0 : index
    %366 = vector.load %arg4[%c880, %c0_130] : memref<1432x128xf32, #tpu.memory_space<vmem>>, vector<8x32xf32>
    %cst_131 = arith.constant dense<0.000000e+00> : vector<8x32xf32>
    %367 = tpu.matmul %365, %366, %cst_131 {dimension_numbers = #tpu.dot_dimension_numbers<[1], [0], [0], [1], [0, 0, 1, 1], [], []>} : vector<8x8xf32>, vector<8x32xf32>, vector<8x32xf32> -> vector<8x32xf32>
    %368 = arith.addf %347, %367 : vector<8x32xf32>
    %369 = vector.extract_strided_slice %306 {offsets = [0, 24], sizes = [8, 8], strides = [1, 1]} : vector<8x96xf32> to vector<8x8xf32>
    %370 = vector.extract_strided_slice %306 {offsets = [0, 56], sizes = [8, 8], strides = [1, 1]} : vector<8x96xf32> to vector<8x8xf32>
    %371 = vector.extract_strided_slice %306 {offsets = [0, 88], sizes = [8, 8], strides = [1, 1]} : vector<8x96xf32> to vector<8x8xf32>
    %cst_132 = arith.constant dense<0.000000e+00> : vector<8x8xf32>
    %372 = tpu.matmul %369, %370, %cst_132 {dimension_numbers = #tpu.dot_dimension_numbers<[1], [1], [0], [0], [0, 0, 1, 0], [], []>} : vector<8x8xf32>, vector<8x8xf32>, vector<8x8xf32> -> vector<8x8xf32>
    %cst_133 = arith.constant 0.353553385 : f32
    %373 = vector.broadcast %cst_133 : f32 to vector<8x8xf32>
    %374 = arith.mulf %372, %373 : vector<8x8xf32>
    %375 = arith.addf %374, %37 : vector<8x8xf32>
    %cst_134 = arith.constant dense<0xFF800000> : vector<8xf32>
    %376 = vector.multi_reduction <maximumf>, %375, %cst_134 [1] : vector<8x8xf32> to vector<8xf32>
    %377 = vector.shape_cast %376 : vector<8xf32> to vector<8x1xf32>
    %378 = vector.broadcast %377 : vector<8x1xf32> to vector<8x8xf32>
    %379 = arith.subf %375, %378 : vector<8x8xf32>
    %380 = math.exp %379 : vector<8x8xf32>
    %cst_135 = arith.constant dense<0.000000e+00> : vector<8xf32>
    %381 = vector.multi_reduction <add>, %380, %cst_135 [1] : vector<8x8xf32> to vector<8xf32>
    %382 = vector.shape_cast %381 : vector<8xf32> to vector<8x1xf32>
    %383 = tpu.reciprocal %382 {approx = true} : vector<8x1xf32> -> vector<8x1xf32>
    %384 = vector.broadcast %383 : vector<8x1xf32> to vector<8x8xf32>
    %385 = arith.mulf %380, %384 : vector<8x8xf32>
    %cst_136 = arith.constant dense<0.000000e+00> : vector<8x8xf32>
    %386 = tpu.matmul %385, %371, %cst_136 {dimension_numbers = #tpu.dot_dimension_numbers<[1], [0], [0], [1], [0, 0, 1, 1], [], []>} : vector<8x8xf32>, vector<8x8xf32>, vector<8x8xf32> -> vector<8x8xf32>
    %c888 = arith.constant 888 : index
    %c0_137 = arith.constant 0 : index
    %387 = vector.load %arg4[%c888, %c0_137] : memref<1432x128xf32, #tpu.memory_space<vmem>>, vector<8x32xf32>
    %cst_138 = arith.constant dense<0.000000e+00> : vector<8x32xf32>
    %388 = tpu.matmul %386, %387, %cst_138 {dimension_numbers = #tpu.dot_dimension_numbers<[1], [0], [0], [1], [0, 0, 1, 1], [], []>} : vector<8x8xf32>, vector<8x32xf32>, vector<8x32xf32> -> vector<8x32xf32>
    %389 = arith.addf %368, %388 : vector<8x32xf32>
    %390 = vector.extract_strided_slice %305 {offsets = [8, 0], sizes = [8, 96], strides = [1, 1]} : vector<16x96xf32> to vector<8x96xf32>
    %391 = vector.extract_strided_slice %390 {offsets = [0, 0], sizes = [8, 8], strides = [1, 1]} : vector<8x96xf32> to vector<8x8xf32>
    %392 = vector.extract_strided_slice %390 {offsets = [0, 32], sizes = [8, 8], strides = [1, 1]} : vector<8x96xf32> to vector<8x8xf32>
    %393 = vector.extract_strided_slice %390 {offsets = [0, 64], sizes = [8, 8], strides = [1, 1]} : vector<8x96xf32> to vector<8x8xf32>
    %cst_139 = arith.constant dense<0.000000e+00> : vector<8x8xf32>
    %394 = tpu.matmul %391, %392, %cst_139 {dimension_numbers = #tpu.dot_dimension_numbers<[1], [1], [0], [0], [0, 0, 1, 0], [], []>} : vector<8x8xf32>, vector<8x8xf32>, vector<8x8xf32> -> vector<8x8xf32>
    %cst_140 = arith.constant 0.353553385 : f32
    %395 = vector.broadcast %cst_140 : f32 to vector<8x8xf32>
    %396 = arith.mulf %394, %395 : vector<8x8xf32>
    %397 = arith.addf %396, %37 : vector<8x8xf32>
    %cst_141 = arith.constant dense<0xFF800000> : vector<8xf32>
    %398 = vector.multi_reduction <maximumf>, %397, %cst_141 [1] : vector<8x8xf32> to vector<8xf32>
    %399 = vector.shape_cast %398 : vector<8xf32> to vector<8x1xf32>
    %400 = vector.broadcast %399 : vector<8x1xf32> to vector<8x8xf32>
    %401 = arith.subf %397, %400 : vector<8x8xf32>
    %402 = math.exp %401 : vector<8x8xf32>
    %cst_142 = arith.constant dense<0.000000e+00> : vector<8xf32>
    %403 = vector.multi_reduction <add>, %402, %cst_142 [1] : vector<8x8xf32> to vector<8xf32>
    %404 = vector.shape_cast %403 : vector<8xf32> to vector<8x1xf32>
    %405 = tpu.reciprocal %404 {approx = true} : vector<8x1xf32> -> vector<8x1xf32>
    %406 = vector.broadcast %405 : vector<8x1xf32> to vector<8x8xf32>
    %407 = arith.mulf %402, %406 : vector<8x8xf32>
    %cst_143 = arith.constant dense<0.000000e+00> : vector<8x8xf32>
    %408 = tpu.matmul %407, %393, %cst_143 {dimension_numbers = #tpu.dot_dimension_numbers<[1], [0], [0], [1], [0, 0, 1, 1], [], []>} : vector<8x8xf32>, vector<8x8xf32>, vector<8x8xf32> -> vector<8x8xf32>
    %c864_144 = arith.constant 864 : index
    %c0_145 = arith.constant 0 : index
    %409 = vector.load %arg4[%c864_144, %c0_145] : memref<1432x128xf32, #tpu.memory_space<vmem>>, vector<8x32xf32>
    %cst_146 = arith.constant dense<0.000000e+00> : vector<8x32xf32>
    %410 = tpu.matmul %408, %409, %cst_146 {dimension_numbers = #tpu.dot_dimension_numbers<[1], [0], [0], [1], [0, 0, 1, 1], [], []>} : vector<8x8xf32>, vector<8x32xf32>, vector<8x32xf32> -> vector<8x32xf32>
    %411 = vector.extract_strided_slice %390 {offsets = [0, 8], sizes = [8, 8], strides = [1, 1]} : vector<8x96xf32> to vector<8x8xf32>
    %412 = vector.extract_strided_slice %390 {offsets = [0, 40], sizes = [8, 8], strides = [1, 1]} : vector<8x96xf32> to vector<8x8xf32>
    %413 = vector.extract_strided_slice %390 {offsets = [0, 72], sizes = [8, 8], strides = [1, 1]} : vector<8x96xf32> to vector<8x8xf32>
    %cst_147 = arith.constant dense<0.000000e+00> : vector<8x8xf32>
    %414 = tpu.matmul %411, %412, %cst_147 {dimension_numbers = #tpu.dot_dimension_numbers<[1], [1], [0], [0], [0, 0, 1, 0], [], []>} : vector<8x8xf32>, vector<8x8xf32>, vector<8x8xf32> -> vector<8x8xf32>
    %cst_148 = arith.constant 0.353553385 : f32
    %415 = vector.broadcast %cst_148 : f32 to vector<8x8xf32>
    %416 = arith.mulf %414, %415 : vector<8x8xf32>
    %417 = arith.addf %416, %37 : vector<8x8xf32>
    %cst_149 = arith.constant dense<0xFF800000> : vector<8xf32>
    %418 = vector.multi_reduction <maximumf>, %417, %cst_149 [1] : vector<8x8xf32> to vector<8xf32>
    %419 = vector.shape_cast %418 : vector<8xf32> to vector<8x1xf32>
    %420 = vector.broadcast %419 : vector<8x1xf32> to vector<8x8xf32>
    %421 = arith.subf %417, %420 : vector<8x8xf32>
    %422 = math.exp %421 : vector<8x8xf32>
    %cst_150 = arith.constant dense<0.000000e+00> : vector<8xf32>
    %423 = vector.multi_reduction <add>, %422, %cst_150 [1] : vector<8x8xf32> to vector<8xf32>
    %424 = vector.shape_cast %423 : vector<8xf32> to vector<8x1xf32>
    %425 = tpu.reciprocal %424 {approx = true} : vector<8x1xf32> -> vector<8x1xf32>
    %426 = vector.broadcast %425 : vector<8x1xf32> to vector<8x8xf32>
    %427 = arith.mulf %422, %426 : vector<8x8xf32>
    %cst_151 = arith.constant dense<0.000000e+00> : vector<8x8xf32>
    %428 = tpu.matmul %427, %413, %cst_151 {dimension_numbers = #tpu.dot_dimension_numbers<[1], [0], [0], [1], [0, 0, 1, 1], [], []>} : vector<8x8xf32>, vector<8x8xf32>, vector<8x8xf32> -> vector<8x8xf32>
    %c872_152 = arith.constant 872 : index
    %c0_153 = arith.constant 0 : index
    %429 = vector.load %arg4[%c872_152, %c0_153] : memref<1432x128xf32, #tpu.memory_space<vmem>>, vector<8x32xf32>
    %cst_154 = arith.constant dense<0.000000e+00> : vector<8x32xf32>
    %430 = tpu.matmul %428, %429, %cst_154 {dimension_numbers = #tpu.dot_dimension_numbers<[1], [0], [0], [1], [0, 0, 1, 1], [], []>} : vector<8x8xf32>, vector<8x32xf32>, vector<8x32xf32> -> vector<8x32xf32>
    %431 = arith.addf %410, %430 : vector<8x32xf32>
    %432 = vector.extract_strided_slice %390 {offsets = [0, 16], sizes = [8, 8], strides = [1, 1]} : vector<8x96xf32> to vector<8x8xf32>
    %433 = vector.extract_strided_slice %390 {offsets = [0, 48], sizes = [8, 8], strides = [1, 1]} : vector<8x96xf32> to vector<8x8xf32>
    %434 = vector.extract_strided_slice %390 {offsets = [0, 80], sizes = [8, 8], strides = [1, 1]} : vector<8x96xf32> to vector<8x8xf32>
    %cst_155 = arith.constant dense<0.000000e+00> : vector<8x8xf32>
    %435 = tpu.matmul %432, %433, %cst_155 {dimension_numbers = #tpu.dot_dimension_numbers<[1], [1], [0], [0], [0, 0, 1, 0], [], []>} : vector<8x8xf32>, vector<8x8xf32>, vector<8x8xf32> -> vector<8x8xf32>
    %cst_156 = arith.constant 0.353553385 : f32
    %436 = vector.broadcast %cst_156 : f32 to vector<8x8xf32>
    %437 = arith.mulf %435, %436 : vector<8x8xf32>
    %438 = arith.addf %437, %37 : vector<8x8xf32>
    %cst_157 = arith.constant dense<0xFF800000> : vector<8xf32>
    %439 = vector.multi_reduction <maximumf>, %438, %cst_157 [1] : vector<8x8xf32> to vector<8xf32>
    %440 = vector.shape_cast %439 : vector<8xf32> to vector<8x1xf32>
    %441 = vector.broadcast %440 : vector<8x1xf32> to vector<8x8xf32>
    %442 = arith.subf %438, %441 : vector<8x8xf32>
    %443 = math.exp %442 : vector<8x8xf32>
    %cst_158 = arith.constant dense<0.000000e+00> : vector<8xf32>
    %444 = vector.multi_reduction <add>, %443, %cst_158 [1] : vector<8x8xf32> to vector<8xf32>
    %445 = vector.shape_cast %444 : vector<8xf32> to vector<8x1xf32>
    %446 = tpu.reciprocal %445 {approx = true} : vector<8x1xf32> -> vector<8x1xf32>
    %447 = vector.broadcast %446 : vector<8x1xf32> to vector<8x8xf32>
    %448 = arith.mulf %443, %447 : vector<8x8xf32>
    %cst_159 = arith.constant dense<0.000000e+00> : vector<8x8xf32>
    %449 = tpu.matmul %448, %434, %cst_159 {dimension_numbers = #tpu.dot_dimension_numbers<[1], [0], [0], [1], [0, 0, 1, 1], [], []>} : vector<8x8xf32>, vector<8x8xf32>, vector<8x8xf32> -> vector<8x8xf32>
    %c880_160 = arith.constant 880 : index
    %c0_161 = arith.constant 0 : index
    %450 = vector.load %arg4[%c880_160, %c0_161] : memref<1432x128xf32, #tpu.memory_space<vmem>>, vector<8x32xf32>
    %cst_162 = arith.constant dense<0.000000e+00> : vector<8x32xf32>
    %451 = tpu.matmul %449, %450, %cst_162 {dimension_numbers = #tpu.dot_dimension_numbers<[1], [0], [0], [1], [0, 0, 1, 1], [], []>} : vector<8x8xf32>, vector<8x32xf32>, vector<8x32xf32> -> vector<8x32xf32>
    %452 = arith.addf %431, %451 : vector<8x32xf32>
    %453 = vector.extract_strided_slice %390 {offsets = [0, 24], sizes = [8, 8], strides = [1, 1]} : vector<8x96xf32> to vector<8x8xf32>
    %454 = vector.extract_strided_slice %390 {offsets = [0, 56], sizes = [8, 8], strides = [1, 1]} : vector<8x96xf32> to vector<8x8xf32>
    %455 = vector.extract_strided_slice %390 {offsets = [0, 88], sizes = [8, 8], strides = [1, 1]} : vector<8x96xf32> to vector<8x8xf32>
    %cst_163 = arith.constant dense<0.000000e+00> : vector<8x8xf32>
    %456 = tpu.matmul %453, %454, %cst_163 {dimension_numbers = #tpu.dot_dimension_numbers<[1], [1], [0], [0], [0, 0, 1, 0], [], []>} : vector<8x8xf32>, vector<8x8xf32>, vector<8x8xf32> -> vector<8x8xf32>
    %cst_164 = arith.constant 0.353553385 : f32
    %457 = vector.broadcast %cst_164 : f32 to vector<8x8xf32>
    %458 = arith.mulf %456, %457 : vector<8x8xf32>
    %459 = arith.addf %458, %37 : vector<8x8xf32>
    %cst_165 = arith.constant dense<0xFF800000> : vector<8xf32>
    %460 = vector.multi_reduction <maximumf>, %459, %cst_165 [1] : vector<8x8xf32> to vector<8xf32>
    %461 = vector.shape_cast %460 : vector<8xf32> to vector<8x1xf32>
    %462 = vector.broadcast %461 : vector<8x1xf32> to vector<8x8xf32>
    %463 = arith.subf %459, %462 : vector<8x8xf32>
    %464 = math.exp %463 : vector<8x8xf32>
    %cst_166 = arith.constant dense<0.000000e+00> : vector<8xf32>
    %465 = vector.multi_reduction <add>, %464, %cst_166 [1] : vector<8x8xf32> to vector<8xf32>
    %466 = vector.shape_cast %465 : vector<8xf32> to vector<8x1xf32>
    %467 = tpu.reciprocal %466 {approx = true} : vector<8x1xf32> -> vector<8x1xf32>
    %468 = vector.broadcast %467 : vector<8x1xf32> to vector<8x8xf32>
    %469 = arith.mulf %464, %468 : vector<8x8xf32>
    %cst_167 = arith.constant dense<0.000000e+00> : vector<8x8xf32>
    %470 = tpu.matmul %469, %455, %cst_167 {dimension_numbers = #tpu.dot_dimension_numbers<[1], [0], [0], [1], [0, 0, 1, 1], [], []>} : vector<8x8xf32>, vector<8x8xf32>, vector<8x8xf32> -> vector<8x8xf32>
    %c888_168 = arith.constant 888 : index
    %c0_169 = arith.constant 0 : index
    %471 = vector.load %arg4[%c888_168, %c0_169] : memref<1432x128xf32, #tpu.memory_space<vmem>>, vector<8x32xf32>
    %cst_170 = arith.constant dense<0.000000e+00> : vector<8x32xf32>
    %472 = tpu.matmul %470, %471, %cst_170 {dimension_numbers = #tpu.dot_dimension_numbers<[1], [0], [0], [1], [0, 0, 1, 1], [], []>} : vector<8x8xf32>, vector<8x32xf32>, vector<8x32xf32> -> vector<8x32xf32>
    %473 = arith.addf %452, %472 : vector<8x32xf32>
    %474 = tpu.concatenate %389, %473 in 0 : vector<8x32xf32>, vector<8x32xf32> -> vector<16x32xf32>
    %c856 = arith.constant 856 : index
    %c0_171 = arith.constant 0 : index
    %475 = vector.load %arg4[%c856, %c0_171] : memref<1432x128xf32, #tpu.memory_space<vmem>>, vector<1x32xf32>
    %476 = vector.broadcast %475 : vector<1x32xf32> to vector<16x32xf32>
    %477 = arith.addf %474, %476 : vector<16x32xf32>
    %478 = arith.addf %278, %477 : vector<16x32xf32>
    %c1040 = arith.constant 1040 : index
    %c0_172 = arith.constant 0 : index
    %479 = vector.load %arg4[%c1040, %c0_172] : memref<1432x128xf32, #tpu.memory_space<vmem>>, vector<1x32xf32>
    %c1032 = arith.constant 1032 : index
    %c0_173 = arith.constant 0 : index
    %480 = vector.load %arg4[%c1032, %c0_173] : memref<1432x128xf32, #tpu.memory_space<vmem>>, vector<1x32xf32>
    %cst_174 = arith.constant dense<0.000000e+00> : vector<16xf32>
    %481 = vector.multi_reduction <add>, %478, %cst_174 [1] : vector<16x32xf32> to vector<16xf32>
    %482 = vector.shape_cast %481 : vector<16xf32> to vector<16x1xf32>
    %cst_175 = arith.constant 3.200000e+01 : f32
    %483 = vector.broadcast %cst_175 : f32 to vector<16x1xf32>
    %484 = arith.divf %482, %483 : vector<16x1xf32>
    %485 = vector.broadcast %484 : vector<16x1xf32> to vector<16x32xf32>
    %486 = arith.subf %478, %485 : vector<16x32xf32>
    %487 = arith.mulf %486, %486 : vector<16x32xf32>
    %cst_176 = arith.constant dense<0.000000e+00> : vector<16xf32>
    %488 = vector.multi_reduction <add>, %487, %cst_176 [1] : vector<16x32xf32> to vector<16xf32>
    %489 = vector.shape_cast %488 : vector<16xf32> to vector<16x1xf32>
    %cst_177 = arith.constant 3.200000e+01 : f32
    %490 = vector.broadcast %cst_177 : f32 to vector<16x1xf32>
    %491 = arith.divf %489, %490 : vector<16x1xf32>
    %cst_178 = arith.constant 9.99999974E-6 : f32
    %492 = vector.broadcast %cst_178 : f32 to vector<16x1xf32>
    %493 = arith.addf %491, %492 : vector<16x1xf32>
    %494 = math.rsqrt %493 : vector<16x1xf32>
    %495 = vector.broadcast %494 : vector<16x1xf32> to vector<16x32xf32>
    %496 = arith.mulf %486, %495 : vector<16x32xf32>
    %497 = vector.broadcast %479 : vector<1x32xf32> to vector<16x32xf32>
    %498 = arith.mulf %496, %497 : vector<16x32xf32>
    %499 = vector.broadcast %480 : vector<1x32xf32> to vector<16x32xf32>
    %500 = arith.addf %498, %499 : vector<16x32xf32>
    %c912 = arith.constant 912 : index
    %c0_179 = arith.constant 0 : index
    %501 = vector.load %arg4[%c912, %c0_179] : memref<1432x128xf32, #tpu.memory_space<vmem>>, vector<32x64xf32>
    %cst_180 = arith.constant dense<0.000000e+00> : vector<16x64xf32>
    %502 = tpu.matmul %500, %501, %cst_180 {dimension_numbers = #tpu.dot_dimension_numbers<[1], [0], [0], [1], [0, 0, 1, 1], [], []>} : vector<16x32xf32>, vector<32x64xf32>, vector<16x64xf32> -> vector<16x64xf32>
    %c904 = arith.constant 904 : index
    %c0_181 = arith.constant 0 : index
    %503 = vector.load %arg4[%c904, %c0_181] : memref<1432x128xf32, #tpu.memory_space<vmem>>, vector<1x64xf32>
    %504 = vector.broadcast %503 : vector<1x64xf32> to vector<16x64xf32>
    %505 = arith.addf %502, %504 : vector<16x64xf32>
    %cst_182 = arith.constant 1.702000e+00 : f32
    %506 = vector.broadcast %cst_182 : f32 to vector<16x64xf32>
    %507 = arith.mulf %506, %505 : vector<16x64xf32>
    %508 = arith.negf %507 : vector<16x64xf32>
    %509 = math.exp %508 : vector<16x64xf32>
    %cst_183 = arith.constant 1.000000e+00 : f32
    %510 = vector.broadcast %cst_183 : f32 to vector<16x64xf32>
    %511 = arith.addf %510, %509 : vector<16x64xf32>
    %512 = arith.divf %510, %511 : vector<16x64xf32>
    %513 = arith.mulf %505, %512 : vector<16x64xf32>
    %c952 = arith.constant 952 : index
    %c0_184 = arith.constant 0 : index
    %514 = vector.load %arg4[%c952, %c0_184] : memref<1432x128xf32, #tpu.memory_space<vmem>>, vector<64x32xf32>
    %cst_185 = arith.constant dense<0.000000e+00> : vector<16x32xf32>
    %515 = tpu.matmul %513, %514, %cst_185 {dimension_numbers = #tpu.dot_dimension_numbers<[1], [0], [0], [1], [0, 0, 1, 1], [], []>} : vector<16x64xf32>, vector<64x32xf32>, vector<16x32xf32> -> vector<16x32xf32>
    %c944 = arith.constant 944 : index
    %c0_186 = arith.constant 0 : index
    %516 = vector.load %arg4[%c944, %c0_186] : memref<1432x128xf32, #tpu.memory_space<vmem>>, vector<1x32xf32>
    %517 = vector.broadcast %516 : vector<1x32xf32> to vector<16x32xf32>
    %518 = arith.addf %515, %517 : vector<16x32xf32>
    %519 = arith.addf %478, %518 : vector<16x32xf32>
    %c1352 = arith.constant 1352 : index
    %c0_187 = arith.constant 0 : index
    %520 = vector.load %arg4[%c1352, %c0_187] : memref<1432x128xf32, #tpu.memory_space<vmem>>, vector<1x32xf32>
    %c1344 = arith.constant 1344 : index
    %c0_188 = arith.constant 0 : index
    %521 = vector.load %arg4[%c1344, %c0_188] : memref<1432x128xf32, #tpu.memory_space<vmem>>, vector<1x32xf32>
    %cst_189 = arith.constant dense<0.000000e+00> : vector<16xf32>
    %522 = vector.multi_reduction <add>, %519, %cst_189 [1] : vector<16x32xf32> to vector<16xf32>
    %523 = vector.shape_cast %522 : vector<16xf32> to vector<16x1xf32>
    %cst_190 = arith.constant 3.200000e+01 : f32
    %524 = vector.broadcast %cst_190 : f32 to vector<16x1xf32>
    %525 = arith.divf %523, %524 : vector<16x1xf32>
    %526 = vector.broadcast %525 : vector<16x1xf32> to vector<16x32xf32>
    %527 = arith.subf %519, %526 : vector<16x32xf32>
    %528 = arith.mulf %527, %527 : vector<16x32xf32>
    %cst_191 = arith.constant dense<0.000000e+00> : vector<16xf32>
    %529 = vector.multi_reduction <add>, %528, %cst_191 [1] : vector<16x32xf32> to vector<16xf32>
    %530 = vector.shape_cast %529 : vector<16xf32> to vector<16x1xf32>
    %cst_192 = arith.constant 3.200000e+01 : f32
    %531 = vector.broadcast %cst_192 : f32 to vector<16x1xf32>
    %532 = arith.divf %530, %531 : vector<16x1xf32>
    %cst_193 = arith.constant 9.99999974E-6 : f32
    %533 = vector.broadcast %cst_193 : f32 to vector<16x1xf32>
    %534 = arith.addf %532, %533 : vector<16x1xf32>
    %535 = math.rsqrt %534 : vector<16x1xf32>
    %536 = vector.broadcast %535 : vector<16x1xf32> to vector<16x32xf32>
    %537 = arith.mulf %527, %536 : vector<16x32xf32>
    %538 = vector.broadcast %520 : vector<1x32xf32> to vector<16x32xf32>
    %539 = arith.mulf %537, %538 : vector<16x32xf32>
    %540 = vector.broadcast %521 : vector<1x32xf32> to vector<16x32xf32>
    %541 = arith.addf %539, %540 : vector<16x32xf32>
    %c1400 = arith.constant 1400 : index
    %c0_194 = arith.constant 0 : index
    %542 = vector.load %arg4[%c1400, %c0_194] : memref<1432x128xf32, #tpu.memory_space<vmem>>, vector<32x32xf32>
    %cst_195 = arith.constant dense<0.000000e+00> : vector<16x32xf32>
    %543 = tpu.matmul %541, %542, %cst_195 {dimension_numbers = #tpu.dot_dimension_numbers<[1], [0], [0], [1], [0, 0, 1, 1], [], []>} : vector<16x32xf32>, vector<32x32xf32>, vector<16x32xf32> -> vector<16x32xf32>
    %c1376 = arith.constant 1376 : index
    %c0_196 = arith.constant 0 : index
    %544 = vector.load %arg4[%c1376, %c0_196] : memref<1432x128xf32, #tpu.memory_space<vmem>>, vector<1x32xf32>
    %545 = vector.broadcast %544 : vector<1x32xf32> to vector<16x32xf32>
    %546 = arith.addf %543, %545 : vector<16x32xf32>
    %c1392 = arith.constant 1392 : index
    %c0_197 = arith.constant 0 : index
    %547 = vector.load %arg4[%c1392, %c0_197] : memref<1432x128xf32, #tpu.memory_space<vmem>>, vector<1x32xf32>
    %c1384 = arith.constant 1384 : index
    %c0_198 = arith.constant 0 : index
    %548 = vector.load %arg4[%c1384, %c0_198] : memref<1432x128xf32, #tpu.memory_space<vmem>>, vector<1x32xf32>
    %cst_199 = arith.constant dense<0.000000e+00> : vector<16xf32>
    %549 = vector.multi_reduction <add>, %546, %cst_199 [1] : vector<16x32xf32> to vector<16xf32>
    %550 = vector.shape_cast %549 : vector<16xf32> to vector<16x1xf32>
    %cst_200 = arith.constant 3.200000e+01 : f32
    %551 = vector.broadcast %cst_200 : f32 to vector<16x1xf32>
    %552 = arith.divf %550, %551 : vector<16x1xf32>
    %553 = vector.broadcast %552 : vector<16x1xf32> to vector<16x32xf32>
    %554 = arith.subf %546, %553 : vector<16x32xf32>
    %555 = arith.mulf %554, %554 : vector<16x32xf32>
    %cst_201 = arith.constant dense<0.000000e+00> : vector<16xf32>
    %556 = vector.multi_reduction <add>, %555, %cst_201 [1] : vector<16x32xf32> to vector<16xf32>
    %557 = vector.shape_cast %556 : vector<16xf32> to vector<16x1xf32>
    %cst_202 = arith.constant 3.200000e+01 : f32
    %558 = vector.broadcast %cst_202 : f32 to vector<16x1xf32>
    %559 = arith.divf %557, %558 : vector<16x1xf32>
    %cst_203 = arith.constant 9.99999996E-13 : f32
    %560 = vector.broadcast %cst_203 : f32 to vector<16x1xf32>
    %561 = arith.addf %559, %560 : vector<16x1xf32>
    %562 = math.rsqrt %561 : vector<16x1xf32>
    %563 = vector.broadcast %562 : vector<16x1xf32> to vector<16x32xf32>
    %564 = arith.mulf %554, %563 : vector<16x32xf32>
    %565 = vector.broadcast %547 : vector<1x32xf32> to vector<16x32xf32>
    %566 = arith.mulf %564, %565 : vector<16x32xf32>
    %567 = vector.broadcast %548 : vector<1x32xf32> to vector<16x32xf32>
    %568 = arith.addf %566, %567 : vector<16x32xf32>
    %569 = tpu.iota {dimensions = array<i32: 1>} : vector<8x64xi32>
    %c0_204 = arith.constant 0 : index
    %c0_205 = arith.constant 0 : index
    %c0_206 = arith.constant 0 : index
    %570 = vector.load %arg2[%c0_204, %c0_205, %c0_206] : memref<2x8x1xi32, #tpu.memory_space<vmem>>, vector<1x8x1xi32>
    %571 = vector.shape_cast %570 : vector<1x8x1xi32> to vector<8x1xi32>
    %572 = vector.broadcast %571 : vector<8x1xi32> to vector<8x64xi32>
    %573 = arith.cmpi eq, %569, %572 : vector<8x64xi32>
    %574 = arith.extui %573 : vector<8x64xi1> to vector<8x64xi32>
    %575 = arith.sitofp %574 : vector<8x64xi32> to vector<8x64xf32>
    %c1_207 = arith.constant 1 : index
    %c0_208 = arith.constant 0 : index
    %c0_209 = arith.constant 0 : index
    %576 = vector.load %arg2[%c1_207, %c0_208, %c0_209] : memref<2x8x1xi32, #tpu.memory_space<vmem>>, vector<1x8x1xi32>
    %577 = vector.shape_cast %576 : vector<1x8x1xi32> to vector<8x1xi32>
    %578 = vector.broadcast %577 : vector<8x1xi32> to vector<8x64xi32>
    %579 = arith.cmpi eq, %569, %578 : vector<8x64xi32>
    %580 = arith.extui %579 : vector<8x64xi1> to vector<8x64xi32>
    %581 = arith.sitofp %580 : vector<8x64xi32> to vector<8x64xf32>
    %582 = tpu.concatenate %575, %581 in 0 : vector<8x64xf32>, vector<8x64xf32> -> vector<16x64xf32>
    %c568 = arith.constant 568 : index
    %c0_210 = arith.constant 0 : index
    %583 = vector.load %arg4[%c568, %c0_210] : memref<1432x128xf32, #tpu.memory_space<vmem>>, vector<64x32xf32>
    %cst_211 = arith.constant dense<0.000000e+00> : vector<16x32xf32>
    %584 = tpu.matmul %582, %583, %cst_211 {dimension_numbers = #tpu.dot_dimension_numbers<[1], [0], [0], [1], [0, 0, 1, 1], [], []>} : vector<16x64xf32>, vector<64x32xf32>, vector<16x32xf32> -> vector<16x32xf32>
    %c504 = arith.constant 504 : index
    %c0_212 = arith.constant 0 : index
    %585 = vector.load %arg4[%c504, %c0_212] : memref<1432x128xf32, #tpu.memory_space<vmem>>, vector<8x32xf32>
    %586 = tpu.concatenate %585, %585 in 0 : vector<8x32xf32>, vector<8x32xf32> -> vector<16x32xf32>
    %587 = arith.addf %584, %586 : vector<16x32xf32>
    %c48 = arith.constant 48 : index
    %c0_213 = arith.constant 0 : index
    %588 = vector.load %arg4[%c48, %c0_213] : memref<1432x128xf32, #tpu.memory_space<vmem>>, vector<1x32xf32>
    %c40 = arith.constant 40 : index
    %c0_214 = arith.constant 0 : index
    %589 = vector.load %arg4[%c40, %c0_214] : memref<1432x128xf32, #tpu.memory_space<vmem>>, vector<1x32xf32>
    %cst_215 = arith.constant dense<0.000000e+00> : vector<16xf32>
    %590 = vector.multi_reduction <add>, %587, %cst_215 [1] : vector<16x32xf32> to vector<16xf32>
    %591 = vector.shape_cast %590 : vector<16xf32> to vector<16x1xf32>
    %cst_216 = arith.constant 3.200000e+01 : f32
    %592 = vector.broadcast %cst_216 : f32 to vector<16x1xf32>
    %593 = arith.divf %591, %592 : vector<16x1xf32>
    %594 = vector.broadcast %593 : vector<16x1xf32> to vector<16x32xf32>
    %595 = arith.subf %587, %594 : vector<16x32xf32>
    %596 = arith.mulf %595, %595 : vector<16x32xf32>
    %cst_217 = arith.constant dense<0.000000e+00> : vector<16xf32>
    %597 = vector.multi_reduction <add>, %596, %cst_217 [1] : vector<16x32xf32> to vector<16xf32>
    %598 = vector.shape_cast %597 : vector<16xf32> to vector<16x1xf32>
    %cst_218 = arith.constant 3.200000e+01 : f32
    %599 = vector.broadcast %cst_218 : f32 to vector<16x1xf32>
    %600 = arith.divf %598, %599 : vector<16x1xf32>
    %cst_219 = arith.constant 9.99999996E-13 : f32
    %601 = vector.broadcast %cst_219 : f32 to vector<16x1xf32>
    %602 = arith.addf %600, %601 : vector<16x1xf32>
    %603 = math.rsqrt %602 : vector<16x1xf32>
    %604 = vector.broadcast %603 : vector<16x1xf32> to vector<16x32xf32>
    %605 = arith.mulf %595, %604 : vector<16x32xf32>
    %606 = vector.broadcast %588 : vector<1x32xf32> to vector<16x32xf32>
    %607 = arith.mulf %605, %606 : vector<16x32xf32>
    %608 = vector.broadcast %589 : vector<1x32xf32> to vector<16x32xf32>
    %609 = arith.addf %607, %608 : vector<16x32xf32>
    %610 = vector.extract_strided_slice %568 {offsets = [0, 0], sizes = [8, 32], strides = [1, 1]} : vector<16x32xf32> to vector<8x32xf32>
    %611 = vector.extract_strided_slice %609 {offsets = [0, 0], sizes = [8, 32], strides = [1, 1]} : vector<16x32xf32> to vector<8x32xf32>
    %612 = vector.extract_strided_slice %568 {offsets = [8, 0], sizes = [8, 32], strides = [1, 1]} : vector<16x32xf32> to vector<8x32xf32>
    %613 = vector.extract_strided_slice %609 {offsets = [8, 0], sizes = [8, 32], strides = [1, 1]} : vector<16x32xf32> to vector<8x32xf32>
    %614 = tpu.concatenate %610, %611, %612, %613 in 0 : vector<8x32xf32>, vector<8x32xf32>, vector<8x32xf32>, vector<8x32xf32> -> vector<32x32xf32>
    %615 = tpu.iota {dimensions = array<i32: 0>} : vector<16x16xi32>
    %616 = tpu.iota {dimensions = array<i32: 1>} : vector<16x16xi32>
    %c8_i32 = arith.constant 8 : i32
    %617 = vector.broadcast %c8_i32 : i32 to vector<16x16xi32>
    %618 = arith.cmpi slt, %615, %617 : vector<16x16xi32>
    %c8_i32_220 = arith.constant 8 : i32
    %619 = vector.broadcast %c8_i32_220 : i32 to vector<16x16xi32>
    %620 = arith.cmpi sge, %616, %619 : vector<16x16xi32>
    %cst_221 = arith.constant -1.000000e+09 : f32
    %cst_222 = arith.constant 0.000000e+00 : f32
    %621 = vector.broadcast %cst_221 : f32 to vector<16x16xf32>
    %622 = vector.broadcast %cst_222 : f32 to vector<16x16xf32>
    %623 = arith.select %620, %621, %622 : vector<16x16xi1>, vector<16x16xf32>
    %624 = arith.cmpi sgt, %616, %615 : vector<16x16xi32>
    %cst_223 = arith.constant -1.000000e+09 : f32
    %cst_224 = arith.constant 0.000000e+00 : f32
    %625 = vector.broadcast %cst_223 : f32 to vector<16x16xf32>
    %626 = vector.broadcast %cst_224 : f32 to vector<16x16xf32>
    %627 = arith.select %624, %625, %626 : vector<16x16xi1>, vector<16x16xf32>
    %628 = arith.select %618, %623, %627 : vector<16x16xi1>, vector<16x16xf32>
    %c5_i32_225 = arith.constant 5 : i32
    %629 = vector.broadcast %c5_i32_225 : i32 to vector<16x16xi32>
    %630 = arith.cmpi sge, %616, %629 : vector<16x16xi32>
    %c8_i32_226 = arith.constant 8 : i32
    %631 = vector.broadcast %c8_i32_226 : i32 to vector<16x16xi32>
    %632 = arith.cmpi slt, %616, %631 : vector<16x16xi32>
    %633 = arith.andi %630, %632 : vector<16x16xi1>
    %cst_227 = arith.constant -1.000000e+09 : f32
    %cst_228 = arith.constant 0.000000e+00 : f32
    %634 = vector.broadcast %cst_227 : f32 to vector<16x16xf32>
    %635 = vector.broadcast %cst_228 : f32 to vector<16x16xf32>
    %636 = arith.select %633, %634, %635 : vector<16x16xi1>, vector<16x16xf32>
    %637 = arith.addf %628, %636 : vector<16x16xf32>
    %c0_229 = arith.constant 0 : index
    %c0_230 = arith.constant 0 : index
    %c0_231 = arith.constant 0 : index
    %638 = vector.load %arg3[%c0_229, %c0_230, %c0_231] : memref<2x1x16xf32, #tpu.memory_space<vmem>>, vector<2x1x16xf32>
    %639 = vector.extract_strided_slice %638 {offsets = [0, 0, 0], sizes = [1, 1, 16], strides = [1, 1, 1]} : vector<2x1x16xf32> to vector<1x1x16xf32>
    %640 = vector.shape_cast %639 : vector<1x1x16xf32> to vector<1x16xf32>
    %641 = vector.broadcast %640 : vector<1x16xf32> to vector<16x16xf32>
    %642 = arith.addf %637, %641 : vector<16x16xf32>
    %643 = vector.extract_strided_slice %638 {offsets = [1, 0, 0], sizes = [1, 1, 16], strides = [1, 1, 1]} : vector<2x1x16xf32> to vector<1x1x16xf32>
    %644 = vector.shape_cast %643 : vector<1x1x16xf32> to vector<1x16xf32>
    %645 = vector.broadcast %644 : vector<1x16xf32> to vector<16x16xf32>
    %646 = arith.addf %637, %645 : vector<16x16xf32>
    %c248 = arith.constant 248 : index
    %c0_232 = arith.constant 0 : index
    %647 = vector.load %arg4[%c248, %c0_232] : memref<1432x128xf32, #tpu.memory_space<vmem>>, vector<32x96xf32>
    %cst_233 = arith.constant dense<0.000000e+00> : vector<32x96xf32>
    %648 = tpu.matmul %614, %647, %cst_233 {dimension_numbers = #tpu.dot_dimension_numbers<[1], [0], [0], [1], [0, 0, 1, 1], [], []>} : vector<32x32xf32>, vector<32x96xf32>, vector<32x96xf32> -> vector<32x96xf32>
    %c112 = arith.constant 112 : index
    %c0_234 = arith.constant 0 : index
    %649 = vector.load %arg4[%c112, %c0_234] : memref<1432x128xf32, #tpu.memory_space<vmem>>, vector<1x96xf32>
    %650 = vector.broadcast %649 : vector<1x96xf32> to vector<32x96xf32>
    %651 = arith.addf %648, %650 : vector<32x96xf32>
    %652 = vector.extract_strided_slice %651 {offsets = [0, 0], sizes = [16, 96], strides = [1, 1]} : vector<32x96xf32> to vector<16x96xf32>
    %653 = vector.extract_strided_slice %652 {offsets = [0, 0], sizes = [16, 8], strides = [1, 1]} : vector<16x96xf32> to vector<16x8xf32>
    %654 = vector.extract_strided_slice %652 {offsets = [0, 32], sizes = [16, 8], strides = [1, 1]} : vector<16x96xf32> to vector<16x8xf32>
    %655 = vector.extract_strided_slice %652 {offsets = [0, 64], sizes = [16, 8], strides = [1, 1]} : vector<16x96xf32> to vector<16x8xf32>
    %cst_235 = arith.constant dense<0.000000e+00> : vector<16x16xf32>
    %656 = tpu.matmul %653, %654, %cst_235 {dimension_numbers = #tpu.dot_dimension_numbers<[1], [1], [0], [0], [0, 0, 1, 0], [], []>} : vector<16x8xf32>, vector<16x8xf32>, vector<16x16xf32> -> vector<16x16xf32>
    %cst_236 = arith.constant 0.353553385 : f32
    %657 = vector.broadcast %cst_236 : f32 to vector<16x16xf32>
    %658 = arith.mulf %656, %657 : vector<16x16xf32>
    %659 = arith.addf %658, %642 : vector<16x16xf32>
    %cst_237 = arith.constant dense<0xFF800000> : vector<16xf32>
    %660 = vector.multi_reduction <maximumf>, %659, %cst_237 [1] : vector<16x16xf32> to vector<16xf32>
    %661 = vector.shape_cast %660 : vector<16xf32> to vector<16x1xf32>
    %662 = vector.broadcast %661 : vector<16x1xf32> to vector<16x16xf32>
    %663 = arith.subf %659, %662 : vector<16x16xf32>
    %664 = math.exp %663 : vector<16x16xf32>
    %cst_238 = arith.constant dense<0.000000e+00> : vector<16xf32>
    %665 = vector.multi_reduction <add>, %664, %cst_238 [1] : vector<16x16xf32> to vector<16xf32>
    %666 = vector.shape_cast %665 : vector<16xf32> to vector<16x1xf32>
    %667 = tpu.reciprocal %666 {approx = true} : vector<16x1xf32> -> vector<16x1xf32>
    %668 = vector.broadcast %667 : vector<16x1xf32> to vector<16x16xf32>
    %669 = arith.mulf %664, %668 : vector<16x16xf32>
    %cst_239 = arith.constant dense<0.000000e+00> : vector<16x8xf32>
    %670 = tpu.matmul %669, %655, %cst_239 {dimension_numbers = #tpu.dot_dimension_numbers<[1], [0], [0], [1], [0, 0, 1, 1], [], []>} : vector<16x16xf32>, vector<16x8xf32>, vector<16x8xf32> -> vector<16x8xf32>
    %c80 = arith.constant 80 : index
    %c0_240 = arith.constant 0 : index
    %671 = vector.load %arg4[%c80, %c0_240] : memref<1432x128xf32, #tpu.memory_space<vmem>>, vector<8x32xf32>
    %cst_241 = arith.constant dense<0.000000e+00> : vector<16x32xf32>
    %672 = tpu.matmul %670, %671, %cst_241 {dimension_numbers = #tpu.dot_dimension_numbers<[1], [0], [0], [1], [0, 0, 1, 1], [], []>} : vector<16x8xf32>, vector<8x32xf32>, vector<16x32xf32> -> vector<16x32xf32>
    %673 = vector.extract_strided_slice %652 {offsets = [0, 8], sizes = [16, 8], strides = [1, 1]} : vector<16x96xf32> to vector<16x8xf32>
    %674 = vector.extract_strided_slice %652 {offsets = [0, 40], sizes = [16, 8], strides = [1, 1]} : vector<16x96xf32> to vector<16x8xf32>
    %675 = vector.extract_strided_slice %652 {offsets = [0, 72], sizes = [16, 8], strides = [1, 1]} : vector<16x96xf32> to vector<16x8xf32>
    %cst_242 = arith.constant dense<0.000000e+00> : vector<16x16xf32>
    %676 = tpu.matmul %673, %674, %cst_242 {dimension_numbers = #tpu.dot_dimension_numbers<[1], [1], [0], [0], [0, 0, 1, 0], [], []>} : vector<16x8xf32>, vector<16x8xf32>, vector<16x16xf32> -> vector<16x16xf32>
    %cst_243 = arith.constant 0.353553385 : f32
    %677 = vector.broadcast %cst_243 : f32 to vector<16x16xf32>
    %678 = arith.mulf %676, %677 : vector<16x16xf32>
    %679 = arith.addf %678, %642 : vector<16x16xf32>
    %cst_244 = arith.constant dense<0xFF800000> : vector<16xf32>
    %680 = vector.multi_reduction <maximumf>, %679, %cst_244 [1] : vector<16x16xf32> to vector<16xf32>
    %681 = vector.shape_cast %680 : vector<16xf32> to vector<16x1xf32>
    %682 = vector.broadcast %681 : vector<16x1xf32> to vector<16x16xf32>
    %683 = arith.subf %679, %682 : vector<16x16xf32>
    %684 = math.exp %683 : vector<16x16xf32>
    %cst_245 = arith.constant dense<0.000000e+00> : vector<16xf32>
    %685 = vector.multi_reduction <add>, %684, %cst_245 [1] : vector<16x16xf32> to vector<16xf32>
    %686 = vector.shape_cast %685 : vector<16xf32> to vector<16x1xf32>
    %687 = tpu.reciprocal %686 {approx = true} : vector<16x1xf32> -> vector<16x1xf32>
    %688 = vector.broadcast %687 : vector<16x1xf32> to vector<16x16xf32>
    %689 = arith.mulf %684, %688 : vector<16x16xf32>
    %cst_246 = arith.constant dense<0.000000e+00> : vector<16x8xf32>
    %690 = tpu.matmul %689, %675, %cst_246 {dimension_numbers = #tpu.dot_dimension_numbers<[1], [0], [0], [1], [0, 0, 1, 1], [], []>} : vector<16x16xf32>, vector<16x8xf32>, vector<16x8xf32> -> vector<16x8xf32>
    %c88 = arith.constant 88 : index
    %c0_247 = arith.constant 0 : index
    %691 = vector.load %arg4[%c88, %c0_247] : memref<1432x128xf32, #tpu.memory_space<vmem>>, vector<8x32xf32>
    %cst_248 = arith.constant dense<0.000000e+00> : vector<16x32xf32>
    %692 = tpu.matmul %690, %691, %cst_248 {dimension_numbers = #tpu.dot_dimension_numbers<[1], [0], [0], [1], [0, 0, 1, 1], [], []>} : vector<16x8xf32>, vector<8x32xf32>, vector<16x32xf32> -> vector<16x32xf32>
    %693 = arith.addf %672, %692 : vector<16x32xf32>
    %694 = vector.extract_strided_slice %652 {offsets = [0, 16], sizes = [16, 8], strides = [1, 1]} : vector<16x96xf32> to vector<16x8xf32>
    %695 = vector.extract_strided_slice %652 {offsets = [0, 48], sizes = [16, 8], strides = [1, 1]} : vector<16x96xf32> to vector<16x8xf32>
    %696 = vector.extract_strided_slice %652 {offsets = [0, 80], sizes = [16, 8], strides = [1, 1]} : vector<16x96xf32> to vector<16x8xf32>
    %cst_249 = arith.constant dense<0.000000e+00> : vector<16x16xf32>
    %697 = tpu.matmul %694, %695, %cst_249 {dimension_numbers = #tpu.dot_dimension_numbers<[1], [1], [0], [0], [0, 0, 1, 0], [], []>} : vector<16x8xf32>, vector<16x8xf32>, vector<16x16xf32> -> vector<16x16xf32>
    %cst_250 = arith.constant 0.353553385 : f32
    %698 = vector.broadcast %cst_250 : f32 to vector<16x16xf32>
    %699 = arith.mulf %697, %698 : vector<16x16xf32>
    %700 = arith.addf %699, %642 : vector<16x16xf32>
    %cst_251 = arith.constant dense<0xFF800000> : vector<16xf32>
    %701 = vector.multi_reduction <maximumf>, %700, %cst_251 [1] : vector<16x16xf32> to vector<16xf32>
    %702 = vector.shape_cast %701 : vector<16xf32> to vector<16x1xf32>
    %703 = vector.broadcast %702 : vector<16x1xf32> to vector<16x16xf32>
    %704 = arith.subf %700, %703 : vector<16x16xf32>
    %705 = math.exp %704 : vector<16x16xf32>
    %cst_252 = arith.constant dense<0.000000e+00> : vector<16xf32>
    %706 = vector.multi_reduction <add>, %705, %cst_252 [1] : vector<16x16xf32> to vector<16xf32>
    %707 = vector.shape_cast %706 : vector<16xf32> to vector<16x1xf32>
    %708 = tpu.reciprocal %707 {approx = true} : vector<16x1xf32> -> vector<16x1xf32>
    %709 = vector.broadcast %708 : vector<16x1xf32> to vector<16x16xf32>
    %710 = arith.mulf %705, %709 : vector<16x16xf32>
    %cst_253 = arith.constant dense<0.000000e+00> : vector<16x8xf32>
    %711 = tpu.matmul %710, %696, %cst_253 {dimension_numbers = #tpu.dot_dimension_numbers<[1], [0], [0], [1], [0, 0, 1, 1], [], []>} : vector<16x16xf32>, vector<16x8xf32>, vector<16x8xf32> -> vector<16x8xf32>
    %c96 = arith.constant 96 : index
    %c0_254 = arith.constant 0 : index
    %712 = vector.load %arg4[%c96, %c0_254] : memref<1432x128xf32, #tpu.memory_space<vmem>>, vector<8x32xf32>
    %cst_255 = arith.constant dense<0.000000e+00> : vector<16x32xf32>
    %713 = tpu.matmul %711, %712, %cst_255 {dimension_numbers = #tpu.dot_dimension_numbers<[1], [0], [0], [1], [0, 0, 1, 1], [], []>} : vector<16x8xf32>, vector<8x32xf32>, vector<16x32xf32> -> vector<16x32xf32>
    %714 = arith.addf %693, %713 : vector<16x32xf32>
    %715 = vector.extract_strided_slice %652 {offsets = [0, 24], sizes = [16, 8], strides = [1, 1]} : vector<16x96xf32> to vector<16x8xf32>
    %716 = vector.extract_strided_slice %652 {offsets = [0, 56], sizes = [16, 8], strides = [1, 1]} : vector<16x96xf32> to vector<16x8xf32>
    %717 = vector.extract_strided_slice %652 {offsets = [0, 88], sizes = [16, 8], strides = [1, 1]} : vector<16x96xf32> to vector<16x8xf32>
    %cst_256 = arith.constant dense<0.000000e+00> : vector<16x16xf32>
    %718 = tpu.matmul %715, %716, %cst_256 {dimension_numbers = #tpu.dot_dimension_numbers<[1], [1], [0], [0], [0, 0, 1, 0], [], []>} : vector<16x8xf32>, vector<16x8xf32>, vector<16x16xf32> -> vector<16x16xf32>
    %cst_257 = arith.constant 0.353553385 : f32
    %719 = vector.broadcast %cst_257 : f32 to vector<16x16xf32>
    %720 = arith.mulf %718, %719 : vector<16x16xf32>
    %721 = arith.addf %720, %642 : vector<16x16xf32>
    %cst_258 = arith.constant dense<0xFF800000> : vector<16xf32>
    %722 = vector.multi_reduction <maximumf>, %721, %cst_258 [1] : vector<16x16xf32> to vector<16xf32>
    %723 = vector.shape_cast %722 : vector<16xf32> to vector<16x1xf32>
    %724 = vector.broadcast %723 : vector<16x1xf32> to vector<16x16xf32>
    %725 = arith.subf %721, %724 : vector<16x16xf32>
    %726 = math.exp %725 : vector<16x16xf32>
    %cst_259 = arith.constant dense<0.000000e+00> : vector<16xf32>
    %727 = vector.multi_reduction <add>, %726, %cst_259 [1] : vector<16x16xf32> to vector<16xf32>
    %728 = vector.shape_cast %727 : vector<16xf32> to vector<16x1xf32>
    %729 = tpu.reciprocal %728 {approx = true} : vector<16x1xf32> -> vector<16x1xf32>
    %730 = vector.broadcast %729 : vector<16x1xf32> to vector<16x16xf32>
    %731 = arith.mulf %726, %730 : vector<16x16xf32>
    %cst_260 = arith.constant dense<0.000000e+00> : vector<16x8xf32>
    %732 = tpu.matmul %731, %717, %cst_260 {dimension_numbers = #tpu.dot_dimension_numbers<[1], [0], [0], [1], [0, 0, 1, 1], [], []>} : vector<16x16xf32>, vector<16x8xf32>, vector<16x8xf32> -> vector<16x8xf32>
    %c104 = arith.constant 104 : index
    %c0_261 = arith.constant 0 : index
    %733 = vector.load %arg4[%c104, %c0_261] : memref<1432x128xf32, #tpu.memory_space<vmem>>, vector<8x32xf32>
    %cst_262 = arith.constant dense<0.000000e+00> : vector<16x32xf32>
    %734 = tpu.matmul %732, %733, %cst_262 {dimension_numbers = #tpu.dot_dimension_numbers<[1], [0], [0], [1], [0, 0, 1, 1], [], []>} : vector<16x8xf32>, vector<8x32xf32>, vector<16x32xf32> -> vector<16x32xf32>
    %735 = arith.addf %714, %734 : vector<16x32xf32>
    %736 = vector.extract_strided_slice %651 {offsets = [16, 0], sizes = [16, 96], strides = [1, 1]} : vector<32x96xf32> to vector<16x96xf32>
    %737 = vector.extract_strided_slice %736 {offsets = [0, 0], sizes = [16, 8], strides = [1, 1]} : vector<16x96xf32> to vector<16x8xf32>
    %738 = vector.extract_strided_slice %736 {offsets = [0, 32], sizes = [16, 8], strides = [1, 1]} : vector<16x96xf32> to vector<16x8xf32>
    %739 = vector.extract_strided_slice %736 {offsets = [0, 64], sizes = [16, 8], strides = [1, 1]} : vector<16x96xf32> to vector<16x8xf32>
    %cst_263 = arith.constant dense<0.000000e+00> : vector<16x16xf32>
    %740 = tpu.matmul %737, %738, %cst_263 {dimension_numbers = #tpu.dot_dimension_numbers<[1], [1], [0], [0], [0, 0, 1, 0], [], []>} : vector<16x8xf32>, vector<16x8xf32>, vector<16x16xf32> -> vector<16x16xf32>
    %cst_264 = arith.constant 0.353553385 : f32
    %741 = vector.broadcast %cst_264 : f32 to vector<16x16xf32>
    %742 = arith.mulf %740, %741 : vector<16x16xf32>
    %743 = arith.addf %742, %646 : vector<16x16xf32>
    %cst_265 = arith.constant dense<0xFF800000> : vector<16xf32>
    %744 = vector.multi_reduction <maximumf>, %743, %cst_265 [1] : vector<16x16xf32> to vector<16xf32>
    %745 = vector.shape_cast %744 : vector<16xf32> to vector<16x1xf32>
    %746 = vector.broadcast %745 : vector<16x1xf32> to vector<16x16xf32>
    %747 = arith.subf %743, %746 : vector<16x16xf32>
    %748 = math.exp %747 : vector<16x16xf32>
    %cst_266 = arith.constant dense<0.000000e+00> : vector<16xf32>
    %749 = vector.multi_reduction <add>, %748, %cst_266 [1] : vector<16x16xf32> to vector<16xf32>
    %750 = vector.shape_cast %749 : vector<16xf32> to vector<16x1xf32>
    %751 = tpu.reciprocal %750 {approx = true} : vector<16x1xf32> -> vector<16x1xf32>
    %752 = vector.broadcast %751 : vector<16x1xf32> to vector<16x16xf32>
    %753 = arith.mulf %748, %752 : vector<16x16xf32>
    %cst_267 = arith.constant dense<0.000000e+00> : vector<16x8xf32>
    %754 = tpu.matmul %753, %739, %cst_267 {dimension_numbers = #tpu.dot_dimension_numbers<[1], [0], [0], [1], [0, 0, 1, 1], [], []>} : vector<16x16xf32>, vector<16x8xf32>, vector<16x8xf32> -> vector<16x8xf32>
    %c80_268 = arith.constant 80 : index
    %c0_269 = arith.constant 0 : index
    %755 = vector.load %arg4[%c80_268, %c0_269] : memref<1432x128xf32, #tpu.memory_space<vmem>>, vector<8x32xf32>
    %cst_270 = arith.constant dense<0.000000e+00> : vector<16x32xf32>
    %756 = tpu.matmul %754, %755, %cst_270 {dimension_numbers = #tpu.dot_dimension_numbers<[1], [0], [0], [1], [0, 0, 1, 1], [], []>} : vector<16x8xf32>, vector<8x32xf32>, vector<16x32xf32> -> vector<16x32xf32>
    %757 = vector.extract_strided_slice %736 {offsets = [0, 8], sizes = [16, 8], strides = [1, 1]} : vector<16x96xf32> to vector<16x8xf32>
    %758 = vector.extract_strided_slice %736 {offsets = [0, 40], sizes = [16, 8], strides = [1, 1]} : vector<16x96xf32> to vector<16x8xf32>
    %759 = vector.extract_strided_slice %736 {offsets = [0, 72], sizes = [16, 8], strides = [1, 1]} : vector<16x96xf32> to vector<16x8xf32>
    %cst_271 = arith.constant dense<0.000000e+00> : vector<16x16xf32>
    %760 = tpu.matmul %757, %758, %cst_271 {dimension_numbers = #tpu.dot_dimension_numbers<[1], [1], [0], [0], [0, 0, 1, 0], [], []>} : vector<16x8xf32>, vector<16x8xf32>, vector<16x16xf32> -> vector<16x16xf32>
    %cst_272 = arith.constant 0.353553385 : f32
    %761 = vector.broadcast %cst_272 : f32 to vector<16x16xf32>
    %762 = arith.mulf %760, %761 : vector<16x16xf32>
    %763 = arith.addf %762, %646 : vector<16x16xf32>
    %cst_273 = arith.constant dense<0xFF800000> : vector<16xf32>
    %764 = vector.multi_reduction <maximumf>, %763, %cst_273 [1] : vector<16x16xf32> to vector<16xf32>
    %765 = vector.shape_cast %764 : vector<16xf32> to vector<16x1xf32>
    %766 = vector.broadcast %765 : vector<16x1xf32> to vector<16x16xf32>
    %767 = arith.subf %763, %766 : vector<16x16xf32>
    %768 = math.exp %767 : vector<16x16xf32>
    %cst_274 = arith.constant dense<0.000000e+00> : vector<16xf32>
    %769 = vector.multi_reduction <add>, %768, %cst_274 [1] : vector<16x16xf32> to vector<16xf32>
    %770 = vector.shape_cast %769 : vector<16xf32> to vector<16x1xf32>
    %771 = tpu.reciprocal %770 {approx = true} : vector<16x1xf32> -> vector<16x1xf32>
    %772 = vector.broadcast %771 : vector<16x1xf32> to vector<16x16xf32>
    %773 = arith.mulf %768, %772 : vector<16x16xf32>
    %cst_275 = arith.constant dense<0.000000e+00> : vector<16x8xf32>
    %774 = tpu.matmul %773, %759, %cst_275 {dimension_numbers = #tpu.dot_dimension_numbers<[1], [0], [0], [1], [0, 0, 1, 1], [], []>} : vector<16x16xf32>, vector<16x8xf32>, vector<16x8xf32> -> vector<16x8xf32>
    %c88_276 = arith.constant 88 : index
    %c0_277 = arith.constant 0 : index
    %775 = vector.load %arg4[%c88_276, %c0_277] : memref<1432x128xf32, #tpu.memory_space<vmem>>, vector<8x32xf32>
    %cst_278 = arith.constant dense<0.000000e+00> : vector<16x32xf32>
    %776 = tpu.matmul %774, %775, %cst_278 {dimension_numbers = #tpu.dot_dimension_numbers<[1], [0], [0], [1], [0, 0, 1, 1], [], []>} : vector<16x8xf32>, vector<8x32xf32>, vector<16x32xf32> -> vector<16x32xf32>
    %777 = arith.addf %756, %776 : vector<16x32xf32>
    %778 = vector.extract_strided_slice %736 {offsets = [0, 16], sizes = [16, 8], strides = [1, 1]} : vector<16x96xf32> to vector<16x8xf32>
    %779 = vector.extract_strided_slice %736 {offsets = [0, 48], sizes = [16, 8], strides = [1, 1]} : vector<16x96xf32> to vector<16x8xf32>
    %780 = vector.extract_strided_slice %736 {offsets = [0, 80], sizes = [16, 8], strides = [1, 1]} : vector<16x96xf32> to vector<16x8xf32>
    %cst_279 = arith.constant dense<0.000000e+00> : vector<16x16xf32>
    %781 = tpu.matmul %778, %779, %cst_279 {dimension_numbers = #tpu.dot_dimension_numbers<[1], [1], [0], [0], [0, 0, 1, 0], [], []>} : vector<16x8xf32>, vector<16x8xf32>, vector<16x16xf32> -> vector<16x16xf32>
    %cst_280 = arith.constant 0.353553385 : f32
    %782 = vector.broadcast %cst_280 : f32 to vector<16x16xf32>
    %783 = arith.mulf %781, %782 : vector<16x16xf32>
    %784 = arith.addf %783, %646 : vector<16x16xf32>
    %cst_281 = arith.constant dense<0xFF800000> : vector<16xf32>
    %785 = vector.multi_reduction <maximumf>, %784, %cst_281 [1] : vector<16x16xf32> to vector<16xf32>
    %786 = vector.shape_cast %785 : vector<16xf32> to vector<16x1xf32>
    %787 = vector.broadcast %786 : vector<16x1xf32> to vector<16x16xf32>
    %788 = arith.subf %784, %787 : vector<16x16xf32>
    %789 = math.exp %788 : vector<16x16xf32>
    %cst_282 = arith.constant dense<0.000000e+00> : vector<16xf32>
    %790 = vector.multi_reduction <add>, %789, %cst_282 [1] : vector<16x16xf32> to vector<16xf32>
    %791 = vector.shape_cast %790 : vector<16xf32> to vector<16x1xf32>
    %792 = tpu.reciprocal %791 {approx = true} : vector<16x1xf32> -> vector<16x1xf32>
    %793 = vector.broadcast %792 : vector<16x1xf32> to vector<16x16xf32>
    %794 = arith.mulf %789, %793 : vector<16x16xf32>
    %cst_283 = arith.constant dense<0.000000e+00> : vector<16x8xf32>
    %795 = tpu.matmul %794, %780, %cst_283 {dimension_numbers = #tpu.dot_dimension_numbers<[1], [0], [0], [1], [0, 0, 1, 1], [], []>} : vector<16x16xf32>, vector<16x8xf32>, vector<16x8xf32> -> vector<16x8xf32>
    %c96_284 = arith.constant 96 : index
    %c0_285 = arith.constant 0 : index
    %796 = vector.load %arg4[%c96_284, %c0_285] : memref<1432x128xf32, #tpu.memory_space<vmem>>, vector<8x32xf32>
    %cst_286 = arith.constant dense<0.000000e+00> : vector<16x32xf32>
    %797 = tpu.matmul %795, %796, %cst_286 {dimension_numbers = #tpu.dot_dimension_numbers<[1], [0], [0], [1], [0, 0, 1, 1], [], []>} : vector<16x8xf32>, vector<8x32xf32>, vector<16x32xf32> -> vector<16x32xf32>
    %798 = arith.addf %777, %797 : vector<16x32xf32>
    %799 = vector.extract_strided_slice %736 {offsets = [0, 24], sizes = [16, 8], strides = [1, 1]} : vector<16x96xf32> to vector<16x8xf32>
    %800 = vector.extract_strided_slice %736 {offsets = [0, 56], sizes = [16, 8], strides = [1, 1]} : vector<16x96xf32> to vector<16x8xf32>
    %801 = vector.extract_strided_slice %736 {offsets = [0, 88], sizes = [16, 8], strides = [1, 1]} : vector<16x96xf32> to vector<16x8xf32>
    %cst_287 = arith.constant dense<0.000000e+00> : vector<16x16xf32>
    %802 = tpu.matmul %799, %800, %cst_287 {dimension_numbers = #tpu.dot_dimension_numbers<[1], [1], [0], [0], [0, 0, 1, 0], [], []>} : vector<16x8xf32>, vector<16x8xf32>, vector<16x16xf32> -> vector<16x16xf32>
    %cst_288 = arith.constant 0.353553385 : f32
    %803 = vector.broadcast %cst_288 : f32 to vector<16x16xf32>
    %804 = arith.mulf %802, %803 : vector<16x16xf32>
    %805 = arith.addf %804, %646 : vector<16x16xf32>
    %cst_289 = arith.constant dense<0xFF800000> : vector<16xf32>
    %806 = vector.multi_reduction <maximumf>, %805, %cst_289 [1] : vector<16x16xf32> to vector<16xf32>
    %807 = vector.shape_cast %806 : vector<16xf32> to vector<16x1xf32>
    %808 = vector.broadcast %807 : vector<16x1xf32> to vector<16x16xf32>
    %809 = arith.subf %805, %808 : vector<16x16xf32>
    %810 = math.exp %809 : vector<16x16xf32>
    %cst_290 = arith.constant dense<0.000000e+00> : vector<16xf32>
    %811 = vector.multi_reduction <add>, %810, %cst_290 [1] : vector<16x16xf32> to vector<16xf32>
    %812 = vector.shape_cast %811 : vector<16xf32> to vector<16x1xf32>
    %813 = tpu.reciprocal %812 {approx = true} : vector<16x1xf32> -> vector<16x1xf32>
    %814 = vector.broadcast %813 : vector<16x1xf32> to vector<16x16xf32>
    %815 = arith.mulf %810, %814 : vector<16x16xf32>
    %cst_291 = arith.constant dense<0.000000e+00> : vector<16x8xf32>
    %816 = tpu.matmul %815, %801, %cst_291 {dimension_numbers = #tpu.dot_dimension_numbers<[1], [0], [0], [1], [0, 0, 1, 1], [], []>} : vector<16x16xf32>, vector<16x8xf32>, vector<16x8xf32> -> vector<16x8xf32>
    %c104_292 = arith.constant 104 : index
    %c0_293 = arith.constant 0 : index
    %817 = vector.load %arg4[%c104_292, %c0_293] : memref<1432x128xf32, #tpu.memory_space<vmem>>, vector<8x32xf32>
    %cst_294 = arith.constant dense<0.000000e+00> : vector<16x32xf32>
    %818 = tpu.matmul %816, %817, %cst_294 {dimension_numbers = #tpu.dot_dimension_numbers<[1], [0], [0], [1], [0, 0, 1, 1], [], []>} : vector<16x8xf32>, vector<8x32xf32>, vector<16x32xf32> -> vector<16x32xf32>
    %819 = arith.addf %798, %818 : vector<16x32xf32>
    %820 = tpu.concatenate %735, %819 in 0 : vector<16x32xf32>, vector<16x32xf32> -> vector<32x32xf32>
    %c72 = arith.constant 72 : index
    %c0_295 = arith.constant 0 : index
    %821 = vector.load %arg4[%c72, %c0_295] : memref<1432x128xf32, #tpu.memory_space<vmem>>, vector<1x32xf32>
    %822 = vector.broadcast %821 : vector<1x32xf32> to vector<32x32xf32>
    %823 = arith.addf %820, %822 : vector<32x32xf32>
    %824 = arith.addf %823, %614 : vector<32x32xf32>
    %c64 = arith.constant 64 : index
    %c0_296 = arith.constant 0 : index
    %825 = vector.load %arg4[%c64, %c0_296] : memref<1432x128xf32, #tpu.memory_space<vmem>>, vector<1x32xf32>
    %c56 = arith.constant 56 : index
    %c0_297 = arith.constant 0 : index
    %826 = vector.load %arg4[%c56, %c0_297] : memref<1432x128xf32, #tpu.memory_space<vmem>>, vector<1x32xf32>
    %cst_298 = arith.constant dense<0.000000e+00> : vector<32xf32>
    %827 = vector.multi_reduction <add>, %824, %cst_298 [1] : vector<32x32xf32> to vector<32xf32>
    %828 = vector.shape_cast %827 : vector<32xf32> to vector<32x1xf32>
    %cst_299 = arith.constant 3.200000e+01 : f32
    %829 = vector.broadcast %cst_299 : f32 to vector<32x1xf32>
    %830 = arith.divf %828, %829 : vector<32x1xf32>
    %831 = vector.broadcast %830 : vector<32x1xf32> to vector<32x32xf32>
    %832 = arith.subf %824, %831 : vector<32x32xf32>
    %833 = arith.mulf %832, %832 : vector<32x32xf32>
    %cst_300 = arith.constant dense<0.000000e+00> : vector<32xf32>
    %834 = vector.multi_reduction <add>, %833, %cst_300 [1] : vector<32x32xf32> to vector<32xf32>
    %835 = vector.shape_cast %834 : vector<32xf32> to vector<32x1xf32>
    %cst_301 = arith.constant 3.200000e+01 : f32
    %836 = vector.broadcast %cst_301 : f32 to vector<32x1xf32>
    %837 = arith.divf %835, %836 : vector<32x1xf32>
    %cst_302 = arith.constant 9.99999996E-13 : f32
    %838 = vector.broadcast %cst_302 : f32 to vector<32x1xf32>
    %839 = arith.addf %837, %838 : vector<32x1xf32>
    %840 = math.rsqrt %839 : vector<32x1xf32>
    %841 = vector.broadcast %840 : vector<32x1xf32> to vector<32x32xf32>
    %842 = arith.mulf %832, %841 : vector<32x32xf32>
    %843 = vector.broadcast %825 : vector<1x32xf32> to vector<32x32xf32>
    %844 = arith.mulf %842, %843 : vector<32x32xf32>
    %845 = vector.broadcast %826 : vector<1x32xf32> to vector<32x32xf32>
    %846 = arith.addf %844, %845 : vector<32x32xf32>
    %c128 = arith.constant 128 : index
    %c0_303 = arith.constant 0 : index
    %847 = vector.load %arg4[%c128, %c0_303] : memref<1432x128xf32, #tpu.memory_space<vmem>>, vector<32x64xf32>
    %cst_304 = arith.constant dense<0.000000e+00> : vector<32x64xf32>
    %848 = tpu.matmul %846, %847, %cst_304 {dimension_numbers = #tpu.dot_dimension_numbers<[1], [0], [0], [1], [0, 0, 1, 1], [], []>} : vector<32x32xf32>, vector<32x64xf32>, vector<32x64xf32> -> vector<32x64xf32>
    %c120 = arith.constant 120 : index
    %c0_305 = arith.constant 0 : index
    %849 = vector.load %arg4[%c120, %c0_305] : memref<1432x128xf32, #tpu.memory_space<vmem>>, vector<1x64xf32>
    %850 = vector.broadcast %849 : vector<1x64xf32> to vector<32x64xf32>
    %851 = arith.addf %848, %850 : vector<32x64xf32>
    %852 = arith.mulf %851, %851 : vector<32x64xf32>
    %853 = arith.mulf %851, %852 : vector<32x64xf32>
    %cst_306 = arith.constant 4.471500e-02 : f32
    %854 = vector.broadcast %cst_306 : f32 to vector<32x64xf32>
    %855 = arith.mulf %854, %853 : vector<32x64xf32>
    %856 = arith.addf %851, %855 : vector<32x64xf32>
    %cst_307 = arith.constant 0.797884583 : f32
    %857 = vector.broadcast %cst_307 : f32 to vector<32x64xf32>
    %858 = arith.mulf %857, %856 : vector<32x64xf32>
    %859 = math.tanh %858 : vector<32x64xf32>
    %cst_308 = arith.constant 1.000000e+00 : f32
    %860 = vector.broadcast %cst_308 : f32 to vector<32x64xf32>
    %861 = arith.addf %860, %859 : vector<32x64xf32>
    %cst_309 = arith.constant 5.000000e-01 : f32
    %862 = vector.broadcast %cst_309 : f32 to vector<32x64xf32>
    %863 = arith.mulf %862, %861 : vector<32x64xf32>
    %864 = arith.mulf %851, %863 : vector<32x64xf32>
    %c184 = arith.constant 184 : index
    %c0_310 = arith.constant 0 : index
    %865 = vector.load %arg4[%c184, %c0_310] : memref<1432x128xf32, #tpu.memory_space<vmem>>, vector<64x32xf32>
    %cst_311 = arith.constant dense<0.000000e+00> : vector<32x32xf32>
    %866 = tpu.matmul %864, %865, %cst_311 {dimension_numbers = #tpu.dot_dimension_numbers<[1], [0], [0], [1], [0, 0, 1, 1], [], []>} : vector<32x64xf32>, vector<64x32xf32>, vector<32x32xf32> -> vector<32x32xf32>
    %c160 = arith.constant 160 : index
    %c0_312 = arith.constant 0 : index
    %867 = vector.load %arg4[%c160, %c0_312] : memref<1432x128xf32, #tpu.memory_space<vmem>>, vector<1x32xf32>
    %868 = vector.broadcast %867 : vector<1x32xf32> to vector<32x32xf32>
    %869 = arith.addf %866, %868 : vector<32x32xf32>
    %870 = arith.addf %869, %846 : vector<32x32xf32>
    %c176 = arith.constant 176 : index
    %c0_313 = arith.constant 0 : index
    %871 = vector.load %arg4[%c176, %c0_313] : memref<1432x128xf32, #tpu.memory_space<vmem>>, vector<1x32xf32>
    %c168 = arith.constant 168 : index
    %c0_314 = arith.constant 0 : index
    %872 = vector.load %arg4[%c168, %c0_314] : memref<1432x128xf32, #tpu.memory_space<vmem>>, vector<1x32xf32>
    %cst_315 = arith.constant dense<0.000000e+00> : vector<32xf32>
    %873 = vector.multi_reduction <add>, %870, %cst_315 [1] : vector<32x32xf32> to vector<32xf32>
    %874 = vector.shape_cast %873 : vector<32xf32> to vector<32x1xf32>
    %cst_316 = arith.constant 3.200000e+01 : f32
    %875 = vector.broadcast %cst_316 : f32 to vector<32x1xf32>
    %876 = arith.divf %874, %875 : vector<32x1xf32>
    %877 = vector.broadcast %876 : vector<32x1xf32> to vector<32x32xf32>
    %878 = arith.subf %870, %877 : vector<32x32xf32>
    %879 = arith.mulf %878, %878 : vector<32x32xf32>
    %cst_317 = arith.constant dense<0.000000e+00> : vector<32xf32>
    %880 = vector.multi_reduction <add>, %879, %cst_317 [1] : vector<32x32xf32> to vector<32xf32>
    %881 = vector.shape_cast %880 : vector<32xf32> to vector<32x1xf32>
    %cst_318 = arith.constant 3.200000e+01 : f32
    %882 = vector.broadcast %cst_318 : f32 to vector<32x1xf32>
    %883 = arith.divf %881, %882 : vector<32x1xf32>
    %cst_319 = arith.constant 9.99999996E-13 : f32
    %884 = vector.broadcast %cst_319 : f32 to vector<32x1xf32>
    %885 = arith.addf %883, %884 : vector<32x1xf32>
    %886 = math.rsqrt %885 : vector<32x1xf32>
    %887 = vector.broadcast %886 : vector<32x1xf32> to vector<32x32xf32>
    %888 = arith.mulf %878, %887 : vector<32x32xf32>
    %889 = vector.broadcast %871 : vector<1x32xf32> to vector<32x32xf32>
    %890 = arith.mulf %888, %889 : vector<32x32xf32>
    %891 = vector.broadcast %872 : vector<1x32xf32> to vector<32x32xf32>
    %892 = arith.addf %890, %891 : vector<32x32xf32>
    %c472 = arith.constant 472 : index
    %c0_320 = arith.constant 0 : index
    %893 = vector.load %arg4[%c472, %c0_320] : memref<1432x128xf32, #tpu.memory_space<vmem>>, vector<32x96xf32>
    %cst_321 = arith.constant dense<0.000000e+00> : vector<32x96xf32>
    %894 = tpu.matmul %892, %893, %cst_321 {dimension_numbers = #tpu.dot_dimension_numbers<[1], [0], [0], [1], [0, 0, 1, 1], [], []>} : vector<32x32xf32>, vector<32x96xf32>, vector<32x96xf32> -> vector<32x96xf32>
    %c336 = arith.constant 336 : index
    %c0_322 = arith.constant 0 : index
    %895 = vector.load %arg4[%c336, %c0_322] : memref<1432x128xf32, #tpu.memory_space<vmem>>, vector<1x96xf32>
    %896 = vector.broadcast %895 : vector<1x96xf32> to vector<32x96xf32>
    %897 = arith.addf %894, %896 : vector<32x96xf32>
    %898 = vector.extract_strided_slice %897 {offsets = [0, 0], sizes = [16, 96], strides = [1, 1]} : vector<32x96xf32> to vector<16x96xf32>
    %899 = vector.extract_strided_slice %898 {offsets = [0, 0], sizes = [16, 8], strides = [1, 1]} : vector<16x96xf32> to vector<16x8xf32>
    %900 = vector.extract_strided_slice %898 {offsets = [0, 32], sizes = [16, 8], strides = [1, 1]} : vector<16x96xf32> to vector<16x8xf32>
    %901 = vector.extract_strided_slice %898 {offsets = [0, 64], sizes = [16, 8], strides = [1, 1]} : vector<16x96xf32> to vector<16x8xf32>
    %cst_323 = arith.constant dense<0.000000e+00> : vector<16x16xf32>
    %902 = tpu.matmul %899, %900, %cst_323 {dimension_numbers = #tpu.dot_dimension_numbers<[1], [1], [0], [0], [0, 0, 1, 0], [], []>} : vector<16x8xf32>, vector<16x8xf32>, vector<16x16xf32> -> vector<16x16xf32>
    %cst_324 = arith.constant 0.353553385 : f32
    %903 = vector.broadcast %cst_324 : f32 to vector<16x16xf32>
    %904 = arith.mulf %902, %903 : vector<16x16xf32>
    %905 = arith.addf %904, %642 : vector<16x16xf32>
    %cst_325 = arith.constant dense<0xFF800000> : vector<16xf32>
    %906 = vector.multi_reduction <maximumf>, %905, %cst_325 [1] : vector<16x16xf32> to vector<16xf32>
    %907 = vector.shape_cast %906 : vector<16xf32> to vector<16x1xf32>
    %908 = vector.broadcast %907 : vector<16x1xf32> to vector<16x16xf32>
    %909 = arith.subf %905, %908 : vector<16x16xf32>
    %910 = math.exp %909 : vector<16x16xf32>
    %cst_326 = arith.constant dense<0.000000e+00> : vector<16xf32>
    %911 = vector.multi_reduction <add>, %910, %cst_326 [1] : vector<16x16xf32> to vector<16xf32>
    %912 = vector.shape_cast %911 : vector<16xf32> to vector<16x1xf32>
    %913 = tpu.reciprocal %912 {approx = true} : vector<16x1xf32> -> vector<16x1xf32>
    %914 = vector.broadcast %913 : vector<16x1xf32> to vector<16x16xf32>
    %915 = arith.mulf %910, %914 : vector<16x16xf32>
    %cst_327 = arith.constant dense<0.000000e+00> : vector<16x8xf32>
    %916 = tpu.matmul %915, %901, %cst_327 {dimension_numbers = #tpu.dot_dimension_numbers<[1], [0], [0], [1], [0, 0, 1, 1], [], []>} : vector<16x16xf32>, vector<16x8xf32>, vector<16x8xf32> -> vector<16x8xf32>
    %c304 = arith.constant 304 : index
    %c0_328 = arith.constant 0 : index
    %917 = vector.load %arg4[%c304, %c0_328] : memref<1432x128xf32, #tpu.memory_space<vmem>>, vector<8x32xf32>
    %cst_329 = arith.constant dense<0.000000e+00> : vector<16x32xf32>
    %918 = tpu.matmul %916, %917, %cst_329 {dimension_numbers = #tpu.dot_dimension_numbers<[1], [0], [0], [1], [0, 0, 1, 1], [], []>} : vector<16x8xf32>, vector<8x32xf32>, vector<16x32xf32> -> vector<16x32xf32>
    %919 = vector.extract_strided_slice %898 {offsets = [0, 8], sizes = [16, 8], strides = [1, 1]} : vector<16x96xf32> to vector<16x8xf32>
    %920 = vector.extract_strided_slice %898 {offsets = [0, 40], sizes = [16, 8], strides = [1, 1]} : vector<16x96xf32> to vector<16x8xf32>
    %921 = vector.extract_strided_slice %898 {offsets = [0, 72], sizes = [16, 8], strides = [1, 1]} : vector<16x96xf32> to vector<16x8xf32>
    %cst_330 = arith.constant dense<0.000000e+00> : vector<16x16xf32>
    %922 = tpu.matmul %919, %920, %cst_330 {dimension_numbers = #tpu.dot_dimension_numbers<[1], [1], [0], [0], [0, 0, 1, 0], [], []>} : vector<16x8xf32>, vector<16x8xf32>, vector<16x16xf32> -> vector<16x16xf32>
    %cst_331 = arith.constant 0.353553385 : f32
    %923 = vector.broadcast %cst_331 : f32 to vector<16x16xf32>
    %924 = arith.mulf %922, %923 : vector<16x16xf32>
    %925 = arith.addf %924, %642 : vector<16x16xf32>
    %cst_332 = arith.constant dense<0xFF800000> : vector<16xf32>
    %926 = vector.multi_reduction <maximumf>, %925, %cst_332 [1] : vector<16x16xf32> to vector<16xf32>
    %927 = vector.shape_cast %926 : vector<16xf32> to vector<16x1xf32>
    %928 = vector.broadcast %927 : vector<16x1xf32> to vector<16x16xf32>
    %929 = arith.subf %925, %928 : vector<16x16xf32>
    %930 = math.exp %929 : vector<16x16xf32>
    %cst_333 = arith.constant dense<0.000000e+00> : vector<16xf32>
    %931 = vector.multi_reduction <add>, %930, %cst_333 [1] : vector<16x16xf32> to vector<16xf32>
    %932 = vector.shape_cast %931 : vector<16xf32> to vector<16x1xf32>
    %933 = tpu.reciprocal %932 {approx = true} : vector<16x1xf32> -> vector<16x1xf32>
    %934 = vector.broadcast %933 : vector<16x1xf32> to vector<16x16xf32>
    %935 = arith.mulf %930, %934 : vector<16x16xf32>
    %cst_334 = arith.constant dense<0.000000e+00> : vector<16x8xf32>
    %936 = tpu.matmul %935, %921, %cst_334 {dimension_numbers = #tpu.dot_dimension_numbers<[1], [0], [0], [1], [0, 0, 1, 1], [], []>} : vector<16x16xf32>, vector<16x8xf32>, vector<16x8xf32> -> vector<16x8xf32>
    %c312 = arith.constant 312 : index
    %c0_335 = arith.constant 0 : index
    %937 = vector.load %arg4[%c312, %c0_335] : memref<1432x128xf32, #tpu.memory_space<vmem>>, vector<8x32xf32>
    %cst_336 = arith.constant dense<0.000000e+00> : vector<16x32xf32>
    %938 = tpu.matmul %936, %937, %cst_336 {dimension_numbers = #tpu.dot_dimension_numbers<[1], [0], [0], [1], [0, 0, 1, 1], [], []>} : vector<16x8xf32>, vector<8x32xf32>, vector<16x32xf32> -> vector<16x32xf32>
    %939 = arith.addf %918, %938 : vector<16x32xf32>
    %940 = vector.extract_strided_slice %898 {offsets = [0, 16], sizes = [16, 8], strides = [1, 1]} : vector<16x96xf32> to vector<16x8xf32>
    %941 = vector.extract_strided_slice %898 {offsets = [0, 48], sizes = [16, 8], strides = [1, 1]} : vector<16x96xf32> to vector<16x8xf32>
    %942 = vector.extract_strided_slice %898 {offsets = [0, 80], sizes = [16, 8], strides = [1, 1]} : vector<16x96xf32> to vector<16x8xf32>
    %cst_337 = arith.constant dense<0.000000e+00> : vector<16x16xf32>
    %943 = tpu.matmul %940, %941, %cst_337 {dimension_numbers = #tpu.dot_dimension_numbers<[1], [1], [0], [0], [0, 0, 1, 0], [], []>} : vector<16x8xf32>, vector<16x8xf32>, vector<16x16xf32> -> vector<16x16xf32>
    %cst_338 = arith.constant 0.353553385 : f32
    %944 = vector.broadcast %cst_338 : f32 to vector<16x16xf32>
    %945 = arith.mulf %943, %944 : vector<16x16xf32>
    %946 = arith.addf %945, %642 : vector<16x16xf32>
    %cst_339 = arith.constant dense<0xFF800000> : vector<16xf32>
    %947 = vector.multi_reduction <maximumf>, %946, %cst_339 [1] : vector<16x16xf32> to vector<16xf32>
    %948 = vector.shape_cast %947 : vector<16xf32> to vector<16x1xf32>
    %949 = vector.broadcast %948 : vector<16x1xf32> to vector<16x16xf32>
    %950 = arith.subf %946, %949 : vector<16x16xf32>
    %951 = math.exp %950 : vector<16x16xf32>
    %cst_340 = arith.constant dense<0.000000e+00> : vector<16xf32>
    %952 = vector.multi_reduction <add>, %951, %cst_340 [1] : vector<16x16xf32> to vector<16xf32>
    %953 = vector.shape_cast %952 : vector<16xf32> to vector<16x1xf32>
    %954 = tpu.reciprocal %953 {approx = true} : vector<16x1xf32> -> vector<16x1xf32>
    %955 = vector.broadcast %954 : vector<16x1xf32> to vector<16x16xf32>
    %956 = arith.mulf %951, %955 : vector<16x16xf32>
    %cst_341 = arith.constant dense<0.000000e+00> : vector<16x8xf32>
    %957 = tpu.matmul %956, %942, %cst_341 {dimension_numbers = #tpu.dot_dimension_numbers<[1], [0], [0], [1], [0, 0, 1, 1], [], []>} : vector<16x16xf32>, vector<16x8xf32>, vector<16x8xf32> -> vector<16x8xf32>
    %c320 = arith.constant 320 : index
    %c0_342 = arith.constant 0 : index
    %958 = vector.load %arg4[%c320, %c0_342] : memref<1432x128xf32, #tpu.memory_space<vmem>>, vector<8x32xf32>
    %cst_343 = arith.constant dense<0.000000e+00> : vector<16x32xf32>
    %959 = tpu.matmul %957, %958, %cst_343 {dimension_numbers = #tpu.dot_dimension_numbers<[1], [0], [0], [1], [0, 0, 1, 1], [], []>} : vector<16x8xf32>, vector<8x32xf32>, vector<16x32xf32> -> vector<16x32xf32>
    %960 = arith.addf %939, %959 : vector<16x32xf32>
    %961 = vector.extract_strided_slice %898 {offsets = [0, 24], sizes = [16, 8], strides = [1, 1]} : vector<16x96xf32> to vector<16x8xf32>
    %962 = vector.extract_strided_slice %898 {offsets = [0, 56], sizes = [16, 8], strides = [1, 1]} : vector<16x96xf32> to vector<16x8xf32>
    %963 = vector.extract_strided_slice %898 {offsets = [0, 88], sizes = [16, 8], strides = [1, 1]} : vector<16x96xf32> to vector<16x8xf32>
    %cst_344 = arith.constant dense<0.000000e+00> : vector<16x16xf32>
    %964 = tpu.matmul %961, %962, %cst_344 {dimension_numbers = #tpu.dot_dimension_numbers<[1], [1], [0], [0], [0, 0, 1, 0], [], []>} : vector<16x8xf32>, vector<16x8xf32>, vector<16x16xf32> -> vector<16x16xf32>
    %cst_345 = arith.constant 0.353553385 : f32
    %965 = vector.broadcast %cst_345 : f32 to vector<16x16xf32>
    %966 = arith.mulf %964, %965 : vector<16x16xf32>
    %967 = arith.addf %966, %642 : vector<16x16xf32>
    %cst_346 = arith.constant dense<0xFF800000> : vector<16xf32>
    %968 = vector.multi_reduction <maximumf>, %967, %cst_346 [1] : vector<16x16xf32> to vector<16xf32>
    %969 = vector.shape_cast %968 : vector<16xf32> to vector<16x1xf32>
    %970 = vector.broadcast %969 : vector<16x1xf32> to vector<16x16xf32>
    %971 = arith.subf %967, %970 : vector<16x16xf32>
    %972 = math.exp %971 : vector<16x16xf32>
    %cst_347 = arith.constant dense<0.000000e+00> : vector<16xf32>
    %973 = vector.multi_reduction <add>, %972, %cst_347 [1] : vector<16x16xf32> to vector<16xf32>
    %974 = vector.shape_cast %973 : vector<16xf32> to vector<16x1xf32>
    %975 = tpu.reciprocal %974 {approx = true} : vector<16x1xf32> -> vector<16x1xf32>
    %976 = vector.broadcast %975 : vector<16x1xf32> to vector<16x16xf32>
    %977 = arith.mulf %972, %976 : vector<16x16xf32>
    %cst_348 = arith.constant dense<0.000000e+00> : vector<16x8xf32>
    %978 = tpu.matmul %977, %963, %cst_348 {dimension_numbers = #tpu.dot_dimension_numbers<[1], [0], [0], [1], [0, 0, 1, 1], [], []>} : vector<16x16xf32>, vector<16x8xf32>, vector<16x8xf32> -> vector<16x8xf32>
    %c328 = arith.constant 328 : index
    %c0_349 = arith.constant 0 : index
    %979 = vector.load %arg4[%c328, %c0_349] : memref<1432x128xf32, #tpu.memory_space<vmem>>, vector<8x32xf32>
    %cst_350 = arith.constant dense<0.000000e+00> : vector<16x32xf32>
    %980 = tpu.matmul %978, %979, %cst_350 {dimension_numbers = #tpu.dot_dimension_numbers<[1], [0], [0], [1], [0, 0, 1, 1], [], []>} : vector<16x8xf32>, vector<8x32xf32>, vector<16x32xf32> -> vector<16x32xf32>
    %981 = arith.addf %960, %980 : vector<16x32xf32>
    %982 = vector.extract_strided_slice %897 {offsets = [16, 0], sizes = [16, 96], strides = [1, 1]} : vector<32x96xf32> to vector<16x96xf32>
    %983 = vector.extract_strided_slice %982 {offsets = [0, 0], sizes = [16, 8], strides = [1, 1]} : vector<16x96xf32> to vector<16x8xf32>
    %984 = vector.extract_strided_slice %982 {offsets = [0, 32], sizes = [16, 8], strides = [1, 1]} : vector<16x96xf32> to vector<16x8xf32>
    %985 = vector.extract_strided_slice %982 {offsets = [0, 64], sizes = [16, 8], strides = [1, 1]} : vector<16x96xf32> to vector<16x8xf32>
    %cst_351 = arith.constant dense<0.000000e+00> : vector<16x16xf32>
    %986 = tpu.matmul %983, %984, %cst_351 {dimension_numbers = #tpu.dot_dimension_numbers<[1], [1], [0], [0], [0, 0, 1, 0], [], []>} : vector<16x8xf32>, vector<16x8xf32>, vector<16x16xf32> -> vector<16x16xf32>
    %cst_352 = arith.constant 0.353553385 : f32
    %987 = vector.broadcast %cst_352 : f32 to vector<16x16xf32>
    %988 = arith.mulf %986, %987 : vector<16x16xf32>
    %989 = arith.addf %988, %646 : vector<16x16xf32>
    %cst_353 = arith.constant dense<0xFF800000> : vector<16xf32>
    %990 = vector.multi_reduction <maximumf>, %989, %cst_353 [1] : vector<16x16xf32> to vector<16xf32>
    %991 = vector.shape_cast %990 : vector<16xf32> to vector<16x1xf32>
    %992 = vector.broadcast %991 : vector<16x1xf32> to vector<16x16xf32>
    %993 = arith.subf %989, %992 : vector<16x16xf32>
    %994 = math.exp %993 : vector<16x16xf32>
    %cst_354 = arith.constant dense<0.000000e+00> : vector<16xf32>
    %995 = vector.multi_reduction <add>, %994, %cst_354 [1] : vector<16x16xf32> to vector<16xf32>
    %996 = vector.shape_cast %995 : vector<16xf32> to vector<16x1xf32>
    %997 = tpu.reciprocal %996 {approx = true} : vector<16x1xf32> -> vector<16x1xf32>
    %998 = vector.broadcast %997 : vector<16x1xf32> to vector<16x16xf32>
    %999 = arith.mulf %994, %998 : vector<16x16xf32>
    %cst_355 = arith.constant dense<0.000000e+00> : vector<16x8xf32>
    %1000 = tpu.matmul %999, %985, %cst_355 {dimension_numbers = #tpu.dot_dimension_numbers<[1], [0], [0], [1], [0, 0, 1, 1], [], []>} : vector<16x16xf32>, vector<16x8xf32>, vector<16x8xf32> -> vector<16x8xf32>
    %c304_356 = arith.constant 304 : index
    %c0_357 = arith.constant 0 : index
    %1001 = vector.load %arg4[%c304_356, %c0_357] : memref<1432x128xf32, #tpu.memory_space<vmem>>, vector<8x32xf32>
    %cst_358 = arith.constant dense<0.000000e+00> : vector<16x32xf32>
    %1002 = tpu.matmul %1000, %1001, %cst_358 {dimension_numbers = #tpu.dot_dimension_numbers<[1], [0], [0], [1], [0, 0, 1, 1], [], []>} : vector<16x8xf32>, vector<8x32xf32>, vector<16x32xf32> -> vector<16x32xf32>
    %1003 = vector.extract_strided_slice %982 {offsets = [0, 8], sizes = [16, 8], strides = [1, 1]} : vector<16x96xf32> to vector<16x8xf32>
    %1004 = vector.extract_strided_slice %982 {offsets = [0, 40], sizes = [16, 8], strides = [1, 1]} : vector<16x96xf32> to vector<16x8xf32>
    %1005 = vector.extract_strided_slice %982 {offsets = [0, 72], sizes = [16, 8], strides = [1, 1]} : vector<16x96xf32> to vector<16x8xf32>
    %cst_359 = arith.constant dense<0.000000e+00> : vector<16x16xf32>
    %1006 = tpu.matmul %1003, %1004, %cst_359 {dimension_numbers = #tpu.dot_dimension_numbers<[1], [1], [0], [0], [0, 0, 1, 0], [], []>} : vector<16x8xf32>, vector<16x8xf32>, vector<16x16xf32> -> vector<16x16xf32>
    %cst_360 = arith.constant 0.353553385 : f32
    %1007 = vector.broadcast %cst_360 : f32 to vector<16x16xf32>
    %1008 = arith.mulf %1006, %1007 : vector<16x16xf32>
    %1009 = arith.addf %1008, %646 : vector<16x16xf32>
    %cst_361 = arith.constant dense<0xFF800000> : vector<16xf32>
    %1010 = vector.multi_reduction <maximumf>, %1009, %cst_361 [1] : vector<16x16xf32> to vector<16xf32>
    %1011 = vector.shape_cast %1010 : vector<16xf32> to vector<16x1xf32>
    %1012 = vector.broadcast %1011 : vector<16x1xf32> to vector<16x16xf32>
    %1013 = arith.subf %1009, %1012 : vector<16x16xf32>
    %1014 = math.exp %1013 : vector<16x16xf32>
    %cst_362 = arith.constant dense<0.000000e+00> : vector<16xf32>
    %1015 = vector.multi_reduction <add>, %1014, %cst_362 [1] : vector<16x16xf32> to vector<16xf32>
    %1016 = vector.shape_cast %1015 : vector<16xf32> to vector<16x1xf32>
    %1017 = tpu.reciprocal %1016 {approx = true} : vector<16x1xf32> -> vector<16x1xf32>
    %1018 = vector.broadcast %1017 : vector<16x1xf32> to vector<16x16xf32>
    %1019 = arith.mulf %1014, %1018 : vector<16x16xf32>
    %cst_363 = arith.constant dense<0.000000e+00> : vector<16x8xf32>
    %1020 = tpu.matmul %1019, %1005, %cst_363 {dimension_numbers = #tpu.dot_dimension_numbers<[1], [0], [0], [1], [0, 0, 1, 1], [], []>} : vector<16x16xf32>, vector<16x8xf32>, vector<16x8xf32> -> vector<16x8xf32>
    %c312_364 = arith.constant 312 : index
    %c0_365 = arith.constant 0 : index
    %1021 = vector.load %arg4[%c312_364, %c0_365] : memref<1432x128xf32, #tpu.memory_space<vmem>>, vector<8x32xf32>
    %cst_366 = arith.constant dense<0.000000e+00> : vector<16x32xf32>
    %1022 = tpu.matmul %1020, %1021, %cst_366 {dimension_numbers = #tpu.dot_dimension_numbers<[1], [0], [0], [1], [0, 0, 1, 1], [], []>} : vector<16x8xf32>, vector<8x32xf32>, vector<16x32xf32> -> vector<16x32xf32>
    %1023 = arith.addf %1002, %1022 : vector<16x32xf32>
    %1024 = vector.extract_strided_slice %982 {offsets = [0, 16], sizes = [16, 8], strides = [1, 1]} : vector<16x96xf32> to vector<16x8xf32>
    %1025 = vector.extract_strided_slice %982 {offsets = [0, 48], sizes = [16, 8], strides = [1, 1]} : vector<16x96xf32> to vector<16x8xf32>
    %1026 = vector.extract_strided_slice %982 {offsets = [0, 80], sizes = [16, 8], strides = [1, 1]} : vector<16x96xf32> to vector<16x8xf32>
    %cst_367 = arith.constant dense<0.000000e+00> : vector<16x16xf32>
    %1027 = tpu.matmul %1024, %1025, %cst_367 {dimension_numbers = #tpu.dot_dimension_numbers<[1], [1], [0], [0], [0, 0, 1, 0], [], []>} : vector<16x8xf32>, vector<16x8xf32>, vector<16x16xf32> -> vector<16x16xf32>
    %cst_368 = arith.constant 0.353553385 : f32
    %1028 = vector.broadcast %cst_368 : f32 to vector<16x16xf32>
    %1029 = arith.mulf %1027, %1028 : vector<16x16xf32>
    %1030 = arith.addf %1029, %646 : vector<16x16xf32>
    %cst_369 = arith.constant dense<0xFF800000> : vector<16xf32>
    %1031 = vector.multi_reduction <maximumf>, %1030, %cst_369 [1] : vector<16x16xf32> to vector<16xf32>
    %1032 = vector.shape_cast %1031 : vector<16xf32> to vector<16x1xf32>
    %1033 = vector.broadcast %1032 : vector<16x1xf32> to vector<16x16xf32>
    %1034 = arith.subf %1030, %1033 : vector<16x16xf32>
    %1035 = math.exp %1034 : vector<16x16xf32>
    %cst_370 = arith.constant dense<0.000000e+00> : vector<16xf32>
    %1036 = vector.multi_reduction <add>, %1035, %cst_370 [1] : vector<16x16xf32> to vector<16xf32>
    %1037 = vector.shape_cast %1036 : vector<16xf32> to vector<16x1xf32>
    %1038 = tpu.reciprocal %1037 {approx = true} : vector<16x1xf32> -> vector<16x1xf32>
    %1039 = vector.broadcast %1038 : vector<16x1xf32> to vector<16x16xf32>
    %1040 = arith.mulf %1035, %1039 : vector<16x16xf32>
    %cst_371 = arith.constant dense<0.000000e+00> : vector<16x8xf32>
    %1041 = tpu.matmul %1040, %1026, %cst_371 {dimension_numbers = #tpu.dot_dimension_numbers<[1], [0], [0], [1], [0, 0, 1, 1], [], []>} : vector<16x16xf32>, vector<16x8xf32>, vector<16x8xf32> -> vector<16x8xf32>
    %c320_372 = arith.constant 320 : index
    %c0_373 = arith.constant 0 : index
    %1042 = vector.load %arg4[%c320_372, %c0_373] : memref<1432x128xf32, #tpu.memory_space<vmem>>, vector<8x32xf32>
    %cst_374 = arith.constant dense<0.000000e+00> : vector<16x32xf32>
    %1043 = tpu.matmul %1041, %1042, %cst_374 {dimension_numbers = #tpu.dot_dimension_numbers<[1], [0], [0], [1], [0, 0, 1, 1], [], []>} : vector<16x8xf32>, vector<8x32xf32>, vector<16x32xf32> -> vector<16x32xf32>
    %1044 = arith.addf %1023, %1043 : vector<16x32xf32>
    %1045 = vector.extract_strided_slice %982 {offsets = [0, 24], sizes = [16, 8], strides = [1, 1]} : vector<16x96xf32> to vector<16x8xf32>
    %1046 = vector.extract_strided_slice %982 {offsets = [0, 56], sizes = [16, 8], strides = [1, 1]} : vector<16x96xf32> to vector<16x8xf32>
    %1047 = vector.extract_strided_slice %982 {offsets = [0, 88], sizes = [16, 8], strides = [1, 1]} : vector<16x96xf32> to vector<16x8xf32>
    %cst_375 = arith.constant dense<0.000000e+00> : vector<16x16xf32>
    %1048 = tpu.matmul %1045, %1046, %cst_375 {dimension_numbers = #tpu.dot_dimension_numbers<[1], [1], [0], [0], [0, 0, 1, 0], [], []>} : vector<16x8xf32>, vector<16x8xf32>, vector<16x16xf32> -> vector<16x16xf32>
    %cst_376 = arith.constant 0.353553385 : f32
    %1049 = vector.broadcast %cst_376 : f32 to vector<16x16xf32>
    %1050 = arith.mulf %1048, %1049 : vector<16x16xf32>
    %1051 = arith.addf %1050, %646 : vector<16x16xf32>
    %cst_377 = arith.constant dense<0xFF800000> : vector<16xf32>
    %1052 = vector.multi_reduction <maximumf>, %1051, %cst_377 [1] : vector<16x16xf32> to vector<16xf32>
    %1053 = vector.shape_cast %1052 : vector<16xf32> to vector<16x1xf32>
    %1054 = vector.broadcast %1053 : vector<16x1xf32> to vector<16x16xf32>
    %1055 = arith.subf %1051, %1054 : vector<16x16xf32>
    %1056 = math.exp %1055 : vector<16x16xf32>
    %cst_378 = arith.constant dense<0.000000e+00> : vector<16xf32>
    %1057 = vector.multi_reduction <add>, %1056, %cst_378 [1] : vector<16x16xf32> to vector<16xf32>
    %1058 = vector.shape_cast %1057 : vector<16xf32> to vector<16x1xf32>
    %1059 = tpu.reciprocal %1058 {approx = true} : vector<16x1xf32> -> vector<16x1xf32>
    %1060 = vector.broadcast %1059 : vector<16x1xf32> to vector<16x16xf32>
    %1061 = arith.mulf %1056, %1060 : vector<16x16xf32>
    %cst_379 = arith.constant dense<0.000000e+00> : vector<16x8xf32>
    %1062 = tpu.matmul %1061, %1047, %cst_379 {dimension_numbers = #tpu.dot_dimension_numbers<[1], [0], [0], [1], [0, 0, 1, 1], [], []>} : vector<16x16xf32>, vector<16x8xf32>, vector<16x8xf32> -> vector<16x8xf32>
    %c328_380 = arith.constant 328 : index
    %c0_381 = arith.constant 0 : index
    %1063 = vector.load %arg4[%c328_380, %c0_381] : memref<1432x128xf32, #tpu.memory_space<vmem>>, vector<8x32xf32>
    %cst_382 = arith.constant dense<0.000000e+00> : vector<16x32xf32>
    %1064 = tpu.matmul %1062, %1063, %cst_382 {dimension_numbers = #tpu.dot_dimension_numbers<[1], [0], [0], [1], [0, 0, 1, 1], [], []>} : vector<16x8xf32>, vector<8x32xf32>, vector<16x32xf32> -> vector<16x32xf32>
    %1065 = arith.addf %1044, %1064 : vector<16x32xf32>
    %1066 = tpu.concatenate %981, %1065 in 0 : vector<16x32xf32>, vector<16x32xf32> -> vector<32x32xf32>
    %c296 = arith.constant 296 : index
    %c0_383 = arith.constant 0 : index
    %1067 = vector.load %arg4[%c296, %c0_383] : memref<1432x128xf32, #tpu.memory_space<vmem>>, vector<1x32xf32>
    %1068 = vector.broadcast %1067 : vector<1x32xf32> to vector<32x32xf32>
    %1069 = arith.addf %1066, %1068 : vector<32x32xf32>
    %1070 = arith.addf %1069, %892 : vector<32x32xf32>
    %c288 = arith.constant 288 : index
    %c0_384 = arith.constant 0 : index
    %1071 = vector.load %arg4[%c288, %c0_384] : memref<1432x128xf32, #tpu.memory_space<vmem>>, vector<1x32xf32>
    %c280 = arith.constant 280 : index
    %c0_385 = arith.constant 0 : index
    %1072 = vector.load %arg4[%c280, %c0_385] : memref<1432x128xf32, #tpu.memory_space<vmem>>, vector<1x32xf32>
    %cst_386 = arith.constant dense<0.000000e+00> : vector<32xf32>
    %1073 = vector.multi_reduction <add>, %1070, %cst_386 [1] : vector<32x32xf32> to vector<32xf32>
    %1074 = vector.shape_cast %1073 : vector<32xf32> to vector<32x1xf32>
    %cst_387 = arith.constant 3.200000e+01 : f32
    %1075 = vector.broadcast %cst_387 : f32 to vector<32x1xf32>
    %1076 = arith.divf %1074, %1075 : vector<32x1xf32>
    %1077 = vector.broadcast %1076 : vector<32x1xf32> to vector<32x32xf32>
    %1078 = arith.subf %1070, %1077 : vector<32x32xf32>
    %1079 = arith.mulf %1078, %1078 : vector<32x32xf32>
    %cst_388 = arith.constant dense<0.000000e+00> : vector<32xf32>
    %1080 = vector.multi_reduction <add>, %1079, %cst_388 [1] : vector<32x32xf32> to vector<32xf32>
    %1081 = vector.shape_cast %1080 : vector<32xf32> to vector<32x1xf32>
    %cst_389 = arith.constant 3.200000e+01 : f32
    %1082 = vector.broadcast %cst_389 : f32 to vector<32x1xf32>
    %1083 = arith.divf %1081, %1082 : vector<32x1xf32>
    %cst_390 = arith.constant 9.99999996E-13 : f32
    %1084 = vector.broadcast %cst_390 : f32 to vector<32x1xf32>
    %1085 = arith.addf %1083, %1084 : vector<32x1xf32>
    %1086 = math.rsqrt %1085 : vector<32x1xf32>
    %1087 = vector.broadcast %1086 : vector<32x1xf32> to vector<32x32xf32>
    %1088 = arith.mulf %1078, %1087 : vector<32x32xf32>
    %1089 = vector.broadcast %1071 : vector<1x32xf32> to vector<32x32xf32>
    %1090 = arith.mulf %1088, %1089 : vector<32x32xf32>
    %1091 = vector.broadcast %1072 : vector<1x32xf32> to vector<32x32xf32>
    %1092 = arith.addf %1090, %1091 : vector<32x32xf32>
    %c352 = arith.constant 352 : index
    %c0_391 = arith.constant 0 : index
    %1093 = vector.load %arg4[%c352, %c0_391] : memref<1432x128xf32, #tpu.memory_space<vmem>>, vector<32x64xf32>
    %cst_392 = arith.constant dense<0.000000e+00> : vector<32x64xf32>
    %1094 = tpu.matmul %1092, %1093, %cst_392 {dimension_numbers = #tpu.dot_dimension_numbers<[1], [0], [0], [1], [0, 0, 1, 1], [], []>} : vector<32x32xf32>, vector<32x64xf32>, vector<32x64xf32> -> vector<32x64xf32>
    %c344 = arith.constant 344 : index
    %c0_393 = arith.constant 0 : index
    %1095 = vector.load %arg4[%c344, %c0_393] : memref<1432x128xf32, #tpu.memory_space<vmem>>, vector<1x64xf32>
    %1096 = vector.broadcast %1095 : vector<1x64xf32> to vector<32x64xf32>
    %1097 = arith.addf %1094, %1096 : vector<32x64xf32>
    %1098 = arith.mulf %1097, %1097 : vector<32x64xf32>
    %1099 = arith.mulf %1097, %1098 : vector<32x64xf32>
    %cst_394 = arith.constant 4.471500e-02 : f32
    %1100 = vector.broadcast %cst_394 : f32 to vector<32x64xf32>
    %1101 = arith.mulf %1100, %1099 : vector<32x64xf32>
    %1102 = arith.addf %1097, %1101 : vector<32x64xf32>
    %cst_395 = arith.constant 0.797884583 : f32
    %1103 = vector.broadcast %cst_395 : f32 to vector<32x64xf32>
    %1104 = arith.mulf %1103, %1102 : vector<32x64xf32>
    %1105 = math.tanh %1104 : vector<32x64xf32>
    %cst_396 = arith.constant 1.000000e+00 : f32
    %1106 = vector.broadcast %cst_396 : f32 to vector<32x64xf32>
    %1107 = arith.addf %1106, %1105 : vector<32x64xf32>
    %cst_397 = arith.constant 5.000000e-01 : f32
    %1108 = vector.broadcast %cst_397 : f32 to vector<32x64xf32>
    %1109 = arith.mulf %1108, %1107 : vector<32x64xf32>
    %1110 = arith.mulf %1097, %1109 : vector<32x64xf32>
    %c408 = arith.constant 408 : index
    %c0_398 = arith.constant 0 : index
    %1111 = vector.load %arg4[%c408, %c0_398] : memref<1432x128xf32, #tpu.memory_space<vmem>>, vector<64x32xf32>
    %cst_399 = arith.constant dense<0.000000e+00> : vector<32x32xf32>
    %1112 = tpu.matmul %1110, %1111, %cst_399 {dimension_numbers = #tpu.dot_dimension_numbers<[1], [0], [0], [1], [0, 0, 1, 1], [], []>} : vector<32x64xf32>, vector<64x32xf32>, vector<32x32xf32> -> vector<32x32xf32>
    %c384 = arith.constant 384 : index
    %c0_400 = arith.constant 0 : index
    %1113 = vector.load %arg4[%c384, %c0_400] : memref<1432x128xf32, #tpu.memory_space<vmem>>, vector<1x32xf32>
    %1114 = vector.broadcast %1113 : vector<1x32xf32> to vector<32x32xf32>
    %1115 = arith.addf %1112, %1114 : vector<32x32xf32>
    %1116 = arith.addf %1115, %1092 : vector<32x32xf32>
    %c400 = arith.constant 400 : index
    %c0_401 = arith.constant 0 : index
    %1117 = vector.load %arg4[%c400, %c0_401] : memref<1432x128xf32, #tpu.memory_space<vmem>>, vector<1x32xf32>
    %c392 = arith.constant 392 : index
    %c0_402 = arith.constant 0 : index
    %1118 = vector.load %arg4[%c392, %c0_402] : memref<1432x128xf32, #tpu.memory_space<vmem>>, vector<1x32xf32>
    %cst_403 = arith.constant dense<0.000000e+00> : vector<32xf32>
    %1119 = vector.multi_reduction <add>, %1116, %cst_403 [1] : vector<32x32xf32> to vector<32xf32>
    %1120 = vector.shape_cast %1119 : vector<32xf32> to vector<32x1xf32>
    %cst_404 = arith.constant 3.200000e+01 : f32
    %1121 = vector.broadcast %cst_404 : f32 to vector<32x1xf32>
    %1122 = arith.divf %1120, %1121 : vector<32x1xf32>
    %1123 = vector.broadcast %1122 : vector<32x1xf32> to vector<32x32xf32>
    %1124 = arith.subf %1116, %1123 : vector<32x32xf32>
    %1125 = arith.mulf %1124, %1124 : vector<32x32xf32>
    %cst_405 = arith.constant dense<0.000000e+00> : vector<32xf32>
    %1126 = vector.multi_reduction <add>, %1125, %cst_405 [1] : vector<32x32xf32> to vector<32xf32>
    %1127 = vector.shape_cast %1126 : vector<32xf32> to vector<32x1xf32>
    %cst_406 = arith.constant 3.200000e+01 : f32
    %1128 = vector.broadcast %cst_406 : f32 to vector<32x1xf32>
    %1129 = arith.divf %1127, %1128 : vector<32x1xf32>
    %cst_407 = arith.constant 9.99999996E-13 : f32
    %1130 = vector.broadcast %cst_407 : f32 to vector<32x1xf32>
    %1131 = arith.addf %1129, %1130 : vector<32x1xf32>
    %1132 = math.rsqrt %1131 : vector<32x1xf32>
    %1133 = vector.broadcast %1132 : vector<32x1xf32> to vector<32x32xf32>
    %1134 = arith.mulf %1124, %1133 : vector<32x32xf32>
    %1135 = vector.broadcast %1117 : vector<1x32xf32> to vector<32x32xf32>
    %1136 = arith.mulf %1134, %1135 : vector<32x32xf32>
    %1137 = vector.broadcast %1118 : vector<1x32xf32> to vector<32x32xf32>
    %1138 = arith.addf %1136, %1137 : vector<32x32xf32>
    %c8 = arith.constant 8 : index
    %c0_408 = arith.constant 0 : index
    %1139 = vector.load %arg4[%c8, %c0_408] : memref<1432x128xf32, #tpu.memory_space<vmem>>, vector<32x128xf32>
    %cst_409 = arith.constant dense<0.000000e+00> : vector<32x128xf32>
    %1140 = tpu.matmul %1138, %1139, %cst_409 {dimension_numbers = #tpu.dot_dimension_numbers<[1], [0], [0], [1], [0, 0, 1, 1], [], []>} : vector<32x32xf32>, vector<32x128xf32>, vector<32x128xf32> -> vector<32x128xf32>
    %c0_410 = arith.constant 0 : index
    %c0_411 = arith.constant 0 : index
    %1141 = vector.load %arg4[%c0_410, %c0_411] : memref<1432x128xf32, #tpu.memory_space<vmem>>, vector<1x128xf32>
    %1142 = vector.broadcast %1141 : vector<1x128xf32> to vector<32x128xf32>
    %1143 = arith.addf %1140, %1142 : vector<32x128xf32>
    %1144 = vector.extract_strided_slice %1143 {offsets = [0, 0], sizes = [16, 128], strides = [1, 1]} : vector<32x128xf32> to vector<16x128xf32>
    %c0_412 = arith.constant 0 : index
    %c0_413 = arith.constant 0 : index
    %c0_414 = arith.constant 0 : index
    %1145 = vector.load %arg5[%c0_412, %c0_413, %c0_414] : memref<2x16x128xf32, #tpu.memory_space<vmem>>, vector<1x16x128xf32>
    %1146 = vector.shape_cast %1145 : vector<1x16x128xf32> to vector<16x128xf32>
    %1147 = vector.shape_cast %1144 : vector<16x128xf32> to vector<1x16x128xf32>
    tpu.vector_store %arg5[%c0_412, %c0_413, %c0_414], %1147 {strides = array<i32>} : memref<2x16x128xf32, #tpu.memory_space<vmem>>, vector<1x16x128xf32>,
    %1148 = vector.extract_strided_slice %1143 {offsets = [16, 0], sizes = [16, 128], strides = [1, 1]} : vector<32x128xf32> to vector<16x128xf32>
    %c1_415 = arith.constant 1 : index
    %c0_416 = arith.constant 0 : index
    %c0_417 = arith.constant 0 : index
    %1149 = vector.load %arg5[%c1_415, %c0_416, %c0_417] : memref<2x16x128xf32, #tpu.memory_space<vmem>>, vector<1x16x128xf32>
    %1150 = vector.shape_cast %1149 : vector<1x16x128xf32> to vector<16x128xf32>
    %1151 = vector.shape_cast %1148 : vector<16x128xf32> to vector<1x16x128xf32>
    tpu.vector_store %arg5[%c1_415, %c0_416, %c0_417], %1151 {strides = array<i32>} : memref<2x16x128xf32, #tpu.memory_space<vmem>>, vector<1x16x128xf32>,
    return
  }
  func.func @transform_0(%arg0: i32) -> (i32, i32, i32) {
    %c0_i32 = arith.constant 0 : i32
    %c0_i32_0 = arith.constant 0 : i32
    %c0_i32_1 = arith.constant 0 : i32
    return %arg0, %c0_i32, %c0_i32_0 : i32, i32, i32
  }
  func.func @transform_1(%arg0: i32) -> (i32, i32, i32) {
    %c0_i32 = arith.constant 0 : i32
    %c0_i32_0 = arith.constant 0 : i32
    %c0_i32_1 = arith.constant 0 : i32
    return %arg0, %c0_i32, %c0_i32_0 : i32, i32, i32
  }
  func.func @transform_2(%arg0: i32) -> (i32, i32, i32) {
    %c0_i32 = arith.constant 0 : i32
    %c0_i32_0 = arith.constant 0 : i32
    %c0_i32_1 = arith.constant 0 : i32
    return %arg0, %c0_i32, %c0_i32_0 : i32, i32, i32
  }
  func.func @transform_3(%arg0: i32) -> (i32, i32) {
    %c0_i32 = arith.constant 0 : i32
    %c0_i32_0 = arith.constant 0 : i32
    %c0_i32_1 = arith.constant 0 : i32
    return %c0_i32, %c0_i32_0 : i32, i32
  }
  func.func @transform_4(%arg0: i32) -> (i32, i32, i32) {
    %c0_i32 = arith.constant 0 : i32
    %c0_i32_0 = arith.constant 0 : i32
    %c0_i32_1 = arith.constant 0 : i32
    return %arg0, %c0_i32, %c0_i32_0 : i32, i32, i32
  }
}

</mosaic_0001>

<bundles_post_ra>
// kernel: git_forward.1
= control target key start
LH: loop header
LB: loop body
LE: loop exit
PB: predicated region body
PF: predicated region fallthrough
CT: control target
= control target key end

     0   :  { %vm132_vm0 = vcmask 261120   ;;  %vm12665_vm1 = vmmov 0   ;;  %s12666_s28 = smov 96   ;;  %s12667_s29 = smov 88   ;;  %vm309_vm2 = vcmask 64512   ;;  %vm2401_vm4 = vcmask 523264   ;;  %s14508_s3 = inlined_call_operand.vmem [shape: f32[1432,128], index: 3, kind: input, shape index: {}]   ;;  %s14509_s0 = inlined_call_operand.vmem [shape: f32[2,8,256], index: 0, kind: input, shape index: {}]   ;;  %s14510_s1 = inlined_call_operand.vmem [shape: s32[2,8,1], index: 1, kind: input, shape index: {}]   ;;  %s14511_s2 = inlined_call_operand.vmem [shape: f32[2,1,16], index: 2, kind: input, shape index: {}]   ;;  %s14512_s4 = inlined_call_operand.vmem [shape: f32[2,16,128], index: 4, kind: output, shape index: {}]  }
   0x1   :  { %v53_v0 = vld [vmem:[%s14508_s3 + $0x530] sm:$0xff]  ;;  %v52_v2 = vld [vmem:[%s14508_s3 + $0x528] sm:$0xff]  ;;  %v51_v4 = vld [vmem:[%s14508_s3 + $0x520] sm:$0xff]  ;;  %s12668_s30 = smov 64   ;;  %s12669_s5 = smov 120   ;;  %vm5342_vm11 = vcmask 130048  }
   0x2   :  { %v37_v1 = vld [vmem:[%s14508_s3 + $0x4b0] sm:$0xff]  ;;  %11156 = vmatprep.subr.mxu0 %v53_v0  ;;  %v36_v3 = vld [vmem:[%s14508_s3 + $0x4a8] sm:$0xff]  ;;  %v35_v5 = vld [vmem:[%s14508_s3 + $0x4a0] sm:$0xff]  ;;  %s12670_s6 = smov 56   ;;  %s12671_s7 = smov 112  }
   0x3   :  { %11157 = vmatpush3.msra.mxu0 %v37_v1  ;;  %v50_v6 = vld [vmem:[%s14508_s3 + $0x518] sm:$0xff]  ;;  %v49_v8 = vld [vmem:[%s14508_s3 + $0x510] sm:$0xff]  ;;  %v48_v10 = vld [vmem:[%s14508_s3 + $0x508] sm:$0xff]  ;;  %s12672_s8 = smov 80   ;;  %s12673_s12 = smov 72  }
   0x4   :  { %11158 = vmatprep.subr.mxu0 %v52_v2  ;;  %v34_v7 = vld [vmem:[%s14508_s3 + $0x498] sm:$0xff]  ;;  %v33_v9 = vld [vmem:[%s14508_s3 + $0x490] sm:$0xff]  ;;  %v32_v11 = vld [vmem:[%s14508_s3 + $0x488] sm:$0xff]  ;;  %s12674_s13 = smov 104   ;;  %s12675_s14 = smov 48  }
   0x5   :  { %11159 = vmatpush3.msra.mxu0 %v36_v3  ;;  %v47_v12 = vld [vmem:[%s14508_s3 + $0x500] sm:$0xff]  ;;  %v18_v13 = vld [vmem:[%s14509_s0 + $0x8] sm:$0xff]  ;;  %v46_v15 = vld [vmem:[%s14508_s3 + $0x4f8] sm:$0xff]  ;;  %s12676_s17 = smov 40  }
   0x6   :  { %11160 = vmatprep.subr.mxu0 %v51_v4  ;;  %v31_v14 = vld [vmem:[%s14508_s3 + $0x480] sm:$0xff]  ;;  %119 = vmatprep.mubr.f32.mxu0 %v18_v13  ;;  %v30_v16 = vld [vmem:[%s14508_s3 + $0x478] sm:$0xff]  ;;  %v45_v17 = vld [vmem:[%s14508_s3 + $0x4f0] sm:$0xff] }
   0x7   :  { %11161 = vmatpush3.msra.mxu0 %v35_v5  ;;  %v29_v18 = vld [vmem:[%s14508_s3 + $0x470] sm:$0xff]  ;;  %v44_v19 = vld [vmem:[%s14508_s3 + $0x4e8] sm:$0xff]  ;;  %v43_v21 = vld [vmem:[%s14508_s3 + $0x4e0] sm:$0xff] }
   0x8   :  { %11162 = vmatprep.subr.mxu0 %v50_v6  ;;  %v28_v20 = vld [vmem:[%s14508_s3 + $0x468] sm:$0xff]  ;;  %v27_v22 = vld [vmem:[%s14508_s3 + $0x460] sm:$0xff]  ;;  %v42_v23 = vld [vmem:[%s14508_s3 + $0x4d8] sm:$0xff] }
   0x9   :  { %11163 = vmatpush3.msra.mxu0 %v34_v7  ;;  %v26_v24 = vld [vmem:[%s14508_s3 + $0x458] sm:$0xff]  ;;  %v41_v25 = vld [vmem:[%s14508_s3 + $0x4d0] sm:$0xff]  ;;  %v40_v27 = vld [vmem:[%s14508_s3 + $0x4c8] sm:$0xff] }
   0xa   :  { %11164 = vmatprep.subr.mxu0 %v49_v8  ;;  %v25_v26 = vld [vmem:[%s14508_s3 + $0x450] sm:$0xff]  ;;  %v24_v28 = vld [vmem:[%s14508_s3 + $0x448] sm:$0xff]  ;;  %v39_v29 = vld [vmem:[%s14508_s3 + $0x4c0] sm:$0xff] }
   0xb   :  { %11165 = vmatpush3.msra.mxu0 %v33_v9  ;;  %v23_v30 = vld [vmem:[%s14508_s3 + $0x440] sm:$0xff]  ;;  %v38_v31 = vld [vmem:[%s14508_s3 + $0x4b8] sm:$0xff]  ;;  %v10865_v35 = vld [vmem:[%s14509_s0 + $0x10] sm:$0xff] }
   0xc   :  { %11166 = vmatprep.subr.mxu0 %v48_v10  ;;  %v22_v32 = vld [vmem:[%s14508_s3 + $0x438] sm:$0xff]  ;;  %v17_v33 = vld [vmem:[%s14509_s0] sm:$0xff]  ;;  %v10868_v2 = vld [vmem:[%s14508_s3 + $0x550] ss:$0 sm:$0xff] }
   0xd   :  { %11167 = vmatpush3.msra.mxu0 %v32_v11  ;;  %v10866_v34 = vld [vmem:[%s14509_s0 + $0x18] sm:$0xff] }
   0xe   :  { %11168 = vmatprep.subr.mxu0 %v47_v12  ;;  %v54_v38 = vld [vmem:[%s14508_s3 + $0x538] sm:$0xff] }
   0xf   :  { %11169 = vmatpush3.msra.mxu0 %v31_v14  ;;  %v10867_v0 = vld [vmem:[%s14508_s3 + $0x558] ss:$0 sm:$0xff] }
  0x10   :  { %11170 = vmatprep.subr.mxu0 %v46_v15 }
  0x11   :  { %11171 = vmatpush3.msra.mxu0 %v30_v16 }
  0x12   :  { %11172 = vmatprep.subr.mxu0 %v45_v17 }
  0x13   :  { %11173 = vmatpush3.msra.mxu0 %v29_v18 }
  0x14   :  { %11174 = vmatprep.subr.mxu0 %v44_v19 }
  0x15   :  { %11175 = vmatpush3.msra.mxu0 %v28_v20 }
  0x16   :  { %11176 = vmatprep.subr.mxu0 %v43_v21  ;;  %v219_v21 = vld [vmem:[%s14508_s3 + $0x350] sm:$0xff] }
  0x17   :  { %11177 = vmatpush3.msra.mxu0 %v27_v22  ;;  %v218_v22 = vld [vmem:[%s14508_s3 + $0x348] sm:$0xff]  ;;  %11590 = vmatprep.subr.mxu1 %v219_v21 }
  0x18   :  { %11178 = vmatprep.subr.mxu0 %v42_v23  ;;  %11591 = vmatpush3.msra.mxu1 %v219_v21  ;;  %v217_v23 = vld [vmem:[%s14508_s3 + $0x340] sm:$0xff]  ;;  %v12917_v21 = vld [vmem:[%s14508_s3 + $0x288] sm:$0xff] }
  0x19   :  { %11179 = vmatpush3.msra.mxu0 %v26_v24  ;;  %11592 = vmatprep.subr.mxu1 %v218_v22  ;;  %v216_v24 = vld [vmem:[%s14508_s3 + $0x338] sm:$0xff] }
  0x1a   :  { %11180 = vmatprep.subr.mxu0 %v41_v25  ;;  %11593 = vmatpush3.msra.mxu1 %v218_v22  ;;  %v12927_v22 = vld [vmem:[%s14508_s3 + $0x280] sm:$0xff] }
  0x1b   :  { %11181 = vmatpush3.msra.mxu0 %v25_v26  ;;  %11594 = vmatprep.subr.mxu1 %v217_v23 }
  0x1c   :  { %11182 = vmatprep.subr.mxu0 %v40_v27  ;;  %11595 = vmatpush3.msra.mxu1 %v217_v23 }
  0x1d   :  { %11183 = vmatpush3.msra.mxu0 %v24_v28  ;;  %11596 = vmatprep.subr.mxu1 %v216_v24 }
  0x1e   :  { %11184 = vmatprep.subr.mxu0 %v39_v29  ;;  %11597 = vmatpush3.msra.mxu1 %v216_v24 }
  0x1f   :  { %11185 = vmatpush3.msra.mxu0 %v23_v30 }
  0x20   :  { %11186 = vmatprep.subr.mxu0 %v38_v31 }
  0x21   :  { %11187 = vmatpush3.msra.mxu0 %v22_v32  ;;  %v10869_v32 = vld [vmem:[%s14508_s3 + $0x320] ss:$0 sm:$0xff] }
  0x22   :  { %120 = vmatmul.mubr.f32.vlgmr.msra.gmra.mxu0 %v17_v33 }
  0x23   :  { %124 = vmatprep.mubr.f32.mxu0 %v10866_v34  ;;  %v10870_v34 = vld [vmem:[%s14508_s3 + $0x318] ss:$0 sm:$0xff] }
  0x26   :  { %125 = vmatmul.mubr.f32.gmra.mxu0 %v10865_v35 }
  0xe2   :  { %v11188_v36 = vpop.f32.mrf.mxu0 }
  0xe4   :  { %v11189_v37 = vpop.f32.mrf.mxu0 }
  0xe5   :  { %v11190_v39 = vadd.f32 %v11189_v37, %v11188_v36 }
  0xe6   :  { %v11191_v40 = vpop.f32.mrf.mxu0 }
  0xe7   :  { %v122_v41 = vadd.f32 %v11190_v39, %v54_v38 }
  0xe8   :  { %v11192_v42 = vpop.f32.mrf.mxu0 }
  0xe9   :  { %v11193_v43 = vadd.f32 %v11192_v42, %v11191_v40  ;;  %v133_v44 = vsel %vm132_vm0, %v122_v41, 0.0  ;;  %v10871_v42 = vld [vmem:[%s14508_s3 + $0x2a0] ss:$0 sm:$0xff] }
  0xea   :  { %134 = vadd.xlane.f32.xlu0 %v133_v44 }
  0xeb   :  { %v127_v45 = vadd.f32 %v11193_v43, %v54_v38 }
  0xed   :  { %v136_v46 = vsel %vm132_vm0, %v127_v45, 0.0 }
  0xee   :  { %137 = vadd.xlane.f32.xlu0 %v136_v46 }
 0x173   :  { %v135_v47 = vpop.xlane.xlu0 %134 }
 0x174   :  { %v140_v48 = vmul.f32 0.03125, %v135_v47 }
 0x176   :  { %v142_v49 = vsub.f32 %v122_v41, %v140_v48  ;;  %v12664_v41 = vmov 0.0   ;;  %v172_v48 = vlaneseq }
 0x177   :  { %v138_v50 = vpop.xlane.xlu0 %137  ;;  %11601 = vmatprep.subr.mxu1 %v12664_v41  ;;  %11636 = vmatprep.subr.mxu0 %v12664_v41 }
 0x178   :  { %v141_v51 = vmul.f32 0.03125, %v138_v50  ;;  %v144_v52 = vmul.f32 %v142_v49, %v142_v49  ;;  %11638 = vmatprep.mubr.msk.f32.mxu0 %vm12665_vm1, %v12664_v41 }
 0x17a   :  { %v143_v53 = vsub.f32 %v127_v45, %v141_v51  ;;  %v146_v54 = vsel %vm132_vm0, %v144_v52, 0.0 }
 0x17b   :  { %147 = vadd.xlane.f32.xlu1 %v146_v54 }
 0x17c   :  { %v145_v55 = vmul.f32 %v143_v53, %v143_v53 }
 0x17e   :  { %v149_v56 = vsel %vm132_vm0, %v145_v55, 0.0 }
 0x17f   :  { %150 = vadd.xlane.f32.xlu1 %v149_v56 }
 0x204   :  { %v148_v57 = vpop.xlane.xlu1 %147 }
 0x205   :  { %v152_v58 = vmul.f32 0.03125, %v148_v57 }
 0x207   :  { %v154_v59 = vadd.f32 1e-05, %v152_v58 }
 0x208   :  { %v151_v60 = vpop.xlane.xlu1 %150 }
 0x209   :  { %12376 = vrsqrt.f32 %v154_v59  ;;  %v153_v61 = vmul.f32 0.03125, %v151_v60 }
 0x20b   :  { %v155_v62 = vadd.f32 1e-05, %v153_v61 }
 0x20d   :  { %12378 = vrsqrt.f32 %v155_v62 }
 0x216   :  { %v12377_v63 = vpop.eup %12376 }
 0x217   :  { %v158_v1 = vmul.f32 %v12377_v63, %v142_v49  ;;  %v12880_v49 = vand.u32 127, %v172_v48 }
 0x219   :  { %v164_v3 = vmul.f32 %v10867_v0, %v158_v1  ;;  %vm174_vm3 = vcmp.ge.s32.totalorder %v12880_v49, 5  ;;  %vm5120_vm7 = vcmp.lt.s32.totalorder %v12880_v49, 8  ;;  %vm5112_vm10 = vcmp.ge.s32.totalorder %v12880_v49, 8 }
 0x21a   :  { %v12379_v4 = vpop.eup %12378  ;;  %v12886_v51 = vsel %vm174_vm3, -1e+09, %v12664_v41  ;;  %vm5121_vm9 = vmand %vm174_vm3, %vm5120_vm7 }
 0x21b   :  { %v12824_v5 = vadd.f32 %v10868_v2, %v164_v3  ;;  %v159_v6 = vmul.f32 %v12379_v4, %v143_v53 }
 0x21d   :  { %v178_v7 = vsel %vm132_vm0, %v12824_v5, 0.0  ;;  %v165_v8 = vmul.f32 %v10867_v0, %v159_v6 }
 0x21e   :  { %179 = vadd.xlane.f32.xlu0 %v178_v7 }
 0x21f   :  { %v12828_v9 = vadd.f32 %v10868_v2, %v165_v8 }
 0x221   :  { %v181_v10 = vsel %vm132_vm0, %v12828_v9, 0.0 }
 0x222   :  { %182 = vadd.xlane.f32.xlu1 %v181_v10 }
 0x2a7   :  { %v180_v11 = vpop.xlane.xlu0 %179 }
 0x2a8   :  { %v184_v12 = vmul.f32 0.03125, %v180_v11 }
 0x2aa   :  { %v186_v13 = vsub.f32 %v12824_v5, %v184_v12 }
 0x2ab   :  { %v183_v14 = vpop.xlane.xlu1 %182 }
 0x2ac   :  { %v185_v15 = vmul.f32 0.03125, %v183_v14  ;;  %v188_v16 = vmul.f32 %v186_v13, %v186_v13 }
 0x2ae   :  { %v187_v17 = vsub.f32 %v12828_v9, %v185_v15  ;;  %v190_v18 = vsel %vm132_vm0, %v188_v16, 0.0 }
 0x2af   :  { %191 = vadd.xlane.f32.xlu0 %v190_v18 }
 0x2b0   :  { %v189_v19 = vmul.f32 %v187_v17, %v187_v17 }
 0x2b2   :  { %v193_v20 = vsel %vm132_vm0, %v189_v19, 0.0 }
 0x2b3   :  { %194 = vadd.xlane.f32.xlu1 %v193_v20 }
 0x338   :  { %v192_v25 = vpop.xlane.xlu0 %191 }
 0x339   :  { %v196_v26 = vmul.f32 0.03125, %v192_v25 }
 0x33b   :  { %v198_v27 = vadd.f32 1e-05, %v196_v26 }
 0x33c   :  { %v195_v28 = vpop.xlane.xlu1 %194 }
 0x33d   :  { %12380 = vrsqrt.f32 %v198_v27  ;;  %v197_v29 = vmul.f32 0.03125, %v195_v28 }
 0x33f   :  { %v199_v30 = vadd.f32 1e-05, %v197_v29 }
 0x341   :  { %12382 = vrsqrt.f32 %v199_v30 }
 0x34a   :  { %v12381_v31 = vpop.eup %12380 }
 0x34b   :  { %v202_v33 = vmul.f32 %v12381_v31, %v186_v13 }
 0x34d   :  { %v208_v35 = vmul.f32 %v10869_v32, %v202_v33 }
 0x34e   :  { %v12383_v36 = vpop.eup %12382 }
 0x34f   :  { %v203_v37 = vmul.f32 %v12383_v36, %v187_v17  ;;  %v214_v38 = vadd.f32 %v10870_v34, %v208_v35 }
 0x351   :  { %v209_v39 = vmul.f32 %v10869_v32, %v203_v37  ;;  %11598 = vmatprep.mubr.msk.f32.mxu1 %vm132_vm0, %v214_v38 }
 0x353   :  { %v215_v40 = vadd.f32 %v10870_v34, %v209_v39 }
 0x355   :  { %11599 = vmatmul.mubr.msk.f32.vlgmr.msra.gmra.mxu1 %vm132_vm0, %v215_v40 }
 0x356   :  { %11603 = vmatprep.mubr.msk.f32.mxu1 %vm12665_vm1, %v12664_v41 }
 0x415   :  { %v11600_v43 = vpop.f32.mrf.mxu1 }
 0x416   :  { %v12865_v44 = vadd.f32 %v11600_v43, %v10871_v42 }
 0x417   :  { %v297_v45 = vpop.f32.mrf.mxu1 }
 0x418   :  { %v12867_v46 = vadd.f32 %v10871_v42, %v297_v45 }
 0x41a   :  { %307 = vrot.lane.b32.xlu0 %v12867_v46, %s12666_s28 }
 0x41e   :  { %476 = vrot.lane.b32.xlu0 %v12867_v46, %s12667_s29 }
 0x48c   :  { %v308_v47 = vpop.permute.xlu0 %307 }
 0x48d   :  { %11602 = vmatpush3.xpose.msk.msra.mxu1 %vm309_vm2, %v308_v47 }
 0x48e   :  { %11606 = vmatprep.subr.mxu1 %v12664_v41 }
 0x490   :  { %11604 = vmatmul.mubr.msk.f32.vlgmr.msra.gmra.mxu1 %vm309_vm2, %v12867_v46  ;;  %v477_v1 = vpop.permute.xlu0 %476 }
 0x491   :  { %11608 = vmatprep.mubr.msk.f32.mxu1 %vm12665_vm1, %v12664_v41 }
 0x550   :  { %v380_v50 = vpop.f32.mrf.mxu1 }
 0x551   :  { %v384_v52 = vmul.f32 0.35355338, %v380_v50 }
 0x552   :  { %v11605_v53 = vpop.f32.mrf.mxu1 }
 0x553   :  { %v385_v54 = vadd.f32 %v384_v52, %v12886_v51 }
 0x555   :  { %v386_v55 = vsel %vm309_vm2, %v385_v54, -inf }
 0x556   :  { %387 = vmax.xlane.f32.xlu1 %v386_v55 }
 0x567   :  { %397 = vrot.lane.b32.xlu1 %v12867_v46, %s12668_s30 }
 0x5df   :  { %v388_v56 = vpop.xlane.xlu1 %387 }
 0x5e0   :  { %v389_v57 = vsub.f32 %v385_v54, %v388_v56  ;;  %v12967_v54 = vld [vmem:[%s14508_s3 + $0x290] sm:$0xff] }
 0x5e2   :  { %v390_v58 = vmul.f32 1.442695, %v389_v57 }
 0x5e3   :  { %v398_v59 = vpop.permute.xlu1 %397 }
 0x5e4   :  { %12384 = vpow2.f32 %v390_v58  ;;  %11607 = vmatpush3.msra.mxu1 %v398_v59 }
 0x5e5   :  { %11611 = vmatprep.subr.mxu1 %v12664_v41 }
 0x5f1   :  { %v12385_v60 = vpop.eup %12384 }
 0x5f2   :  { %v392_v61 = vsel %vm309_vm2, %v12385_v60, 0.0 }
 0x5f3   :  { %393 = vadd.xlane.f32.xlu1 %v392_v61 }
 0x604   :  { %474 = vrot.lane.b32.xlu1 %v12867_v46, %s12669_s5 }
 0x67c   :  { %v394_v62 = vpop.xlane.xlu1 %393 }
 0x67d   :  { %12386 = vrcp.f32 %v394_v62 }
 0x680   :  { %v475_v2 = vpop.permute.xlu1 %474 }
 0x68a   :  { %v12387_v63 = vpop.eup %12386 }
 0x68b   :  { %v396_v0 = vmul.f32 %v12387_v63, %v12385_v60 }
 0x68d   :  { %11609 = vmatmul.mubr.msk.f32.vlgmr.msra.gmra.mxu1 %vm309_vm2, %v396_v0 }
 0x68e   :  { %11612 = vmatpush3.xpose.msk.msra.mxu1 %vm309_vm2, %v477_v1  ;;  %11613 = vmatprep.mubr.msk.f32.mxu1 %vm12665_vm1, %v12664_v41 }
 0x68f   :  { %11616 = vmatprep.subr.mxu1 %v12664_v41 }
 0x691   :  { %11614 = vmatmul.mubr.msk.f32.vlgmr.msra.gmra.mxu1 %vm309_vm2, %v475_v2 }
 0x692   :  { %11618 = vmatprep.mubr.msk.f32.mxu1 %vm12665_vm1, %v12664_v41 }
 0x74d   :  { %v469_v3 = vpop.f32.mrf.mxu1 }
 0x74f   :  { %v11610_v4 = vpop.f32.mrf.mxu1 }
 0x751   :  { %v548_v6 = vpop.f32.mrf.mxu1 }
 0x752   :  { %v552_v7 = vmul.f32 0.35355338, %v548_v6 }
 0x753   :  { %v11615_v8 = vpop.f32.mrf.mxu1 }
 0x754   :  { %v553_v10 = vadd.f32 %v552_v7, %v12886_v51 }
 0x756   :  { %v554_v11 = vsel %vm309_vm2, %v553_v10, -inf }
 0x757   :  { %555 = vmax.xlane.f32.xlu0 %v554_v11 }
 0x76d   :  { %565 = vrot.lane.b32.xlu0 %v12867_v46, %s12670_s6 }
 0x771   :  { %788 = vrot.lane.b32.xlu0 %v12867_v46, %s12671_s7 }
 0x7e0   :  { %v556_v12 = vpop.xlane.xlu0 %555 }
 0x7e1   :  { %v557_v13 = vsub.f32 %v553_v10, %v556_v12 }
 0x7e3   :  { %v558_v14 = vmul.f32 1.442695, %v557_v13 }
 0x7e4   :  { %v566_v15 = vpop.permute.xlu0 %565 }
 0x7e5   :  { %12388 = vpow2.f32 %v558_v14  ;;  %11617 = vmatpush3.msra.mxu1 %v566_v15  ;;  %v13004_v14 = vld [vmem:[%s14508_s3 + $0x298] sm:$0xff] }
 0x7e6   :  { %11621 = vmatprep.subr.mxu1 %v12664_v41 }
 0x7e8   :  { %v789_v26 = vpop.permute.xlu0 %788 }
 0x7f2   :  { %v12389_v16 = vpop.eup %12388 }
 0x7f3   :  { %v560_v17 = vsel %vm309_vm2, %v12389_v16, 0.0 }
 0x7f4   :  { %561 = vadd.xlane.f32.xlu1 %v560_v17 }
 0x805   :  { %790 = vrot.lane.b32.xlu1 %v12867_v46, %s12672_s8 }
 0x87d   :  { %v562_v18 = vpop.xlane.xlu1 %561 }
 0x87e   :  { %12390 = vrcp.f32 %v562_v18 }
 0x881   :  { %v791_v25 = vpop.permute.xlu1 %790 }
 0x88b   :  { %v12391_v19 = vpop.eup %12390 }
 0x88c   :  { %v564_v20 = vmul.f32 %v12391_v19, %v12389_v16 }
 0x88e   :  { %11619 = vmatmul.mubr.msk.f32.vlgmr.msra.gmra.mxu1 %vm309_vm2, %v564_v20 }
 0x88f   :  { %11622 = vmatpush3.msra.mxu1 %v12917_v21  ;;  %11623 = vmatprep.mubr.msk.f32.mxu1 %vm12665_vm1, %v12664_v41 }
 0x890   :  { %11626 = vmatprep.subr.mxu1 %v12664_v41 }
 0x94e   :  { %v637_v23 = vpop.f32.mrf.mxu1 }
 0x94f   :  { %11624 = vmatmul.mubr.msk.f32.vlgmr.msra.gmra.mxu1 %vm309_vm2, %v637_v23 }
 0x950   :  { %v11620_v24 = vpop.f32.mrf.mxu1  ;;  %11627 = vmatpush3.msra.mxu1 %v12927_v22  ;;  %11628 = vmatprep.mubr.msk.f32.mxu1 %vm12665_vm1, %v12664_v41 }
 0x951   :  { %11631 = vmatprep.subr.mxu1 %v12664_v41 }
 0x953   :  { %11629 = vmatmul.mubr.msk.f32.vlgmr.msra.gmra.mxu1 %vm309_vm2, %v469_v3 }
 0x954   :  { %11632 = vmatpush3.xpose.msk.msra.mxu1 %vm309_vm2, %v791_v25  ;;  %11633 = vmatprep.mubr.msk.f32.mxu1 %vm12665_vm1, %v12664_v41 }
 0x955   :  { %11641 = vmatprep.subr.mxu1 %v12664_v41 }
 0x957   :  { %11634 = vmatmul.mubr.msk.f32.vlgmr.msra.gmra.mxu1 %vm309_vm2, %v789_v26 }
 0x958   :  { %11643 = vmatprep.mubr.msk.f32.mxu1 %vm12665_vm1, %v12664_v41  ;;  %11642 = vmatpush3.msra.mxu1 %v12967_v54 }
 0x959   :  { %11651 = vmatprep.subr.mxu1 %v12664_v41 }
 0xa0f   :  { %v711_v27 = vpop.f32.mrf.mxu1 }
 0xa11   :  { %v11625_v28 = vpop.f32.mrf.mxu1 }
 0xa13   :  { %v784_v29 = vpop.f32.mrf.mxu1 }
 0xa14   :  { %v12942_v30 = vadd.f32 %v784_v29, %v711_v27 }
 0xa15   :  { %v11630_v31 = vpop.f32.mrf.mxu1 }
 0xa17   :  { %v862_v32 = vpop.f32.mrf.mxu1 }
 0xa18   :  { %v866_v33 = vmul.f32 0.35355338, %v862_v32 }
 0xa19   :  { %v11635_v34 = vpop.f32.mrf.mxu1 }
 0xa1a   :  { %v867_v35 = vadd.f32 %v866_v33, %v12886_v51 }
 0xa1c   :  { %v868_v36 = vsel %vm309_vm2, %v867_v35, -inf }
 0xa1d   :  { %869 = vmax.xlane.f32.xlu1 %v868_v36 }
 0xa2e   :  { %1032 = vrot.lane.b32.xlu1 %v12867_v46, %s12673_s12 }
 0xa32   :  { %1030 = vrot.lane.b32.xlu1 %v12867_v46, %s12674_s13 }
 0xa36   :  { %1273 = vrot.lane.b32.xlu1 %v12865_v44, %s12666_s28 }
 0xaa6   :  { %v870_v37 = vpop.xlane.xlu1 %869 }
 0xaa7   :  { %v871_v38 = vsub.f32 %v867_v35, %v870_v37 }
 0xaa9   :  { %v872_v39 = vmul.f32 1.442695, %v871_v38 }
 0xaaa   :  { %v1033_v50 = vpop.permute.xlu1 %1032 }
 0xaab   :  { %12392 = vpow2.f32 %v872_v39 }
 0xaae   :  { %v1031_v53 = vpop.permute.xlu1 %1030 }
 0xab2   :  { %v1274_v7 = vpop.permute.xlu1 %1273 }
 0xab8   :  { %v12393_v40 = vpop.eup %12392 }
 0xab9   :  { %v874_v42 = vsel %vm309_vm2, %v12393_v40, 0.0 }
 0xaba   :  { %875 = vadd.xlane.f32.xlu0 %v874_v42 }
 0xad0   :  { %879 = vrot.lane.b32.xlu0 %v12867_v46, %s12675_s14 }
 0xb43   :  { %v876_v43 = vpop.xlane.xlu0 %875 }
 0xb44   :  { %12394 = vrcp.f32 %v876_v43 }
 0xb47   :  { %v880_v45 = vpop.permute.xlu0 %879 }
 0xb48   :  { %11637 = vmatpush3.msra.mxu0 %v880_v45 }
 0xb49   :  { %11646 = vmatprep.subr.mxu0 %v12664_v41 }
 0xb51   :  { %v12395_v47 = vpop.eup %12394 }
 0xb52   :  { %v878_v52 = vmul.f32 %v12395_v47, %v12393_v40 }
 0xb54   :  { %11639 = vmatmul.mubr.msk.f32.vlgmr.msra.gmra.mxu0 %vm309_vm2, %v878_v52 }
 0xb55   :  { %11647 = vmatpush3.xpose.msk.msra.mxu0 %vm309_vm2, %v1033_v50  ;;  %11648 = vmatprep.mubr.msk.f32.mxu0 %vm12665_vm1, %v12664_v41 }
 0xb56   :  { %11656 = vmatprep.subr.mxu0 %v12664_v41 }
 0xb58   :  { %11649 = vmatmul.mubr.msk.f32.vlgmr.msra.gmra.mxu0 %vm309_vm2, %v1031_v53 }
 0xb59   :  { %11658 = vmatprep.mubr.msk.f32.mxu0 %vm12665_vm1, %v12664_v41  ;;  %11657 = vmatpush3.msra.mxu0 %v13004_v14 }
 0xb5a   :  { %11666 = vmatprep.subr.mxu0 %v12664_v41 }
 0xc14   :  { %v951_v55 = vpop.f32.mrf.mxu0 }
 0xc15   :  { %11644 = vmatmul.mubr.msk.f32.vlgmr.msra.gmra.mxu1 %vm309_vm2, %v951_v55 }
 0xc16   :  { %v11640_v56 = vpop.f32.mrf.mxu0  ;;  %11653 = vmatprep.mubr.msk.f32.mxu1 %vm12665_vm1, %v12664_v41 }
 0xc18   :  { %v1104_v57 = vpop.f32.mrf.mxu0 }
 0xc19   :  { %v1108_v58 = vmul.f32 0.35355338, %v1104_v57 }
 0xc1a   :  { %v11650_v59 = vpop.f32.mrf.mxu0 }
 0xc1b   :  { %v1109_v60 = vadd.f32 %v1108_v58, %v12886_v51 }
 0xc1d   :  { %v1110_v61 = vsel %vm309_vm2, %v1109_v60, -inf }
 0xc1e   :  { %1111 = vmax.xlane.f32.xlu0 %v1110_v61 }
 0xc34   :  { %1121 = vrot.lane.b32.xlu0 %v12867_v46, %s12676_s17 }
 0xc38   :  { %1440 = vrot.lane.b32.xlu0 %v12865_v44, %s12667_s29 }
 0xca7   :  { %v1112_v62 = vpop.xlane.xlu0 %1111 }
 0xca8   :  { %v1113_v63 = vsub.f32 %v1109_v60, %v1112_v62 }
 0xcaa   :  { %v1114_v0 = vmul.f32 1.442695, %v1113_v63 }
 0xcab   :  { %v1122_v1 = vpop.permute.xlu0 %1121 }
 0xcac   :  { %12396 = vpow2.f32 %v1114_v0  ;;  %11652 = vmatpush3.msra.mxu1 %v1122_v1 }
 0xcad   :  { %11661 = vmatprep.subr.mxu1 %v12664_v41 }
 0xcaf   :  { %v1441_v12 = vpop.permute.xlu0 %1440 }
 0xcb9   :  { %v12397_v2 = vpop.eup %12396 }
 0xcba   :  { %v1116_v3 = vsel %vm309_vm2, %v12397_v2, 0.0 }
 0xcbb   :  { %1117 = vadd.xlane.f32.xlu1 %v1116_v3 }
 0xccc   :  { %1438 = vrot.lane.b32.xlu1 %v12865_v44, %s12669_s5 }
 0xcd5   :  { %v1025_v4 = vpop.f32.mrf.mxu1 }
 0xcd6   :  { %v1029_v46 = vadd.f32 %v1025_v4, %v12942_v30 }
 0xcd7   :  { %v11645_v6 = vpop.f32.mrf.mxu1 }
 0xd44   :  { %v1118_v8 = vpop.xlane.xlu1 %1117 }
 0xd45   :  { %12398 = vrcp.f32 %v1118_v8 }
 0xd48   :  { %v1439_v13 = vpop.permute.xlu1 %1438 }
 0xd52   :  { %v12399_v10 = vpop.eup %12398 }
 0xd53   :  { %v1120_v11 = vmul.f32 %v12399_v10, %v12397_v2 }
 0xd55   :  { %11654 = vmatmul.mubr.msk.f32.vlgmr.msra.gmra.mxu1 %vm309_vm2, %v1120_v11 }
 0xd56   :  { %11662 = vmatpush3.xpose.msk.msra.mxu1 %vm309_vm2, %v1274_v7  ;;  %11663 = vmatprep.mubr.msk.f32.mxu1 %vm12665_vm1, %v12664_v41 }
 0xd57   :  { %11671 = vmatprep.subr.mxu1 %v12664_v41 }
 0xd59   :  { %11664 = vmatmul.mubr.msk.f32.vlgmr.msra.gmra.mxu1 %vm309_vm2, %v12865_v44 }
 0xd5a   :  { %11672 = vmatpush3.xpose.msk.msra.mxu1 %vm309_vm2, %v1441_v12  ;;  %11673 = vmatprep.mubr.msk.f32.mxu1 %vm12665_vm1, %v12664_v41 }
 0xd5b   :  { %11681 = vmatprep.subr.mxu1 %v12664_v41 }
 0xd5d   :  { %11674 = vmatmul.mubr.msk.f32.vlgmr.msra.gmra.mxu1 %vm309_vm2, %v1439_v13 }
 0xd5e   :  { %11682 = vmatpush3.msra.mxu1 %v12917_v21  ;;  %11683 = vmatprep.mubr.msk.f32.mxu1 %vm12665_vm1, %v12664_v41 }
 0xd5f   :  { %11691 = vmatprep.subr.mxu1 %v12664_v41 }
 0xe15   :  { %v1193_v15 = vpop.f32.mrf.mxu1 }
 0xe16   :  { %11659 = vmatmul.mubr.msk.f32.vlgmr.msra.gmra.mxu0 %vm309_vm2, %v1193_v15 }
 0xe17   :  { %v11655_v16 = vpop.f32.mrf.mxu1  ;;  %11668 = vmatprep.mubr.msk.f32.mxu0 %vm12665_vm1, %v12664_v41 }
 0xe19   :  { %v1345_v17 = vpop.f32.mrf.mxu1 }
 0xe1a   :  { %v1349_v18 = vmul.f32 0.35355338, %v1345_v17 }
 0xe1b   :  { %v11665_v19 = vpop.f32.mrf.mxu1 }
 0xe1c   :  { %v1350_v20 = vadd.f32 %v1349_v18, %v12886_v51 }
 0xe1d   :  { %v1512_v21 = vpop.f32.mrf.mxu1 }
 0xe1e   :  { %v1516_v23 = vmul.f32 0.35355338, %v1512_v21  ;;  %v1351_v24 = vsel %vm309_vm2, %v1350_v20, -inf }
 0xe1f   :  { %1352 = vmax.xlane.f32.xlu0 %v1351_v24  ;;  %v11675_v25 = vpop.f32.mrf.mxu1 }
 0xe20   :  { %v1517_v26 = vadd.f32 %v1516_v23, %v12886_v51 }
 0xe22   :  { %v1518_v27 = vsel %vm309_vm2, %v1517_v26, -inf }
 0xe23   :  { %1519 = vmax.xlane.f32.xlu1 %v1518_v27 }
 0xe34   :  { %1529 = vrot.lane.b32.xlu1 %v12865_v44, %s12670_s6 }
 0xe38   :  { %1753 = vrot.lane.b32.xlu1 %v12865_v44, %s12672_s8 }
 0xe3c   :  { %1751 = vrot.lane.b32.xlu1 %v12865_v44, %s12671_s7 }
 0xea8   :  { %v1353_v28 = vpop.xlane.xlu0 %1352 }
 0xea9   :  { %v1354_v29 = vsub.f32 %v1350_v20, %v1353_v28  ;;  %v10906_v20 = vld [vmem:[%s14508_s3 + $0x278] ss:$0 sm:$0xff] }
 0xeab   :  { %v1355_v30 = vmul.f32 1.442695, %v1354_v29 }
 0xeac   :  { %v1520_v31 = vpop.xlane.xlu1 %1519 }
 0xead   :  { %12400 = vpow2.f32 %v1355_v30  ;;  %v1521_v32 = vsub.f32 %v1517_v26, %v1520_v31 }
 0xeaf   :  { %v1522_v33 = vmul.f32 1.442695, %v1521_v32 }
 0xeb0   :  { %v1530_v52 = vpop.permute.xlu1 %1529 }
 0xeb1   :  { %12402 = vpow2.f32 %v1522_v33 }
 0xeb4   :  { %v1754_v57 = vpop.permute.xlu1 %1753 }
 0xeba   :  { %v12401_v34 = vpop.eup %12400 }
 0xebb   :  { %v1357_v35 = vsel %vm309_vm2, %v12401_v34, 0.0 }
 0xebc   :  { %1358 = vadd.xlane.f32.xlu0 %v1357_v35 }
 0xebe   :  { %v12403_v36 = vpop.eup %12402 }
 0xebf   :  { %v1524_v37 = vsel %vm309_vm2, %v12403_v36, 0.0 }
 0xec0   :  { %1525 = vadd.xlane.f32.xlu0 %v1524_v37 }
 0xed6   :  { %v1267_v38 = vpop.f32.mrf.mxu0  ;;  %1362 = vrot.lane.b32.xlu0 %v12865_v44, %s12668_s30 }
 0xed7   :  { %v13025_v39 = vadd.f32 %v1267_v38, %v1029_v46 }
 0xed8   :  { %v11660_v40 = vpop.f32.mrf.mxu0 }
 0xed9   :  { %v2238_v24 = vadd.f32 %v10906_v20, %v13025_v39 }
 0xedb   :  { %v13078_v27 = vadd.f32 %v2238_v24, %v12824_v5  ;;  %v2392_v24 = vld [vmem:[%s14508_s3 + $0x2f8] sm:$0xff] }
 0xedd   :  { %v2244_v29 = vsel %vm132_vm0, %v13078_v27, 0.0 }
 0xf45   :  { %v1359_v42 = vpop.xlane.xlu0 %1358 }
 0xf46   :  { %12404 = vrcp.f32 %v1359_v42 }
 0xf49   :  { %v1526_v43 = vpop.xlane.xlu0 %1525 }
 0xf4a   :  { %12406 = vrcp.f32 %v1526_v43 }
 0xf4d   :  { %v1363_v45 = vpop.permute.xlu0 %1362 }
 0xf4e   :  { %11667 = vmatpush3.msra.mxu0 %v1363_v45 }
 0xf4f   :  { %11676 = vmatprep.subr.mxu0 %v12664_v41 }
 0xf53   :  { %v12405_v47 = vpop.eup %12404 }
 0xf54   :  { %v1361_v50 = vmul.f32 %v12405_v47, %v12401_v34 }
 0xf56   :  { %11669 = vmatmul.mubr.msk.f32.vlgmr.msra.gmra.mxu0 %vm309_vm2, %v1361_v50 }
 0xf57   :  { %v12407_v53 = vpop.eup %12406  ;;  %11677 = vmatpush3.msra.mxu0 %v1530_v52  ;;  %11678 = vmatprep.mubr.msk.f32.mxu0 %vm12665_vm1, %v12664_v41 }
 0xf58   :  { %v1528_v55 = vmul.f32 %v12407_v53, %v12403_v36  ;;  %11686 = vmatprep.subr.mxu0 %v12664_v41 }
 0xf5a   :  { %11679 = vmatmul.mubr.msk.f32.vlgmr.msra.gmra.mxu0 %vm309_vm2, %v1528_v55 }
 0xf5b   :  { %11687 = vmatpush3.msra.mxu0 %v12927_v22  ;;  %11688 = vmatprep.mubr.msk.f32.mxu0 %vm12665_vm1, %v12664_v41  ;;  %v1752_v22 = vpop.permute.xlu1 %1751 }
 0xf5c   :  { %11696 = vmatprep.subr.mxu0 %v12664_v41 }
0x1016   :  { %v1434_v56 = vpop.f32.mrf.mxu0 }
0x1017   :  { %11689 = vmatmul.mubr.msk.f32.vlgmr.msra.gmra.mxu0 %vm309_vm2, %v1434_v56 }
0x1018   :  { %v11670_v58 = vpop.f32.mrf.mxu0  ;;  %11698 = vmatprep.mubr.msk.f32.mxu0 %vm12665_vm1, %v12664_v41 }
0x101a   :  { %v1601_v59 = vpop.f32.mrf.mxu0 }
0x101b   :  { %11684 = vmatmul.mubr.msk.f32.vlgmr.msra.gmra.mxu1 %vm309_vm2, %v1601_v59 }
0x101c   :  { %11692 = vmatpush3.xpose.msk.msra.mxu1 %vm309_vm2, %v1754_v57  ;;  %v11680_v60 = vpop.f32.mrf.mxu0  ;;  %11693 = vmatprep.mubr.msk.f32.mxu1 %vm12665_vm1, %v12664_v41 }
0x101d   :  { %11701 = vmatprep.subr.mxu1 %v12664_v41 }
0x101f   :  { %11694 = vmatmul.mubr.msk.f32.vlgmr.msra.gmra.mxu1 %vm309_vm2, %v1752_v22 }
0x1020   :  { %11702 = vmatpush3.msra.mxu1 %v12967_v54  ;;  %11703 = vmatprep.mubr.msk.f32.mxu1 %vm12665_vm1, %v12664_v41 }
0x1021   :  { %11711 = vmatprep.subr.mxu1 %v12664_v41 }
0x10d7   :  { %v1747_v61 = vpop.f32.mrf.mxu0 }
0x10d9   :  { %v11690_v62 = vpop.f32.mrf.mxu0 }
0x10db   :  { %v1674_v63 = vpop.f32.mrf.mxu1 }
0x10dc   :  { %v1748_v0 = vadd.f32 %v1747_v61, %v1674_v63 }
0x10dd   :  { %v11685_v1 = vpop.f32.mrf.mxu1 }
0x10df   :  { %v1825_v2 = vpop.f32.mrf.mxu1 }
0x10e0   :  { %v1829_v3 = vmul.f32 0.35355338, %v1825_v2 }
0x10e1   :  { %v11695_v4 = vpop.f32.mrf.mxu1 }
0x10e2   :  { %v1830_v46 = vadd.f32 %v1829_v3, %v12886_v51  ;;  %v10907_v3 = vld [vmem:[%s14508_s3 + $0x330] ss:$0 sm:$0xff]  ;;  %v2285_v4 = vld [vmem:[%s14508_s3 + $0x2c8] sm:$0xff] }
0x10e4   :  { %v1831_v6 = vsel %vm309_vm2, %v1830_v46, -inf }
0x10e5   :  { %1832 = vmax.xlane.f32.xlu0 %v1831_v6 }
0x10fb   :  { %1842 = vrot.lane.b32.xlu0 %v12865_v44, %s12675_s14 }
0x10ff   :  { %1992 = vrot.lane.b32.xlu0 %v12865_v44, %s12674_s13 }
0x116e   :  { %v1833_v54 = vpop.xlane.xlu0 %1832 }
0x116f   :  { %v1834_v7 = vsub.f32 %v1830_v46, %v1833_v54  ;;  %v2284_v46 = vld [vmem:[%s14508_s3 + $0x2c0] sm:$0xff]  ;;  %v10908_v54 = vld [vmem:[%s14508_s3 + $0x328] ss:$0 sm:$0xff] }
0x1171   :  { %v1835_v8 = vmul.f32 1.442695, %v1834_v7  ;;  %v2283_v7 = vld [vmem:[%s14508_s3 + $0x2b8] sm:$0xff] }
0x1172   :  { %v1843_v10 = vpop.permute.xlu0 %1842 }
0x1173   :  { %12408 = vpow2.f32 %v1835_v8  ;;  %11697 = vmatpush3.msra.mxu0 %v1843_v10  ;;  %v2282_v10 = vld [vmem:[%s14508_s3 + $0x2b0] sm:$0xff] }
0x1174   :  { %11706 = vmatprep.subr.mxu0 %v12664_v41 }
0x1176   :  { %v1993_v18 = vpop.permute.xlu0 %1992 }
0x1180   :  { %v12409_v11 = vpop.eup %12408 }
0x1181   :  { %v1837_v12 = vsel %vm309_vm2, %v12409_v11, 0.0 }
0x1182   :  { %1838 = vadd.xlane.f32.xlu1 %v1837_v12 }
0x1193   :  { %1994 = vrot.lane.b32.xlu1 %v12865_v44, %s12673_s12 }
0x120b   :  { %v1839_v13 = vpop.xlane.xlu1 %1838 }
0x120c   :  { %12410 = vrcp.f32 %v1839_v13 }
0x120f   :  { %v1995_v17 = vpop.permute.xlu1 %1994 }
0x1219   :  { %v12411_v15 = vpop.eup %12410 }
0x121a   :  { %v1841_v16 = vmul.f32 %v12411_v15, %v12409_v11 }
0x121c   :  { %11699 = vmatmul.mubr.msk.f32.vlgmr.msra.gmra.mxu0 %vm309_vm2, %v1841_v16 }
0x121d   :  { %11707 = vmatpush3.xpose.msk.msra.mxu0 %vm309_vm2, %v1995_v17  ;;  %11708 = vmatprep.mubr.msk.f32.mxu0 %vm12665_vm1, %v12664_v41 }
0x121e   :  { %11716 = vmatprep.subr.mxu0 %v12664_v41 }
0x1220   :  { %11709 = vmatmul.mubr.msk.f32.vlgmr.msra.gmra.mxu0 %vm309_vm2, %v1993_v18 }
0x1221   :  { %11717 = vmatpush3.msra.mxu0 %v13004_v14  ;;  %11718 = vmatprep.mubr.msk.f32.mxu0 %vm12665_vm1, %v12664_v41 }
0x12dc   :  { %v1914_v19 = vpop.f32.mrf.mxu0 }
0x12dd   :  { %11704 = vmatmul.mubr.msk.f32.vlgmr.msra.gmra.mxu1 %vm309_vm2, %v1914_v19 }
0x12de   :  { %v11700_v21 = vpop.f32.mrf.mxu0  ;;  %11713 = vmatprep.mubr.msk.f32.mxu1 %vm12665_vm1, %v12664_v41 }
0x12df   :  { %v2394_v21 = vld [vmem:[%s14508_s3 + $0x308] sm:$0xff] }
0x12e0   :  { %v2066_v23 = vpop.f32.mrf.mxu0 }
0x12e1   :  { %v2070_v25 = vmul.f32 0.35355338, %v2066_v23  ;;  %v2393_v23 = vld [vmem:[%s14508_s3 + $0x300] sm:$0xff] }
0x12e2   :  { %v11710_v26 = vpop.f32.mrf.mxu0 }
0x12e3   :  { %v2071_v14 = vadd.f32 %v2070_v25, %v12886_v51  ;;  %v2391_v25 = vld [vmem:[%s14508_s3 + $0x2f0] sm:$0xff]  ;;  %v2390_v26 = vld [vmem:[%s14508_s3 + $0x2e8] sm:$0xff] }
0x12e5   :  { %v2072_v28 = vsel %vm309_vm2, %v2071_v14, -inf }
0x12e6   :  { %2073 = vmax.xlane.f32.xlu1 %v2072_v28  ;;  %v2388_v28 = vld [vmem:[%s14508_s3 + $0x2d8] sm:$0xff] }
0x12ea   :  { %2245 = vadd.xlane.f32.xlu1 %v2244_v29  ;;  %v10909_v29 = vld [vmem:[%s14508_s3 + $0x2a8] ss:$0 sm:$0xff] }
0x136f   :  { %v2074_v30 = vpop.xlane.xlu1 %2073 }
0x1370   :  { %v2075_v31 = vsub.f32 %v2071_v14, %v2074_v30  ;;  %v2389_v14 = vld [vmem:[%s14508_s3 + $0x2e0] sm:$0xff] }
0x1372   :  { %v2076_v32 = vmul.f32 1.442695, %v2075_v31 }
0x1373   :  { %v2246_v45 = vpop.xlane.xlu1 %2245 }
0x1374   :  { %12412 = vpow2.f32 %v2076_v32  ;;  %v2250_v47 = vmul.f32 0.03125, %v2246_v45 }
0x1376   :  { %v2252_v53 = vsub.f32 %v13078_v27, %v2250_v47 }
0x1378   :  { %v2254_v58 = vmul.f32 %v2252_v53, %v2252_v53 }
0x137a   :  { %v2256_v59 = vsel %vm132_vm0, %v2254_v58, 0.0 }
0x1381   :  { %v12413_v33 = vpop.eup %12412 }
0x1382   :  { %v2078_v34 = vsel %vm309_vm2, %v12413_v33, 0.0 }
0x1383   :  { %2079 = vadd.xlane.f32.xlu0 %v2078_v34 }
0x1399   :  { %2083 = vrot.lane.b32.xlu0 %v12865_v44, %s12676_s17 }
0x139d   :  { %v1987_v5 = vpop.f32.mrf.mxu1 }
0x139e   :  { %v1991_v35 = vadd.f32 %v1987_v5, %v1748_v0 }
0x139f   :  { %v11705_v36 = vpop.f32.mrf.mxu1 }
0x140c   :  { %v2080_v37 = vpop.xlane.xlu0 %2079 }
0x140d   :  { %12414 = vrcp.f32 %v2080_v37 }
0x1410   :  { %v2084_v38 = vpop.permute.xlu0 %2083 }
0x1411   :  { %11712 = vmatpush3.msra.mxu1 %v2084_v38 }
0x1412   :  { %11721 = vmatprep.subr.mxu1 %v2285_v4 }
0x141a   :  { %v12415_v39 = vpop.eup %12414 }
0x141b   :  { %v2082_v40 = vmul.f32 %v12415_v39, %v12413_v33 }
0x141d   :  { %11714 = vmatmul.mubr.msk.f32.vlgmr.msra.gmra.mxu1 %vm309_vm2, %v2082_v40 }
0x141e   :  { %11722 = vmatpush3.msra.mxu1 %v2285_v4  ;;  %v2527_v4 = vld [vmem:[%s14508_s3 + $0x428] sm:$0xff] }
0x141f   :  { %11723 = vmatprep.subr.mxu1 %v2284_v46 }
0x1420   :  { %11724 = vmatpush3.msra.mxu1 %v2284_v46  ;;  %v2526_v46 = vld [vmem:[%s14508_s3 + $0x420] sm:$0xff] }
0x1421   :  { %11725 = vmatprep.subr.mxu1 %v2283_v7 }
0x1422   :  { %11726 = vmatpush3.msra.mxu1 %v2283_v7 }
0x1423   :  { %11727 = vmatprep.subr.mxu1 %v2282_v10 }
0x1424   :  { %11728 = vmatpush3.msra.mxu1 %v2282_v10 }
0x14dd   :  { %v2155_v42 = vpop.f32.mrf.mxu1 }
0x14de   :  { %11719 = vmatmul.mubr.msk.f32.vlgmr.msra.gmra.mxu0 %vm309_vm2, %v2155_v42 }
0x14df   :  { %v11715_v43 = vpop.f32.mrf.mxu1 }
0x159e   :  { %v2228_v50 = vpop.f32.mrf.mxu0 }
0x159f   :  { %v2232_v52 = vadd.f32 %v2228_v50, %v1991_v35  ;;  %v10914_v50 = vld [vmem:[%s14508_s3 + $0x2d0] ss:$0 sm:$0xff] }
0x15a0   :  { %v11720_v44 = vpop.f32.mrf.mxu0 }
0x15a1   :  { %v2239_v55 = vadd.f32 %v10906_v20, %v2232_v52  ;;  %v2395_v20 = vld [vmem:[%s14508_s3 + $0x310] sm:$0xff] }
0x15a2   :  { %11732 = vmatprep.subr.mxu0 %v2395_v20 }
0x15a3   :  { %v13090_v56 = vadd.f32 %v2239_v55, %v12828_v9  ;;  %11733 = vmatpush3.msra.mxu0 %v2395_v20 }
0x15a4   :  { %11734 = vmatprep.subr.mxu0 %v2394_v21 }
0x15a5   :  { %v2247_v57 = vsel %vm132_vm0, %v13090_v56, 0.0  ;;  %11735 = vmatpush3.msra.mxu0 %v2394_v21 }
0x15a6   :  { %2248 = vadd.xlane.f32.xlu1 %v2247_v57  ;;  %11736 = vmatprep.subr.mxu0 %v2393_v23 }
0x15a7   :  { %11737 = vmatpush3.msra.mxu0 %v2393_v23 }
0x15a8   :  { %11738 = vmatprep.subr.mxu0 %v2392_v24 }
0x15a9   :  { %11739 = vmatpush3.msra.mxu0 %v2392_v24 }
0x15aa   :  { %2257 = vadd.xlane.f32.xlu1 %v2256_v59  ;;  %11740 = vmatprep.subr.mxu0 %v2391_v25 }
0x15ab   :  { %11741 = vmatpush3.msra.mxu0 %v2391_v25  ;;  %v10919_v25 = vld [vmem:[%s14508_s3 + $0x380] ss:$0 sm:$0xff] }
0x15ac   :  { %11742 = vmatprep.subr.mxu0 %v2390_v26 }
0x15ad   :  { %11743 = vmatpush3.msra.mxu0 %v2390_v26 }
0x15ae   :  { %11744 = vmatprep.subr.mxu0 %v2389_v14 }
0x15af   :  { %11745 = vmatpush3.msra.mxu0 %v2389_v14 }
0x15b0   :  { %11746 = vmatprep.subr.mxu0 %v2388_v28 }
0x15b1   :  { %11747 = vmatpush3.msra.mxu0 %v2388_v28 }
0x15b2   :  { %11767 = vmatprep.subr.mxu0 %v12664_v41 }
0x162f   :  { %v2249_v60 = vpop.xlane.xlu1 %2248 }
0x1630   :  { %v2251_v22 = vmul.f32 0.03125, %v2249_v60 }
0x1632   :  { %v2253_v61 = vsub.f32 %v13090_v56, %v2251_v22 }
0x1633   :  { %v2258_v62 = vpop.xlane.xlu1 %2257 }
0x1634   :  { %v2262_v63 = vmul.f32 0.03125, %v2258_v62  ;;  %v2255_v0 = vmul.f32 %v2253_v61, %v2253_v61 }
0x1636   :  { %v2264_v1 = vadd.f32 1e-05, %v2262_v63  ;;  %v2259_v2 = vsel %vm132_vm0, %v2255_v0, 0.0 }
0x1637   :  { %2260 = vadd.xlane.f32.xlu1 %v2259_v2 }
0x1638   :  { %12416 = vrsqrt.f32 %v2264_v1 }
0x1645   :  { %v12417_v9 = vpop.eup %12416 }
0x1646   :  { %v2268_v6 = vmul.f32 %v12417_v9, %v2252_v53 }
0x1648   :  { %v2274_v8 = vmul.f32 %v10907_v3, %v2268_v6  ;;  %v2525_v6 = vld [vmem:[%s14508_s3 + $0x418] sm:$0xff] }
0x164a   :  { %v2280_v11 = vadd.f32 %v10908_v54, %v2274_v8 }
0x164c   :  { %11729 = vmatprep.mubr.msk.f32.mxu1 %vm132_vm0, %v2280_v11 }
0x16c0   :  { %v2261_v12 = vpop.xlane.xlu1 %2260 }
0x16c1   :  { %v2263_v13 = vmul.f32 0.03125, %v2261_v12 }
0x16c3   :  { %v2265_v15 = vadd.f32 1e-05, %v2263_v13 }
0x16c5   :  { %12418 = vrsqrt.f32 %v2265_v15  ;;  %v10917_v15 = vld [vmem:[%s14508_s3 + $0x400] ss:$0 sm:$0xff] }
0x16d2   :  { %v12419_v16 = vpop.eup %12418 }
0x16d3   :  { %v2269_v17 = vmul.f32 %v12419_v16, %v2253_v61 }
0x16d5   :  { %v2275_v18 = vmul.f32 %v10907_v3, %v2269_v17  ;;  %v2528_v3 = vld [vmem:[%s14508_s3 + $0x430] sm:$0xff]  ;;  %v10918_v17 = vld [vmem:[%s14508_s3 + $0x3f8] ss:$0 sm:$0xff] }
0x16d6   :  { %11751 = vmatprep.subr.mxu1 %v2528_v3 }
0x16d7   :  { %v2281_v19 = vadd.f32 %v10908_v54, %v2275_v18 }
0x16d9   :  { %11730 = vmatmul.mubr.msk.f32.vlgmr.msra.gmra.mxu1 %vm132_vm0, %v2281_v19 }
0x16da   :  { %11752 = vmatpush3.msra.mxu1 %v2528_v3 }
0x16db   :  { %11753 = vmatprep.subr.mxu1 %v2527_v4 }
0x16dc   :  { %11754 = vmatpush3.msra.mxu1 %v2527_v4 }
0x16dd   :  { %11755 = vmatprep.subr.mxu1 %v2526_v46 }
0x16de   :  { %11756 = vmatpush3.msra.mxu1 %v2526_v46 }
0x16df   :  { %11757 = vmatprep.subr.mxu1 %v2525_v6 }
0x16e0   :  { %11758 = vmatpush3.msra.mxu1 %v2525_v6 }
0x16e1   :  { %11762 = vmatprep.subr.mxu1 %v12664_v41 }
0x1799   :  { %v11731_v30 = vpop.f32.mrf.mxu1 }
0x179a   :  { %v2369_v31 = vadd.f32 %v11731_v30, %v10909_v29 }
0x179b   :  { %v2363_v32 = vpop.f32.mrf.mxu1 }
0x179c   :  { %v10913_v33 = vmul.f32 -1.702, %v2369_v31  ;;  %v2364_v34 = vadd.f32 %v10909_v29, %v2363_v32 }
0x179e   :  { %v2378_v5 = vmul.f32 1.442695, %v10913_v33  ;;  %v10912_v35 = vmul.f32 -1.702, %v2364_v34 }
0x17a0   :  { %12420 = vpow2.f32 %v2378_v5  ;;  %v2376_v36 = vmul.f32 1.442695, %v10912_v35 }
0x17a2   :  { %12422 = vpow2.f32 %v2376_v36 }
0x17ad   :  { %v12421_v37 = vpop.eup %12420 }
0x17ae   :  { %v2381_v38 = vadd.f32 1.0, %v12421_v37 }
0x17af   :  { %v12423_v39 = vpop.eup %12422 }
0x17b0   :  { %v2380_v40 = vadd.f32 1.0, %v12423_v39  ;;  %12424 = vrcp.f32 %v2381_v38 }
0x17b2   :  { %12426 = vrcp.f32 %v2380_v40 }
0x17bd   :  { %v12425_v42 = vpop.eup %12424 }
0x17be   :  { %v2387_v47 = vmul.f32 %v12425_v42, %v2369_v31 }
0x17bf   :  { %v12427_v43 = vpop.eup %12426 }
0x17c0   :  { %v2386_v45 = vmul.f32 %v12427_v43, %v2364_v34 }
0x17c2   :  { %11748 = vmatprep.mubr.msk.f32.mxu0 %vm2401_vm4, %v2386_v45 }
0x17c3   :  { %11749 = vmatmul.mubr.msk.f32.vlgmr.msra.gmra.mxu0 %vm2401_vm4, %v2387_v47 }
0x17c4   :  { %11769 = vmatprep.mubr.msk.f32.mxu0 %vm12665_vm1, %v12664_v41 }
0x1883   :  { %v11750_v52 = vpop.f32.mrf.mxu0 }
0x1884   :  { %v2480_v44 = vadd.f32 %v11750_v52, %v10914_v50 }
0x1885   :  { %v2474_v53 = vpop.f32.mrf.mxu0 }
0x1886   :  { %v13153_v55 = vadd.f32 %v2480_v44, %v13090_v56  ;;  %v2475_v57 = vadd.f32 %v10914_v50, %v2474_v53 }
0x1888   :  { %v13156_v58 = vadd.f32 %v2475_v57, %v13078_v27  ;;  %v2490_v59 = vsel %vm132_vm0, %v13153_v55, 0.0 }
0x1889   :  { %2491 = vadd.xlane.f32.xlu0 %v2490_v59 }
0x188a   :  { %v2487_v60 = vsel %vm132_vm0, %v13156_v58, 0.0 }
0x188b   :  { %2488 = vadd.xlane.f32.xlu1 %v2487_v60 }
0x1912   :  { %v2492_v22 = vpop.xlane.xlu0 %2491 }
0x1913   :  { %v2494_v61 = vmul.f32 0.03125, %v2492_v22 }
0x1914   :  { %v2489_v62 = vpop.xlane.xlu1 %2488 }
0x1915   :  { %v2493_v63 = vmul.f32 0.03125, %v2489_v62  ;;  %v2496_v0 = vsub.f32 %v13153_v55, %v2494_v61 }
0x1917   :  { %v2495_v56 = vsub.f32 %v13156_v58, %v2493_v63  ;;  %v2498_v2 = vmul.f32 %v2496_v0, %v2496_v0 }
0x1919   :  { %v2497_v1 = vmul.f32 %v2495_v56, %v2495_v56  ;;  %v2502_v9 = vsel %vm132_vm0, %v2498_v2, 0.0  ;;  %v13238_v2 = vld [vmem:[%s14508_s3 + $0x360] sm:$0xff] }
0x191b   :  { %v2499_v27 = vsel %vm132_vm0, %v2497_v1, 0.0 }
0x191c   :  { %2500 = vadd.xlane.f32.xlu1 %v2499_v27 }
0x1920   :  { %2503 = vadd.xlane.f32.xlu1 %v2502_v9  ;;  %v13244_v9 = vld [vmem:[%s14508_s3 + $0x368] sm:$0xff] }
0x19a5   :  { %v2501_v54 = vpop.xlane.xlu1 %2500 }
0x19a6   :  { %v2505_v7 = vmul.f32 0.03125, %v2501_v54 }
0x19a8   :  { %v2507_v8 = vadd.f32 1e-05, %v2505_v7 }
0x19a9   :  { %v2504_v10 = vpop.xlane.xlu1 %2503 }
0x19aa   :  { %12428 = vrsqrt.f32 %v2507_v8  ;;  %v2506_v11 = vmul.f32 0.03125, %v2504_v10 }
0x19ac   :  { %v2508_v12 = vadd.f32 1e-05, %v2506_v11 }
0x19ae   :  { %12430 = vrsqrt.f32 %v2508_v12 }
0x19b7   :  { %v12429_v13 = vpop.eup %12428 }
0x19b8   :  { %v2511_v16 = vmul.f32 %v12429_v13, %v2495_v56 }
0x19ba   :  { %v2517_v18 = vmul.f32 %v10917_v15, %v2511_v16 }
0x19bb   :  { %v12431_v19 = vpop.eup %12430 }
0x19bc   :  { %v2512_v20 = vmul.f32 %v12431_v19, %v2496_v0  ;;  %v2523_v21 = vadd.f32 %v10918_v17, %v2517_v18 }
0x19be   :  { %v2518_v23 = vmul.f32 %v10917_v15, %v2512_v20  ;;  %11759 = vmatprep.mubr.msk.f32.mxu1 %vm132_vm0, %v2523_v21 }
0x19c0   :  { %v2524_v24 = vadd.f32 %v10918_v17, %v2518_v23 }
0x19c2   :  { %11760 = vmatmul.mubr.msk.f32.vlgmr.msra.gmra.mxu1 %vm132_vm0, %v2524_v24 }
0x19c3   :  { %11764 = vmatprep.mubr.msk.f32.mxu1 %vm12665_vm1, %v12664_v41 }
0x1a82   :  { %v11761_v26 = vpop.f32.mrf.mxu1 }
0x1a83   :  { %v13192_v14 = vadd.f32 %v11761_v26, %v10919_v25 }
0x1a84   :  { %v2606_v28 = vpop.f32.mrf.mxu1 }
0x1a85   :  { %v13194_v29 = vadd.f32 %v10919_v25, %v2606_v28 }
0x1a87   :  { %2782 = vrot.lane.b32.xlu0 %v13194_v29, %s12669_s5  ;;  %2616 = vrot.lane.b32.xlu1 %v13194_v29, %s12666_s28 }
0x1a8b   :  { %2784 = vrot.lane.b32.xlu1 %v13194_v29, %s12667_s29 }
0x1af9   :  { %v2617_v30 = vpop.permute.xlu1 %2616  ;;  %v2783_v32 = vpop.permute.xlu0 %2782 }
0x1afa   :  { %11763 = vmatpush3.xpose.msk.msra.mxu1 %vm309_vm2, %v2617_v30 }
0x1afb   :  { %11772 = vmatprep.subr.mxu1 %v12664_v41 }
0x1afd   :  { %11765 = vmatmul.mubr.msk.f32.vlgmr.msra.gmra.mxu1 %vm309_vm2, %v13194_v29  ;;  %v2785_v31 = vpop.permute.xlu1 %2784 }
0x1afe   :  { %11773 = vmatpush3.xpose.msk.msra.mxu1 %vm309_vm2, %v2785_v31  ;;  %11774 = vmatprep.mubr.msk.f32.mxu1 %vm12665_vm1, %v12664_v41 }
0x1aff   :  { %11782 = vmatprep.subr.mxu1 %v12664_v41 }
0x1b01   :  { %11775 = vmatmul.mubr.msk.f32.vlgmr.msra.gmra.mxu1 %vm309_vm2, %v2783_v32 }
0x1b02   :  { %11784 = vmatprep.mubr.msk.f32.mxu1 %vm12665_vm1, %v12664_v41  ;;  %11783 = vmatpush3.msra.mxu1 %v13244_v9 }
0x1b03   :  { %11792 = vmatprep.subr.mxu1 %v12664_v41 }
0x1bbd   :  { %v2688_v33 = vpop.f32.mrf.mxu1 }
0x1bbe   :  { %v2692_v34 = vmul.f32 0.35355338, %v2688_v33 }
0x1bbf   :  { %v11766_v5 = vpop.f32.mrf.mxu1 }
0x1bc0   :  { %v2693_v35 = vadd.f32 %v2692_v34, %v12886_v51  ;;  %v13281_v34 = vld [vmem:[%s14508_s3 + $0x370] sm:$0xff] }
0x1bc1   :  { %v2856_v36 = vpop.f32.mrf.mxu1 }
0x1bc2   :  { %v2860_v37 = vmul.f32 0.35355338, %v2856_v36  ;;  %v2694_v38 = vsel %vm309_vm2, %v2693_v35, -inf }
0x1bc3   :  { %2695 = vmax.xlane.f32.xlu1 %v2694_v38  ;;  %v11776_v39 = vpop.f32.mrf.mxu1 }
0x1bc4   :  { %v2861_v40 = vadd.f32 %v2860_v37, %v12886_v51 }
0x1bc6   :  { %v2862_v42 = vsel %vm309_vm2, %v2861_v40, -inf }
0x1bc7   :  { %2863 = vmax.xlane.f32.xlu0 %v2862_v42 }
0x1bdd   :  { %2873 = vrot.lane.b32.xlu0 %v13194_v29, %s12670_s6 }
0x1c4c   :  { %v2696_v43 = vpop.xlane.xlu1 %2695 }
0x1c4d   :  { %v2697_v45 = vsub.f32 %v2693_v35, %v2696_v43 }
0x1c4f   :  { %v2698_v47 = vmul.f32 1.442695, %v2697_v45 }
0x1c50   :  { %v2864_v50 = vpop.xlane.xlu0 %2863 }
0x1c51   :  { %12432 = vpow2.f32 %v2698_v47  ;;  %v2865_v52 = vsub.f32 %v2861_v40, %v2864_v50 }
0x1c53   :  { %v2866_v44 = vmul.f32 1.442695, %v2865_v52 }
0x1c54   :  { %v2874_v56 = vpop.permute.xlu0 %2873 }
0x1c55   :  { %12434 = vpow2.f32 %v2866_v44 }
0x1c5e   :  { %v12433_v53 = vpop.eup %12432 }
0x1c5f   :  { %v2700_v57 = vsel %vm309_vm2, %v12433_v53, 0.0 }
0x1c60   :  { %2701 = vadd.xlane.f32.xlu1 %v2700_v57 }
0x1c62   :  { %v12435_v59 = vpop.eup %12434 }
0x1c63   :  { %v2868_v60 = vsel %vm309_vm2, %v12435_v59, 0.0 }
0x1c64   :  { %2869 = vadd.xlane.f32.xlu1 %v2868_v60 }
0x1c75   :  { %2705 = vrot.lane.b32.xlu1 %v13194_v29, %s12668_s30 }
0x1c79   :  { %3098 = vrot.lane.b32.xlu1 %v13194_v29, %s12672_s8 }
0x1c7d   :  { %3096 = vrot.lane.b32.xlu1 %v13194_v29, %s12671_s7 }
0x1ce9   :  { %v2702_v22 = vpop.xlane.xlu1 %2701 }
0x1cea   :  { %12436 = vrcp.f32 %v2702_v22 }
0x1ced   :  { %v2870_v61 = vpop.xlane.xlu1 %2869 }
0x1cee   :  { %12438 = vrcp.f32 %v2870_v61 }
0x1cf1   :  { %v2706_v62 = vpop.permute.xlu1 %2705 }
0x1cf2   :  { %11768 = vmatpush3.msra.mxu0 %v2706_v62 }
0x1cf3   :  { %11777 = vmatprep.subr.mxu0 %v12664_v41 }
0x1cf5   :  { %v3099_v4 = vpop.permute.xlu1 %3098 }
0x1cf7   :  { %v12437_v63 = vpop.eup %12436 }
0x1cf8   :  { %v2704_v0 = vmul.f32 %v12437_v63, %v12433_v53  ;;  %v13319_v63 = vld [vmem:[%s14508_s3 + $0x378] sm:$0xff] }
0x1cf9   :  { %v3097_v7 = vpop.permute.xlu1 %3096 }
0x1cfa   :  { %11770 = vmatmul.mubr.msk.f32.vlgmr.msra.gmra.mxu0 %vm309_vm2, %v2704_v0 }
0x1cfb   :  { %v12439_v1 = vpop.eup %12438  ;;  %11778 = vmatpush3.msra.mxu0 %v2874_v56  ;;  %11779 = vmatprep.mubr.msk.f32.mxu0 %vm12665_vm1, %v12664_v41 }
0x1cfc   :  { %v2872_v27 = vmul.f32 %v12439_v1, %v12435_v59  ;;  %11787 = vmatprep.subr.mxu0 %v12664_v41 }
0x1cfe   :  { %11780 = vmatmul.mubr.msk.f32.vlgmr.msra.gmra.mxu0 %vm309_vm2, %v2872_v27 }
0x1cff   :  { %11789 = vmatprep.mubr.msk.f32.mxu0 %vm12665_vm1, %v12664_v41  ;;  %11788 = vmatpush3.msra.mxu0 %v13238_v2 }
0x1d00   :  { %11797 = vmatprep.subr.mxu0 %v12664_v41 }
0x1dba   :  { %v2777_v3 = vpop.f32.mrf.mxu0 }
0x1dbb   :  { %11790 = vmatmul.mubr.msk.f32.vlgmr.msra.gmra.mxu0 %vm309_vm2, %v2777_v3 }
0x1dbc   :  { %v11771_v46 = vpop.f32.mrf.mxu0  ;;  %11799 = vmatprep.mubr.msk.f32.mxu0 %vm12665_vm1, %v12664_v41 }
0x1dbe   :  { %v2945_v6 = vpop.f32.mrf.mxu0 }
0x1dbf   :  { %11785 = vmatmul.mubr.msk.f32.vlgmr.msra.gmra.mxu1 %vm309_vm2, %v2945_v6 }
0x1dc0   :  { %11793 = vmatpush3.xpose.msk.msra.mxu1 %vm309_vm2, %v3099_v4  ;;  %v11781_v54 = vpop.f32.mrf.mxu0  ;;  %11794 = vmatprep.mubr.msk.f32.mxu1 %vm12665_vm1, %v12664_v41 }
0x1dc1   :  { %11802 = vmatprep.subr.mxu1 %v12664_v41 }
0x1dc3   :  { %11795 = vmatmul.mubr.msk.f32.vlgmr.msra.gmra.mxu1 %vm309_vm2, %v3097_v7 }
0x1dc4   :  { %11804 = vmatprep.mubr.msk.f32.mxu1 %vm12665_vm1, %v12664_v41  ;;  %11803 = vmatpush3.msra.mxu1 %v13281_v34 }
0x1dc5   :  { %11812 = vmatprep.subr.mxu1 %v12664_v41 }
0x1e7b   :  { %v3092_v8 = vpop.f32.mrf.mxu0 }
0x1e7d   :  { %v11791_v10 = vpop.f32.mrf.mxu0 }
0x1e7f   :  { %v3019_v11 = vpop.f32.mrf.mxu1 }
0x1e80   :  { %v3093_v12 = vadd.f32 %v3092_v8, %v3019_v11 }
0x1e81   :  { %v11786_v13 = vpop.f32.mrf.mxu1 }
0x1e83   :  { %v3170_v15 = vpop.f32.mrf.mxu1 }
0x1e84   :  { %v3174_v16 = vmul.f32 0.35355338, %v3170_v15 }
0x1e85   :  { %v11796_v17 = vpop.f32.mrf.mxu1 }
0x1e86   :  { %v3175_v18 = vadd.f32 %v3174_v16, %v12886_v51 }
0x1e88   :  { %v3176_v19 = vsel %vm309_vm2, %v3175_v18, -inf }
0x1e89   :  { %3177 = vmax.xlane.f32.xlu1 %v3176_v19 }
0x1e9a   :  { %3187 = vrot.lane.b32.xlu1 %v13194_v29, %s12675_s14 }
0x1e9e   :  { %3338 = vrot.lane.b32.xlu1 %v13194_v29, %s12674_s13 }
0x1f12   :  { %v3178_v20 = vpop.xlane.xlu1 %3177 }
0x1f13   :  { %v3179_v21 = vsub.f32 %v3175_v18, %v3178_v20 }
0x1f15   :  { %v3180_v23 = vmul.f32 1.442695, %v3179_v21 }
0x1f16   :  { %v3188_v24 = vpop.permute.xlu1 %3187 }
0x1f17   :  { %12440 = vpow2.f32 %v3180_v23  ;;  %11798 = vmatpush3.msra.mxu0 %v3188_v24 }
0x1f18   :  { %11807 = vmatprep.subr.mxu0 %v12664_v41 }
0x1f1a   :  { %v3339_v33 = vpop.permute.xlu1 %3338 }
0x1f24   :  { %v12441_v25 = vpop.eup %12440 }
0x1f25   :  { %v3182_v26 = vsel %vm309_vm2, %v12441_v25, 0.0 }
0x1f26   :  { %3183 = vadd.xlane.f32.xlu0 %v3182_v26 }
0x1f3c   :  { %3340 = vrot.lane.b32.xlu0 %v13194_v29, %s12673_s12 }
0x1faf   :  { %v3184_v28 = vpop.xlane.xlu0 %3183 }
0x1fb0   :  { %12442 = vrcp.f32 %v3184_v28 }
0x1fb3   :  { %v3341_v32 = vpop.permute.xlu0 %3340 }
0x1fbd   :  { %v12443_v30 = vpop.eup %12442 }
0x1fbe   :  { %v3186_v31 = vmul.f32 %v12443_v30, %v12441_v25 }
0x1fc0   :  { %11800 = vmatmul.mubr.msk.f32.vlgmr.msra.gmra.mxu0 %vm309_vm2, %v3186_v31 }
0x1fc1   :  { %11808 = vmatpush3.xpose.msk.msra.mxu0 %vm309_vm2, %v3341_v32  ;;  %11809 = vmatprep.mubr.msk.f32.mxu0 %vm12665_vm1, %v12664_v41 }
0x1fc2   :  { %11817 = vmatprep.subr.mxu0 %v12664_v41 }
0x1fc4   :  { %11810 = vmatmul.mubr.msk.f32.vlgmr.msra.gmra.mxu0 %vm309_vm2, %v3339_v33 }
0x1fc5   :  { %11819 = vmatprep.mubr.msk.f32.mxu0 %vm12665_vm1, %v12664_v41  ;;  %11818 = vmatpush3.msra.mxu0 %v13319_v63 }
0x1fc6   :  { %11827 = vmatprep.subr.mxu0 %v12664_v41 }
0x2080   :  { %v3259_v5 = vpop.f32.mrf.mxu0 }
0x2081   :  { %11805 = vmatmul.mubr.msk.f32.vlgmr.msra.gmra.mxu1 %vm309_vm2, %v3259_v5 }
0x2082   :  { %v11801_v35 = vpop.f32.mrf.mxu0  ;;  %11814 = vmatprep.mubr.msk.f32.mxu1 %vm12665_vm1, %v12664_v41 }
0x2084   :  { %v3412_v36 = vpop.f32.mrf.mxu0 }
0x2085   :  { %v3416_v37 = vmul.f32 0.35355338, %v3412_v36 }
0x2086   :  { %v11811_v38 = vpop.f32.mrf.mxu0 }
0x2087   :  { %v3417_v39 = vadd.f32 %v3416_v37, %v12886_v51 }
0x2089   :  { %v3418_v40 = vsel %vm309_vm2, %v3417_v39, -inf }
0x208a   :  { %3419 = vmax.xlane.f32.xlu1 %v3418_v40 }
0x209b   :  { %3581 = vrot.lane.b32.xlu1 %v13192_v14, %s12666_s28 }
0x209f   :  { %3748 = vrot.lane.b32.xlu1 %v13192_v14, %s12667_s29 }
0x2113   :  { %v3420_v42 = vpop.xlane.xlu1 %3419 }
0x2114   :  { %v3421_v43 = vsub.f32 %v3417_v39, %v3420_v42 }
0x2116   :  { %v3422_v45 = vmul.f32 1.442695, %v3421_v43 }
0x2117   :  { %v3582_v22 = vpop.permute.xlu1 %3581 }
0x2118   :  { %12444 = vpow2.f32 %v3422_v45 }
0x2125   :  { %v12445_v47 = vpop.eup %12444 }
0x2126   :  { %v3424_v50 = vsel %vm309_vm2, %v12445_v47, 0.0 }
0x2127   :  { %3425 = vadd.xlane.f32.xlu0 %v3424_v50 }
0x213d   :  { %3429 = vrot.lane.b32.xlu0 %v13194_v29, %s12676_s17  ;;  %v3749_v29 = vpop.permute.xlu1 %3748 }
0x2141   :  { %3746 = vrot.lane.b32.xlu0 %v13192_v14, %s12669_s5  ;;  %v3333_v52 = vpop.f32.mrf.mxu1 }
0x2142   :  { %v3337_v44 = vadd.f32 %v3333_v52, %v3093_v12 }
0x2143   :  { %v11806_v53 = vpop.f32.mrf.mxu1 }
0x21b0   :  { %v3426_v57 = vpop.xlane.xlu0 %3425 }
0x21b1   :  { %12446 = vrcp.f32 %v3426_v57 }
0x21b4   :  { %v3430_v59 = vpop.permute.xlu0 %3429 }
0x21b5   :  { %11813 = vmatpush3.msra.mxu1 %v3430_v59 }
0x21b6   :  { %11822 = vmatprep.subr.mxu1 %v12664_v41 }
0x21b8   :  { %v3747_v62 = vpop.permute.xlu0 %3746 }
0x21be   :  { %v12447_v60 = vpop.eup %12446 }
0x21bf   :  { %v3428_v61 = vmul.f32 %v12447_v60, %v12445_v47 }
0x21c1   :  { %11815 = vmatmul.mubr.msk.f32.vlgmr.msra.gmra.mxu1 %vm309_vm2, %v3428_v61 }
0x21c2   :  { %11823 = vmatpush3.xpose.msk.msra.mxu1 %vm309_vm2, %v3582_v22  ;;  %11824 = vmatprep.mubr.msk.f32.mxu1 %vm12665_vm1, %v12664_v41 }
0x21c3   :  { %11832 = vmatprep.subr.mxu1 %v12664_v41 }
0x21c5   :  { %11825 = vmatmul.mubr.msk.f32.vlgmr.msra.gmra.mxu1 %vm309_vm2, %v13192_v14 }
0x21c6   :  { %11833 = vmatpush3.xpose.msk.msra.mxu1 %vm309_vm2, %v3749_v29  ;;  %11834 = vmatprep.mubr.msk.f32.mxu1 %vm12665_vm1, %v12664_v41 }
0x21c7   :  { %11842 = vmatprep.subr.mxu1 %v12664_v41 }
0x21c9   :  { %11835 = vmatmul.mubr.msk.f32.vlgmr.msra.gmra.mxu1 %vm309_vm2, %v3747_v62 }
0x21ca   :  { %11843 = vmatpush3.msra.mxu1 %v13244_v9  ;;  %11844 = vmatprep.mubr.msk.f32.mxu1 %vm12665_vm1, %v12664_v41 }
0x21cb   :  { %11852 = vmatprep.subr.mxu1 %v12664_v41 }
0x2281   :  { %v3501_v0 = vpop.f32.mrf.mxu1 }
0x2282   :  { %11820 = vmatmul.mubr.msk.f32.vlgmr.msra.gmra.mxu0 %vm309_vm2, %v3501_v0 }
0x2283   :  { %v11816_v56 = vpop.f32.mrf.mxu1  ;;  %11829 = vmatprep.mubr.msk.f32.mxu0 %vm12665_vm1, %v12664_v41 }
0x2285   :  { %v3653_v1 = vpop.f32.mrf.mxu1 }
0x2286   :  { %v3657_v27 = vmul.f32 0.35355338, %v3653_v1 }
0x2287   :  { %v11826_v9 = vpop.f32.mrf.mxu1 }
0x2288   :  { %v3658_v3 = vadd.f32 %v3657_v27, %v12886_v51 }
0x2289   :  { %v3820_v4 = vpop.f32.mrf.mxu1 }
0x228a   :  { %v3824_v46 = vmul.f32 0.35355338, %v3820_v4  ;;  %v3659_v6 = vsel %vm309_vm2, %v3658_v3, -inf }
0x228b   :  { %3660 = vmax.xlane.f32.xlu1 %v3659_v6  ;;  %v11836_v54 = vpop.f32.mrf.mxu1 }
0x228c   :  { %v3825_v7 = vadd.f32 %v3824_v46, %v12886_v51 }
0x228e   :  { %v3826_v8 = vsel %vm309_vm2, %v3825_v7, -inf }
0x228f   :  { %3827 = vmax.xlane.f32.xlu0 %v3826_v8 }
0x2314   :  { %v3661_v10 = vpop.xlane.xlu1 %3660 }
0x2315   :  { %v3662_v11 = vsub.f32 %v3658_v3, %v3661_v10 }
0x2317   :  { %v3663_v12 = vmul.f32 1.442695, %v3662_v11 }
0x2318   :  { %v3828_v13 = vpop.xlane.xlu0 %3827 }
0x2319   :  { %12448 = vpow2.f32 %v3663_v12  ;;  %v3829_v15 = vsub.f32 %v3825_v7, %v3828_v13  ;;  %v10954_v12 = vld [vmem:[%s14508_s3 + $0x358] ss:$0 sm:$0xff] }
0x231b   :  { %v3830_v16 = vmul.f32 1.442695, %v3829_v15 }
0x231d   :  { %12450 = vpow2.f32 %v3830_v16 }
0x2326   :  { %v12449_v17 = vpop.eup %12448 }
0x2327   :  { %v3665_v18 = vsel %vm309_vm2, %v12449_v17, 0.0 }
0x2328   :  { %3666 = vadd.xlane.f32.xlu0 %v3665_v18 }
0x232a   :  { %v12451_v19 = vpop.eup %12450 }
0x232b   :  { %v3832_v20 = vsel %vm309_vm2, %v12451_v19, 0.0 }
0x232c   :  { %3833 = vadd.xlane.f32.xlu1 %v3832_v20 }
0x233d   :  { %3837 = vrot.lane.b32.xlu1 %v13192_v14, %s12670_s6 }
0x233e   :  { %3670 = vrot.lane.b32.xlu0 %v13192_v14, %s12668_s30 }
0x2341   :  { %4061 = vrot.lane.b32.xlu1 %v13192_v14, %s12672_s8 }
0x2342   :  { %v3575_v21 = vpop.f32.mrf.mxu0  ;;  %4059 = vrot.lane.b32.xlu0 %v13192_v14, %s12671_s7 }
0x2343   :  { %v13340_v23 = vadd.f32 %v3575_v21, %v3337_v44 }
0x2344   :  { %v11821_v24 = vpop.f32.mrf.mxu0 }
0x2345   :  { %v4546_v13 = vadd.f32 %v10954_v12, %v13340_v23 }
0x23b1   :  { %v3667_v25 = vpop.xlane.xlu0 %3666 }
0x23b2   :  { %12452 = vrcp.f32 %v3667_v25 }
0x23b5   :  { %v3834_v26 = vpop.xlane.xlu1 %3833  ;;  %v3671_v28 = vpop.permute.xlu0 %3670 }
0x23b6   :  { %12454 = vrcp.f32 %v3834_v26  ;;  %11828 = vmatpush3.msra.mxu0 %v3671_v28 }
0x23b7   :  { %11837 = vmatprep.subr.mxu0 %v12664_v41 }
0x23b9   :  { %v3838_v32 = vpop.permute.xlu1 %3837 }
0x23bd   :  { %v4062_v38 = vpop.permute.xlu1 %4061 }
0x23bf   :  { %v12453_v30 = vpop.eup %12452 }
0x23c0   :  { %v3669_v31 = vmul.f32 %v12453_v30, %v12449_v17 }
0x23c2   :  { %11830 = vmatmul.mubr.msk.f32.vlgmr.msra.gmra.mxu0 %vm309_vm2, %v3669_v31 }
0x23c3   :  { %v12455_v33 = vpop.eup %12454  ;;  %11838 = vmatpush3.msra.mxu0 %v3838_v32  ;;  %11839 = vmatprep.mubr.msk.f32.mxu0 %vm12665_vm1, %v12664_v41 }
0x23c4   :  { %v3836_v5 = vmul.f32 %v12455_v33, %v12451_v19  ;;  %11847 = vmatprep.subr.mxu0 %v12664_v41 }
0x23c6   :  { %11840 = vmatmul.mubr.msk.f32.vlgmr.msra.gmra.mxu0 %vm309_vm2, %v3836_v5 }
0x23c7   :  { %11848 = vmatpush3.msra.mxu0 %v13238_v2  ;;  %11849 = vmatprep.mubr.msk.f32.mxu0 %vm12665_vm1, %v12664_v41  ;;  %v4060_v2 = vpop.permute.xlu0 %4059 }
0x23c8   :  { %11857 = vmatprep.subr.mxu0 %v12664_v41 }
0x2482   :  { %v3742_v35 = vpop.f32.mrf.mxu0 }
0x2483   :  { %11850 = vmatmul.mubr.msk.f32.vlgmr.msra.gmra.mxu0 %vm309_vm2, %v3742_v35 }
0x2484   :  { %v11831_v36 = vpop.f32.mrf.mxu0  ;;  %11859 = vmatprep.mubr.msk.f32.mxu0 %vm12665_vm1, %v12664_v41 }
0x2486   :  { %v3909_v37 = vpop.f32.mrf.mxu0 }
0x2487   :  { %11845 = vmatmul.mubr.msk.f32.vlgmr.msra.gmra.mxu1 %vm309_vm2, %v3909_v37 }
0x2488   :  { %11853 = vmatpush3.xpose.msk.msra.mxu1 %vm309_vm2, %v4062_v38  ;;  %v11841_v39 = vpop.f32.mrf.mxu0  ;;  %11854 = vmatprep.mubr.msk.f32.mxu1 %vm12665_vm1, %v12664_v41 }
0x2489   :  { %11862 = vmatprep.subr.mxu1 %v12664_v41 }
0x248b   :  { %11855 = vmatmul.mubr.msk.f32.vlgmr.msra.gmra.mxu1 %vm309_vm2, %v4060_v2 }
0x248c   :  { %11863 = vmatpush3.msra.mxu1 %v13281_v34  ;;  %11864 = vmatprep.mubr.msk.f32.mxu1 %vm12665_vm1, %v12664_v41 }
0x248d   :  { %11872 = vmatprep.subr.mxu1 %v12664_v41 }
0x2543   :  { %v4055_v40 = vpop.f32.mrf.mxu0 }
0x2545   :  { %v11851_v42 = vpop.f32.mrf.mxu0 }
0x2547   :  { %v3982_v43 = vpop.f32.mrf.mxu1 }
0x2548   :  { %v4056_v45 = vadd.f32 %v4055_v40, %v3982_v43 }
0x2549   :  { %v11846_v47 = vpop.f32.mrf.mxu1 }
0x254b   :  { %v4133_v50 = vpop.f32.mrf.mxu1 }
0x254c   :  { %v4137_v52 = vmul.f32 0.35355338, %v4133_v50  ;;  %v10955_v50 = vld [vmem:[%s14508_s3 + $0x410] ss:$0 sm:$0xff] }
0x254d   :  { %v11856_v44 = vpop.f32.mrf.mxu1 }
0x254e   :  { %v4138_v53 = vadd.f32 %v4137_v52, %v12886_v51  ;;  %v4593_v52 = vld [vmem:[%s14508_s3 + $0x3a8] sm:$0xff]  ;;  %v4592_v44 = vld [vmem:[%s14508_s3 + $0x3a0] sm:$0xff] }
0x2550   :  { %v4139_v57 = vsel %vm309_vm2, %v4138_v53, -inf }
0x2551   :  { %4140 = vmax.xlane.f32.xlu1 %v4139_v57  ;;  %v10956_v57 = vld [vmem:[%s14508_s3 + $0x408] ss:$0 sm:$0xff] }
0x2562   :  { %4302 = vrot.lane.b32.xlu1 %v13192_v14, %s12673_s12 }
0x2566   :  { %4300 = vrot.lane.b32.xlu1 %v13192_v14, %s12674_s13 }
0x25da   :  { %v4141_v34 = vpop.xlane.xlu1 %4140 }
0x25db   :  { %v4142_v59 = vsub.f32 %v4138_v53, %v4141_v34  ;;  %v4591_v34 = vld [vmem:[%s14508_s3 + $0x398] sm:$0xff] }
0x25dd   :  { %v4143_v60 = vmul.f32 1.442695, %v4142_v59 }
0x25de   :  { %v4303_v56 = vpop.permute.xlu1 %4302 }
0x25df   :  { %12456 = vpow2.f32 %v4143_v60  ;;  %v4590_v60 = vld [vmem:[%s14508_s3 + $0x390] sm:$0xff] }
0x25e2   :  { %v4301_v27 = vpop.permute.xlu1 %4300 }
0x25ec   :  { %v12457_v22 = vpop.eup %12456 }
0x25ed   :  { %v4145_v61 = vsel %vm309_vm2, %v12457_v22, 0.0 }
0x25ee   :  { %4146 = vadd.xlane.f32.xlu0 %v4145_v61 }
0x2604   :  { %4150 = vrot.lane.b32.xlu0 %v13192_v14, %s12675_s14 }
0x2677   :  { %v4147_v29 = vpop.xlane.xlu0 %4146 }
0x2678   :  { %12458 = vrcp.f32 %v4147_v29 }
0x267b   :  { %v4151_v62 = vpop.permute.xlu0 %4150 }
0x267c   :  { %11858 = vmatpush3.msra.mxu0 %v4151_v62 }
0x267d   :  { %11867 = vmatprep.subr.mxu0 %v12664_v41 }
0x2685   :  { %v12459_v0 = vpop.eup %12458 }
0x2686   :  { %v4149_v1 = vmul.f32 %v12459_v0, %v12457_v22 }
0x2688   :  { %11860 = vmatmul.mubr.msk.f32.vlgmr.msra.gmra.mxu0 %vm309_vm2, %v4149_v1 }
0x2689   :  { %11868 = vmatpush3.xpose.msk.msra.mxu0 %vm309_vm2, %v4303_v56  ;;  %11869 = vmatprep.mubr.msk.f32.mxu0 %vm12665_vm1, %v12664_v41 }
0x268a   :  { %11877 = vmatprep.subr.mxu0 %v12664_v41 }
0x268c   :  { %11870 = vmatmul.mubr.msk.f32.vlgmr.msra.gmra.mxu0 %vm309_vm2, %v4301_v27 }
0x268d   :  { %11878 = vmatpush3.msra.mxu0 %v13319_v63  ;;  %11879 = vmatprep.mubr.msk.f32.mxu0 %vm12665_vm1, %v12664_v41 }
0x2748   :  { %v4222_v9 = vpop.f32.mrf.mxu0 }
0x2749   :  { %11865 = vmatmul.mubr.msk.f32.vlgmr.msra.gmra.mxu1 %vm309_vm2, %v4222_v9  ;;  %v4703_v9 = vld [vmem:[%s14508_s3 + $0x3f0] sm:$0xff] }
0x274a   :  { %v11861_v3 = vpop.f32.mrf.mxu0  ;;  %11874 = vmatprep.mubr.msk.f32.mxu1 %vm12665_vm1, %v12664_v41  ;;  %11893 = vmatprep.subr.mxu0 %v4703_v9 }
0x274b   :  { %v4702_v3 = vld [vmem:[%s14508_s3 + $0x3e8] sm:$0xff] }
0x274c   :  { %v4374_v4 = vpop.f32.mrf.mxu0 }
0x274d   :  { %v4378_v46 = vmul.f32 0.35355338, %v4374_v4  ;;  %v4701_v4 = vld [vmem:[%s14508_s3 + $0x3e0] sm:$0xff] }
0x274e   :  { %v11871_v6 = vpop.f32.mrf.mxu0 }
0x274f   :  { %v4379_v54 = vadd.f32 %v4378_v46, %v12886_v51  ;;  %v13396_v51 = vadd.f32 %v4546_v13, %v13156_v58  ;;  %v4700_v46 = vld [vmem:[%s14508_s3 + $0x3d8] sm:$0xff]  ;;  %v4699_v6 = vld [vmem:[%s14508_s3 + $0x3d0] sm:$0xff] }
0x2751   :  { %v4380_v7 = vsel %vm309_vm2, %v4379_v54, -inf }
0x2752   :  { %4381 = vmax.xlane.f32.xlu0 %v4380_v7  ;;  %v4697_v7 = vld [vmem:[%s14508_s3 + $0x3c0] sm:$0xff] }
0x2768   :  { %4391 = vrot.lane.b32.xlu0 %v13192_v14, %s12676_s17  ;;  %v4552_v14 = vsel %vm132_vm0, %v13396_v51, 0.0 }
0x27db   :  { %v4382_v63 = vpop.xlane.xlu0 %4381 }
0x27dc   :  { %v4383_v8 = vsub.f32 %v4379_v54, %v4382_v63  ;;  %v4698_v54 = vld [vmem:[%s14508_s3 + $0x3c8] sm:$0xff]  ;;  %v4696_v63 = vld [vmem:[%s14508_s3 + $0x3b8] sm:$0xff] }
0x27de   :  { %v4384_v10 = vmul.f32 1.442695, %v4383_v8  ;;  %v10957_v8 = vld [vmem:[%s14508_s3 + $0x388] ss:$0 sm:$0xff] }
0x27df   :  { %v4392_v11 = vpop.permute.xlu0 %4391 }
0x27e0   :  { %12460 = vpow2.f32 %v4384_v10  ;;  %11873 = vmatpush3.msra.mxu1 %v4392_v11 }
0x27e1   :  { %11882 = vmatprep.subr.mxu1 %v4593_v52 }
0x27ed   :  { %v12461_v15 = vpop.eup %12460 }
0x27ee   :  { %v4386_v16 = vsel %vm309_vm2, %v12461_v15, 0.0 }
0x27ef   :  { %4387 = vadd.xlane.f32.xlu1 %v4386_v16 }
0x27f3   :  { %4553 = vadd.xlane.f32.xlu1 %v4552_v14 }
0x2809   :  { %v4295_v17 = vpop.f32.mrf.mxu1 }
0x280a   :  { %v4299_v18 = vadd.f32 %v4295_v17, %v4056_v45 }
0x280b   :  { %v11866_v19 = vpop.f32.mrf.mxu1 }
0x2878   :  { %v4388_v20 = vpop.xlane.xlu1 %4387 }
0x2879   :  { %12462 = vrcp.f32 %v4388_v20 }
0x287c   :  { %v4554_v25 = vpop.xlane.xlu1 %4553 }
0x287d   :  { %v4558_v26 = vmul.f32 0.03125, %v4554_v25 }
0x287f   :  { %v4560_v32 = vsub.f32 %v13396_v51, %v4558_v26  ;;  %v10962_v26 = vld [vmem:[%s14508_s3 + $0x3b0] ss:$0 sm:$0xff] }
0x2881   :  { %v4562_v36 = vmul.f32 %v4560_v32, %v4560_v32 }
0x2883   :  { %v4564_v37 = vsel %vm132_vm0, %v4562_v36, 0.0 }
0x2886   :  { %v12463_v21 = vpop.eup %12462 }
0x2887   :  { %v4390_v24 = vmul.f32 %v12463_v21, %v12461_v15 }
0x2889   :  { %11875 = vmatmul.mubr.msk.f32.vlgmr.msra.gmra.mxu1 %vm309_vm2, %v4390_v24 }
0x288a   :  { %11883 = vmatpush3.msra.mxu1 %v4593_v52  ;;  %v4835_v52 = vld [vmem:[%s14508_s3 + $0x590] sm:$0xff] }
0x288b   :  { %11884 = vmatprep.subr.mxu1 %v4592_v44 }
0x288c   :  { %11885 = vmatpush3.msra.mxu1 %v4592_v44  ;;  %v4834_v44 = vld [vmem:[%s14508_s3 + $0x588] sm:$0xff] }
0x288d   :  { %11886 = vmatprep.subr.mxu1 %v4591_v34 }
0x288e   :  { %11887 = vmatpush3.msra.mxu1 %v4591_v34  ;;  %v4832_v34 = vld [vmem:[%s14508_s3 + $0x578] sm:$0xff] }
0x288f   :  { %11888 = vmatprep.subr.mxu1 %v4590_v60 }
0x2890   :  { %11889 = vmatpush3.msra.mxu1 %v4590_v60 }
0x2891   :  { %11912 = vmatprep.subr.mxu1 %v4835_v52 }
0x2949   :  { %v4463_v23 = vpop.f32.mrf.mxu1 }
0x294a   :  { %11880 = vmatmul.mubr.msk.f32.vlgmr.msra.gmra.mxu0 %vm309_vm2, %v4463_v23 }
0x294b   :  { %v11876_v58 = vpop.f32.mrf.mxu1  ;;  %11894 = vmatpush3.msra.mxu0 %v4703_v9  ;;  %v10966_v9 = vld [vmem:[%s14508_s3 + $0x540] ss:$0 sm:$0xff] }
0x294c   :  { %11895 = vmatprep.subr.mxu0 %v4702_v3 }
0x294d   :  { %11896 = vmatpush3.msra.mxu0 %v4702_v3 }
0x294e   :  { %11897 = vmatprep.subr.mxu0 %v4701_v4 }
0x294f   :  { %11898 = vmatpush3.msra.mxu0 %v4701_v4 }
0x2950   :  { %11899 = vmatprep.subr.mxu0 %v4700_v46 }
0x2951   :  { %11900 = vmatpush3.msra.mxu0 %v4700_v46 }
0x2952   :  { %11901 = vmatprep.subr.mxu0 %v4699_v6 }
0x2953   :  { %11902 = vmatpush3.msra.mxu0 %v4699_v6 }
0x2954   :  { %11903 = vmatprep.subr.mxu0 %v4698_v54 }
0x2955   :  { %11904 = vmatpush3.msra.mxu0 %v4698_v54 }
0x2956   :  { %11905 = vmatprep.subr.mxu0 %v4697_v7 }
0x2957   :  { %11906 = vmatpush3.msra.mxu0 %v4697_v7 }
0x2958   :  { %11907 = vmatprep.subr.mxu0 %v4696_v63 }
0x2959   :  { %11908 = vmatpush3.msra.mxu0 %v4696_v63 }
0x2a0a   :  { %v4536_v28 = vpop.f32.mrf.mxu0 }
0x2a0b   :  { %v4540_v30 = vadd.f32 %v4536_v28, %v4299_v18 }
0x2a0c   :  { %v11881_v31 = vpop.f32.mrf.mxu0 }
0x2a0d   :  { %v4547_v33 = vadd.f32 %v10954_v12, %v4540_v30 }
0x2a0f   :  { %v13405_v5 = vadd.f32 %v4547_v33, %v13153_v55 }
0x2a11   :  { %v4555_v35 = vsel %vm132_vm0, %v13405_v5, 0.0 }
0x2a12   :  { %4556 = vadd.xlane.f32.xlu1 %v4555_v35 }
0x2a16   :  { %4565 = vadd.xlane.f32.xlu1 %v4564_v37 }
0x2a9b   :  { %v4557_v38 = vpop.xlane.xlu1 %4556 }
0x2a9c   :  { %v4559_v39 = vmul.f32 0.03125, %v4557_v38  ;;  %v12677_v38 = vmov 0  }
0x2a9d   :  { %12374 = vset.pattern.permute.xlu1 %v12677_v38  ;;  %12375 = vset.pattern.permute.xlu0 %v12677_v38 }
0x2a9e   :  { %v4561_v2 = vsub.f32 %v13405_v5, %v4559_v39 }
0x2a9f   :  { %v4566_v40 = vpop.xlane.xlu1 %4565 }
0x2aa0   :  { %v4570_v42 = vmul.f32 0.03125, %v4566_v40  ;;  %v4563_v43 = vmul.f32 %v4561_v2, %v4561_v2 }
0x2aa2   :  { %v4572_v45 = vadd.f32 1e-05, %v4570_v42  ;;  %v4567_v47 = vsel %vm132_vm0, %v4563_v43, 0.0 }
0x2aa3   :  { %4568 = vadd.xlane.f32.xlu1 %v4567_v47 }
0x2aa4   :  { %12464 = vrsqrt.f32 %v4572_v45 }
0x2ab1   :  { %v12465_v55 = vpop.eup %12464 }
0x2ab2   :  { %v4576_v53 = vmul.f32 %v12465_v55, %v4560_v32 }
0x2ab4   :  { %v4582_v59 = vmul.f32 %v10955_v50, %v4576_v53  ;;  %v4833_v53 = vld [vmem:[%s14508_s3 + $0x580] sm:$0xff] }
0x2ab6   :  { %v4588_v22 = vadd.f32 %v10956_v57, %v4582_v59  ;;  %v4984_v59 = vld [vmem:[%s14508_s3 + $0x270] sm:$0xff] }
0x2ab8   :  { %11890 = vmatprep.mubr.msk.f32.mxu1 %vm132_vm0, %v4588_v22 }
0x2b2c   :  { %v4569_v61 = vpop.xlane.xlu1 %4568 }
0x2b2d   :  { %v4571_v29 = vmul.f32 0.03125, %v4569_v61 }
0x2b2f   :  { %v4573_v62 = vadd.f32 1e-05, %v4571_v29 }
0x2b31   :  { %12466 = vrsqrt.f32 %v4573_v62 }
0x2b3e   :  { %v12467_v0 = vpop.eup %12466 }
0x2b3f   :  { %v4577_v56 = vmul.f32 %v12467_v0, %v4561_v2 }
0x2b41   :  { %v4583_v1 = vmul.f32 %v10955_v50, %v4577_v56  ;;  %v4962_v50 = vld [vmem:[%s14510_s1] sm:$0xff] }
0x2b43   :  { %v4589_v27 = vadd.f32 %v10956_v57, %v4583_v1  ;;  %v10973_v57 = vld [vmem:[%s14510_s1 + $0x8] sm:$0xff] }
0x2b44   :  { %v10965_v1 = vld [vmem:[%s14508_s3 + $0x548] ss:$0 sm:$0xff] }
0x2b45   :  { %11891 = vmatmul.mubr.msk.f32.vlgmr.msra.gmra.mxu1 %vm132_vm0, %v4589_v27 }
0x2b46   :  { %11913 = vmatpush3.msra.mxu1 %v4835_v52 }
0x2b47   :  { %11914 = vmatprep.subr.mxu1 %v4834_v44 }
0x2b48   :  { %11915 = vmatpush3.msra.mxu1 %v4834_v44 }
0x2b49   :  { %11916 = vmatprep.subr.mxu1 %v4833_v53 }
0x2b4a   :  { %11917 = vmatpush3.msra.mxu1 %v4833_v53 }
0x2b4b   :  { %11918 = vmatprep.subr.mxu1 %v4832_v34 }
0x2b4c   :  { %11919 = vmatpush3.msra.mxu1 %v4832_v34 }
0x2b4d   :  { %11923 = vmatprep.subr.mxu1 %v4984_v59 }
0x2c05   :  { %v11892_v10 = vpop.f32.mrf.mxu1 }
0x2c06   :  { %v4677_v11 = vadd.f32 %v11892_v10, %v10957_v8  ;;  %v4983_v10 = vld [vmem:[%s14508_s3 + $0x268] sm:$0xff] }
0x2c07   :  { %v4671_v12 = vpop.f32.mrf.mxu1 }
0x2c08   :  { %v10961_v13 = vmul.f32 -1.702, %v4677_v11  ;;  %v4672_v15 = vadd.f32 %v10957_v8, %v4671_v12  ;;  %v4981_v12 = vld [vmem:[%s14508_s3 + $0x258] sm:$0xff] }
0x2c0a   :  { %v4686_v16 = vmul.f32 1.442695, %v10961_v13  ;;  %v10960_v14 = vmul.f32 -1.702, %v4672_v15  ;;  %v4980_v13 = vld [vmem:[%s14508_s3 + $0x250] sm:$0xff] }
0x2c0c   :  { %12468 = vpow2.f32 %v4686_v16  ;;  %v4684_v17 = vmul.f32 1.442695, %v10960_v14  ;;  %v4978_v14 = vld [vmem:[%s14508_s3 + $0x240] sm:$0xff] }
0x2c0e   :  { %12470 = vpow2.f32 %v4684_v17  ;;  %v4977_v17 = vld [vmem:[%s14508_s3 + $0x238] sm:$0xff] }
0x2c19   :  { %v12469_v18 = vpop.eup %12468 }
0x2c1a   :  { %v4689_v19 = vadd.f32 1.0, %v12469_v18 }
0x2c1b   :  { %v12471_v20 = vpop.eup %12470 }
0x2c1c   :  { %v4688_v21 = vadd.f32 1.0, %v12471_v20  ;;  %12472 = vrcp.f32 %v4689_v19  ;;  %v10967_v19 = vld [vmem:[%s14508_s3 + $0x560] ss:$0 sm:$0xff] }
0x2c1e   :  { %12474 = vrcp.f32 %v4688_v21 }
0x2c29   :  { %v12473_v24 = vpop.eup %12472 }
0x2c2a   :  { %v4695_v25 = vmul.f32 %v12473_v24, %v4677_v11  ;;  %v4982_v11 = vld [vmem:[%s14508_s3 + $0x260] sm:$0xff] }
0x2c2b   :  { %v12475_v23 = vpop.eup %12474 }
0x2c2c   :  { %v4694_v58 = vmul.f32 %v12475_v23, %v4672_v15  ;;  %v4979_v15 = vld [vmem:[%s14508_s3 + $0x248] sm:$0xff] }
0x2c2e   :  { %11909 = vmatprep.mubr.msk.f32.mxu0 %vm2401_vm4, %v4694_v58 }
0x2c2f   :  { %11910 = vmatmul.mubr.msk.f32.vlgmr.msra.gmra.mxu0 %vm2401_vm4, %v4695_v25  ;;  %v4985_v25 = vld [vmem:[%s14508_s3 + $0x1f8] sm:$0xff] }
0x2cef   :  { %v11911_v28 = vpop.f32.mrf.mxu0 }
0x2cf0   :  { %v4787_v30 = vadd.f32 %v11911_v28, %v10962_v26 }
0x2cf1   :  { %v4781_v31 = vpop.f32.mrf.mxu0 }
0x2cf2   :  { %v4791_v32 = vadd.f32 %v4787_v30, %v13405_v5  ;;  %v4782_v33 = vadd.f32 %v10962_v26, %v4781_v31 }
0x2cf4   :  { %v4797_v35 = vsel %vm132_vm0, %v4791_v32, 0.0  ;;  %v4790_v36 = vadd.f32 %v4782_v33, %v13396_v51 }
0x2cf5   :  { %4798 = vadd.xlane.f32.xlu1 %v4797_v35 }
0x2cf6   :  { %v4794_v37 = vsel %vm132_vm0, %v4790_v36, 0.0 }
0x2cf7   :  { %4795 = vadd.xlane.f32.xlu0 %v4794_v37 }
0x2d7e   :  { %v4799_v39 = vpop.xlane.xlu1 %4798 }
0x2d7f   :  { %v4801_v2 = vmul.f32 0.03125, %v4799_v39 }
0x2d80   :  { %v4796_v40 = vpop.xlane.xlu0 %4795 }
0x2d81   :  { %v4800_v42 = vmul.f32 0.03125, %v4796_v40  ;;  %v4803_v43 = vsub.f32 %v4791_v32, %v4801_v2 }
0x2d83   :  { %v4802_v45 = vsub.f32 %v4790_v36, %v4800_v42  ;;  %v4805_v55 = vmul.f32 %v4803_v43, %v4803_v43 }
0x2d85   :  { %v4804_v47 = vmul.f32 %v4802_v45, %v4802_v45  ;;  %v4809_v51 = vsel %vm132_vm0, %v4805_v55, 0.0  ;;  %v5145_v55 = vld [vmem:[%s14508_s3 + $0x108] sm:$0xff] }
0x2d87   :  { %v4806_v5 = vsel %vm132_vm0, %v4804_v47, 0.0 }
0x2d88   :  { %4807 = vadd.xlane.f32.xlu1 %v4806_v5  ;;  %v5146_v5 = vld [vmem:[%s14508_s3 + $0x110] sm:$0xff] }
0x2d89   :  { %11942 = vmatprep.subr.mxu0 %v5146_v5 }
0x2d8a   :  { %11943 = vmatpush3.msra.mxu0 %v5146_v5 }
0x2d8b   :  { %11944 = vmatprep.subr.mxu0 %v5145_v55 }
0x2d8c   :  { %4810 = vadd.xlane.f32.xlu1 %v4809_v51  ;;  %v5144_v51 = vld [vmem:[%s14508_s3 + $0x100] sm:$0xff]  ;;  %11945 = vmatpush3.msra.mxu0 %v5145_v55  ;;  %v5113_v55 = vsel %vm5112_vm10, -1e+09, %v12664_v41 }
0x2d8d   :  { %11946 = vmatprep.subr.mxu0 %v5144_v51 }
0x2d8e   :  { %11947 = vmatpush3.msra.mxu0 %v5144_v51 }
0x2d9d   :  { %4964 = vperm.xlu1 %12374, %v4962_v50   ;;  %v5143_v50 = vld [vmem:[%s14508_s3 + $0xf8] sm:$0xff] }
0x2d9e   :  { %11948 = vmatprep.subr.mxu0 %v5143_v50 }
0x2d9f   :  { %11949 = vmatpush3.msra.mxu0 %v5143_v50 }
0x2da1   :  { %4972 = vperm.xlu1 %12374, %v10973_v57  }
0x2e11   :  { %v4808_v60 = vpop.xlane.xlu1 %4807 }
0x2e12   :  { %v4812_v22 = vmul.f32 0.03125, %v4808_v60  ;;  %v10970_v60 = vld [vmem:[%s14508_s3 + $0x570] ss:$0 sm:$0xff] }
0x2e14   :  { %v4814_v61 = vadd.f32 1e-05, %v4812_v22 }
0x2e15   :  { %v4811_v29 = vpop.xlane.xlu1 %4810 }
0x2e16   :  { %12476 = vrsqrt.f32 %v4814_v61  ;;  %v4813_v62 = vmul.f32 0.03125, %v4811_v29 }
0x2e18   :  { %v4815_v0 = vadd.f32 1e-05, %v4813_v62  ;;  %v10971_v62 = vld [vmem:[%s14508_s3 + $0x568] ss:$0 sm:$0xff] }
0x2e19   :  { %v4965_v54 = vpop.permute.xlu1 %4964 }
0x2e1a   :  { %12478 = vrsqrt.f32 %v4815_v0  ;;  %vm4966_vm5 = vcmp.eq.s32.totalorder %v12880_v49, %v4965_v54 }
0x2e1b   :  { %v10972_v8 = vsel %vm4966_vm5, 1.0, %v12664_v41 }
0x2e1d   :  { %v4973_v16 = vpop.permute.xlu1 %4972 }
0x2e1e   :  { %vm4974_vm6 = vcmp.eq.s32.totalorder %v12880_v49, %v4973_v16 }
0x2e1f   :  { %v10974_v18 = vsel %vm4974_vm6, 1.0, %v12664_v41 }
0x2e23   :  { %v12477_v56 = vpop.eup %12476 }
0x2e24   :  { %v4818_v27 = vmul.f32 %v12477_v56, %v4802_v45 }
0x2e26   :  { %v4824_v3 = vmul.f32 %v10965_v1, %v4818_v27 }
0x2e27   :  { %v12479_v4 = vpop.eup %12478 }
0x2e28   :  { %v4819_v46 = vmul.f32 %v12479_v4, %v4803_v43  ;;  %v4830_v6 = vadd.f32 %v10966_v9, %v4824_v3 }
0x2e2a   :  { %v4825_v7 = vmul.f32 %v10965_v1, %v4819_v46  ;;  %11920 = vmatprep.mubr.msk.f32.mxu1 %vm132_vm0, %v4830_v6 }
0x2e2c   :  { %v4831_v63 = vadd.f32 %v10966_v9, %v4825_v7 }
0x2e2e   :  { %11921 = vmatmul.mubr.msk.f32.vlgmr.msra.gmra.mxu1 %vm132_vm0, %v4831_v63 }
0x2e2f   :  { %11924 = vmatpush3.msra.mxu1 %v4984_v59  ;;  %11939 = vmatprep.mubr.msk.f32.mxu1 %vm2401_vm4, %v10972_v8  ;;  %v10977_v8 = vld [vmem:[%s14508_s3 + $0x30] ss:$0 sm:$0xff] }
0x2e30   :  { %11925 = vmatprep.subr.mxu1 %v4983_v10 }
0x2e31   :  { %11926 = vmatpush3.msra.mxu1 %v4983_v10 }
0x2e32   :  { %11927 = vmatprep.subr.mxu1 %v4982_v11 }
0x2e33   :  { %11928 = vmatpush3.msra.mxu1 %v4982_v11  ;;  %v10978_v11 = vld [vmem:[%s14508_s3 + $0x28] ss:$0 sm:$0xff] }
0x2e34   :  { %11929 = vmatprep.subr.mxu1 %v4981_v12 }
0x2e35   :  { %11930 = vmatpush3.msra.mxu1 %v4981_v12 }
0x2e36   :  { %11931 = vmatprep.subr.mxu1 %v4980_v13 }
0x2e37   :  { %11932 = vmatpush3.msra.mxu1 %v4980_v13 }
0x2e38   :  { %11933 = vmatprep.subr.mxu1 %v4979_v15 }
0x2e39   :  { %11934 = vmatpush3.msra.mxu1 %v4979_v15 }
0x2e3a   :  { %11935 = vmatprep.subr.mxu1 %v4978_v14 }
0x2e3b   :  { %11936 = vmatpush3.msra.mxu1 %v4978_v14 }
0x2e3c   :  { %11937 = vmatprep.subr.mxu1 %v4977_v17 }
0x2e3d   :  { %11938 = vmatpush3.msra.mxu1 %v4977_v17 }
0x2e3e   :  { %11940 = vmatmul.mubr.msk.f32.vlgmr.msra.gmra.mxu1 %vm2401_vm4, %v10974_v18 }
0x2eee   :  { %v11922_v20 = vpop.f32.mrf.mxu1 }
0x2eef   :  { %v4919_v21 = vadd.f32 %v11922_v20, %v10967_v19 }
0x2ef0   :  { %v4913_v24 = vpop.f32.mrf.mxu1 }
0x2ef1   :  { %v4914_v23 = vadd.f32 %v10967_v19, %v4913_v24  ;;  %v4927_v45 = vsel %vm132_vm0, %v4919_v21, 0.0 }
0x2ef3   :  { %v4924_v58 = vsel %vm132_vm0, %v4914_v23, 0.0 }
0x2ef4   :  { %4925 = vadd.xlane.f32.xlu0 %v4924_v58 }
0x2efe   :  { %v11941_v26 = vpop.f32.mrf.mxu1 }
0x2eff   :  { %v5064_v28 = vadd.f32 %v11941_v26, %v4985_v25 }
0x2f00   :  { %v5058_v30 = vpop.f32.mrf.mxu1 }
0x2f01   :  { %v5059_v31 = vadd.f32 %v5058_v30, %v4985_v25  ;;  %v5072_v47 = vsel %vm132_vm0, %v5064_v28, 0.0  ;;  %v13583_v30 = vld [vmem:[%s14508_s3 + $0x70] ss:$0 sm:$0xff] }
0x2f03   :  { %v5069_v32 = vsel %vm132_vm0, %v5059_v31, 0.0 }
0x2f04   :  { %5070 = vadd.xlane.f32.xlu1 %v5069_v32 }
0x2f7d   :  { %v4926_v33 = vpop.xlane.xlu0 %4925 }
0x2f7e   :  { %v4930_v35 = vmul.f32 0.03125, %v4926_v33 }
0x2f80   :  { %v4932_v36 = vsub.f32 %v4914_v23, %v4930_v35 }
0x2f82   :  { %v4934_v37 = vmul.f32 %v4932_v36, %v4932_v36 }
0x2f84   :  { %v4936_v38 = vsel %vm132_vm0, %v4934_v37, 0.0 }
0x2f85   :  { %4937 = vadd.xlane.f32.xlu0 %v4936_v38 }
0x2f8d   :  { %v5071_v39 = vpop.xlane.xlu1 %5070 }
0x2f8e   :  { %v5075_v2 = vmul.f32 0.03125, %v5071_v39 }
0x2f90   :  { %v5077_v40 = vsub.f32 %v5059_v31, %v5075_v2 }
0x2f92   :  { %v5079_v42 = vmul.f32 %v5077_v40, %v5077_v40 }
0x2f94   :  { %v5081_v43 = vsel %vm132_vm0, %v5079_v42, 0.0  ;;  %v5108_v42 = vshrl.u32 %v172_v48, 7  ;;  %v10979_v48 = vld [vmem:[%s14511_s2] ss:$0 sm:$0xff] }
0x2f95   :  { %5082 = vadd.xlane.f32.xlu0 %v5081_v43 }
0x2f96   :  { %v5109_v43 = vadd.s32 8, %v5108_v42 }
0x2f98   :  { %vm5115_vm8 = vcmp.gt.s32.totalorder %v12880_v49, %v5109_v43 }
0x2f99   :  { %4928 = vadd.xlane.f32.xlu0 %v4927_v45  ;;  %v5117_v45 = vsel %vm5115_vm8, -1e+09, %v12664_v41 }
0x2f9d   :  { %5073 = vadd.xlane.f32.xlu0 %v5072_v47  ;;  %v5122_v47 = vsel %vm5121_vm9, -1e+09, %v12664_v41 }
0x2f9e   :  { %v13628_v51 = vadd.f32 %v5122_v47, %v5117_v45  ;;  %v13633_v50 = vadd.f32 %v5122_v47, %v5113_v55  ;;  %v13684_v47 = vld [vmem:[%s14508_s3 + $0x58] sm:$0xff] }
0x2fa0   :  { %v13638_v49 = vadd.f32 %v10979_v48, %v13628_v51 }
0x300e   :  { %v4938_v52 = vpop.xlane.xlu0 %4937 }
0x300f   :  { %v4942_v44 = vmul.f32 0.03125, %v4938_v52 }
0x3011   :  { %v4944_v53 = vadd.f32 1e-12, %v4942_v44 }
0x3013   :  { %12480 = vrsqrt.f32 %v4944_v53 }
0x301e   :  { %v5083_v57 = vpop.xlane.xlu0 %5082 }
0x301f   :  { %v5087_v34 = vmul.f32 0.03125, %v5083_v57  ;;  %v13641_v57 = vadd.f32 %v10979_v48, %v13633_v50 }
0x3020   :  { %v12481_v59 = vpop.eup %12480 }
0x3021   :  { %v5089_v22 = vadd.f32 1e-12, %v5087_v34  ;;  %v4948_v61 = vmul.f32 %v12481_v59, %v4932_v36 }
0x3022   :  { %v4929_v29 = vpop.xlane.xlu0 %4928 }
0x3023   :  { %12482 = vrsqrt.f32 %v5089_v22  ;;  %v4931_v0 = vmul.f32 0.03125, %v4929_v29  ;;  %v4954_v56 = vmul.f32 %v10970_v60, %v4948_v61 }
0x3025   :  { %v4933_v1 = vsub.f32 %v4919_v21, %v4931_v0  ;;  %v13556_v27 = vadd.f32 %v10971_v62, %v4954_v56 }
0x3026   :  { %v5074_v9 = vpop.xlane.xlu0 %5073 }
0x3027   :  { %v5076_v3 = vmul.f32 0.03125, %v5074_v9  ;;  %11950 = vmatprep.mubr.msk.f32.mxu0 %vm132_vm0, %v13556_v27  ;;  %v4935_v4 = vmul.f32 %v4933_v1, %v4933_v1 }
0x3029   :  { %v5078_v46 = vsub.f32 %v5064_v28, %v5076_v3  ;;  %v4939_v6 = vsel %vm132_vm0, %v4935_v4, 0.0 }
0x302a   :  { %4940 = vadd.xlane.f32.xlu0 %v4939_v6 }
0x302b   :  { %v5080_v54 = vmul.f32 %v5078_v46, %v5078_v46 }
0x302d   :  { %v5084_v7 = vsel %vm132_vm0, %v5080_v54, 0.0 }
0x302e   :  { %5085 = vadd.xlane.f32.xlu0 %v5084_v7 }
0x3030   :  { %v12483_v63 = vpop.eup %12482 }
0x3031   :  { %v5093_v10 = vmul.f32 %v12483_v63, %v5077_v40 }
0x3033   :  { %v5099_v12 = vmul.f32 %v10977_v8, %v5093_v10 }
0x3035   :  { %v13568_v13 = vadd.f32 %v10978_v11, %v5099_v12 }
0x3037   :  { %11951 = vmatmul.mubr.msk.f32.vlgmr.msra.gmra.mxu0 %vm132_vm0, %v13568_v13 }
0x30b3   :  { %v4941_v15 = vpop.xlane.xlu0 %4940 }
0x30b4   :  { %v4943_v16 = vmul.f32 0.03125, %v4941_v15 }
0x30b6   :  { %v4945_v14 = vadd.f32 1e-12, %v4943_v16 }
0x30b7   :  { %v5086_v17 = vpop.xlane.xlu0 %5085 }
0x30b8   :  { %12484 = vrsqrt.f32 %v4945_v14  ;;  %v5088_v18 = vmul.f32 0.03125, %v5086_v17 }
0x30ba   :  { %v5090_v19 = vadd.f32 1e-12, %v5088_v18 }
0x30bc   :  { %12486 = vrsqrt.f32 %v5090_v19 }
0x30c5   :  { %v12485_v20 = vpop.eup %12484 }
0x30c6   :  { %v4949_v21 = vmul.f32 %v12485_v20, %v4933_v1 }
0x30c8   :  { %v4955_v24 = vmul.f32 %v10970_v60, %v4949_v21 }
0x30c9   :  { %v12487_v23 = vpop.eup %12486 }
0x30ca   :  { %v13572_v58 = vadd.f32 %v10971_v62, %v4955_v24  ;;  %v5094_v25 = vmul.f32 %v12487_v23, %v5078_v46 }
0x30cc   :  { %11953 = vmatprep.mubr.msk.f32.mxu0 %vm132_vm0, %v13572_v58  ;;  %v5100_v26 = vmul.f32 %v10977_v8, %v5094_v25 }
0x30ce   :  { %v13576_v28 = vadd.f32 %v10978_v11, %v5100_v26 }
0x30d0   :  { %11954 = vmatmul.mubr.msk.f32.gmra.mxu0 %vm132_vm0, %v13576_v28 }
0x30f7   :  { %v11952_v31 = vpop.f32.mrf.mxu0 }
0x30f8   :  { %v13586_v32 = vadd.f32 %v11952_v31, %v13583_v30 }
0x30f9   :  { %v5230_v33 = vpop.f32.mrf.mxu0 }
0x30fa   :  { %v13589_v35 = vadd.f32 %v13583_v30, %v5230_v33  ;;  %5253 = vrot.lane.b32.xlu0 %v13586_v32, %s12666_s28 }
0x30fc   :  { %5251 = vrot.lane.b32.xlu1 %v13589_v35, %s12666_s28  ;;  %11960 = vmatprep.mubr.msk.f32.mxu0 %vm309_vm2, %v13589_v35 }
0x30fe   :  { %5459 = vrot.lane.b32.xlu0 %v13586_v32, %s12667_s29 }
0x3100   :  { %5453 = vrot.lane.b32.xlu1 %v13589_v35, %s12669_s5 }
0x3102   :  { %5457 = vrot.lane.b32.xlu0 %v13589_v35, %s12667_s29 }
0x3106   :  { %5455 = vrot.lane.b32.xlu0 %v13586_v32, %s12669_s5 }
0x316c   :  { %v5254_v36 = vpop.permute.xlu0 %5253 }
0x316d   :  { %11956 = vmatprep.subr.msk.mxu0 %vm309_vm2, %v5254_v36 }
0x316e   :  { %v5252_v37 = vpop.permute.xlu1 %5251  ;;  %11957 = vmatpush3.xpose.msk.msra.mxu0 %vm309_vm2, %v5254_v36 }
0x316f   :  { %11958 = vmatprep.subr.msk.mxu0 %vm309_vm2, %v5252_v37 }
0x3170   :  { %v5460_v38 = vpop.permute.xlu0 %5459 }
0x3172   :  { %11959 = vmatpush3.xpose.msk.msra.mxu0 %vm309_vm2, %v5252_v37  ;;  %v5454_v39 = vpop.permute.xlu1 %5453 }
0x3173   :  { %11970 = vmatprep.subr.msk.mxu0 %vm309_vm2, %v5460_v38 }
0x3174   :  { %v5458_v2 = vpop.permute.xlu0 %5457 }
0x3175   :  { %11961 = vmatmul.mubr.msk.f32.vlgmr.msra.gmra.mxu0 %vm309_vm2, %v13586_v32 }
0x3176   :  { %11971 = vmatpush3.xpose.msk.msra.mxu0 %vm309_vm2, %v5460_v38  ;;  %11974 = vmatprep.mubr.msk.f32.mxu0 %vm309_vm2, %v5454_v39 }
0x3177   :  { %11972 = vmatprep.subr.msk.mxu0 %vm309_vm2, %v5458_v2 }
0x3178   :  { %v5456_v40 = vpop.permute.xlu0 %5455 }
0x317a   :  { %11973 = vmatpush3.xpose.msk.msra.mxu0 %vm309_vm2, %v5458_v2 }
0x317d   :  { %11975 = vmatmul.mubr.msk.f32.vlgmr.msra.gmra.mxu0 %vm309_vm2, %v5456_v40 }
0x3190   :  { %v13625_v5 = vpop.f32.mrf.mxu0 }
0x3192   :  { %v13635_v52 = vpop.f32.mrf.mxu0 }
0x3235   :  { %v11962_v44 = vpop.f32.mrf.mxu0 }
0x3236   :  { %v5339_v53 = vmul.f32 0.35355338, %v11962_v44 }
0x3237   :  { %v5329_v34 = vpop.f32.mrf.mxu0 }
0x3238   :  { %v5341_v41 = vadd.f32 %v5339_v53, %v13638_v49  ;;  %v5338_v59 = vmul.f32 0.35355338, %v5329_v34 }
0x323a   :  { %v5340_v60 = vadd.f32 %v5338_v59, %v13641_v57  ;;  %v5346_v22 = vsel %vm5342_vm11, %v5341_v41, -inf }
0x323b   :  { %5347 = vmax.xlane.f32.xlu0 %v5346_v22 }
0x323c   :  { %v5343_v61 = vsel %vm5342_vm11, %v5340_v60, -inf }
0x323d   :  { %5344 = vmax.xlane.f32.xlu1 %v5343_v61  ;;  %v11976_v29 = vpop.f32.mrf.mxu0 }
0x323e   :  { %v5545_v62 = vmul.f32 0.35355338, %v11976_v29 }
0x323f   :  { %v5535_v0 = vpop.f32.mrf.mxu0 }
0x3240   :  { %v5547_v56 = vadd.f32 %v5545_v62, %v13638_v49  ;;  %v5544_v1 = vmul.f32 0.35355338, %v5535_v0 }
0x3242   :  { %v5546_v9 = vadd.f32 %v5544_v1, %v13641_v57  ;;  %v5551_v3 = vsel %vm5342_vm11, %v5547_v56, -inf }
0x3243   :  { %5552 = vmax.xlane.f32.xlu1 %v5551_v3  ;;  %v13714_v3 = vadd.f32 %v13583_v30, %v13635_v52 }
0x3244   :  { %v5548_v4 = vsel %vm5342_vm11, %v5546_v9, -inf }
0x3245   :  { %5549 = vmax.xlane.f32.xlu0 %v5548_v4 }
0x3254   :  { %5365 = vrot.lane.b32.xlu1 %v13589_v35, %s12668_s30 }
0x325b   :  { %5367 = vrot.lane.b32.xlu0 %v13586_v32, %s12668_s30 }
0x32c4   :  { %v5348_v46 = vpop.xlane.xlu0 %5347 }
0x32c5   :  { %v5350_v6 = vsub.f32 %v5341_v41, %v5348_v46  ;;  %v13694_v41 = vld [vmem:[%s14508_s3 + $0x50] sm:$0xff] }
0x32c6   :  { %v5345_v54 = vpop.xlane.xlu1 %5344  ;;  %11989 = vmatprep.subr.mxu0 %v13694_v41 }
0x32c7   :  { %v5353_v7 = vmul.f32 1.442695, %v5350_v6  ;;  %v5349_v63 = vsub.f32 %v5340_v60, %v5345_v54  ;;  %11990 = vmatpush3.msra.mxu0 %v13694_v41 }
0x32c9   :  { %12488 = vpow2.f32 %v5353_v7  ;;  %v5351_v8 = vmul.f32 1.442695, %v5349_v63 }
0x32cb   :  { %12490 = vpow2.f32 %v5351_v8 }
0x32cc   :  { %v5553_v10 = vpop.xlane.xlu1 %5552 }
0x32cd   :  { %v5555_v11 = vsub.f32 %v5547_v56, %v5553_v10 }
0x32ce   :  { %v5550_v12 = vpop.xlane.xlu0 %5549 }
0x32cf   :  { %v5558_v15 = vmul.f32 1.442695, %v5555_v11  ;;  %v5554_v16 = vsub.f32 %v5546_v9, %v5550_v12 }
0x32d0   :  { %v5366_v18 = vpop.permute.xlu1 %5365 }
0x32d1   :  { %12492 = vpow2.f32 %v5558_v15  ;;  %v5556_v14 = vmul.f32 1.442695, %v5554_v16 }
0x32d2   :  { %v5368_v17 = vpop.permute.xlu0 %5367 }
0x32d3   :  { %12494 = vpow2.f32 %v5556_v14  ;;  %11963 = vmatprep.subr.mxu1 %v5368_v17 }
0x32d4   :  { %11964 = vmatpush3.msra.mxu1 %v5368_v17 }
0x32d5   :  { %11965 = vmatprep.subr.mxu1 %v5366_v18 }
0x32d6   :  { %v12489_v19 = vpop.eup %12488  ;;  %11966 = vmatpush3.msra.mxu1 %v5366_v18 }
0x32d7   :  { %v5358_v20 = vsel %vm5342_vm11, %v12489_v19, 0.0 }
0x32d8   :  { %v12491_v21 = vpop.eup %12490  ;;  %5359 = vadd.xlane.f32.xlu1 %v5358_v20 }
0x32d9   :  { %v5355_v24 = vsel %vm5342_vm11, %v12491_v21, 0.0 }
0x32da   :  { %5356 = vadd.xlane.f32.xlu0 %v5355_v24 }
0x32de   :  { %v12493_v23 = vpop.eup %12492 }
0x32df   :  { %v5563_v25 = vsel %vm5342_vm11, %v12493_v23, 0.0 }
0x32e0   :  { %v12495_v26 = vpop.eup %12494  ;;  %5564 = vadd.xlane.f32.xlu1 %v5563_v25 }
0x32e1   :  { %v5560_v31 = vsel %vm5342_vm11, %v12495_v26, 0.0 }
0x32e2   :  { %5561 = vadd.xlane.f32.xlu0 %v5560_v31  ;;  %v13733_v31 = vadd.f32 %v13625_v5, %v13583_v30 }
0x32f1   :  { %5572 = vrot.lane.b32.xlu1 %v13586_v32, %s12670_s6 }
0x32f5   :  { %5826 = vrot.lane.b32.xlu1 %v13586_v32, %s12672_s8 }
0x32f8   :  { %5570 = vrot.lane.b32.xlu0 %v13589_v35, %s12670_s6 }
0x32f9   :  { %5820 = vrot.lane.b32.xlu1 %v13589_v35, %s12671_s7 }
0x32fc   :  { %5824 = vrot.lane.b32.xlu0 %v13589_v35, %s12672_s8 }
0x32fd   :  { %6114 = vrot.lane.b32.xlu1 %v13586_v32, %s12673_s12 }
0x3300   :  { %5822 = vrot.lane.b32.xlu0 %v13586_v32, %s12671_s7 }
0x3301   :  { %6108 = vrot.lane.b32.xlu1 %v13589_v35, %s12674_s13 }
0x3304   :  { %6112 = vrot.lane.b32.xlu0 %v13589_v35, %s12673_s12 }
0x3308   :  { %6110 = vrot.lane.b32.xlu0 %v13586_v32, %s12674_s13 }
0x3361   :  { %v5360_v33 = vpop.xlane.xlu1 %5359 }
0x3362   :  { %12496 = vrcp.f32 %v5360_v33 }
0x3363   :  { %v5357_v36 = vpop.xlane.xlu0 %5356 }
0x3364   :  { %12498 = vrcp.f32 %v5357_v36 }
0x3369   :  { %v5565_v37 = vpop.xlane.xlu1 %5564 }
0x336a   :  { %12500 = vrcp.f32 %v5565_v37 }
0x336b   :  { %v5562_v38 = vpop.xlane.xlu0 %5561 }
0x336c   :  { %12502 = vrcp.f32 %v5562_v38 }
0x336d   :  { %v5573_v39 = vpop.permute.xlu1 %5572 }
0x336e   :  { %11977 = vmatprep.subr.mxu1 %v5573_v39 }
0x336f   :  { %v12497_v2 = vpop.eup %12496  ;;  %v5571_v45 = vpop.permute.xlu0 %5570 }
0x3370   :  { %v5364_v43 = vmul.f32 %v12497_v2, %v12489_v19 }
0x3371   :  { %v12499_v40 = vpop.eup %12498  ;;  %v5827_v34 = vpop.permute.xlu1 %5826 }
0x3372   :  { %v5363_v42 = vmul.f32 %v12499_v40, %v12491_v21 }
0x3373   :  { %v5825_v29 = vpop.permute.xlu0 %5824 }
0x3374   :  { %11967 = vmatprep.mubr.msk.f32.mxu1 %vm5342_vm11, %v5363_v42 }
0x3375   :  { %11968 = vmatmul.mubr.msk.f32.vlgmr.msra.gmra.mxu1 %vm5342_vm11, %v5364_v43  ;;  %v5821_v22 = vpop.permute.xlu1 %5820 }
0x3376   :  { %11978 = vmatpush3.msra.mxu1 %v5573_v39 }
0x3377   :  { %11979 = vmatprep.subr.mxu1 %v5571_v45  ;;  %v12501_v55 = vpop.eup %12500  ;;  %v5823_v56 = vpop.permute.xlu0 %5822 }
0x3378   :  { %11980 = vmatpush3.msra.mxu1 %v5571_v45  ;;  %v5569_v53 = vmul.f32 %v12501_v55, %v12493_v23 }
0x3379   :  { %v12503_v48 = vpop.eup %12502  ;;  %11984 = vmatprep.subr.mxu1 %v13684_v47  ;;  %v6115_v0 = vpop.permute.xlu1 %6114 }
0x337a   :  { %v5568_v44 = vmul.f32 %v12503_v48, %v12495_v26 }
0x337b   :  { %v6113_v9 = vpop.permute.xlu0 %6112 }
0x337c   :  { %11981 = vmatprep.mubr.msk.f32.mxu1 %vm5342_vm11, %v5568_v44 }
0x337d   :  { %11982 = vmatmul.mubr.msk.f32.vlgmr.msra.gmra.mxu1 %vm5342_vm11, %v5569_v53  ;;  %v6109_v1 = vpop.permute.xlu1 %6108 }
0x337e   :  { %11985 = vmatpush3.msra.mxu1 %v13684_v47 }
0x337f   :  { %11994 = vmatprep.subr.msk.mxu1 %vm309_vm2, %v5827_v34  ;;  %v6111_v4 = vpop.permute.xlu0 %6110 }
0x3435   :  { %v11969_v59 = vpop.f32.mrf.mxu1 }
0x3437   :  { %v5443_v60 = vpop.f32.mrf.mxu1 }
0x3438   :  { %11991 = vmatprep.mubr.msk.f32.mxu0 %vm309_vm2, %v5443_v60 }
0x3439   :  { %11992 = vmatmul.mubr.msk.f32.vlgmr.msra.gmra.mxu0 %vm309_vm2, %v11969_v59 }
0x343d   :  { %v11983_v61 = vpop.f32.mrf.mxu1 }
0x343f   :  { %v5648_v62 = vpop.f32.mrf.mxu1 }
0x3440   :  { %11986 = vmatprep.mubr.msk.f32.mxu1 %vm309_vm2, %v5648_v62 }
0x3441   :  { %11987 = vmatmul.mubr.msk.f32.vlgmr.msra.gmra.mxu1 %vm309_vm2, %v11983_v61 }
0x3442   :  { %11995 = vmatpush3.xpose.msk.msra.mxu1 %vm309_vm2, %v5827_v34  ;;  %11998 = vmatprep.mubr.msk.f32.mxu1 %vm309_vm2, %v5821_v22 }
0x3443   :  { %11996 = vmatprep.subr.msk.mxu1 %vm309_vm2, %v5825_v29 }
0x3446   :  { %11997 = vmatpush3.xpose.msk.msra.mxu1 %vm309_vm2, %v5825_v29 }
0x3447   :  { %12013 = vmatprep.subr.msk.mxu1 %vm309_vm2, %v6115_v0 }
0x3449   :  { %11999 = vmatmul.mubr.msk.f32.vlgmr.msra.gmra.mxu1 %vm309_vm2, %v5823_v56 }
0x344a   :  { %12014 = vmatpush3.xpose.msk.msra.mxu1 %vm309_vm2, %v6115_v0  ;;  %12017 = vmatprep.mubr.msk.f32.mxu1 %vm309_vm2, %v6109_v1 }
0x344b   :  { %12015 = vmatprep.subr.msk.mxu1 %vm309_vm2, %v6113_v9 }
0x344e   :  { %12016 = vmatpush3.xpose.msk.msra.mxu1 %vm309_vm2, %v6113_v9 }
0x3451   :  { %12018 = vmatmul.mubr.msk.f32.vlgmr.msra.gmra.mxu1 %vm309_vm2, %v6111_v4 }
0x3452   :  { %12036 = vmatprep.mubr.msk.f32.mxu1 %vm309_vm2, %v13714_v3 }
0x34f9   :  { %v11993_v46 = vpop.f32.mrf.mxu0 }
0x3501   :  { %v11988_v6 = vpop.f32.mrf.mxu1 }
0x3502   :  { %v13719_v54 = vadd.f32 %v11993_v46, %v11988_v6  ;;  %v13758_v46 = vld [vmem:[%s14508_s3 + $0x60] sm:$0xff] }
0x3503   :  { %v13721_v7 = vpop.f32.mrf.mxu1  ;;  %v10980_v6 = vld [vmem:[%s14511_s2 + $0x1] ss:$0 sm:$0xff] }
0x3509   :  { %v12000_v63 = vpop.f32.mrf.mxu1 }
0x350a   :  { %v5912_v8 = vmul.f32 0.35355338, %v12000_v63  ;;  %v13770_v63 = vadd.f32 %v10980_v6, %v13628_v51 }
0x350b   :  { %v5902_v10 = vpop.f32.mrf.mxu1 }
0x350c   :  { %v5914_v11 = vadd.f32 %v5912_v8, %v13638_v49  ;;  %v5911_v12 = vmul.f32 0.35355338, %v5902_v10  ;;  %v5811_v10 = vpop.f32.mrf.mxu0 }
0x350e   :  { %v5913_v52 = vadd.f32 %v5911_v12, %v13641_v57  ;;  %v5918_v15 = vsel %vm5342_vm11, %v5914_v11, -inf  ;;  %v13773_v12 = vadd.f32 %v10980_v6, %v13633_v50 }
0x350f   :  { %5919 = vmax.xlane.f32.xlu0 %v5918_v15 }
0x3510   :  { %v5915_v16 = vsel %vm5342_vm11, %v5913_v52, -inf }
0x3511   :  { %5916 = vmax.xlane.f32.xlu1 %v5915_v16  ;;  %v12019_v33 = vpop.f32.mrf.mxu1 }
0x3512   :  { %v6200_v38 = vmul.f32 0.35355338, %v12019_v33 }
0x3513   :  { %v6190_v36 = vpop.f32.mrf.mxu1 }
0x3514   :  { %v6199_v37 = vmul.f32 0.35355338, %v6190_v36  ;;  %v6202_v2 = vadd.f32 %v6200_v38, %v13638_v49 }
0x3516   :  { %v6201_v39 = vadd.f32 %v6199_v37, %v13641_v57  ;;  %v6206_v5 = vsel %vm5342_vm11, %v6202_v2, -inf }
0x3518   :  { %v6203_v30 = vsel %vm5342_vm11, %v6201_v39, -inf }
0x3598   :  { %v5920_v14 = vpop.xlane.xlu0 %5919 }
0x3599   :  { %v5922_v17 = vsub.f32 %v5914_v11, %v5920_v14 }
0x359a   :  { %v5917_v18 = vpop.xlane.xlu1 %5916 }
0x359b   :  { %v5925_v19 = vmul.f32 1.442695, %v5922_v17  ;;  %v5921_v20 = vsub.f32 %v5913_v52, %v5917_v18 }
0x359d   :  { %12504 = vpow2.f32 %v5925_v19  ;;  %v5923_v21 = vmul.f32 1.442695, %v5921_v20 }
0x359f   :  { %12506 = vpow2.f32 %v5923_v21 }
0x35aa   :  { %v12505_v24 = vpop.eup %12504 }
0x35ab   :  { %v5930_v23 = vsel %vm5342_vm11, %v12505_v24, 0.0 }
0x35ac   :  { %v12507_v25 = vpop.eup %12506  ;;  %5931 = vadd.xlane.f32.xlu1 %v5930_v23 }
0x35ad   :  { %v5927_v26 = vsel %vm5342_vm11, %v12507_v25, 0.0 }
0x35ae   :  { %5928 = vadd.xlane.f32.xlu0 %v5927_v26  ;;  %v13786_v26 = vld [vmem:[%s14508_s3 + $0x68] sm:$0xff] }
0x35bd   :  { %5937 = vrot.lane.b32.xlu1 %v13589_v35, %s12675_s14 }
0x35c1   :  { %6400 = vrot.lane.b32.xlu1 %v13733_v31, %s12666_s28 }
0x35c4   :  { %5939 = vrot.lane.b32.xlu0 %v13586_v32, %s12675_s14 }
0x35c8   :  { %6398 = vrot.lane.b32.xlu0 %v13714_v3, %s12666_s28 }
0x35e5   :  { %6204 = vmax.xlane.f32.xlu1 %v6203_v30 }
0x35e7   :  { %6207 = vmax.xlane.f32.xlu0 %v6206_v5 }
0x3635   :  { %v5932_v40 = vpop.xlane.xlu1 %5931 }
0x3636   :  { %12508 = vrcp.f32 %v5932_v40 }
0x3637   :  { %v5929_v42 = vpop.xlane.xlu0 %5928 }
0x3638   :  { %12510 = vrcp.f32 %v5929_v42 }
0x3639   :  { %v5938_v43 = vpop.permute.xlu1 %5937 }
0x363b   :  { %v5940_v45 = vpop.permute.xlu0 %5939 }
0x363c   :  { %12001 = vmatprep.subr.mxu0 %v5940_v45 }
0x363d   :  { %v6401_v55 = vpop.permute.xlu1 %6400  ;;  %12002 = vmatpush3.msra.mxu0 %v5940_v45  ;;  %v5812_v45 = vadd.f32 %v5811_v10, %v13721_v7 }
0x363e   :  { %12003 = vmatprep.subr.mxu0 %v5938_v43  ;;  %12032 = vmatprep.subr.msk.mxu1 %vm309_vm2, %v6401_v55 }
0x363f   :  { %12004 = vmatpush3.msra.mxu0 %v5938_v43  ;;  %12033 = vmatpush3.xpose.msk.msra.mxu1 %vm309_vm2, %v6401_v55  ;;  %v6399_v48 = vpop.permute.xlu0 %6398 }
0x3640   :  { %12034 = vmatprep.subr.msk.mxu1 %vm309_vm2, %v6399_v48  ;;  %12008 = vmatprep.subr.mxu0 %v13758_v46 }
0x3643   :  { %12035 = vmatpush3.xpose.msk.msra.mxu1 %vm309_vm2, %v6399_v48  ;;  %v12509_v44 = vpop.eup %12508 }
0x3644   :  { %v5936_v59 = vmul.f32 %v12509_v44, %v12505_v24 }
0x3645   :  { %v12511_v53 = vpop.eup %12510 }
0x3646   :  { %12037 = vmatmul.mubr.msk.f32.vlgmr.msra.gmra.mxu1 %vm309_vm2, %v13733_v31  ;;  %v5935_v34 = vmul.f32 %v12511_v53, %v12507_v25 }
0x3648   :  { %12005 = vmatprep.mubr.msk.f32.mxu0 %vm5342_vm11, %v5935_v34 }
0x3649   :  { %12006 = vmatmul.mubr.msk.f32.vlgmr.msra.gmra.mxu0 %vm5342_vm11, %v5936_v59 }
0x364a   :  { %12009 = vmatpush3.msra.mxu0 %v13758_v46 }
0x366e   :  { %v6205_v60 = vpop.xlane.xlu1 %6204 }
0x366f   :  { %v6209_v22 = vsub.f32 %v6201_v39, %v6205_v60 }
0x3670   :  { %v6208_v61 = vpop.xlane.xlu0 %6207 }
0x3671   :  { %v6211_v29 = vmul.f32 1.442695, %v6209_v22  ;;  %v6210_v62 = vsub.f32 %v6202_v2, %v6208_v61 }
0x3673   :  { %12512 = vpow2.f32 %v6211_v29  ;;  %v6213_v0 = vmul.f32 1.442695, %v6210_v62 }
0x3675   :  { %12514 = vpow2.f32 %v6213_v0 }
0x3680   :  { %v12513_v56 = vpop.eup %12512 }
0x3681   :  { %v6215_v1 = vsel %vm5342_vm11, %v12513_v56, 0.0 }
0x3682   :  { %v12515_v9 = vpop.eup %12514  ;;  %6216 = vadd.xlane.f32.xlu0 %v6215_v1 }
0x3683   :  { %v6218_v4 = vsel %vm5342_vm11, %v12515_v9, 0.0 }
0x3684   :  { %6219 = vadd.xlane.f32.xlu1 %v6218_v4 }
0x3695   :  { %6225 = vrot.lane.b32.xlu1 %v13589_v35, %s12676_s17 }
0x3698   :  { %6227 = vrot.lane.b32.xlu0 %v13586_v32, %s12676_s17 }
0x3706   :  { %v12038_v8 = vpop.f32.mrf.mxu1 }
0x3707   :  { %v6486_v11 = vmul.f32 0.35355338, %v12038_v8 }
0x3708   :  { %v6476_v52 = vpop.f32.mrf.mxu1 }
0x3709   :  { %v6488_v15 = vadd.f32 %v6486_v11, %v13770_v63  ;;  %v6485_v35 = vmul.f32 0.35355338, %v6476_v52  ;;  %v12007_v16 = vpop.f32.mrf.mxu0 }
0x370b   :  { %v6487_v32 = vadd.f32 %v6485_v35, %v13773_v12  ;;  %v6015_v14 = vpop.f32.mrf.mxu0  ;;  %v6217_v17 = vpop.xlane.xlu0 %6216  ;;  %v6492_v18 = vsel %vm5342_vm11, %v6488_v15, -inf }
0x370c   :  { %12516 = vrcp.f32 %v6217_v17  ;;  %12010 = vmatprep.mubr.msk.f32.mxu0 %vm309_vm2, %v6015_v14  ;;  %6493 = vmax.xlane.f32.xlu0 %v6492_v18 }
0x370d   :  { %12011 = vmatmul.mubr.msk.f32.vlgmr.msra.gmra.mxu0 %vm309_vm2, %v12007_v16  ;;  %v6220_v51 = vpop.xlane.xlu1 %6219  ;;  %v6489_v50 = vsel %vm5342_vm11, %v6487_v32, -inf }
0x370e   :  { %12518 = vrcp.f32 %v6220_v51  ;;  %6490 = vmax.xlane.f32.xlu1 %v6489_v50 }
0x370f   :  { %v6228_v19 = vpop.permute.xlu0 %6227 }
0x3710   :  { %12020 = vmatprep.subr.mxu0 %v6228_v19 }
0x3711   :  { %v6226_v20 = vpop.permute.xlu1 %6225  ;;  %12021 = vmatpush3.msra.mxu0 %v6228_v19 }
0x3712   :  { %12022 = vmatprep.subr.mxu0 %v6226_v20 }
0x3713   :  { %12023 = vmatpush3.msra.mxu0 %v6226_v20 }
0x3714   :  { %12027 = vmatprep.subr.mxu0 %v13786_v26 }
0x3719   :  { %v12517_v21 = vpop.eup %12516 }
0x371a   :  { %v6223_v24 = vmul.f32 %v12517_v21, %v12513_v56 }
0x371b   :  { %v12519_v23 = vpop.eup %12518 }
0x371c   :  { %12024 = vmatprep.mubr.msk.f32.mxu0 %vm5342_vm11, %v6223_v24  ;;  %v6224_v25 = vmul.f32 %v12519_v23, %v12515_v9 }
0x371e   :  { %12025 = vmatmul.mubr.msk.f32.vlgmr.msra.gmra.mxu0 %vm5342_vm11, %v6224_v25 }
0x371f   :  { %12028 = vmatpush3.msra.mxu0 %v13786_v26 }
0x3795   :  { %v6494_v33 = vpop.xlane.xlu0 %6493 }
0x3796   :  { %v6496_v36 = vsub.f32 %v6488_v15, %v6494_v33 }
0x3797   :  { %v6491_v37 = vpop.xlane.xlu1 %6490 }
0x3798   :  { %v6499_v38 = vmul.f32 1.442695, %v6496_v36  ;;  %v6495_v39 = vsub.f32 %v6487_v32, %v6491_v37 }
0x379a   :  { %12520 = vpow2.f32 %v6499_v38  ;;  %v6497_v2 = vmul.f32 1.442695, %v6495_v39 }
0x379c   :  { %12522 = vpow2.f32 %v6497_v2 }
0x37a7   :  { %v12521_v30 = vpop.eup %12520 }
0x37a8   :  { %v6504_v5 = vsel %vm5342_vm11, %v12521_v30, 0.0 }
0x37a9   :  { %v12523_v40 = vpop.eup %12522  ;;  %6505 = vadd.xlane.f32.xlu1 %v6504_v5 }
0x37aa   :  { %v6501_v42 = vsel %vm5342_vm11, %v12523_v40, 0.0 }
0x37ab   :  { %6502 = vadd.xlane.f32.xlu0 %v6501_v42 }
0x37ba   :  { %6511 = vrot.lane.b32.xlu1 %v13714_v3, %s12668_s30 }
0x37be   :  { %6604 = vrot.lane.b32.xlu1 %v13733_v31, %s12667_s29 }
0x37c1   :  { %6513 = vrot.lane.b32.xlu0 %v13733_v31, %s12668_s30 }
0x37c2   :  { %6598 = vrot.lane.b32.xlu1 %v13714_v3, %s12669_s5 }
0x37c5   :  { %6602 = vrot.lane.b32.xlu0 %v13714_v3, %s12667_s29 }
0x37c9   :  { %6600 = vrot.lane.b32.xlu0 %v13733_v31, %s12669_s5 }
0x37cd   :  { %v12012_v43 = vpop.f32.mrf.mxu0 }
0x37ce   :  { %v6107_v55 = vadd.f32 %v12012_v43, %v13719_v54 }
0x37cf   :  { %v6097_v48 = vpop.f32.mrf.mxu0 }
0x37d0   :  { %v13806_v44 = vadd.f32 %v6097_v48, %v5812_v45 }
0x37de   :  { %v12026_v53 = vpop.f32.mrf.mxu0 }
0x37e0   :  { %v6303_v34 = vpop.f32.mrf.mxu0 }
0x37e1   :  { %12029 = vmatprep.mubr.msk.f32.mxu0 %vm309_vm2, %v6303_v34 }
0x37e2   :  { %12030 = vmatmul.mubr.msk.f32.vlgmr.msra.gmra.mxu0 %vm309_vm2, %v12026_v53 }
0x3832   :  { %v6506_v59 = vpop.xlane.xlu1 %6505 }
0x3833   :  { %12524 = vrcp.f32 %v6506_v59 }
0x3834   :  { %v6503_v60 = vpop.xlane.xlu0 %6502 }
0x3835   :  { %12526 = vrcp.f32 %v6503_v60 }
0x3836   :  { %v6512_v22 = vpop.permute.xlu1 %6511 }
0x3838   :  { %v6514_v61 = vpop.permute.xlu0 %6513 }
0x3839   :  { %12039 = vmatprep.subr.mxu0 %v6514_v61 }
0x383a   :  { %12040 = vmatpush3.msra.mxu0 %v6514_v61  ;;  %v6605_v7 = vpop.permute.xlu1 %6604 }
0x383b   :  { %12041 = vmatprep.subr.mxu0 %v6512_v22 }
0x383c   :  { %12042 = vmatpush3.msra.mxu0 %v6512_v22  ;;  %v6603_v1 = vpop.permute.xlu0 %6602 }
0x383d   :  { %12046 = vmatprep.subr.msk.mxu0 %vm309_vm2, %v6605_v7 }
0x383e   :  { %v6599_v56 = vpop.permute.xlu1 %6598 }
0x3840   :  { %v12525_v54 = vpop.eup %12524  ;;  %v6601_v9 = vpop.permute.xlu0 %6600 }
0x3841   :  { %v6510_v0 = vmul.f32 %v12525_v54, %v12521_v30 }
0x3842   :  { %v12527_v29 = vpop.eup %12526 }
0x3843   :  { %v6509_v62 = vmul.f32 %v12527_v29, %v12523_v40 }
0x3845   :  { %12043 = vmatprep.mubr.msk.f32.mxu0 %vm5342_vm11, %v6509_v62 }
0x3846   :  { %12044 = vmatmul.mubr.msk.f32.vlgmr.msra.gmra.mxu0 %vm5342_vm11, %v6510_v0 }
0x3847   :  { %12047 = vmatpush3.xpose.msk.msra.mxu0 %vm309_vm2, %v6605_v7  ;;  %12050 = vmatprep.mubr.msk.f32.mxu0 %vm309_vm2, %v6599_v56 }
0x3848   :  { %12048 = vmatprep.subr.msk.mxu0 %vm309_vm2, %v6603_v1 }
0x384b   :  { %12049 = vmatpush3.xpose.msk.msra.mxu0 %vm309_vm2, %v6603_v1 }
0x384c   :  { %12065 = vmatprep.subr.mxu0 %v13694_v41 }
0x384e   :  { %12051 = vmatmul.mubr.msk.f32.vlgmr.msra.gmra.mxu0 %vm309_vm2, %v6601_v9 }
0x384f   :  { %12066 = vmatpush3.msra.mxu0 %v13694_v41 }
0x38a2   :  { %v12031_v4 = vpop.f32.mrf.mxu0 }
0x38a3   :  { %v13820_v6 = vadd.f32 %v12031_v4, %v6107_v55 }
0x38a4   :  { %v13822_v8 = vpop.f32.mrf.mxu0 }
0x3906   :  { %v12045_v10 = vpop.f32.mrf.mxu0 }
0x3908   :  { %v6589_v11 = vpop.f32.mrf.mxu0 }
0x3909   :  { %12067 = vmatprep.mubr.msk.f32.mxu0 %vm309_vm2, %v6589_v11 }
0x390a   :  { %12068 = vmatmul.mubr.msk.f32.vlgmr.msra.gmra.mxu0 %vm309_vm2, %v12045_v10 }
0x390e   :  { %v12052_v52 = vpop.f32.mrf.mxu0 }
0x390f   :  { %v6690_v15 = vmul.f32 0.35355338, %v12052_v52 }
0x3910   :  { %v6680_v35 = vpop.f32.mrf.mxu0 }
0x3911   :  { %v6692_v16 = vadd.f32 %v6690_v15, %v13770_v63  ;;  %v6689_v32 = vmul.f32 0.35355338, %v6680_v35 }
0x3913   :  { %v6691_v14 = vadd.f32 %v6689_v32, %v13773_v12  ;;  %v6696_v41 = vsel %vm5342_vm11, %v6692_v16, -inf }
0x3914   :  { %6697 = vmax.xlane.f32.xlu0 %v6696_v41 }
0x3915   :  { %v6693_v17 = vsel %vm5342_vm11, %v6691_v14, -inf }
0x3916   :  { %6694 = vmax.xlane.f32.xlu1 %v6693_v17 }
0x399d   :  { %v6698_v18 = vpop.xlane.xlu0 %6697 }
0x399e   :  { %v6700_v51 = vsub.f32 %v6692_v16, %v6698_v18 }
0x399f   :  { %v6695_v50 = vpop.xlane.xlu1 %6694 }
0x39a0   :  { %v6703_v19 = vmul.f32 1.442695, %v6700_v51  ;;  %v6699_v20 = vsub.f32 %v6691_v14, %v6695_v50 }
0x39a2   :  { %12528 = vpow2.f32 %v6703_v19  ;;  %v6701_v21 = vmul.f32 1.442695, %v6699_v20 }
0x39a4   :  { %12530 = vpow2.f32 %v6701_v21 }
0x39af   :  { %v12529_v24 = vpop.eup %12528 }
0x39b0   :  { %v6708_v23 = vsel %vm5342_vm11, %v12529_v24, 0.0 }
0x39b1   :  { %v12531_v25 = vpop.eup %12530  ;;  %6709 = vadd.xlane.f32.xlu1 %v6708_v23 }
0x39b2   :  { %v6705_v33 = vsel %vm5342_vm11, %v12531_v25, 0.0 }
0x39b3   :  { %6706 = vadd.xlane.f32.xlu0 %v6705_v33 }
0x39c2   :  { %6715 = vrot.lane.b32.xlu1 %v13714_v3, %s12670_s6 }
0x39c6   :  { %6970 = vrot.lane.b32.xlu1 %v13733_v31, %s12672_s8 }
0x39c9   :  { %6717 = vrot.lane.b32.xlu0 %v13733_v31, %s12670_s6 }
0x39ca   :  { %6964 = vrot.lane.b32.xlu1 %v13714_v3, %s12671_s7 }
0x39cd   :  { %6968 = vrot.lane.b32.xlu0 %v13714_v3, %s12672_s8 }
0x39ce   :  { %7257 = vrot.lane.b32.xlu1 %v13733_v31, %s12673_s12 }
0x39d1   :  { %6966 = vrot.lane.b32.xlu0 %v13733_v31, %s12671_s7 }
0x39d2   :  { %7251 = vrot.lane.b32.xlu1 %v13714_v3, %s12674_s13 }
0x39d5   :  { %7255 = vrot.lane.b32.xlu0 %v13714_v3, %s12673_s12 }
0x39d9   :  { %7253 = vrot.lane.b32.xlu0 %v13733_v31, %s12674_s13 }
0x3a3a   :  { %v6710_v36 = vpop.xlane.xlu1 %6709 }
0x3a3b   :  { %12532 = vrcp.f32 %v6710_v36 }
0x3a3c   :  { %v6707_v37 = vpop.xlane.xlu0 %6706 }
0x3a3d   :  { %12534 = vrcp.f32 %v6707_v37 }
0x3a3e   :  { %v6716_v39 = vpop.permute.xlu1 %6715 }
0x3a40   :  { %v6718_v38 = vpop.permute.xlu0 %6717 }
0x3a41   :  { %12053 = vmatprep.subr.mxu1 %v6718_v38 }
0x3a42   :  { %12054 = vmatpush3.msra.mxu1 %v6718_v38  ;;  %v6971_v42 = vpop.permute.xlu1 %6970 }
0x3a43   :  { %12055 = vmatprep.subr.mxu1 %v6716_v39 }
0x3a44   :  { %12056 = vmatpush3.msra.mxu1 %v6716_v39  ;;  %v6969_v55 = vpop.permute.xlu0 %6968 }
0x3a45   :  { %12060 = vmatprep.subr.mxu1 %v13684_v47 }
0x3a46   :  { %v6965_v43 = vpop.permute.xlu1 %6964 }
0x3a48   :  { %v12533_v2 = vpop.eup %12532  ;;  %v6967_v34 = vpop.permute.xlu0 %6966 }
0x3a49   :  { %v6714_v40 = vmul.f32 %v12533_v2, %v12529_v24 }
0x3a4a   :  { %v12535_v30 = vpop.eup %12534  ;;  %v7258_v53 = vpop.permute.xlu1 %7257 }
0x3a4b   :  { %v6713_v5 = vmul.f32 %v12535_v30, %v12531_v25 }
0x3a4c   :  { %v7256_v59 = vpop.permute.xlu0 %7255 }
0x3a4d   :  { %12057 = vmatprep.mubr.msk.f32.mxu1 %vm5342_vm11, %v6713_v5 }
0x3a4e   :  { %12058 = vmatmul.mubr.msk.f32.vlgmr.msra.gmra.mxu1 %vm5342_vm11, %v6714_v40 }
0x3a4f   :  { %12061 = vmatpush3.msra.mxu1 %v13684_v47  ;;  %v7252_v47 = vpop.permute.xlu1 %7251 }
0x3a50   :  { %12070 = vmatprep.subr.msk.mxu1 %vm309_vm2, %v6971_v42  ;;  %v7254_v60 = vpop.permute.xlu0 %7253 }
0x3b0e   :  { %v12059_v45 = vpop.f32.mrf.mxu1 }
0x3b10   :  { %v6793_v48 = vpop.f32.mrf.mxu1 }
0x3b11   :  { %12062 = vmatprep.mubr.msk.f32.mxu1 %vm309_vm2, %v6793_v48 }
0x3b12   :  { %12063 = vmatmul.mubr.msk.f32.vlgmr.msra.gmra.mxu1 %vm309_vm2, %v12059_v45 }
0x3b13   :  { %12071 = vmatpush3.xpose.msk.msra.mxu1 %vm309_vm2, %v6971_v42  ;;  %12074 = vmatprep.mubr.msk.f32.mxu1 %vm309_vm2, %v6965_v43 }
0x3b14   :  { %12072 = vmatprep.subr.msk.mxu1 %vm309_vm2, %v6969_v55 }
0x3b17   :  { %12073 = vmatpush3.xpose.msk.msra.mxu1 %vm309_vm2, %v6969_v55 }
0x3b18   :  { %12089 = vmatprep.subr.msk.mxu1 %vm309_vm2, %v7258_v53 }
0x3b1a   :  { %12075 = vmatmul.mubr.msk.f32.vlgmr.msra.gmra.mxu1 %vm309_vm2, %v6967_v34 }
0x3b1b   :  { %12090 = vmatpush3.xpose.msk.msra.mxu1 %vm309_vm2, %v7258_v53  ;;  %12093 = vmatprep.mubr.msk.f32.mxu1 %vm309_vm2, %v7252_v47  ;;  %v6394_v47 = vadd.f32 %v13822_v8, %v13806_v44 }
0x3b1c   :  { %12091 = vmatprep.subr.msk.mxu1 %vm309_vm2, %v7256_v59 }
0x3b1f   :  { %12092 = vmatpush3.xpose.msk.msra.mxu1 %vm309_vm2, %v7256_v59 }
0x3b22   :  { %12094 = vmatmul.mubr.msk.f32.vlgmr.msra.gmra.mxu1 %vm309_vm2, %v7254_v60 }
0x3bd2   :  { %v13870_v22 = vpop.f32.mrf.mxu1 }
0x3bd4   :  { %v13872_v61 = vpop.f32.mrf.mxu1 }
0x3bda   :  { %v12076_v7 = vpop.f32.mrf.mxu1 }
0x3bdb   :  { %v7056_v54 = vmul.f32 0.35355338, %v12076_v7 }
0x3bdc   :  { %v7046_v29 = vpop.f32.mrf.mxu1 }
0x3bdd   :  { %v7058_v62 = vadd.f32 %v7056_v54, %v13770_v63  ;;  %v7055_v0 = vmul.f32 0.35355338, %v7046_v29  ;;  %v12069_v29 = vpop.f32.mrf.mxu0 }
0x3bdf   :  { %v7057_v56 = vadd.f32 %v7055_v0, %v13773_v12  ;;  %v7062_v1 = vsel %vm5342_vm11, %v7058_v62, -inf }
0x3be0   :  { %7063 = vmax.xlane.f32.xlu0 %v7062_v1 }
0x3be1   :  { %v7059_v9 = vsel %vm5342_vm11, %v7057_v56, -inf }
0x3be2   :  { %7060 = vmax.xlane.f32.xlu1 %v7059_v9  ;;  %v12095_v17 = vpop.f32.mrf.mxu1 }
0x3be3   :  { %v7343_v50 = vmul.f32 0.35355338, %v12095_v17 }
0x3be4   :  { %v7333_v18 = vpop.f32.mrf.mxu1 }
0x3be5   :  { %v7342_v51 = vmul.f32 0.35355338, %v7333_v18  ;;  %v7345_v20 = vadd.f32 %v7343_v50, %v13770_v63  ;;  %v7624_v18 = vld [vmem:[%s14508_s3 + $0x98] sm:$0xff]  ;;  %v7621_v50 = vld [vmem:[%s14508_s3 + $0x80] sm:$0xff] }
0x3be6   :  { %12108 = vmatprep.subr.mxu1 %v7624_v18 }
0x3be7   :  { %v7344_v19 = vadd.f32 %v7342_v51, %v13773_v12  ;;  %v7349_v24 = vsel %vm5342_vm11, %v7345_v20, -inf  ;;  %12109 = vmatpush3.msra.mxu1 %v7624_v18  ;;  %v7622_v51 = vld [vmem:[%s14508_s3 + $0x88] sm:$0xff] }
0x3be9   :  { %v7346_v21 = vsel %vm5342_vm11, %v7344_v19, -inf }
0x3c69   :  { %v7064_v4 = vpop.xlane.xlu0 %7063 }
0x3c6a   :  { %v7066_v10 = vsub.f32 %v7058_v62, %v7064_v4  ;;  %v6955_v62 = vpop.f32.mrf.mxu0 }
0x3c6b   :  { %v7061_v11 = vpop.xlane.xlu1 %7060 }
0x3c6c   :  { %v7069_v52 = vmul.f32 1.442695, %v7066_v10  ;;  %v7065_v15 = vsub.f32 %v7057_v56, %v7061_v11 }
0x3c6e   :  { %12536 = vpow2.f32 %v7069_v52  ;;  %v7067_v35 = vmul.f32 1.442695, %v7065_v15 }
0x3c70   :  { %12538 = vpow2.f32 %v7067_v35 }
0x3c7b   :  { %v12537_v16 = vpop.eup %12536 }
0x3c7c   :  { %v7074_v32 = vsel %vm5342_vm11, %v12537_v16, 0.0 }
0x3c7d   :  { %v12539_v14 = vpop.eup %12538  ;;  %7075 = vadd.xlane.f32.xlu1 %v7074_v32 }
0x3c7e   :  { %v7071_v41 = vsel %vm5342_vm11, %v12539_v14, 0.0 }
0x3c7f   :  { %7072 = vadd.xlane.f32.xlu0 %v7071_v41 }
0x3c8e   :  { %7081 = vrot.lane.b32.xlu1 %v13714_v3, %s12675_s14 }
0x3c95   :  { %7083 = vrot.lane.b32.xlu0 %v13733_v31, %s12675_s14 }
0x3cb2   :  { %7347 = vmax.xlane.f32.xlu1 %v7346_v21 }
0x3cb4   :  { %7350 = vmax.xlane.f32.xlu0 %v7349_v24  ;;  %v6956_v24 = vadd.f32 %v6955_v62, %v13872_v61  ;;  %v13939_v61 = vld [vmem:[%s14508_s3 + $0x40] ss:$0 sm:$0xff] }
0x3d06   :  { %v7076_v23 = vpop.xlane.xlu1 %7075 }
0x3d07   :  { %12540 = vrcp.f32 %v7076_v23 }
0x3d08   :  { %v7073_v25 = vpop.xlane.xlu0 %7072 }
0x3d09   :  { %12542 = vrcp.f32 %v7073_v25 }
0x3d0a   :  { %v7082_v36 = vpop.permute.xlu1 %7081 }
0x3d0c   :  { %v7084_v33 = vpop.permute.xlu0 %7083 }
0x3d0d   :  { %12077 = vmatprep.subr.mxu0 %v7084_v33 }
0x3d0e   :  { %12078 = vmatpush3.msra.mxu0 %v7084_v33 }
0x3d0f   :  { %12079 = vmatprep.subr.mxu0 %v7082_v36 }
0x3d10   :  { %12080 = vmatpush3.msra.mxu0 %v7082_v36 }
0x3d11   :  { %12084 = vmatprep.subr.mxu0 %v13758_v46 }
0x3d14   :  { %v12541_v37 = vpop.eup %12540 }
0x3d15   :  { %v7080_v2 = vmul.f32 %v12541_v37, %v12537_v16 }
0x3d16   :  { %v12543_v38 = vpop.eup %12542 }
0x3d17   :  { %v7079_v39 = vmul.f32 %v12543_v38, %v12539_v14 }
0x3d19   :  { %12081 = vmatprep.mubr.msk.f32.mxu0 %vm5342_vm11, %v7079_v39 }
0x3d1a   :  { %12082 = vmatmul.mubr.msk.f32.vlgmr.msra.gmra.mxu0 %vm5342_vm11, %v7080_v2 }
0x3d1b   :  { %12085 = vmatpush3.msra.mxu0 %v13758_v46  ;;  %v13901_v46 = vld [vmem:[%s14508_s3 + $0x48] ss:$0 sm:$0xff] }
0x3d1c   :  { %v7544_v59 = vadd.f32 %v13901_v46, %v13820_v6  ;;  %v7543_v60 = vadd.f32 %v13901_v46, %v6394_v47  ;;  %v7770_v47 = vld [vmem:[%s14508_s3 + $0xf0] sm:$0xff] }
0x3d1e   :  { %v7548_v7 = vadd.f32 %v7544_v59, %v13568_v13  ;;  %v7769_v59 = vld [vmem:[%s14508_s3 + $0xe8] sm:$0xff] }
0x3d20   :  { %v7556_v54 = vsel %vm132_vm0, %v7548_v7, 0.0 }
0x3d3b   :  { %v7348_v30 = vpop.xlane.xlu1 %7347 }
0x3d3c   :  { %v7352_v5 = vsub.f32 %v7344_v19, %v7348_v30  ;;  %v6961_v19 = vadd.f32 %v12069_v29, %v13870_v22  ;;  %v7763_v29 = vld [vmem:[%s14508_s3 + $0xb8] sm:$0xff] }
0x3d3d   :  { %v7351_v40 = vpop.xlane.xlu0 %7350 }
0x3d3e   :  { %v7354_v42 = vmul.f32 1.442695, %v7352_v5  ;;  %v7353_v43 = vsub.f32 %v7345_v20, %v7351_v40 }
0x3d40   :  { %12544 = vpow2.f32 %v7354_v42  ;;  %v7356_v45 = vmul.f32 1.442695, %v7353_v43 }
0x3d42   :  { %12546 = vpow2.f32 %v7356_v45 }
0x3d4d   :  { %v12545_v55 = vpop.eup %12544 }
0x3d4e   :  { %v7358_v48 = vsel %vm5342_vm11, %v12545_v55, 0.0 }
0x3d4f   :  { %v12547_v53 = vpop.eup %12546  ;;  %7359 = vadd.xlane.f32.xlu0 %v7358_v48 }
0x3d50   :  { %v7361_v34 = vsel %vm5342_vm11, %v12547_v53, 0.0 }
0x3d51   :  { %7362 = vadd.xlane.f32.xlu1 %v7361_v34 }
0x3d62   :  { %7368 = vrot.lane.b32.xlu1 %v13714_v3, %s12676_s17  ;;  %v7547_v3 = vadd.f32 %v7543_v60, %v13556_v27  ;;  %v7768_v60 = vld [vmem:[%s14508_s3 + $0xe0] sm:$0xff] }
0x3d65   :  { %7370 = vrot.lane.b32.xlu0 %v13733_v31, %s12676_s17  ;;  %v7553_v31 = vsel %vm132_vm0, %v7547_v3, 0.0 }
0x3d84   :  { %7557 = vadd.xlane.f32.xlu0 %v7556_v54  ;;  %v7765_v54 = vld [vmem:[%s14508_s3 + $0xc8] sm:$0xff] }
0x3d86   :  { %7554 = vadd.xlane.f32.xlu1 %v7553_v31  ;;  %v7764_v31 = vld [vmem:[%s14508_s3 + $0xc0] sm:$0xff] }
0x3dd8   :  { %v7360_v0 = vpop.xlane.xlu0 %7359 }
0x3dd9   :  { %12548 = vrcp.f32 %v7360_v0 }
0x3dda   :  { %v12083_v44 = vpop.f32.mrf.mxu0  ;;  %v7363_v8 = vpop.xlane.xlu1 %7362 }
0x3ddb   :  { %12550 = vrcp.f32 %v7363_v8 }
0x3ddc   :  { %v7159_v6 = vpop.f32.mrf.mxu0  ;;  %v7371_v56 = vpop.permute.xlu0 %7370 }
0x3ddd   :  { %12086 = vmatprep.mubr.msk.f32.mxu0 %vm309_vm2, %v7159_v6  ;;  %12096 = vmatprep.subr.mxu0 %v7371_v56 }
0x3dde   :  { %12087 = vmatmul.mubr.msk.f32.vlgmr.msra.gmra.mxu0 %vm309_vm2, %v12083_v44  ;;  %v7369_v27 = vpop.permute.xlu1 %7368 }
0x3ddf   :  { %12097 = vmatpush3.msra.mxu0 %v7371_v56 }
0x3de0   :  { %12098 = vmatprep.subr.mxu0 %v7369_v27 }
0x3de1   :  { %12099 = vmatpush3.msra.mxu0 %v7369_v27 }
0x3de2   :  { %12103 = vmatprep.subr.mxu0 %v13786_v26 }
0x3de6   :  { %v12549_v13 = vpop.eup %12548 }
0x3de7   :  { %v7366_v1 = vmul.f32 %v12549_v13, %v12545_v55  ;;  %v13945_v55 = vld [vmem:[%s14508_s3 + $0x38] ss:$0 sm:$0xff] }
0x3de8   :  { %v12551_v9 = vpop.eup %12550 }
0x3de9   :  { %12100 = vmatprep.mubr.msk.f32.mxu0 %vm5342_vm11, %v7366_v1  ;;  %v7367_v4 = vmul.f32 %v12551_v9, %v12547_v53 }
0x3deb   :  { %12101 = vmatmul.mubr.msk.f32.vlgmr.msra.gmra.mxu0 %vm5342_vm11, %v7367_v4  ;;  %v13991_v4 = vld [vmem:[%s14508_s3 + $0x78] ss:$0 sm:$0xff] }
0x3dec   :  { %12104 = vmatpush3.msra.mxu0 %v13786_v26  ;;  %v7623_v26 = vld [vmem:[%s14508_s3 + $0x90] sm:$0xff] }
0x3ded   :  { %12110 = vmatprep.subr.mxu1 %v7623_v26  ;;  %12122 = vmatprep.subr.mxu0 %v7770_v47 }
0x3dee   :  { %12111 = vmatpush3.msra.mxu1 %v7623_v26 }
0x3def   :  { %12112 = vmatprep.subr.mxu1 %v7622_v51 }
0x3df0   :  { %12113 = vmatpush3.msra.mxu1 %v7622_v51 }
0x3df1   :  { %12114 = vmatprep.subr.mxu1 %v7621_v50 }
0x3df2   :  { %12115 = vmatpush3.msra.mxu1 %v7621_v50 }
0x3e0d   :  { %v7558_v10 = vpop.xlane.xlu0 %7557 }
0x3e0e   :  { %v7566_v11 = vmul.f32 0.03125, %v7558_v10 }
0x3e0f   :  { %v7555_v52 = vpop.xlane.xlu1 %7554 }
0x3e10   :  { %v7570_v15 = vsub.f32 %v7548_v7, %v7566_v11  ;;  %v7565_v35 = vmul.f32 0.03125, %v7555_v52  ;;  %v7767_v7 = vld [vmem:[%s14508_s3 + $0xd8] sm:$0xff] }
0x3e12   :  { %v7569_v16 = vsub.f32 %v7547_v3, %v7565_v35  ;;  %v7574_v32 = vmul.f32 %v7570_v15, %v7570_v15  ;;  %v7766_v3 = vld [vmem:[%s14508_s3 + $0xd0] sm:$0xff] }
0x3e14   :  { %v7580_v14 = vsel %vm132_vm0, %v7574_v32, 0.0  ;;  %v7573_v41 = vmul.f32 %v7569_v16, %v7569_v16 }
0x3e15   :  { %7581 = vadd.xlane.f32.xlu1 %v7580_v14 }
0x3e16   :  { %v7577_v17 = vsel %vm132_vm0, %v7573_v41, 0.0 }
0x3e17   :  { %7578 = vadd.xlane.f32.xlu0 %v7577_v17 }
0x3e9e   :  { %v12088_v20 = vpop.f32.mrf.mxu0  ;;  %v7582_v21 = vpop.xlane.xlu1 %7581 }
0x3e9f   :  { %v7250_v23 = vadd.f32 %v12088_v20, %v6961_v19  ;;  %v7590_v25 = vmul.f32 0.03125, %v7582_v21 }
0x3ea0   :  { %v7240_v33 = vpop.f32.mrf.mxu0  ;;  %v7579_v36 = vpop.xlane.xlu0 %7578 }
0x3ea1   :  { %v7594_v37 = vadd.f32 1e-12, %v7590_v25  ;;  %v7249_v38 = vadd.f32 %v7240_v33, %v6956_v24  ;;  %v7589_v39 = vmul.f32 0.03125, %v7579_v36 }
0x3ea3   :  { %12552 = vrsqrt.f32 %v7594_v37  ;;  %v7593_v2 = vadd.f32 1e-12, %v7589_v39 }
0x3ea5   :  { %12554 = vrsqrt.f32 %v7593_v2 }
0x3eab   :  { %v12102_v30 = vpop.f32.mrf.mxu0 }
0x3ead   :  { %v7446_v5 = vpop.f32.mrf.mxu0 }
0x3eae   :  { %12105 = vmatprep.mubr.msk.f32.mxu0 %vm309_vm2, %v7446_v5 }
0x3eaf   :  { %12106 = vmatmul.mubr.msk.f32.vlgmr.msra.gmra.mxu0 %vm309_vm2, %v12102_v30 }
0x3eb0   :  { %v12553_v22 = vpop.eup %12552  ;;  %12123 = vmatpush3.msra.mxu0 %v7770_v47 }
0x3eb1   :  { %v7602_v40 = vmul.f32 %v12553_v22, %v7570_v15  ;;  %12124 = vmatprep.subr.mxu0 %v7769_v59 }
0x3eb2   :  { %v12555_v42 = vpop.eup %12554  ;;  %12125 = vmatpush3.msra.mxu0 %v7769_v59 }
0x3eb3   :  { %v7601_v43 = vmul.f32 %v12555_v42, %v7569_v16  ;;  %v7610_v45 = vmul.f32 %v13939_v61, %v7602_v40  ;;  %12126 = vmatprep.subr.mxu0 %v7768_v60  ;;  %v14002_v40 = vld [vmem:[%s14508_s3 + $0xa0] ss:$0 sm:$0xff] }
0x3eb4   :  { %12127 = vmatpush3.msra.mxu0 %v7768_v60 }
0x3eb5   :  { %v7609_v48 = vmul.f32 %v13939_v61, %v7601_v43  ;;  %v13952_v34 = vadd.f32 %v13945_v55, %v7610_v45  ;;  %12128 = vmatprep.subr.mxu0 %v7767_v7 }
0x3eb6   :  { %12129 = vmatpush3.msra.mxu0 %v7767_v7 }
0x3eb7   :  { %v13949_v53 = vadd.f32 %v13945_v55, %v7609_v48  ;;  %12130 = vmatprep.subr.mxu0 %v7766_v3 }
0x3eb8   :  { %12131 = vmatpush3.msra.mxu0 %v7766_v3 }
0x3eb9   :  { %12116 = vmatprep.mubr.msk.f32.mxu1 %vm132_vm0, %v13949_v53  ;;  %12132 = vmatprep.subr.mxu0 %v7765_v54 }
0x3eba   :  { %12117 = vmatmul.mubr.msk.f32.vlgmr.msra.gmra.mxu1 %vm132_vm0, %v13952_v34  ;;  %12133 = vmatpush3.msra.mxu0 %v7765_v54 }
0x3ebb   :  { %12134 = vmatprep.subr.mxu0 %v7764_v31 }
0x3ebc   :  { %12135 = vmatpush3.msra.mxu0 %v7764_v31 }
0x3ebd   :  { %12136 = vmatprep.subr.mxu0 %v7763_v29 }
0x3ebe   :  { %12137 = vmatpush3.msra.mxu0 %v7763_v29 }
0x3f6f   :  { %v12107_v62 = vpop.f32.mrf.mxu0 }
0x3f70   :  { %v7537_v0 = vadd.f32 %v12107_v62, %v7250_v23 }
0x3f71   :  { %v7527_v44 = vpop.f32.mrf.mxu0 }
0x3f72   :  { %v7546_v8 = vadd.f32 %v13901_v46, %v7537_v0  ;;  %v7536_v6 = vadd.f32 %v7527_v44, %v7249_v38 }
0x3f74   :  { %v7545_v56 = vadd.f32 %v13901_v46, %v7536_v6  ;;  %v7550_v27 = vadd.f32 %v7546_v8, %v13576_v28 }
0x3f76   :  { %v7562_v13 = vsel %vm132_vm0, %v7550_v27, 0.0  ;;  %v7549_v1 = vadd.f32 %v7545_v56, %v13572_v58 }
0x3f77   :  { %7563 = vadd.xlane.f32.xlu1 %v7562_v13 }
0x3f78   :  { %v7559_v9 = vsel %vm132_vm0, %v7549_v1, 0.0 }
0x3f79   :  { %7560 = vadd.xlane.f32.xlu0 %v7559_v9 }
0x3f7a   :  { %v12118_v10 = vpop.f32.mrf.mxu1 }
0x3f7b   :  { %v7714_v11 = vadd.f32 %v12118_v10, %v13991_v4 }
0x3f7c   :  { %v7708_v52 = vpop.f32.mrf.mxu1 }
0x3f7d   :  { %v7728_v46 = vmul.f32 %v7714_v11, %v7714_v11  ;;  %v7709_v28 = vadd.f32 %v13991_v4, %v7708_v52 }
0x3f7f   :  { %v7732_v15 = vmul.f32 %v7728_v46, %v7714_v11  ;;  %v7727_v35 = vmul.f32 %v7709_v28, %v7709_v28 }
0x3f81   :  { %v7736_v16 = vmul.f32 0.044715, %v7732_v15  ;;  %v7731_v58 = vmul.f32 %v7727_v35, %v7709_v28  ;;  %v7950_v35 = vld [vmem:[%s14508_s3 + $0x1f0] sm:$0xff] }
0x3f82   :  { %12144 = vmatprep.subr.mxu1 %v7950_v35 }
0x3f83   :  { %v7740_v32 = vadd.f32 %v7736_v16, %v7714_v11  ;;  %v7735_v14 = vmul.f32 0.044715, %v7731_v58  ;;  %v7949_v16 = vld [vmem:[%s14508_s3 + $0x1e8] sm:$0xff]  ;;  %12145 = vmatpush3.msra.mxu1 %v7950_v35  ;;  %v7948_v58 = vld [vmem:[%s14508_s3 + $0x1e0] sm:$0xff] }
0x3f84   :  { %12146 = vmatprep.subr.mxu1 %v7949_v16 }
0x3f85   :  { %v7744_v41 = vmul.f32 0.7978846, %v7740_v32  ;;  %v7739_v17 = vadd.f32 %v7735_v14, %v7709_v28  ;;  %12147 = vmatpush3.msra.mxu1 %v7949_v16  ;;  %v7947_v32 = vld [vmem:[%s14508_s3 + $0x1d8] sm:$0xff] }
0x3f86   :  { %12148 = vmatprep.subr.mxu1 %v7948_v58 }
0x3f87   :  { %12556 = vtanh.f32 %v7744_v41  ;;  %v7743_v18 = vmul.f32 0.7978846, %v7739_v17  ;;  %12149 = vmatpush3.msra.mxu1 %v7948_v58  ;;  %v14069_v58 = vld [vmem:[%s14508_s3 + $0x150] ss:$0 sm:$0xff] }
0x3f88   :  { %12150 = vmatprep.subr.mxu1 %v7947_v32 }
0x3f89   :  { %12558 = vtanh.f32 %v7743_v18  ;;  %12151 = vmatpush3.msra.mxu1 %v7947_v32 }
0x3f94   :  { %v12557_v26 = vpop.eup %12556 }
0x3f95   :  { %v7752_v51 = vadd.f32 1.0, %v12557_v26 }
0x3f96   :  { %v12559_v50 = vpop.eup %12558 }
0x3f97   :  { %v7751_v19 = vadd.f32 1.0, %v12559_v50  ;;  %v7756_v20 = vmul.f32 0.5, %v7752_v51 }
0x3f99   :  { %v7755_v21 = vmul.f32 0.5, %v7751_v19  ;;  %v7760_v23 = vmul.f32 %v7756_v20, %v7714_v11 }
0x3f9b   :  { %v7759_v24 = vmul.f32 %v7755_v21, %v7709_v28 }
0x3f9d   :  { %12138 = vmatprep.mubr.msk.f32.mxu0 %vm2401_vm4, %v7759_v24 }
0x3f9e   :  { %12139 = vmatmul.mubr.msk.f32.vlgmr.msra.gmra.mxu0 %vm2401_vm4, %v7760_v23 }
0x4000   :  { %v7564_v25 = vpop.xlane.xlu1 %7563 }
0x4001   :  { %v7568_v33 = vmul.f32 0.03125, %v7564_v25 }
0x4002   :  { %v7561_v36 = vpop.xlane.xlu0 %7560 }
0x4003   :  { %v7572_v37 = vsub.f32 %v7550_v27, %v7568_v33  ;;  %v7567_v38 = vmul.f32 0.03125, %v7561_v36 }
0x4005   :  { %v7571_v39 = vsub.f32 %v7549_v1, %v7567_v38  ;;  %v7576_v2 = vmul.f32 %v7572_v37, %v7572_v37 }
0x4007   :  { %v7586_v30 = vsel %vm132_vm0, %v7576_v2, 0.0  ;;  %v7575_v5 = vmul.f32 %v7571_v39, %v7571_v39 }
0x4008   :  { %7587 = vadd.xlane.f32.xlu1 %v7586_v30 }
0x4009   :  { %v7583_v22 = vsel %vm132_vm0, %v7575_v5, 0.0 }
0x400a   :  { %7584 = vadd.xlane.f32.xlu0 %v7583_v22 }
0x405e   :  { %v12140_v42 = vpop.f32.mrf.mxu0 }
0x405f   :  { %v7860_v43 = vadd.f32 %v12140_v42, %v14002_v40 }
0x4060   :  { %v7854_v45 = vpop.f32.mrf.mxu0 }
0x4061   :  { %v7874_v48 = vadd.f32 %v7860_v43, %v13952_v34  ;;  %v7855_v47 = vadd.f32 %v14002_v40, %v7854_v45 }
0x4063   :  { %v7873_v59 = vadd.f32 %v7855_v47, %v13949_v53  ;;  %v7882_v60 = vsel %vm132_vm0, %v7874_v48, 0.0 }
0x4064   :  { %7883 = vadd.xlane.f32.xlu1 %v7882_v60 }
0x4065   :  { %v7879_v7 = vsel %vm132_vm0, %v7873_v59, 0.0 }
0x4066   :  { %7880 = vadd.xlane.f32.xlu0 %v7879_v7  ;;  %v14043_v7 = vld [vmem:[%s14508_s3 + $0xb0] ss:$0 sm:$0xff] }
0x4091   :  { %v7588_v3 = vpop.xlane.xlu1 %7587 }
0x4092   :  { %v7592_v54 = vmul.f32 0.03125, %v7588_v3 }
0x4093   :  { %v7585_v31 = vpop.xlane.xlu0 %7584 }
0x4094   :  { %v7596_v29 = vadd.f32 1e-12, %v7592_v54  ;;  %v7591_v62 = vmul.f32 0.03125, %v7585_v31 }
0x4096   :  { %12560 = vrsqrt.f32 %v7596_v29  ;;  %v7595_v0 = vadd.f32 1e-12, %v7591_v62  ;;  %v11064_v29 = vld [vmem:[%s14508_s3 + $0xa8] ss:$0 sm:$0xff] }
0x4098   :  { %12562 = vrsqrt.f32 %v7595_v0 }
0x40a3   :  { %v12561_v44 = vpop.eup %12560 }
0x40a4   :  { %v7604_v34 = vmul.f32 %v12561_v44, %v7572_v37 }
0x40a5   :  { %v12563_v8 = vpop.eup %12562 }
0x40a6   :  { %v7603_v6 = vmul.f32 %v12563_v8, %v7571_v39  ;;  %v7612_v53 = vmul.f32 %v13939_v61, %v7604_v34 }
0x40a8   :  { %v7611_v56 = vmul.f32 %v13939_v61, %v7603_v6  ;;  %v14016_v13 = vadd.f32 %v13945_v55, %v7612_v53 }
0x40aa   :  { %v14013_v27 = vadd.f32 %v13945_v55, %v7611_v56 }
0x40ac   :  { %12119 = vmatprep.mubr.msk.f32.mxu1 %vm132_vm0, %v14013_v27 }
0x40ad   :  { %12120 = vmatmul.mubr.msk.f32.gmra.mxu1 %vm132_vm0, %v14016_v13 }
0x40ed   :  { %v7884_v1 = vpop.xlane.xlu1 %7883 }
0x40ee   :  { %v7892_v9 = vmul.f32 0.03125, %v7884_v1 }
0x40ef   :  { %v7881_v10 = vpop.xlane.xlu0 %7880 }
0x40f0   :  { %v7896_v11 = vsub.f32 %v7874_v48, %v7892_v9  ;;  %v7891_v52 = vmul.f32 0.03125, %v7881_v10 }
0x40f2   :  { %v7895_v46 = vsub.f32 %v7873_v59, %v7891_v52  ;;  %v7900_v28 = vmul.f32 %v7896_v11, %v7896_v11 }
0x40f4   :  { %v7906_v61 = vsel %vm132_vm0, %v7900_v28, 0.0  ;;  %v7899_v15 = vmul.f32 %v7895_v46, %v7895_v46 }
0x40f5   :  { %7907 = vadd.xlane.f32.xlu1 %v7906_v61 }
0x40f6   :  { %v7903_v55 = vsel %vm132_vm0, %v7899_v15, 0.0 }
0x40f7   :  { %7904 = vadd.xlane.f32.xlu0 %v7903_v55 }
0x416d   :  { %v12121_v14 = vpop.f32.mrf.mxu1 }
0x416e   :  { %v7724_v41 = vadd.f32 %v12121_v14, %v13991_v4 }
0x416f   :  { %v7718_v17 = vpop.f32.mrf.mxu1 }
0x4170   :  { %v7730_v18 = vmul.f32 %v7724_v41, %v7724_v41  ;;  %v7719_v26 = vadd.f32 %v13991_v4, %v7718_v17 }
0x4172   :  { %v7734_v51 = vmul.f32 %v7730_v18, %v7724_v41  ;;  %v7729_v50 = vmul.f32 %v7719_v26, %v7719_v26 }
0x4174   :  { %v7738_v19 = vmul.f32 0.044715, %v7734_v51  ;;  %v7733_v20 = vmul.f32 %v7729_v50, %v7719_v26 }
0x4176   :  { %v7742_v21 = vadd.f32 %v7738_v19, %v7724_v41  ;;  %v7737_v24 = vmul.f32 0.044715, %v7733_v20 }
0x4178   :  { %v7746_v23 = vmul.f32 0.7978846, %v7742_v21  ;;  %v7741_v25 = vadd.f32 %v7737_v24, %v7719_v26 }
0x417a   :  { %12564 = vtanh.f32 %v7746_v23  ;;  %v7745_v33 = vmul.f32 0.7978846, %v7741_v25 }
0x417c   :  { %12566 = vtanh.f32 %v7745_v33 }
0x417e   :  { %v7908_v36 = vpop.xlane.xlu1 %7907 }
0x417f   :  { %v7916_v37 = vmul.f32 0.03125, %v7908_v36 }
0x4180   :  { %v7905_v38 = vpop.xlane.xlu0 %7904 }
0x4181   :  { %v7920_v39 = vadd.f32 1e-12, %v7916_v37  ;;  %v7915_v2 = vmul.f32 0.03125, %v7905_v38 }
0x4183   :  { %12568 = vrsqrt.f32 %v7920_v39  ;;  %v7919_v30 = vadd.f32 1e-12, %v7915_v2 }
0x4185   :  { %12570 = vrsqrt.f32 %v7919_v30 }
0x4187   :  { %v12565_v4 = vpop.eup %12564 }
0x4188   :  { %v7754_v5 = vadd.f32 1.0, %v12565_v4 }
0x4189   :  { %v12567_v22 = vpop.eup %12566 }
0x418a   :  { %v7753_v42 = vadd.f32 1.0, %v12567_v22  ;;  %v7758_v43 = vmul.f32 0.5, %v7754_v5 }
0x418c   :  { %v7757_v45 = vmul.f32 0.5, %v7753_v42  ;;  %v7762_v47 = vmul.f32 %v7758_v43, %v7724_v41 }
0x418e   :  { %v7761_v48 = vmul.f32 %v7757_v45, %v7719_v26 }
0x4190   :  { %v12569_v59 = vpop.eup %12568  ;;  %12141 = vmatprep.mubr.msk.f32.mxu0 %vm2401_vm4, %v7761_v48 }
0x4191   :  { %v7928_v60 = vmul.f32 %v12569_v59, %v7896_v11  ;;  %12142 = vmatmul.mubr.msk.f32.gmra.mxu0 %vm2401_vm4, %v7762_v47 }
0x4192   :  { %v12571_v3 = vpop.eup %12570 }
0x4193   :  { %v7927_v54 = vmul.f32 %v12571_v3, %v7895_v46  ;;  %v7936_v31 = vmul.f32 %v14043_v7, %v7928_v60 }
0x4195   :  { %v7935_v62 = vmul.f32 %v14043_v7, %v7927_v54  ;;  %v14052_v44 = vadd.f32 %v11064_v29, %v7936_v31 }
0x4197   :  { %v14050_v0 = vadd.f32 %v11064_v29, %v7935_v62 }
0x4199   :  { %12152 = vmatprep.mubr.msk.f32.mxu1 %vm132_vm0, %v14050_v0 }
0x419a   :  { %12153 = vmatmul.mubr.msk.f32.vlgmr.msra.gmra.mxu1 %vm132_vm0, %v14052_v44 }
0x4251   :  { %v12143_v34 = vpop.f32.mrf.mxu0 }
0x4252   :  { %v7870_v8 = vadd.f32 %v12143_v34, %v14002_v40 }
0x4253   :  { %v7864_v6 = vpop.f32.mrf.mxu0 }
0x4254   :  { %v7876_v53 = vadd.f32 %v7870_v8, %v14016_v13  ;;  %v7865_v56 = vadd.f32 %v14002_v40, %v7864_v6 }
0x4256   :  { %v7875_v1 = vadd.f32 %v7865_v56, %v14013_v27  ;;  %v7888_v9 = vsel %vm132_vm0, %v7876_v53, 0.0 }
0x4257   :  { %7889 = vadd.xlane.f32.xlu1 %v7888_v9 }
0x4258   :  { %v7885_v10 = vsel %vm132_vm0, %v7875_v1, 0.0 }
0x4259   :  { %7886 = vadd.xlane.f32.xlu0 %v7885_v10 }
0x425a   :  { %v12154_v27 = vpop.f32.mrf.mxu1 }
0x425b   :  { %v14077_v14 = vadd.f32 %v12154_v27, %v14069_v58 }
0x425c   :  { %v8034_v16 = vpop.f32.mrf.mxu1 }
0x425d   :  { %v14072_v32 = vadd.f32 %v14069_v58, %v8034_v16 }
0x42e0   :  { %v7890_v11 = vpop.xlane.xlu1 %7889 }
0x42e1   :  { %v7894_v52 = vmul.f32 0.03125, %v7890_v11 }
0x42e2   :  { %v7887_v46 = vpop.xlane.xlu0 %7886 }
0x42e3   :  { %v7898_v28 = vsub.f32 %v7876_v53, %v7894_v52  ;;  %v7893_v61 = vmul.f32 0.03125, %v7887_v46 }
0x42e5   :  { %v7897_v15 = vsub.f32 %v7875_v1, %v7893_v61  ;;  %v7902_v55 = vmul.f32 %v7898_v28, %v7898_v28 }
0x42e7   :  { %v7912_v35 = vsel %vm132_vm0, %v7902_v55, 0.0  ;;  %v7901_v13 = vmul.f32 %v7897_v15, %v7897_v15 }
0x42e8   :  { %7913 = vadd.xlane.f32.xlu1 %v7912_v35 }
0x42e9   :  { %v7909_v40 = vsel %vm132_vm0, %v7901_v13, 0.0 }
0x42ea   :  { %7910 = vadd.xlane.f32.xlu0 %v7909_v40 }
0x42f9   :  { %8055 = vrot.lane.b32.xlu1 %v14072_v32, %s12666_s28 }
0x42fd   :  { %8262 = vrot.lane.b32.xlu1 %v14077_v14, %s12667_s29 }
0x4300   :  { %8057 = vrot.lane.b32.xlu0 %v14077_v14, %s12666_s28 }
0x4301   :  { %8256 = vrot.lane.b32.xlu1 %v14072_v32, %s12669_s5 }
0x4304   :  { %8260 = vrot.lane.b32.xlu0 %v14072_v32, %s12667_s29 }
0x4308   :  { %8258 = vrot.lane.b32.xlu0 %v14077_v14, %s12669_s5 }
0x4371   :  { %v7914_v41 = vpop.xlane.xlu1 %7913 }
0x4372   :  { %v7918_v17 = vmul.f32 0.03125, %v7914_v41 }
0x4373   :  { %v7911_v18 = vpop.xlane.xlu0 %7910 }
0x4374   :  { %v7922_v26 = vadd.f32 1e-12, %v7918_v17  ;;  %v7917_v51 = vmul.f32 0.03125, %v7911_v18 }
0x4375   :  { %v8056_v19 = vpop.permute.xlu1 %8055 }
0x4376   :  { %12572 = vrsqrt.f32 %v7922_v26  ;;  %v7921_v50 = vadd.f32 1e-12, %v7917_v51 }
0x4377   :  { %v8058_v20 = vpop.permute.xlu0 %8057 }
0x4378   :  { %12574 = vrsqrt.f32 %v7921_v50  ;;  %12158 = vmatprep.subr.msk.mxu1 %vm309_vm2, %v8058_v20 }
0x4379   :  { %12159 = vmatpush3.xpose.msk.msra.mxu1 %vm309_vm2, %v8058_v20  ;;  %v8263_v21 = vpop.permute.xlu1 %8262 }
0x437a   :  { %12160 = vmatprep.subr.msk.mxu1 %vm309_vm2, %v8056_v19 }
0x437b   :  { %v8261_v30 = vpop.permute.xlu0 %8260 }
0x437d   :  { %12161 = vmatpush3.xpose.msk.msra.mxu1 %vm309_vm2, %v8056_v19  ;;  %v8257_v2 = vpop.permute.xlu1 %8256 }
0x437e   :  { %12172 = vmatprep.subr.msk.mxu1 %vm309_vm2, %v8263_v21 }
0x437f   :  { %v8259_v4 = vpop.permute.xlu0 %8258 }
0x4383   :  { %v12573_v24 = vpop.eup %12572 }
0x4384   :  { %v7930_v23 = vmul.f32 %v12573_v24, %v7898_v28 }
0x4385   :  { %v12575_v25 = vpop.eup %12574 }
0x4386   :  { %v7929_v33 = vmul.f32 %v12575_v25, %v7897_v15  ;;  %v7938_v36 = vmul.f32 %v14043_v7, %v7930_v23 }
0x4388   :  { %v7937_v37 = vmul.f32 %v14043_v7, %v7929_v33  ;;  %v14098_v39 = vadd.f32 %v11064_v29, %v7938_v36 }
0x438a   :  { %v14096_v38 = vadd.f32 %v11064_v29, %v7937_v37 }
0x438c   :  { %12155 = vmatprep.mubr.msk.f32.mxu1 %vm132_vm0, %v14096_v38 }
0x438d   :  { %12156 = vmatmul.mubr.msk.f32.gmra.mxu1 %vm132_vm0, %v14098_v39 }
0x438e   :  { %12162 = vmatprep.mubr.msk.f32.mxu1 %vm309_vm2, %v14072_v32 }
0x4391   :  { %12163 = vmatmul.mubr.msk.f32.vlgmr.msra.gmra.mxu1 %vm309_vm2, %v14077_v14 }
0x4392   :  { %12173 = vmatpush3.xpose.msk.msra.mxu1 %vm309_vm2, %v8263_v21  ;;  %12176 = vmatprep.mubr.msk.f32.mxu1 %vm309_vm2, %v8257_v2  ;;  %v14158_v2 = vld [vmem:[%s14508_s3 + $0x138] sm:$0xff] }
0x4393   :  { %12174 = vmatprep.subr.msk.mxu1 %vm309_vm2, %v8261_v30 }
0x4396   :  { %12175 = vmatpush3.xpose.msk.msra.mxu1 %vm309_vm2, %v8261_v30 }
0x4399   :  { %12177 = vmatmul.mubr.msk.f32.vlgmr.msra.gmra.mxu1 %vm309_vm2, %v8259_v4 }
0x444d   :  { %v14113_v5 = vpop.f32.mrf.mxu1 }
0x444f   :  { %v14115_v22 = vpop.f32.mrf.mxu1 }
0x4451   :  { %v12164_v42 = vpop.f32.mrf.mxu1 }
0x4452   :  { %v8143_v43 = vmul.f32 0.35355338, %v12164_v42 }
0x4453   :  { %v8133_v45 = vpop.f32.mrf.mxu1 }
0x4454   :  { %v8145_v48 = vadd.f32 %v8143_v43, %v13638_v49  ;;  %v8142_v47 = vmul.f32 0.35355338, %v8133_v45 }
0x4456   :  { %v8144_v59 = vadd.f32 %v8142_v47, %v13641_v57  ;;  %v8149_v60 = vsel %vm5342_vm11, %v8145_v48, -inf }
0x4457   :  { %8150 = vmax.xlane.f32.xlu0 %v8149_v60 }
0x4458   :  { %v8146_v7 = vsel %vm5342_vm11, %v8144_v59, -inf }
0x4459   :  { %v12178_v3 = vpop.f32.mrf.mxu1  ;;  %8147 = vmax.xlane.f32.xlu1 %v8146_v7 }
0x445a   :  { %v8348_v54 = vmul.f32 0.35355338, %v12178_v3 }
0x445b   :  { %v8338_v31 = vpop.f32.mrf.mxu1 }
0x445c   :  { %v8350_v29 = vadd.f32 %v8348_v54, %v13638_v49  ;;  %v8347_v62 = vmul.f32 0.35355338, %v8338_v31 }
0x445e   :  { %v8349_v34 = vadd.f32 %v8347_v62, %v13641_v57  ;;  %v8354_v8 = vsel %vm5342_vm11, %v8350_v29, -inf }
0x445f   :  { %8355 = vmax.xlane.f32.xlu1 %v8354_v8  ;;  %v14188_v8 = vadd.f32 %v14069_v58, %v14115_v22 }
0x4460   :  { %v8351_v6 = vsel %vm5342_vm11, %v8349_v34, -inf }
0x4461   :  { %8352 = vmax.xlane.f32.xlu0 %v8351_v6 }
0x4470   :  { %8168 = vrot.lane.b32.xlu1 %v14072_v32, %s12668_s30 }
0x4477   :  { %8170 = vrot.lane.b32.xlu0 %v14077_v14, %s12668_s30 }
0x44e0   :  { %v8151_v53 = vpop.xlane.xlu0 %8150 }
0x44e1   :  { %v8153_v56 = vsub.f32 %v8145_v48, %v8151_v53  ;;  %v14168_v48 = vld [vmem:[%s14508_s3 + $0x130] sm:$0xff] }
0x44e2   :  { %v8148_v1 = vpop.xlane.xlu1 %8147  ;;  %12191 = vmatprep.subr.mxu1 %v14168_v48 }
0x44e3   :  { %v8156_v9 = vmul.f32 1.442695, %v8153_v56  ;;  %v8152_v10 = vsub.f32 %v8144_v59, %v8148_v1  ;;  %12192 = vmatpush3.msra.mxu1 %v14168_v48 }
0x44e5   :  { %12576 = vpow2.f32 %v8156_v9  ;;  %v8154_v11 = vmul.f32 1.442695, %v8152_v10 }
0x44e7   :  { %12578 = vpow2.f32 %v8154_v11 }
0x44e8   :  { %v8356_v52 = vpop.xlane.xlu1 %8355 }
0x44e9   :  { %v8358_v46 = vsub.f32 %v8350_v29, %v8356_v52 }
0x44ea   :  { %v8353_v28 = vpop.xlane.xlu0 %8352 }
0x44eb   :  { %v8361_v61 = vmul.f32 1.442695, %v8358_v46  ;;  %v8357_v15 = vsub.f32 %v8349_v34, %v8353_v28 }
0x44ec   :  { %v8169_v13 = vpop.permute.xlu1 %8168 }
0x44ed   :  { %12580 = vpow2.f32 %v8361_v61  ;;  %v8359_v55 = vmul.f32 1.442695, %v8357_v15 }
0x44ee   :  { %v8171_v35 = vpop.permute.xlu0 %8170 }
0x44ef   :  { %12582 = vpow2.f32 %v8359_v55  ;;  %12165 = vmatprep.subr.mxu0 %v8171_v35 }
0x44f0   :  { %12166 = vmatpush3.msra.mxu0 %v8171_v35 }
0x44f1   :  { %12167 = vmatprep.subr.mxu0 %v8169_v13 }
0x44f2   :  { %v12577_v40 = vpop.eup %12576  ;;  %12168 = vmatpush3.msra.mxu0 %v8169_v13 }
0x44f3   :  { %v8161_v27 = vsel %vm5342_vm11, %v12577_v40, 0.0 }
0x44f4   :  { %v12579_v16 = vpop.eup %12578  ;;  %8162 = vadd.xlane.f32.xlu1 %v8161_v27 }
0x44f5   :  { %v8158_v41 = vsel %vm5342_vm11, %v12579_v16, 0.0 }
0x44f6   :  { %8159 = vadd.xlane.f32.xlu0 %v8158_v41 }
0x44fa   :  { %v12581_v17 = vpop.eup %12580 }
0x44fb   :  { %v8366_v18 = vsel %vm5342_vm11, %v12581_v17, 0.0 }
0x44fc   :  { %v12583_v26 = vpop.eup %12582  ;;  %8367 = vadd.xlane.f32.xlu1 %v8366_v18 }
0x44fd   :  { %v8363_v51 = vsel %vm5342_vm11, %v12583_v26, 0.0 }
0x44fe   :  { %8364 = vadd.xlane.f32.xlu0 %v8363_v51  ;;  %v14207_v51 = vadd.f32 %v14113_v5, %v14069_v58 }
0x450d   :  { %8375 = vrot.lane.b32.xlu1 %v14077_v14, %s12670_s6 }
0x4511   :  { %8629 = vrot.lane.b32.xlu1 %v14077_v14, %s12672_s8 }
0x4514   :  { %8373 = vrot.lane.b32.xlu0 %v14072_v32, %s12670_s6 }
0x4515   :  { %8623 = vrot.lane.b32.xlu1 %v14072_v32, %s12671_s7 }
0x4518   :  { %8627 = vrot.lane.b32.xlu0 %v14072_v32, %s12672_s8 }
0x4519   :  { %8917 = vrot.lane.b32.xlu1 %v14077_v14, %s12673_s12 }
0x451c   :  { %8625 = vrot.lane.b32.xlu0 %v14077_v14, %s12671_s7 }
0x451d   :  { %8911 = vrot.lane.b32.xlu1 %v14072_v32, %s12674_s13 }
0x4520   :  { %8915 = vrot.lane.b32.xlu0 %v14072_v32, %s12673_s12 }
0x4524   :  { %8913 = vrot.lane.b32.xlu0 %v14077_v14, %s12674_s13 }
0x457d   :  { %v8163_v50 = vpop.xlane.xlu1 %8162 }
0x457e   :  { %12584 = vrcp.f32 %v8163_v50 }
0x457f   :  { %v8160_v19 = vpop.xlane.xlu0 %8159 }
0x4580   :  { %12586 = vrcp.f32 %v8160_v19 }
0x4585   :  { %v8368_v20 = vpop.xlane.xlu1 %8367 }
0x4586   :  { %12588 = vrcp.f32 %v8368_v20 }
0x4587   :  { %v8365_v21 = vpop.xlane.xlu0 %8364 }
0x4588   :  { %12590 = vrcp.f32 %v8365_v21 }
0x4589   :  { %v8376_v24 = vpop.permute.xlu1 %8375 }
0x458a   :  { %12179 = vmatprep.subr.mxu0 %v8376_v24 }
0x458b   :  { %v12585_v23 = vpop.eup %12584  ;;  %v8374_v37 = vpop.permute.xlu0 %8373 }
0x458c   :  { %v8167_v36 = vmul.f32 %v12585_v23, %v12577_v40 }
0x458d   :  { %v12587_v25 = vpop.eup %12586  ;;  %v8630_v45 = vpop.permute.xlu1 %8629 }
0x458e   :  { %v8166_v33 = vmul.f32 %v12587_v25, %v12579_v16 }
0x458f   :  { %v8628_v3 = vpop.permute.xlu0 %8627 }
0x4590   :  { %12169 = vmatprep.mubr.msk.f32.mxu0 %vm5342_vm11, %v8166_v33 }
0x4591   :  { %12170 = vmatmul.mubr.msk.f32.vlgmr.msra.gmra.mxu0 %vm5342_vm11, %v8167_v36  ;;  %v8624_v60 = vpop.permute.xlu1 %8623 }
0x4592   :  { %12180 = vmatpush3.msra.mxu0 %v8376_v24 }
0x4593   :  { %12181 = vmatprep.subr.mxu0 %v8374_v37  ;;  %v12589_v30 = vpop.eup %12588  ;;  %v8626_v29 = vpop.permute.xlu0 %8625 }
0x4594   :  { %12182 = vmatpush3.msra.mxu0 %v8374_v37  ;;  %v8372_v43 = vmul.f32 %v12589_v30, %v12581_v17 }
0x4595   :  { %v12591_v4 = vpop.eup %12590  ;;  %12186 = vmatprep.subr.mxu0 %v14158_v2  ;;  %v8918_v31 = vpop.permute.xlu1 %8917 }
0x4596   :  { %v8371_v42 = vmul.f32 %v12591_v4, %v12583_v26 }
0x4597   :  { %v8916_v34 = vpop.permute.xlu0 %8915 }
0x4598   :  { %12183 = vmatprep.mubr.msk.f32.mxu0 %vm5342_vm11, %v8371_v42 }
0x4599   :  { %12184 = vmatmul.mubr.msk.f32.vlgmr.msra.gmra.mxu0 %vm5342_vm11, %v8372_v43  ;;  %v8912_v62 = vpop.permute.xlu1 %8911 }
0x459a   :  { %12187 = vmatpush3.msra.mxu0 %v14158_v2 }
0x459b   :  { %12196 = vmatprep.subr.msk.mxu0 %vm309_vm2, %v8630_v45  ;;  %v8914_v6 = vpop.permute.xlu0 %8913 }
0x4651   :  { %v12171_v47 = vpop.f32.mrf.mxu0 }
0x4653   :  { %v8246_v59 = vpop.f32.mrf.mxu0 }
0x4654   :  { %12193 = vmatprep.mubr.msk.f32.mxu1 %vm309_vm2, %v8246_v59 }
0x4655   :  { %12194 = vmatmul.mubr.msk.f32.vlgmr.msra.gmra.mxu1 %vm309_vm2, %v12171_v47 }
0x4659   :  { %v12185_v7 = vpop.f32.mrf.mxu0 }
0x465b   :  { %v8451_v54 = vpop.f32.mrf.mxu0 }
0x465c   :  { %12188 = vmatprep.mubr.msk.f32.mxu0 %vm309_vm2, %v8451_v54 }
0x465d   :  { %12189 = vmatmul.mubr.msk.f32.vlgmr.msra.gmra.mxu0 %vm309_vm2, %v12185_v7 }
0x465e   :  { %12197 = vmatpush3.xpose.msk.msra.mxu0 %vm309_vm2, %v8630_v45  ;;  %12200 = vmatprep.mubr.msk.f32.mxu0 %vm309_vm2, %v8624_v60 }
0x465f   :  { %12198 = vmatprep.subr.msk.mxu0 %vm309_vm2, %v8628_v3 }
0x4662   :  { %12199 = vmatpush3.xpose.msk.msra.mxu0 %vm309_vm2, %v8628_v3 }
0x4663   :  { %12215 = vmatprep.subr.msk.mxu0 %vm309_vm2, %v8918_v31 }
0x4665   :  { %12201 = vmatmul.mubr.msk.f32.vlgmr.msra.gmra.mxu0 %vm309_vm2, %v8626_v29 }
0x4666   :  { %12216 = vmatpush3.xpose.msk.msra.mxu0 %vm309_vm2, %v8918_v31  ;;  %12219 = vmatprep.mubr.msk.f32.mxu0 %vm309_vm2, %v8912_v62 }
0x4667   :  { %12217 = vmatprep.subr.msk.mxu0 %vm309_vm2, %v8916_v34 }
0x466a   :  { %12218 = vmatpush3.xpose.msk.msra.mxu0 %vm309_vm2, %v8916_v34  ;;  %v14232_v34 = vld [vmem:[%s14508_s3 + $0x140] sm:$0xff] }
0x466d   :  { %12220 = vmatmul.mubr.msk.f32.vlgmr.msra.gmra.mxu0 %vm309_vm2, %v8914_v6 }
0x466e   :  { %12238 = vmatprep.mubr.msk.f32.mxu0 %vm309_vm2, %v14188_v8 }
0x4715   :  { %v12195_v53 = vpop.f32.mrf.mxu1 }
0x471d   :  { %v12190_v56 = vpop.f32.mrf.mxu0 }
0x471e   :  { %v14193_v1 = vadd.f32 %v12195_v53, %v12190_v56  ;;  %v8614_v53 = vpop.f32.mrf.mxu1 }
0x471f   :  { %v14195_v9 = vpop.f32.mrf.mxu0 }
0x4725   :  { %v12202_v10 = vpop.f32.mrf.mxu0 }
0x4726   :  { %v8715_v11 = vmul.f32 0.35355338, %v12202_v10 }
0x4727   :  { %v8705_v52 = vpop.f32.mrf.mxu0 }
0x4728   :  { %v8717_v46 = vadd.f32 %v8715_v11, %v13638_v49  ;;  %v8714_v28 = vmul.f32 0.35355338, %v8705_v52 }
0x472a   :  { %v8716_v22 = vadd.f32 %v8714_v28, %v13641_v57  ;;  %v8721_v61 = vsel %vm5342_vm11, %v8717_v46, -inf }
0x472b   :  { %8722 = vmax.xlane.f32.xlu0 %v8721_v61 }
0x472c   :  { %v8718_v15 = vsel %vm5342_vm11, %v8716_v22, -inf }
0x472d   :  { %8719 = vmax.xlane.f32.xlu1 %v8718_v15  ;;  %v12221_v50 = vpop.f32.mrf.mxu0 }
0x472e   :  { %v9003_v21 = vmul.f32 0.35355338, %v12221_v50 }
0x472f   :  { %v8993_v19 = vpop.f32.mrf.mxu0 }
0x4730   :  { %v9002_v20 = vmul.f32 0.35355338, %v8993_v19  ;;  %v9005_v23 = vadd.f32 %v9003_v21, %v13638_v49 }
0x4732   :  { %v9004_v24 = vadd.f32 %v9002_v20, %v13641_v57  ;;  %v9009_v5 = vsel %vm5342_vm11, %v9005_v23, -inf }
0x4734   :  { %v9006_v58 = vsel %vm5342_vm11, %v9004_v24, -inf }
0x47b4   :  { %v8723_v55 = vpop.xlane.xlu0 %8722 }
0x47b5   :  { %v8725_v35 = vsub.f32 %v8717_v46, %v8723_v55 }
0x47b6   :  { %v8720_v13 = vpop.xlane.xlu1 %8719 }
0x47b7   :  { %v8728_v40 = vmul.f32 1.442695, %v8725_v35  ;;  %v8724_v27 = vsub.f32 %v8716_v22, %v8720_v13 }
0x47b9   :  { %12592 = vpow2.f32 %v8728_v40  ;;  %v8726_v16 = vmul.f32 1.442695, %v8724_v27 }
0x47bb   :  { %12594 = vpow2.f32 %v8726_v16 }
0x47c6   :  { %v12593_v41 = vpop.eup %12592 }
0x47c7   :  { %v8733_v17 = vsel %vm5342_vm11, %v12593_v41, 0.0 }
0x47c8   :  { %v12595_v18 = vpop.eup %12594  ;;  %8734 = vadd.xlane.f32.xlu1 %v8733_v17 }
0x47c9   :  { %v8730_v26 = vsel %vm5342_vm11, %v12595_v18, 0.0 }
0x47ca   :  { %8731 = vadd.xlane.f32.xlu0 %v8730_v26 }
0x47d9   :  { %8740 = vrot.lane.b32.xlu1 %v14072_v32, %s12675_s14 }
0x47dd   :  { %9203 = vrot.lane.b32.xlu1 %v14207_v51, %s12666_s28 }
0x47e0   :  { %8742 = vrot.lane.b32.xlu0 %v14077_v14, %s12675_s14 }
0x47e4   :  { %9201 = vrot.lane.b32.xlu0 %v14188_v8, %s12666_s28 }
0x4801   :  { %9007 = vmax.xlane.f32.xlu1 %v9006_v58 }
0x4803   :  { %9010 = vmax.xlane.f32.xlu0 %v9009_v5 }
0x4851   :  { %v8735_v25 = vpop.xlane.xlu1 %8734 }
0x4852   :  { %12596 = vrcp.f32 %v8735_v25  ;;  %v8615_v25 = vadd.f32 %v8614_v53, %v14195_v9 }
0x4853   :  { %v8732_v33 = vpop.xlane.xlu0 %8731 }
0x4854   :  { %12598 = vrcp.f32 %v8732_v33 }
0x4855   :  { %v8741_v36 = vpop.permute.xlu1 %8740 }
0x4857   :  { %v8743_v37 = vpop.permute.xlu0 %8742 }
0x4858   :  { %12203 = vmatprep.subr.mxu1 %v8743_v37 }
0x4859   :  { %12204 = vmatpush3.msra.mxu1 %v8743_v37  ;;  %v9204_v30 = vpop.permute.xlu1 %9203 }
0x485a   :  { %12205 = vmatprep.subr.mxu1 %v8741_v36  ;;  %12234 = vmatprep.subr.msk.mxu0 %vm309_vm2, %v9204_v30 }
0x485b   :  { %v9202_v57 = vpop.permute.xlu0 %9201  ;;  %12206 = vmatpush3.msra.mxu1 %v8741_v36  ;;  %12235 = vmatpush3.xpose.msk.msra.mxu0 %vm309_vm2, %v9204_v30 }
0x485c   :  { %12236 = vmatprep.subr.msk.mxu0 %vm309_vm2, %v9202_v57  ;;  %12210 = vmatprep.subr.mxu1 %v14232_v34 }
0x485f   :  { %12237 = vmatpush3.xpose.msk.msra.mxu0 %vm309_vm2, %v9202_v57  ;;  %v12597_v49 = vpop.eup %12596 }
0x4860   :  { %v8739_v43 = vmul.f32 %v12597_v49, %v12593_v41  ;;  %v14251_v41 = vld [vmem:[%s14508_s3 + $0x148] sm:$0xff] }
0x4861   :  { %v12599_v4 = vpop.eup %12598 }
0x4862   :  { %12239 = vmatmul.mubr.msk.f32.vlgmr.msra.gmra.mxu0 %vm309_vm2, %v14207_v51  ;;  %v8738_v42 = vmul.f32 %v12599_v4, %v12595_v18 }
0x4864   :  { %12207 = vmatprep.mubr.msk.f32.mxu1 %vm5342_vm11, %v8738_v42 }
0x4865   :  { %12208 = vmatmul.mubr.msk.f32.vlgmr.msra.gmra.mxu1 %vm5342_vm11, %v8739_v43 }
0x4866   :  { %12211 = vmatpush3.msra.mxu1 %v14232_v34 }
0x488a   :  { %v9008_v45 = vpop.xlane.xlu1 %9007 }
0x488b   :  { %v9012_v47 = vsub.f32 %v9004_v24, %v9008_v45 }
0x488c   :  { %v9011_v59 = vpop.xlane.xlu0 %9010 }
0x488d   :  { %v9014_v60 = vmul.f32 1.442695, %v9012_v47  ;;  %v9013_v7 = vsub.f32 %v9005_v23, %v9011_v59 }
0x488f   :  { %12600 = vpow2.f32 %v9014_v60  ;;  %v9016_v3 = vmul.f32 1.442695, %v9013_v7 }
0x4891   :  { %12602 = vpow2.f32 %v9016_v3 }
0x489c   :  { %v12601_v54 = vpop.eup %12600 }
0x489d   :  { %v9018_v31 = vsel %vm5342_vm11, %v12601_v54, 0.0 }
0x489e   :  { %v12603_v29 = vpop.eup %12602  ;;  %9019 = vadd.xlane.f32.xlu0 %v9018_v31 }
0x489f   :  { %v9021_v62 = vsel %vm5342_vm11, %v12603_v29, 0.0 }
0x48a0   :  { %9022 = vadd.xlane.f32.xlu1 %v9021_v62 }
0x48b1   :  { %9028 = vrot.lane.b32.xlu1 %v14072_v32, %s12676_s17 }
0x48b4   :  { %9030 = vrot.lane.b32.xlu0 %v14077_v14, %s12676_s17 }
0x4922   :  { %v12240_v6 = vpop.f32.mrf.mxu0 }
0x4923   :  { %v9289_v56 = vmul.f32 0.35355338, %v12240_v6 }
0x4924   :  { %v9279_v10 = vpop.f32.mrf.mxu0 }
0x4925   :  { %v9291_v11 = vadd.f32 %v9289_v56, %v13770_v63  ;;  %v9288_v52 = vmul.f32 0.35355338, %v9279_v10  ;;  %v12209_v46 = vpop.f32.mrf.mxu1 }
0x4927   :  { %v9290_v28 = vadd.f32 %v9288_v52, %v13773_v12  ;;  %v8818_v22 = vpop.f32.mrf.mxu1  ;;  %v9020_v61 = vpop.xlane.xlu0 %9019  ;;  %v9295_v15 = vsel %vm5342_vm11, %v9291_v11, -inf }
0x4928   :  { %12604 = vrcp.f32 %v9020_v61  ;;  %12212 = vmatprep.mubr.msk.f32.mxu1 %vm309_vm2, %v8818_v22  ;;  %9296 = vmax.xlane.f32.xlu0 %v9295_v15 }
0x4929   :  { %12213 = vmatmul.mubr.msk.f32.vlgmr.msra.gmra.mxu1 %vm309_vm2, %v12209_v46  ;;  %v9023_v32 = vpop.xlane.xlu1 %9022  ;;  %v9292_v14 = vsel %vm5342_vm11, %v9290_v28, -inf }
0x492a   :  { %12606 = vrcp.f32 %v9023_v32  ;;  %9293 = vmax.xlane.f32.xlu1 %v9292_v14 }
0x492b   :  { %v9031_v55 = vpop.permute.xlu0 %9030 }
0x492c   :  { %12222 = vmatprep.subr.mxu1 %v9031_v55 }
0x492d   :  { %12223 = vmatpush3.msra.mxu1 %v9031_v55  ;;  %v9029_v35 = vpop.permute.xlu1 %9028 }
0x492e   :  { %12224 = vmatprep.subr.mxu1 %v9029_v35 }
0x492f   :  { %12225 = vmatpush3.msra.mxu1 %v9029_v35 }
0x4930   :  { %12229 = vmatprep.subr.mxu1 %v14251_v41 }
0x4935   :  { %v12605_v13 = vpop.eup %12604 }
0x4936   :  { %v9026_v40 = vmul.f32 %v12605_v13, %v12601_v54 }
0x4937   :  { %v12607_v27 = vpop.eup %12606 }
0x4938   :  { %12226 = vmatprep.mubr.msk.f32.mxu1 %vm5342_vm11, %v9026_v40  ;;  %v9027_v16 = vmul.f32 %v12607_v27, %v12603_v29 }
0x493a   :  { %12227 = vmatmul.mubr.msk.f32.vlgmr.msra.gmra.mxu1 %vm5342_vm11, %v9027_v16 }
0x493b   :  { %12230 = vmatpush3.msra.mxu1 %v14251_v41 }
0x49b1   :  { %v9297_v17 = vpop.xlane.xlu0 %9296 }
0x49b2   :  { %v9299_v18 = vsub.f32 %v9291_v11, %v9297_v17 }
0x49b3   :  { %v9294_v26 = vpop.xlane.xlu1 %9293 }
0x49b4   :  { %v9302_v50 = vmul.f32 1.442695, %v9299_v18  ;;  %v9298_v19 = vsub.f32 %v9290_v28, %v9294_v26 }
0x49b6   :  { %12608 = vpow2.f32 %v9302_v50  ;;  %v9300_v20 = vmul.f32 1.442695, %v9298_v19 }
0x49b8   :  { %12610 = vpow2.f32 %v9300_v20 }
0x49c3   :  { %v12609_v21 = vpop.eup %12608 }
0x49c4   :  { %v9307_v24 = vsel %vm5342_vm11, %v12609_v21, 0.0 }
0x49c5   :  { %v12611_v23 = vpop.eup %12610  ;;  %9308 = vadd.xlane.f32.xlu1 %v9307_v24 }
0x49c6   :  { %v9304_v58 = vsel %vm5342_vm11, %v12611_v23, 0.0 }
0x49c7   :  { %9305 = vadd.xlane.f32.xlu0 %v9304_v58 }
0x49d6   :  { %9314 = vrot.lane.b32.xlu1 %v14188_v8, %s12668_s30 }
0x49da   :  { %9407 = vrot.lane.b32.xlu1 %v14207_v51, %s12667_s29 }
0x49dd   :  { %9316 = vrot.lane.b32.xlu0 %v14207_v51, %s12668_s30 }
0x49de   :  { %9401 = vrot.lane.b32.xlu1 %v14188_v8, %s12669_s5 }
0x49e1   :  { %9405 = vrot.lane.b32.xlu0 %v14188_v8, %s12667_s29 }
0x49e5   :  { %9403 = vrot.lane.b32.xlu0 %v14207_v51, %s12669_s5 }
0x49e9   :  { %v12214_v5 = vpop.f32.mrf.mxu1 }
0x49ea   :  { %v8910_v33 = vadd.f32 %v12214_v5, %v14193_v1 }
0x49eb   :  { %v8900_v36 = vpop.f32.mrf.mxu1 }
0x49ec   :  { %v14271_v37 = vadd.f32 %v8900_v36, %v8615_v25 }
0x49fa   :  { %v12228_v30 = vpop.f32.mrf.mxu1 }
0x49fc   :  { %v9106_v57 = vpop.f32.mrf.mxu1 }
0x49fd   :  { %12231 = vmatprep.mubr.msk.f32.mxu1 %vm309_vm2, %v9106_v57 }
0x49fe   :  { %12232 = vmatmul.mubr.msk.f32.vlgmr.msra.gmra.mxu1 %vm309_vm2, %v12228_v30 }
0x4a4e   :  { %v9309_v49 = vpop.xlane.xlu1 %9308 }
0x4a4f   :  { %12612 = vrcp.f32 %v9309_v49 }
0x4a50   :  { %v9306_v4 = vpop.xlane.xlu0 %9305 }
0x4a51   :  { %12614 = vrcp.f32 %v9306_v4 }
0x4a52   :  { %v9315_v42 = vpop.permute.xlu1 %9314 }
0x4a54   :  { %v9317_v43 = vpop.permute.xlu0 %9316 }
0x4a55   :  { %12241 = vmatprep.subr.mxu1 %v9317_v43 }
0x4a56   :  { %12242 = vmatpush3.msra.mxu1 %v9317_v43  ;;  %v9408_v9 = vpop.permute.xlu1 %9407 }
0x4a57   :  { %12243 = vmatprep.subr.mxu1 %v9315_v42 }
0x4a58   :  { %12244 = vmatpush3.msra.mxu1 %v9315_v42  ;;  %v9406_v7 = vpop.permute.xlu0 %9405 }
0x4a59   :  { %12248 = vmatprep.subr.msk.mxu1 %vm309_vm2, %v9408_v9 }
0x4a5a   :  { %v9402_v60 = vpop.permute.xlu1 %9401 }
0x4a5c   :  { %v12613_v1 = vpop.eup %12612  ;;  %v9404_v3 = vpop.permute.xlu0 %9403 }
0x4a5d   :  { %v9313_v59 = vmul.f32 %v12613_v1, %v12609_v21 }
0x4a5e   :  { %v12615_v45 = vpop.eup %12614 }
0x4a5f   :  { %v9312_v47 = vmul.f32 %v12615_v45, %v12611_v23 }
0x4a61   :  { %12245 = vmatprep.mubr.msk.f32.mxu1 %vm5342_vm11, %v9312_v47 }
0x4a62   :  { %12246 = vmatmul.mubr.msk.f32.vlgmr.msra.gmra.mxu1 %vm5342_vm11, %v9313_v59 }
0x4a63   :  { %12249 = vmatpush3.xpose.msk.msra.mxu1 %vm309_vm2, %v9408_v9  ;;  %12252 = vmatprep.mubr.msk.f32.mxu1 %vm309_vm2, %v9402_v60 }
0x4a64   :  { %12250 = vmatprep.subr.msk.mxu1 %vm309_vm2, %v9406_v7 }
0x4a67   :  { %12251 = vmatpush3.xpose.msk.msra.mxu1 %vm309_vm2, %v9406_v7 }
0x4a68   :  { %12267 = vmatprep.subr.mxu1 %v14168_v48 }
0x4a6a   :  { %12253 = vmatmul.mubr.msk.f32.vlgmr.msra.gmra.mxu1 %vm309_vm2, %v9404_v3 }
0x4a6b   :  { %12268 = vmatpush3.msra.mxu1 %v14168_v48 }
0x4abe   :  { %v12233_v54 = vpop.f32.mrf.mxu1 }
0x4abf   :  { %v14285_v31 = vadd.f32 %v12233_v54, %v8910_v33 }
0x4ac0   :  { %v14287_v29 = vpop.f32.mrf.mxu1 }
0x4b22   :  { %v12247_v62 = vpop.f32.mrf.mxu1 }
0x4b24   :  { %v9392_v6 = vpop.f32.mrf.mxu1 }
0x4b25   :  { %12269 = vmatprep.mubr.msk.f32.mxu1 %vm309_vm2, %v9392_v6 }
0x4b26   :  { %12270 = vmatmul.mubr.msk.f32.vlgmr.msra.gmra.mxu1 %vm309_vm2, %v12247_v62 }
0x4b2a   :  { %v12254_v53 = vpop.f32.mrf.mxu1 }
0x4b2b   :  { %v9493_v56 = vmul.f32 0.35355338, %v12254_v53 }
0x4b2c   :  { %v9483_v10 = vpop.f32.mrf.mxu1 }
0x4b2d   :  { %v9495_v11 = vadd.f32 %v9493_v56, %v13770_v63  ;;  %v9492_v52 = vmul.f32 0.35355338, %v9483_v10 }
0x4b2f   :  { %v9494_v46 = vadd.f32 %v9492_v52, %v13773_v12  ;;  %v9499_v48 = vsel %vm5342_vm11, %v9495_v11, -inf }
0x4b30   :  { %9500 = vmax.xlane.f32.xlu0 %v9499_v48 }
0x4b31   :  { %v9496_v28 = vsel %vm5342_vm11, %v9494_v46, -inf }
0x4b32   :  { %9497 = vmax.xlane.f32.xlu1 %v9496_v28 }
0x4bb9   :  { %v9501_v22 = vpop.xlane.xlu0 %9500 }
0x4bba   :  { %v9503_v61 = vsub.f32 %v9495_v11, %v9501_v22 }
0x4bbb   :  { %v9498_v15 = vpop.xlane.xlu1 %9497 }
0x4bbc   :  { %v9506_v32 = vmul.f32 1.442695, %v9503_v61  ;;  %v9502_v14 = vsub.f32 %v9494_v46, %v9498_v15 }
0x4bbe   :  { %12616 = vpow2.f32 %v9506_v32  ;;  %v9504_v55 = vmul.f32 1.442695, %v9502_v14 }
0x4bc0   :  { %12618 = vpow2.f32 %v9504_v55 }
0x4bcb   :  { %v12617_v35 = vpop.eup %12616 }
0x4bcc   :  { %v9511_v13 = vsel %vm5342_vm11, %v12617_v35, 0.0 }
0x4bcd   :  { %v12619_v40 = vpop.eup %12618  ;;  %9512 = vadd.xlane.f32.xlu1 %v9511_v13 }
0x4bce   :  { %v9508_v27 = vsel %vm5342_vm11, %v12619_v40, 0.0 }
0x4bcf   :  { %9509 = vadd.xlane.f32.xlu0 %v9508_v27 }
0x4bde   :  { %9518 = vrot.lane.b32.xlu1 %v14188_v8, %s12670_s6 }
0x4be2   :  { %9773 = vrot.lane.b32.xlu1 %v14207_v51, %s12672_s8 }
0x4be5   :  { %9520 = vrot.lane.b32.xlu0 %v14207_v51, %s12670_s6 }
0x4be6   :  { %9767 = vrot.lane.b32.xlu1 %v14188_v8, %s12671_s7 }
0x4be9   :  { %9771 = vrot.lane.b32.xlu0 %v14188_v8, %s12672_s8 }
0x4bea   :  { %10060 = vrot.lane.b32.xlu1 %v14207_v51, %s12673_s12 }
0x4bed   :  { %9769 = vrot.lane.b32.xlu0 %v14207_v51, %s12671_s7 }
0x4bee   :  { %10054 = vrot.lane.b32.xlu1 %v14188_v8, %s12674_s13 }
0x4bf1   :  { %10058 = vrot.lane.b32.xlu0 %v14188_v8, %s12673_s12 }
0x4bf5   :  { %10056 = vrot.lane.b32.xlu0 %v14207_v51, %s12674_s13 }
0x4c56   :  { %v9513_v16 = vpop.xlane.xlu1 %9512 }
0x4c57   :  { %12620 = vrcp.f32 %v9513_v16 }
0x4c58   :  { %v9510_v17 = vpop.xlane.xlu0 %9509 }
0x4c59   :  { %12622 = vrcp.f32 %v9510_v17 }
0x4c5a   :  { %v9519_v26 = vpop.permute.xlu1 %9518 }
0x4c5c   :  { %v9521_v18 = vpop.permute.xlu0 %9520 }
0x4c5d   :  { %12255 = vmatprep.subr.mxu0 %v9521_v18 }
0x4c5e   :  { %12256 = vmatpush3.msra.mxu0 %v9521_v18  ;;  %v9774_v24 = vpop.permute.xlu1 %9773 }
0x4c5f   :  { %12257 = vmatprep.subr.mxu0 %v9519_v26 }
0x4c60   :  { %12258 = vmatpush3.msra.mxu0 %v9519_v26  ;;  %v9772_v5 = vpop.permute.xlu0 %9771 }
0x4c61   :  { %12262 = vmatprep.subr.mxu0 %v14158_v2 }
0x4c62   :  { %v9768_v23 = vpop.permute.xlu1 %9767 }
0x4c64   :  { %v12621_v50 = vpop.eup %12620  ;;  %v9770_v36 = vpop.permute.xlu0 %9769 }
0x4c65   :  { %v9517_v21 = vmul.f32 %v12621_v50, %v12617_v35 }
0x4c66   :  { %v12623_v19 = vpop.eup %12622  ;;  %v10061_v33 = vpop.permute.xlu1 %10060 }
0x4c67   :  { %v9516_v20 = vmul.f32 %v12623_v19, %v12619_v40 }
0x4c68   :  { %v10059_v30 = vpop.permute.xlu0 %10058 }
0x4c69   :  { %12259 = vmatprep.mubr.msk.f32.mxu0 %vm5342_vm11, %v9516_v20 }
0x4c6a   :  { %12260 = vmatmul.mubr.msk.f32.vlgmr.msra.gmra.mxu0 %vm5342_vm11, %v9517_v21 }
0x4c6b   :  { %12263 = vmatpush3.msra.mxu0 %v14158_v2  ;;  %v10055_v2 = vpop.permute.xlu1 %10054 }
0x4c6c   :  { %12272 = vmatprep.subr.msk.mxu0 %vm309_vm2, %v9774_v24  ;;  %v10057_v57 = vpop.permute.xlu0 %10056 }
0x4d2a   :  { %v12261_v58 = vpop.f32.mrf.mxu0 }
0x4d2c   :  { %v9596_v25 = vpop.f32.mrf.mxu0 }
0x4d2d   :  { %12264 = vmatprep.mubr.msk.f32.mxu0 %vm309_vm2, %v9596_v25 }
0x4d2e   :  { %12265 = vmatmul.mubr.msk.f32.vlgmr.msra.gmra.mxu0 %vm309_vm2, %v12261_v58 }
0x4d2f   :  { %12273 = vmatpush3.xpose.msk.msra.mxu0 %vm309_vm2, %v9774_v24  ;;  %12276 = vmatprep.mubr.msk.f32.mxu0 %vm309_vm2, %v9768_v23 }
0x4d30   :  { %12274 = vmatprep.subr.msk.mxu0 %vm309_vm2, %v9772_v5 }
0x4d33   :  { %12275 = vmatpush3.xpose.msk.msra.mxu0 %vm309_vm2, %v9772_v5  ;;  %v9197_v5 = vadd.f32 %v14287_v29, %v14271_v37 }
0x4d34   :  { %12291 = vmatprep.subr.msk.mxu0 %vm309_vm2, %v10061_v33 }
0x4d36   :  { %12277 = vmatmul.mubr.msk.f32.vlgmr.msra.gmra.mxu0 %vm309_vm2, %v9770_v36 }
0x4d37   :  { %12292 = vmatpush3.xpose.msk.msra.mxu0 %vm309_vm2, %v10061_v33  ;;  %12295 = vmatprep.mubr.msk.f32.mxu0 %vm309_vm2, %v10055_v2 }
0x4d38   :  { %12293 = vmatprep.subr.msk.mxu0 %vm309_vm2, %v10059_v30 }
0x4d3b   :  { %12294 = vmatpush3.xpose.msk.msra.mxu0 %vm309_vm2, %v10059_v30 }
0x4d3e   :  { %12296 = vmatmul.mubr.msk.f32.vlgmr.msra.gmra.mxu0 %vm309_vm2, %v10057_v57 }
0x4dee   :  { %v14335_v49 = vpop.f32.mrf.mxu0 }
0x4df0   :  { %v14337_v4 = vpop.f32.mrf.mxu0 }
0x4df6   :  { %v12278_v42 = vpop.f32.mrf.mxu0 }
0x4df7   :  { %v9859_v43 = vmul.f32 0.35355338, %v12278_v42 }
0x4df8   :  { %v9849_v9 = vpop.f32.mrf.mxu0 }
0x4df9   :  { %v9861_v1 = vadd.f32 %v9859_v43, %v13770_v63  ;;  %v9858_v45 = vmul.f32 0.35355338, %v9849_v9 }
0x4dfb   :  { %v9860_v47 = vadd.f32 %v9858_v45, %v13773_v12  ;;  %v9865_v59 = vsel %vm5342_vm11, %v9861_v1, -inf }
0x4dfc   :  { %9866 = vmax.xlane.f32.xlu0 %v9865_v59 }
0x4dfd   :  { %v9862_v60 = vsel %vm5342_vm11, %v9860_v47, -inf }
0x4dfe   :  { %9863 = vmax.xlane.f32.xlu1 %v9862_v60  ;;  %v12297_v46 = vpop.f32.mrf.mxu0 }
0x4dff   :  { %v10146_v22 = vmul.f32 0.35355338, %v12297_v46 }
0x4e00   :  { %v10136_v48 = vpop.f32.mrf.mxu0 }
0x4e01   :  { %v10145_v28 = vmul.f32 0.35355338, %v10136_v48  ;;  %v10148_v15 = vadd.f32 %v10146_v22, %v13770_v63 }
0x4e03   :  { %v10147_v61 = vadd.f32 %v10145_v28, %v13773_v12  ;;  %v10152_v14 = vsel %vm5342_vm11, %v10148_v15, -inf }
0x4e05   :  { %v10149_v32 = vsel %vm5342_vm11, %v10147_v61, -inf }
0x4e85   :  { %v9867_v7 = vpop.xlane.xlu0 %9866 }
0x4e86   :  { %v9869_v3 = vsub.f32 %v9861_v1, %v9867_v7 }
0x4e87   :  { %v9864_v54 = vpop.xlane.xlu1 %9863 }
0x4e88   :  { %v9872_v62 = vmul.f32 1.442695, %v9869_v3  ;;  %v9868_v6 = vsub.f32 %v9860_v47, %v9864_v54 }
0x4e8a   :  { %12624 = vpow2.f32 %v9872_v62  ;;  %v9870_v53 = vmul.f32 1.442695, %v9868_v6 }
0x4e8c   :  { %12626 = vpow2.f32 %v9870_v53 }
0x4e97   :  { %v12625_v56 = vpop.eup %12624 }
0x4e98   :  { %v9877_v10 = vsel %vm5342_vm11, %v12625_v56, 0.0 }
0x4e99   :  { %v12627_v11 = vpop.eup %12626  ;;  %9878 = vadd.xlane.f32.xlu1 %v9877_v10 }
0x4e9a   :  { %v9874_v52 = vsel %vm5342_vm11, %v12627_v11, 0.0 }
0x4e9b   :  { %9875 = vadd.xlane.f32.xlu0 %v9874_v52 }
0x4eaa   :  { %9884 = vrot.lane.b32.xlu1 %v14188_v8, %s12675_s14 }
0x4eb1   :  { %9886 = vrot.lane.b32.xlu0 %v14207_v51, %s12675_s14 }
0x4ece   :  { %10150 = vmax.xlane.f32.xlu1 %v10149_v32 }
0x4ed0   :  { %10153 = vmax.xlane.f32.xlu0 %v10152_v14 }
0x4f22   :  { %v9879_v55 = vpop.xlane.xlu1 %9878 }
0x4f23   :  { %12628 = vrcp.f32 %v9879_v55 }
0x4f24   :  { %v9876_v35 = vpop.xlane.xlu0 %9875 }
0x4f25   :  { %12630 = vrcp.f32 %v9876_v35 }
0x4f26   :  { %v9885_v40 = vpop.permute.xlu1 %9884 }
0x4f28   :  { %v9887_v13 = vpop.permute.xlu0 %9886 }
0x4f29   :  { %12279 = vmatprep.subr.mxu1 %v9887_v13 }
0x4f2a   :  { %12280 = vmatpush3.msra.mxu1 %v9887_v13 }
0x4f2b   :  { %12281 = vmatprep.subr.mxu1 %v9885_v40 }
0x4f2c   :  { %12282 = vmatpush3.msra.mxu1 %v9885_v40 }
0x4f2d   :  { %12286 = vmatprep.subr.mxu1 %v14232_v34 }
0x4f30   :  { %v12629_v12 = vpop.eup %12628 }
0x4f31   :  { %v9883_v16 = vmul.f32 %v12629_v12, %v12625_v56  ;;  %v10425_v12 = vld [vmem:[%s14508_s3 + $0x168] sm:$0xff] }
0x4f32   :  { %v12631_v63 = vpop.eup %12630 }
0x4f33   :  { %v9882_v27 = vmul.f32 %v12631_v63, %v12627_v11  ;;  %v10424_v63 = vld [vmem:[%s14508_s3 + $0x160] sm:$0xff] }
0x4f35   :  { %12283 = vmatprep.mubr.msk.f32.mxu1 %vm5342_vm11, %v9882_v27 }
0x4f36   :  { %12284 = vmatmul.mubr.msk.f32.vlgmr.msra.gmra.mxu1 %vm5342_vm11, %v9883_v16 }
0x4f37   :  { %12287 = vmatpush3.msra.mxu1 %v14232_v34  ;;  %v11134_v34 = vld [vmem:[%s14508_s3 + $0x128] ss:$0 sm:$0xff] }
0x4f38   :  { %v10347_v25 = vadd.f32 %v11134_v34, %v14285_v31  ;;  %v10346_v33 = vadd.f32 %v11134_v34, %v9197_v5 }
0x4f3a   :  { %v10351_v36 = vadd.f32 %v10347_v25, %v14052_v44  ;;  %v10350_v2 = vadd.f32 %v10346_v33, %v14050_v0 }
0x4f3c   :  { %v10359_v30 = vsel %vm132_vm0, %v10351_v36, 0.0 }
0x4f57   :  { %v10151_v17 = vpop.xlane.xlu1 %10150 }
0x4f58   :  { %v10155_v18 = vsub.f32 %v10147_v61, %v10151_v17 }
0x4f59   :  { %v10154_v26 = vpop.xlane.xlu0 %10153 }
0x4f5a   :  { %v10157_v50 = vmul.f32 1.442695, %v10155_v18  ;;  %v10156_v19 = vsub.f32 %v10148_v15, %v10154_v26 }
0x4f5c   :  { %12632 = vpow2.f32 %v10157_v50  ;;  %v10159_v20 = vmul.f32 1.442695, %v10156_v19 }
0x4f5e   :  { %12634 = vpow2.f32 %v10159_v20 }
0x4f69   :  { %v12633_v21 = vpop.eup %12632 }
0x4f6a   :  { %v10161_v24 = vsel %vm5342_vm11, %v12633_v21, 0.0 }
0x4f6b   :  { %v12635_v23 = vpop.eup %12634  ;;  %10162 = vadd.xlane.f32.xlu0 %v10161_v24 }
0x4f6c   :  { %v10164_v58 = vsel %vm5342_vm11, %v12635_v23, 0.0 }
0x4f6d   :  { %10165 = vadd.xlane.f32.xlu1 %v10164_v58 }
0x4f7e   :  { %10171 = vrot.lane.b32.xlu1 %v14188_v8, %s12676_s17  ;;  %v10356_v8 = vsel %vm132_vm0, %v10350_v2, 0.0 }
0x4f81   :  { %10173 = vrot.lane.b32.xlu0 %v14207_v51, %s12676_s17  ;;  %v12271_v51 = vpop.f32.mrf.mxu1 }
0x4f82   :  { %v9764_v47 = vadd.f32 %v12271_v51, %v14335_v49 }
0x4f83   :  { %v9758_v57 = vpop.f32.mrf.mxu1 }
0x4f84   :  { %v9759_v60 = vadd.f32 %v9758_v57, %v14337_v4 }
0x4fa0   :  { %10360 = vadd.xlane.f32.xlu0 %v10359_v30  ;;  %v11135_v30 = vld [vmem:[%s14508_s3 + $0x120] ss:$0 sm:$0xff] }
0x4fa2   :  { %10357 = vadd.xlane.f32.xlu1 %v10356_v8 }
0x4ff4   :  { %v10163_v42 = vpop.xlane.xlu0 %10162 }
0x4ff5   :  { %12636 = vrcp.f32 %v10163_v42  ;;  %v11136_v42 = vld [vmem:[%s14508_s3 + $0x118] ss:$0 sm:$0xff] }
0x4ff6   :  { %v12285_v43 = vpop.f32.mrf.mxu1  ;;  %v10166_v9 = vpop.xlane.xlu1 %10165 }
0x4ff7   :  { %12638 = vrcp.f32 %v10166_v9 }
0x4ff8   :  { %v9962_v37 = vpop.f32.mrf.mxu1  ;;  %v10174_v31 = vpop.permute.xlu0 %10173 }
0x4ff9   :  { %12288 = vmatprep.mubr.msk.f32.mxu1 %vm309_vm2, %v9962_v37  ;;  %12298 = vmatprep.subr.mxu1 %v10174_v31 }
0x4ffa   :  { %12289 = vmatmul.mubr.msk.f32.vlgmr.msra.gmra.mxu1 %vm309_vm2, %v12285_v43  ;;  %v10172_v0 = vpop.permute.xlu1 %10171 }
0x4ffb   :  { %12299 = vmatpush3.msra.mxu1 %v10174_v31  ;;  %v10573_v31 = vld [vmem:[%s14508_s3 + $0x1d0] sm:$0xff] }
0x4ffc   :  { %12300 = vmatprep.subr.mxu1 %v10172_v0 }
0x4ffd   :  { %12301 = vmatpush3.msra.mxu1 %v10172_v0  ;;  %v10572_v0 = vld [vmem:[%s14508_s3 + $0x1c8] sm:$0xff] }
0x4ffe   :  { %12305 = vmatprep.subr.mxu1 %v14251_v41 }
0x5002   :  { %v12637_v44 = vpop.eup %12636 }
0x5003   :  { %v10169_v29 = vmul.f32 %v12637_v44, %v12633_v21  ;;  %v10571_v44 = vld [vmem:[%s14508_s3 + $0x1c0] sm:$0xff] }
0x5004   :  { %v12639_v1 = vpop.eup %12638 }
0x5005   :  { %v10170_v45 = vmul.f32 %v12639_v1, %v12635_v23  ;;  %12302 = vmatprep.mubr.msk.f32.mxu1 %vm5342_vm11, %v10169_v29  ;;  %v10570_v29 = vld [vmem:[%s14508_s3 + $0x1b8] sm:$0xff]  ;;  %v10569_v1 = vld [vmem:[%s14508_s3 + $0x1b0] sm:$0xff] }
0x5007   :  { %12303 = vmatmul.mubr.msk.f32.vlgmr.msra.gmra.mxu1 %vm5342_vm11, %v10170_v45  ;;  %v10568_v45 = vld [vmem:[%s14508_s3 + $0x1a8] sm:$0xff] }
0x5008   :  { %12306 = vmatpush3.msra.mxu1 %v14251_v41 }
0x5009   :  { %12324 = vmatprep.subr.mxu1 %v10573_v31 }
0x5029   :  { %v10361_v53 = vpop.xlane.xlu0 %10360 }
0x502a   :  { %v10369_v10 = vmul.f32 0.03125, %v10361_v53 }
0x502b   :  { %v10358_v56 = vpop.xlane.xlu1 %10357 }
0x502c   :  { %v10368_v52 = vmul.f32 0.03125, %v10358_v56  ;;  %v10373_v49 = vsub.f32 %v10351_v36, %v10369_v10 }
0x502e   :  { %v10372_v4 = vsub.f32 %v10350_v2, %v10368_v52  ;;  %v10377_v14 = vmul.f32 %v10373_v49, %v10373_v49 }
0x5030   :  { %v10376_v35 = vmul.f32 %v10372_v4, %v10372_v4  ;;  %v10383_v13 = vsel %vm132_vm0, %v10377_v14, 0.0 }
0x5032   :  { %v10380_v40 = vsel %vm132_vm0, %v10376_v35, 0.0 }
0x50ba   :  { %v12290_v59 = vpop.f32.mrf.mxu1 }
0x50bb   :  { %v10053_v7 = vadd.f32 %v12290_v59, %v9764_v47  ;;  %v10567_v47 = vld [vmem:[%s14508_s3 + $0x1a0] sm:$0xff]  ;;  %v10566_v59 = vld [vmem:[%s14508_s3 + $0x198] sm:$0xff] }
0x50bc   :  { %v10043_v3 = vpop.f32.mrf.mxu1 }
0x50bd   :  { %v10052_v54 = vadd.f32 %v10043_v3, %v9759_v60 }
0x50c7   :  { %v12304_v62 = vpop.f32.mrf.mxu1 }
0x50c9   :  { %v10249_v6 = vpop.f32.mrf.mxu1 }
0x50ca   :  { %12307 = vmatprep.mubr.msk.f32.mxu1 %vm309_vm2, %v10249_v6 }
0x50cb   :  { %12308 = vmatmul.mubr.msk.f32.vlgmr.msra.gmra.mxu1 %vm309_vm2, %v12304_v62 }
0x50cc   :  { %12325 = vmatpush3.msra.mxu1 %v10573_v31 }
0x50cd   :  { %12326 = vmatprep.subr.mxu1 %v10572_v0 }
0x50ce   :  { %12327 = vmatpush3.msra.mxu1 %v10572_v0 }
0x50cf   :  { %12328 = vmatprep.subr.mxu1 %v10571_v44 }
0x50d0   :  { %12329 = vmatpush3.msra.mxu1 %v10571_v44 }
0x50d1   :  { %12330 = vmatprep.subr.mxu1 %v10570_v29 }
0x50d2   :  { %12331 = vmatpush3.msra.mxu1 %v10570_v29 }
0x50d3   :  { %12332 = vmatprep.subr.mxu1 %v10569_v1 }
0x50d4   :  { %12333 = vmatpush3.msra.mxu1 %v10569_v1 }
0x50d5   :  { %12334 = vmatprep.subr.mxu1 %v10568_v45 }
0x50d6   :  { %12335 = vmatpush3.msra.mxu1 %v10568_v45  ;;  %v11142_v45 = vld [vmem:[%s14508_s3 + $0x180] ss:$0 sm:$0xff] }
0x50d7   :  { %12336 = vmatprep.subr.mxu1 %v10567_v47 }
0x50d8   :  { %12337 = vmatpush3.msra.mxu1 %v10567_v47 }
0x50d9   :  { %12338 = vmatprep.subr.mxu1 %v10566_v59 }
0x50da   :  { %12339 = vmatpush3.msra.mxu1 %v10566_v59 }
0x518b   :  { %v12309_v11 = vpop.f32.mrf.mxu1 }
0x518c   :  { %v10340_v41 = vadd.f32 %v12309_v11, %v10053_v7 }
0x518d   :  { %v10330_v46 = vpop.f32.mrf.mxu1 }
0x518e   :  { %v10349_v48 = vadd.f32 %v11134_v34, %v10340_v41  ;;  %v10339_v28 = vadd.f32 %v10330_v46, %v10052_v54 }
0x5190   :  { %v10348_v22 = vadd.f32 %v11134_v34, %v10339_v28  ;;  %v10353_v61 = vadd.f32 %v10349_v48, %v14098_v39  ;;  %v10427_v39 = vld [vmem:[%s14508_s3 + $0x178] sm:$0xff] }
0x5191   :  { %12310 = vmatprep.subr.mxu0 %v10427_v39  ;;  %v11137_v48 = vld [vmem:[%s14508_s3 + $0x158] ss:$0 sm:$0xff] }
0x5192   :  { %v10365_v15 = vsel %vm132_vm0, %v10353_v61, 0.0  ;;  %v10352_v32 = vadd.f32 %v10348_v22, %v14096_v38  ;;  %v10426_v38 = vld [vmem:[%s14508_s3 + $0x170] sm:$0xff]  ;;  %12311 = vmatpush3.msra.mxu0 %v10427_v39 }
0x5193   :  { %10366 = vadd.xlane.f32.xlu1 %v10365_v15  ;;  %12312 = vmatprep.subr.mxu0 %v10426_v38 }
0x5194   :  { %v10362_v55 = vsel %vm132_vm0, %v10352_v32, 0.0  ;;  %12313 = vmatpush3.msra.mxu0 %v10426_v38 }
0x5195   :  { %10363 = vadd.xlane.f32.xlu0 %v10362_v55  ;;  %12314 = vmatprep.subr.mxu0 %v10425_v12 }
0x5196   :  { %12315 = vmatpush3.msra.mxu0 %v10425_v12 }
0x5197   :  { %10384 = vadd.xlane.f32.xlu1 %v10383_v13  ;;  %12316 = vmatprep.subr.mxu0 %v10424_v63 }
0x5198   :  { %12317 = vmatpush3.msra.mxu0 %v10424_v63 }
0x5199   :  { %10381 = vadd.xlane.f32.xlu0 %v10380_v40 }
0x521c   :  { %v10367_v27 = vpop.xlane.xlu1 %10366 }
0x521d   :  { %v10371_v16 = vmul.f32 0.03125, %v10367_v27 }
0x521e   :  { %v10364_v17 = vpop.xlane.xlu0 %10363 }
0x521f   :  { %v10375_v18 = vsub.f32 %v10353_v61, %v10371_v16  ;;  %v10370_v26 = vmul.f32 0.03125, %v10364_v17 }
0x5220   :  { %v10385_v50 = vpop.xlane.xlu1 %10384 }
0x5221   :  { %v10374_v19 = vsub.f32 %v10352_v32, %v10370_v26  ;;  %v10393_v20 = vmul.f32 0.03125, %v10385_v50  ;;  %v10379_v21 = vmul.f32 %v10375_v18, %v10375_v18 }
0x5222   :  { %v10382_v24 = vpop.xlane.xlu0 %10381 }
0x5223   :  { %v10397_v23 = vadd.f32 1e-12, %v10393_v20  ;;  %v10392_v58 = vmul.f32 0.03125, %v10382_v24  ;;  %v10389_v34 = vsel %vm132_vm0, %v10379_v21, 0.0  ;;  %v10378_v5 = vmul.f32 %v10374_v19, %v10374_v19 }
0x5224   :  { %10390 = vadd.xlane.f32.xlu1 %v10389_v34 }
0x5225   :  { %12640 = vrsqrt.f32 %v10397_v23  ;;  %v10396_v25 = vadd.f32 1e-12, %v10392_v58  ;;  %v10386_v33 = vsel %vm132_vm0, %v10378_v5, 0.0 }
0x5226   :  { %10387 = vadd.xlane.f32.xlu0 %v10386_v33 }
0x5227   :  { %12642 = vrsqrt.f32 %v10396_v25 }
0x5232   :  { %v12641_v36 = vpop.eup %12640 }
0x5233   :  { %v10405_v2 = vmul.f32 %v12641_v36, %v10373_v49 }
0x5234   :  { %v12643_v8 = vpop.eup %12642 }
0x5235   :  { %v10404_v51 = vmul.f32 %v12643_v8, %v10372_v4  ;;  %v10413_v57 = vmul.f32 %v11135_v30, %v10405_v2 }
0x5237   :  { %v10412_v43 = vmul.f32 %v11135_v30, %v10404_v51  ;;  %v14411_v37 = vadd.f32 %v11136_v42, %v10413_v57 }
0x5239   :  { %v14409_v9 = vadd.f32 %v11136_v42, %v10412_v43 }
0x523b   :  { %12318 = vmatprep.mubr.msk.f32.mxu0 %vm132_vm0, %v14409_v9 }
0x523c   :  { %12319 = vmatmul.mubr.msk.f32.vlgmr.msra.gmra.mxu0 %vm132_vm0, %v14411_v37 }
0x52ad   :  { %v10391_v60 = vpop.xlane.xlu1 %10390 }
0x52ae   :  { %v10395_v7 = vmul.f32 0.03125, %v10391_v60 }
0x52af   :  { %v10388_v3 = vpop.xlane.xlu0 %10387 }
0x52b0   :  { %v10399_v54 = vadd.f32 1e-12, %v10395_v7  ;;  %v10394_v62 = vmul.f32 0.03125, %v10388_v3 }
0x52b2   :  { %12644 = vrsqrt.f32 %v10399_v54  ;;  %v10398_v6 = vadd.f32 1e-12, %v10394_v62 }
0x52b4   :  { %12646 = vrsqrt.f32 %v10398_v6 }
0x52bf   :  { %v12645_v53 = vpop.eup %12644 }
0x52c0   :  { %v10407_v56 = vmul.f32 %v12645_v53, %v10375_v18 }
0x52c1   :  { %v12647_v10 = vpop.eup %12646 }
0x52c2   :  { %v10406_v11 = vmul.f32 %v12647_v10, %v10374_v19  ;;  %v10415_v52 = vmul.f32 %v11135_v30, %v10407_v56 }
0x52c4   :  { %v10414_v41 = vmul.f32 %v11135_v30, %v10406_v11  ;;  %v14443_v49 = vadd.f32 %v11136_v42, %v10415_v52 }
0x52c6   :  { %v14441_v46 = vadd.f32 %v11136_v42, %v10414_v41 }
0x52c8   :  { %12321 = vmatprep.mubr.msk.f32.mxu0 %vm132_vm0, %v14441_v46 }
0x52c9   :  { %12322 = vmatmul.mubr.msk.f32.gmra.mxu0 %vm132_vm0, %v14443_v49 }
0x52fc   :  { %v12320_v28 = vpop.f32.mrf.mxu0 }
0x52fd   :  { %v10517_v4 = vadd.f32 %v12320_v28, %v11137_v48 }
0x52fe   :  { %v10511_v22 = vpop.f32.mrf.mxu0 }
0x52ff   :  { %v10531_v61 = vmul.f32 %v10517_v4, %v10517_v4  ;;  %v10512_v15 = vadd.f32 %v11137_v48, %v10511_v22 }
0x5301   :  { %v10535_v32 = vmul.f32 %v10531_v61, %v10517_v4  ;;  %v10530_v14 = vmul.f32 %v10512_v15, %v10512_v15 }
0x5303   :  { %v10539_v55 = vmul.f32 0.044715, %v10535_v32  ;;  %v10534_v35 = vmul.f32 %v10530_v14, %v10512_v15 }
0x5305   :  { %v10543_v13 = vadd.f32 %v10539_v55, %v10517_v4  ;;  %v10538_v40 = vmul.f32 0.044715, %v10534_v35  ;;  %v10752_v35 = vld [vmem:[%s14508_s3 + $0x18] sm:$0xff] }
0x5307   :  { %v10547_v39 = vmul.f32 0.7978846, %v10543_v13  ;;  %v10542_v38 = vadd.f32 %v10538_v40, %v10512_v15  ;;  %v10751_v13 = vld [vmem:[%s14508_s3 + $0x10] sm:$0xff]  ;;  %v10750_v40 = vld [vmem:[%s14508_s3 + $0x8] sm:$0xff] }
0x5309   :  { %12648 = vtanh.f32 %v10547_v39  ;;  %v10546_v12 = vmul.f32 0.7978846, %v10542_v38 }
0x530b   :  { %12650 = vtanh.f32 %v10546_v12 }
0x5316   :  { %v12649_v63 = vpop.eup %12648 }
0x5317   :  { %v10555_v27 = vadd.f32 1.0, %v12649_v63 }
0x5318   :  { %v12651_v16 = vpop.eup %12650 }
0x5319   :  { %v10554_v17 = vadd.f32 1.0, %v12651_v16  ;;  %v10559_v18 = vmul.f32 0.5, %v10555_v27 }
0x531b   :  { %v10558_v26 = vmul.f32 0.5, %v10554_v17  ;;  %v10563_v19 = vmul.f32 %v10559_v18, %v10517_v4 }
0x531d   :  { %v10562_v50 = vmul.f32 %v10558_v26, %v10512_v15 }
0x531f   :  { %12340 = vmatprep.mubr.msk.f32.mxu1 %vm2401_vm4, %v10562_v50 }
0x5320   :  { %12341 = vmatmul.mubr.msk.f32.vlgmr.msra.gmra.mxu1 %vm2401_vm4, %v10563_v19 }
0x5389   :  { %v12323_v20 = vpop.f32.mrf.mxu0 }
0x538a   :  { %v10527_v21 = vadd.f32 %v12323_v20, %v11137_v48 }
0x538b   :  { %v10521_v24 = vpop.f32.mrf.mxu0 }
0x538c   :  { %v10533_v23 = vmul.f32 %v10527_v21, %v10527_v21  ;;  %v10522_v58 = vadd.f32 %v11137_v48, %v10521_v24 }
0x538e   :  { %v10537_v34 = vmul.f32 %v10533_v23, %v10527_v21  ;;  %v10532_v5 = vmul.f32 %v10522_v58, %v10522_v58 }
0x5390   :  { %v10541_v25 = vmul.f32 0.044715, %v10537_v34  ;;  %v10536_v33 = vmul.f32 %v10532_v5, %v10522_v58 }
0x5392   :  { %v10545_v36 = vadd.f32 %v10541_v25, %v10527_v21  ;;  %v10540_v2 = vmul.f32 0.044715, %v10536_v33  ;;  %v11147_v25 = vld [vmem:[%s14508_s3 + $0x190] ss:$0 sm:$0xff] }
0x5394   :  { %v10549_v30 = vmul.f32 0.7978846, %v10545_v36  ;;  %v10544_v8 = vadd.f32 %v10540_v2, %v10522_v58 }
0x5396   :  { %12652 = vtanh.f32 %v10549_v30  ;;  %v10548_v51 = vmul.f32 0.7978846, %v10544_v8  ;;  %v11148_v30 = vld [vmem:[%s14508_s3 + $0x188] ss:$0 sm:$0xff] }
0x5398   :  { %12654 = vtanh.f32 %v10548_v51 }
0x53a3   :  { %v12653_v57 = vpop.eup %12652 }
0x53a4   :  { %v10557_v42 = vadd.f32 1.0, %v12653_v57 }
0x53a5   :  { %v12655_v43 = vpop.eup %12654 }
0x53a6   :  { %v10556_v31 = vadd.f32 1.0, %v12655_v43  ;;  %v10561_v0 = vmul.f32 0.5, %v10557_v42 }
0x53a8   :  { %v10560_v44 = vmul.f32 0.5, %v10556_v31  ;;  %v10565_v1 = vmul.f32 %v10561_v0, %v10527_v21 }
0x53aa   :  { %v10564_v29 = vmul.f32 %v10560_v44, %v10522_v58 }
0x53ac   :  { %12343 = vmatprep.mubr.msk.f32.mxu1 %vm2401_vm4, %v10564_v29 }
0x53ad   :  { %12344 = vmatmul.mubr.msk.f32.gmra.mxu1 %vm2401_vm4, %v10565_v1 }
0x53e0   :  { %v12342_v47 = vpop.f32.mrf.mxu1 }
0x53e1   :  { %v10663_v59 = vadd.f32 %v12342_v47, %v11142_v45 }
0x53e2   :  { %v10657_v60 = vpop.f32.mrf.mxu1 }
0x53e3   :  { %v10677_v7 = vadd.f32 %v10663_v59, %v14411_v37  ;;  %v10658_v3 = vadd.f32 %v11142_v45, %v10657_v60 }
0x53e5   :  { %v10676_v54 = vadd.f32 %v10658_v3, %v14409_v9  ;;  %v10685_v62 = vsel %vm132_vm0, %v10677_v7, 0.0 }
0x53e6   :  { %10686 = vadd.xlane.f32.xlu1 %v10685_v62  ;;  %v11149_v62 = vld [vmem:[%s14508_s3] ss:$0 sm:$0xff] }
0x53e7   :  { %v10682_v6 = vsel %vm132_vm0, %v10676_v54, 0.0 }
0x53e8   :  { %10683 = vadd.xlane.f32.xlu0 %v10682_v6 }
0x546d   :  { %v12345_v53 = vpop.f32.mrf.mxu1 }
0x546e   :  { %v10673_v56 = vadd.f32 %v12345_v53, %v11142_v45 }
0x546f   :  { %v10667_v10 = vpop.f32.mrf.mxu1  ;;  %v10687_v11 = vpop.xlane.xlu1 %10686 }
0x5470   :  { %v10679_v52 = vadd.f32 %v10673_v56, %v14443_v49  ;;  %v10668_v41 = vadd.f32 %v11142_v45, %v10667_v10  ;;  %v10695_v48 = vmul.f32 0.03125, %v10687_v11 }
0x5471   :  { %v10684_v28 = vpop.xlane.xlu0 %10683 }
0x5472   :  { %v10678_v37 = vadd.f32 %v10668_v41, %v14441_v46  ;;  %v10699_v4 = vsub.f32 %v10677_v7, %v10695_v48  ;;  %v10694_v22 = vmul.f32 0.03125, %v10684_v28  ;;  %v10691_v9 = vsel %vm132_vm0, %v10679_v52, 0.0  ;;  %v10753_v46 = vld [vmem:[%s14508_s3 + $0x20] sm:$0xff] }
0x5473   :  { %10692 = vadd.xlane.f32.xlu1 %v10691_v9  ;;  %12346 = vmatprep.subr.mxu0 %v10753_v46 }
0x5474   :  { %v10698_v61 = vsub.f32 %v10676_v54, %v10694_v22  ;;  %v10688_v15 = vsel %vm132_vm0, %v10678_v37, 0.0  ;;  %v10703_v32 = vmul.f32 %v10699_v4, %v10699_v4  ;;  %12347 = vmatpush3.msra.mxu0 %v10753_v46 }
0x5475   :  { %10689 = vadd.xlane.f32.xlu0 %v10688_v15  ;;  %12348 = vmatprep.subr.mxu0 %v10752_v35 }
0x5476   :  { %v10709_v14 = vsel %vm132_vm0, %v10703_v32, 0.0  ;;  %v10702_v55 = vmul.f32 %v10698_v61, %v10698_v61  ;;  %12349 = vmatpush3.msra.mxu0 %v10752_v35 }
0x5477   :  { %10710 = vadd.xlane.f32.xlu1 %v10709_v14  ;;  %12350 = vmatprep.subr.mxu0 %v10751_v13 }
0x5478   :  { %v10706_v49 = vsel %vm132_vm0, %v10702_v55, 0.0  ;;  %12351 = vmatpush3.msra.mxu0 %v10751_v13 }
0x5479   :  { %10707 = vadd.xlane.f32.xlu0 %v10706_v49  ;;  %12352 = vmatprep.subr.mxu0 %v10750_v40 }
0x547a   :  { %12353 = vmatpush3.msra.mxu0 %v10750_v40 }
0x54fc   :  { %v10693_v39 = vpop.xlane.xlu1 %10692 }
0x54fd   :  { %v10697_v38 = vmul.f32 0.03125, %v10693_v39 }
0x54fe   :  { %v10690_v12 = vpop.xlane.xlu0 %10689 }
0x54ff   :  { %v10701_v63 = vsub.f32 %v10679_v52, %v10697_v38  ;;  %v10696_v27 = vmul.f32 0.03125, %v10690_v12 }
0x5500   :  { %v10711_v16 = vpop.xlane.xlu1 %10710 }
0x5501   :  { %v10700_v17 = vsub.f32 %v10678_v37, %v10696_v27  ;;  %v10719_v18 = vmul.f32 0.03125, %v10711_v16  ;;  %v10705_v26 = vmul.f32 %v10701_v63, %v10701_v63 }
0x5502   :  { %v10708_v50 = vpop.xlane.xlu0 %10707 }
0x5503   :  { %v10723_v19 = vadd.f32 1e-12, %v10719_v18  ;;  %v10718_v20 = vmul.f32 0.03125, %v10708_v50  ;;  %v10715_v21 = vsel %vm132_vm0, %v10705_v26, 0.0  ;;  %v10704_v24 = vmul.f32 %v10700_v17, %v10700_v17 }
0x5504   :  { %10716 = vadd.xlane.f32.xlu1 %v10715_v21 }
0x5505   :  { %12656 = vrsqrt.f32 %v10723_v19  ;;  %v10722_v23 = vadd.f32 1e-12, %v10718_v20  ;;  %v10712_v58 = vsel %vm132_vm0, %v10704_v24, 0.0 }
0x5506   :  { %10713 = vadd.xlane.f32.xlu0 %v10712_v58 }
0x5507   :  { %12658 = vrsqrt.f32 %v10722_v23 }
0x5512   :  { %v12657_v34 = vpop.eup %12656 }
0x5513   :  { %v10731_v5 = vmul.f32 %v12657_v34, %v10699_v4 }
0x5514   :  { %v12659_v33 = vpop.eup %12658 }
0x5515   :  { %v10730_v36 = vmul.f32 %v12659_v33, %v10698_v61  ;;  %v10739_v2 = vmul.f32 %v11147_v25, %v10731_v5 }
0x5517   :  { %v10738_v8 = vmul.f32 %v11147_v25, %v10730_v36  ;;  %v10747_v57 = vadd.f32 %v11148_v30, %v10739_v2 }
0x5519   :  { %v10746_v51 = vadd.f32 %v11148_v30, %v10738_v8 }
0x551b   :  { %12354 = vmatprep.mubr.msk.f32.mxu0 %vm132_vm0, %v10746_v51 }
0x551c   :  { %12355 = vmatmul.mubr.msk.f32.vlgmr.msra.gmra.mxu0 %vm132_vm0, %v10747_v57 }
0x558d   :  { %v10717_v42 = vpop.xlane.xlu1 %10716 }
0x558e   :  { %v10721_v43 = vmul.f32 0.03125, %v10717_v42 }
0x558f   :  { %v10714_v31 = vpop.xlane.xlu0 %10713 }
0x5590   :  { %v10725_v0 = vadd.f32 1e-12, %v10721_v43  ;;  %v10720_v44 = vmul.f32 0.03125, %v10714_v31 }
0x5592   :  { %12660 = vrsqrt.f32 %v10725_v0  ;;  %v10724_v29 = vadd.f32 1e-12, %v10720_v44 }
0x5594   :  { %12662 = vrsqrt.f32 %v10724_v29 }
0x559f   :  { %v12661_v1 = vpop.eup %12660 }
0x55a0   :  { %v10733_v45 = vmul.f32 %v12661_v1, %v10701_v63 }
0x55a1   :  { %v12663_v47 = vpop.eup %12662 }
0x55a2   :  { %v10732_v59 = vmul.f32 %v12663_v47, %v10700_v17  ;;  %v10741_v60 = vmul.f32 %v11147_v25, %v10733_v45 }
0x55a4   :  { %v10740_v7 = vmul.f32 %v11147_v25, %v10732_v59  ;;  %v10749_v54 = vadd.f32 %v11148_v30, %v10741_v60 }
0x55a6   :  { %v10748_v3 = vadd.f32 %v11148_v30, %v10740_v7 }
0x55a8   :  { %12357 = vmatprep.mubr.msk.f32.mxu0 %vm132_vm0, %v10748_v3 }
0x55a9   :  { %12358 = vmatmul.mubr.msk.f32.gmra.mxu0 %vm132_vm0, %v10749_v54 }
0x55dc   :  { %v12356_v6 = vpop.f32.mrf.mxu0 }
0x55dd   :  { %v10843_v53 = vadd.f32 %v12356_v6, %v11149_v62 }
0x55de   :  { %v10837_v56 = vpop.f32.mrf.mxu0 }
0x55df   :  { %10857 = vst [vmem:[%s14512_s4 + $0x8] sm:$0xff] %v10843_v53  ;;  %v10838_v10 = vadd.f32 %v11149_v62, %v10837_v56 }
0x55e1   :  { %10856 = vst [vmem:[%s14512_s4] sm:$0xff] %v10838_v10 }
0x5669   :  { %v12359_v11 = vpop.f32.mrf.mxu0 }
0x566a   :  { %v10853_v52 = vadd.f32 %v12359_v11, %v11149_v62 }
0x566b   :  { %v10847_v41 = vpop.f32.mrf.mxu0 }
0x566c   :  { %11155 = vst [vmem:[%s14512_s4 + $0x18] sm:$0xff] %v10853_v52  ;;  %v10848_v48 = vadd.f32 %v11149_v62, %v10847_v41 }
0x566e   :  { %11154 = vst [vmem:[%s14512_s4 + $0x10] sm:$0xff] %v10848_v48 }

</bundles_post_ra>
